<compile_context>
chip_gen: v5e
topology: v5e:2x2
jax: 0.10.0
libtpu: 0.0.40
codegen_flags: <defaults>
</compile_context>

<pallas_src>
import math
from functools import partial

import jax
import jax.numpy as jnp
from jax.experimental import pallas as pl
from jax.experimental.pallas import tpu as pltpu


_CH = (32, 48, 48)
_KSIZE = ((3, 7, 7), (3, 7, 7), (3, 5, 5))
_STRIDE = ((2, 2, 2), (2, 2, 2), (2, 2, 2))


def _round_up(x, m):
    return (x + m - 1) // m * m


# ----------------------------------------------------------------------------
# Pallas kernels
# ----------------------------------------------------------------------------
def conv_gemm_stats_kernel(a_ref, w_ref, b_ref, o_ref, sum_ref, ssq_ref, *, tm, m_total):
    """One M-block of (patches @ weights + bias).  Also emits per-block column sum and
    sum-of-squares (masked to valid rows) so the BatchNorm stats need no extra HBM pass."""
    i = pl.program_id(0)
    y = jnp.dot(a_ref[...], w_ref[...], preferred_element_type=jnp.float32) + b_ref[...]
    o_ref[...] = y

    # Mask rows of the (possibly) partial last M block so they don't pollute the stats.
    row = jax.lax.broadcasted_iota(jnp.int32, y.shape, 0) + i * tm
    ym = jnp.where(row < m_total, y, 0.0)
    sum_ref[...] = jnp.sum(ym, axis=0, keepdims=True)[None]
    ssq_ref[...] = jnp.sum(ym * ym, axis=0, keepdims=True)[None]


def bn_relu_kernel(y_ref, scale_ref, shift_ref, o_ref):
    """relu(y * scale + shift) in f32; reads lane-padded channels, stores only real ones
    (as bf16, ready to feed the next layer's im2col / GEMM)."""
    c = o_ref.shape[-1]
    z = jnp.maximum(y_ref[...] * scale_ref[...] + shift_ref[...], 0.0)
    o_ref[...] = z[:, :c].astype(o_ref.dtype)


def fused_mlp_kernel(x_ref, w1_ref, b1_ref, w2_ref, b2_ref, w3_ref, b3_ref, o_ref):
    """fc1+ReLU -> fc2+ReLU -> (dropout p=0 identity) -> fc3, all resident in VMEM."""
    h = jnp.dot(x_ref[...], w1_ref[...], preferred_element_type=jnp.float32) + b1_ref[...]
    h = jnp.maximum(h, 0.0).astype(jnp.bfloat16)
    h = jnp.dot(h, w2_ref[...], preferred_element_type=jnp.float32) + b2_ref[...]
    h = jnp.maximum(h, 0.0).astype(jnp.bfloat16)
    o_ref[...] = jnp.dot(h, w3_ref[...], preferred_element_type=jnp.float32) + b3_ref[...]


# ----------------------------------------------------------------------------
# Pallas wrappers
# ----------------------------------------------------------------------------
def conv_gemm_stats(a, w, b, *, tm):
    """a:(M,Kp) bf16 @ w:(Kp,Np) bf16 + b:(1,Np) f32 -> y:(M,Np) f32 plus per-M-block
    column sum / sum-of-squares (for BatchNorm).  Single K step (full K in VMEM)."""
    m, kp = a.shape
    kp2, np_ = w.shape
    assert kp == kp2
    tm = min(tm, _round_up(m, 8))
    nblk = pl.cdiv(m, tm)
    return pl.pallas_call(
        partial(conv_gemm_stats_kernel, tm=tm, m_total=m),
        out_shape=(jax.ShapeDtypeStruct((m, np_), jnp.float32),
                   jax.ShapeDtypeStruct((nblk, 1, np_), jnp.float32),
                   jax.ShapeDtypeStruct((nblk, 1, np_), jnp.float32)),
        grid_spec=pltpu.PrefetchScalarGridSpec(
            num_scalar_prefetch=0,
            grid=(nblk,),
            in_specs=[
                pl.BlockSpec((tm, kp), lambda i: (i, 0)),
                pl.BlockSpec((kp, np_), lambda i: (0, 0)),
                pl.BlockSpec((1, np_), lambda i: (0, 0)),
            ],
            out_specs=[
                pl.BlockSpec((tm, np_), lambda i: (i, 0)),
                pl.BlockSpec((1, 1, np_), lambda i: (i, 0, 0)),
                pl.BlockSpec((1, 1, np_), lambda i: (i, 0, 0)),
            ],
        ),
        compiler_params=pltpu.CompilerParams(dimension_semantics=("parallel",)),
    )(a, w, b)


def pallas_bn_relu(y, scale, shift, cout, *, tm=512):
    """out = relu(y * scale + shift)[:, :cout] as bf16.  y:(M,Np) f32, scale/shift:(1,Np)."""
    m, np_ = y.shape
    tm = min(tm, _round_up(m, 8))
    nblk = pl.cdiv(m, tm)
    return pl.pallas_call(
        bn_relu_kernel,
        out_shape=jax.ShapeDtypeStruct((m, cout), jnp.bfloat16),
        grid_spec=pltpu.PrefetchScalarGridSpec(
            num_scalar_prefetch=0,
            grid=(nblk,),
            in_specs=[
                pl.BlockSpec((tm, np_), lambda i: (i, 0)),
                pl.BlockSpec((1, np_), lambda i: (0, 0)),
                pl.BlockSpec((1, np_), lambda i: (0, 0)),
            ],
            out_specs=pl.BlockSpec((tm, cout), lambda i: (i, 0)),
        ),
        compiler_params=pltpu.CompilerParams(dimension_semantics=("parallel",)),
    )(y, scale, shift)


def fused_mlp(x, w1, b1, w2, b2, w3, b3):
    """Single Pallas call chaining fc1+ReLU -> fc2+ReLU -> fc3 (weights pre-padded)."""
    bsz, k = x.shape
    bp = _round_up(bsz, 8)
    kp = w1.shape[0]
    xp = jnp.zeros((bp, kp), jnp.bfloat16).at[:bsz, :k].set(x.astype(jnp.bfloat16))
    h1p, h2p, cp = w1.shape[1], w2.shape[1], w3.shape[1]
    return pl.pallas_call(
        fused_mlp_kernel,
        out_shape=jax.ShapeDtypeStruct((bp, cp), jnp.float32),
        grid_spec=pltpu.PrefetchScalarGridSpec(
            num_scalar_prefetch=0,
            grid=(1,),
            in_specs=[
                pl.BlockSpec((bp, kp), lambda i: (0, 0)),
                pl.BlockSpec((kp, h1p), lambda i: (0, 0)),
                pl.BlockSpec((1, h1p), lambda i: (0, 0)),
                pl.BlockSpec((h1p, h2p), lambda i: (0, 0)),
                pl.BlockSpec((1, h2p), lambda i: (0, 0)),
                pl.BlockSpec((h2p, cp), lambda i: (0, 0)),
                pl.BlockSpec((1, cp), lambda i: (0, 0)),
            ],
            out_specs=pl.BlockSpec((bp, cp), lambda i: (0, 0)),
        ),
        compiler_params=pltpu.CompilerParams(dimension_semantics=("arbitrary",)),
    )(xp, w1, b1, w2, b2, w3, b3)


# ----------------------------------------------------------------------------
# Channels-last im2col (emits K already padded to a lane-aligned width)
# ----------------------------------------------------------------------------
def _im2col_ndhwc(x, ksize, stride, k_padded):
    """x:(N,D,H,W,C) -> patches (N*Do*Ho*Wo, k_padded), K order = (kd,kh,kw,C), C on lanes."""
    n, d, h, w, c = x.shape
    kd, kh, kw = ksize
    sd, sh, sw = stride
    do = (d - kd) // sd + 1
    ho = (h - kh) // sh + 1
    wo = (w - kw) // sw + 1

    pieces = []
    for a in range(kd):
        for bb in range(kh):
            for cc in range(kw):
                pieces.append(x[:, a:a + sd * (do - 1) + 1:sd,
                                bb:bb + sh * (ho - 1) + 1:sh,
                                cc:cc + sw * (wo - 1) + 1:sw, :])
    k = kd * kh * kw * c
    if k_padded > k:  # fold the lane-alignment zero pad into the same materialization
        pieces.append(jnp.zeros((n, do, ho, wo, k_padded - k), x.dtype))
    patches = jnp.concatenate(pieces, axis=-1)            # (N,Do,Ho,Wo,Kp)
    return patches.reshape(n * do * ho * wo, k_padded), (do, ho, wo)


def conv_bn_relu_layer(x, layer, ksize, stride, cout, *, tm, eps=1e-5):
    """PyTorch Conv3d (valid padding) -> BatchNorm3d (training batch stats) -> ReLU,
    in channels-last layout.  Returns (N, Do, Ho, Wo, cout) bf16."""
    n = x.shape[0]
    w, b = layer["w"], layer["b"]
    gamma, beta = layer["gamma"], layer["beta"]

    patches, (do, ho, wo) = _im2col_ndhwc(x, ksize, stride, w.shape[0])
    m = patches.shape[0]

    y, s, q = conv_gemm_stats(patches, w, b, tm=tm)        # y:(M,Np) f32 + fused stats

    # Training-mode BatchNorm statistics (biased variance) over (N,D,H,W) per channel,
    # assembled from the per-block partial sums emitted by the GEMM epilogue (tiny arrays).
    # TODO(synk): E[y^2]-E[y]^2 can cancel when |mean| >> std; clamped at 0 as mitigation.
    mean = jnp.sum(s, axis=0) / m                          # (1, Np)
    var = jnp.maximum(jnp.sum(q, axis=0) / m - mean * mean, 0.0)
    scale = gamma * jax.lax.rsqrt(var + eps)
    shift = beta - mean * scale

    out = pallas_bn_relu(y, scale, shift, cout)            # (M, cout) bf16
    return out.reshape(n, do, ho, wo, cout)


# ----------------------------------------------------------------------------
# Full CNN3D forward
# ----------------------------------------------------------------------------
def cnn3d_forward(x, params, *, num_classes):
    # x arrives NCDHW like PyTorch; convert once to channels-last (NDHWC) bf16.
    x = jnp.transpose(x, (0, 2, 3, 4, 1)).astype(jnp.bfloat16)
    x = conv_bn_relu_layer(x, params["conv1"], _KSIZE[0], _STRIDE[0], _CH[0], tm=512)
    x = conv_bn_relu_layer(x, params["conv2"], _KSIZE[1], _STRIDE[1], _CH[1], tm=128)
    x = conv_bn_relu_layer(x, params["conv3"], _KSIZE[2], _STRIDE[2], _CH[2], tm=8)
    b = x.shape[0]
    x = x.reshape(b, -1)        # flatten in (D,H,W,C) order; fc1_w was permuted to match
    logits = fused_mlp(x, params["fc1_w"], params["fc1_b"],
                       params["fc2_w"], params["fc2_b"],
                       params["fc3_w"], params["fc3_b"])
    return logits[:b, :num_classes]


# ----------------------------------------------------------------------------
# Parameter init (PyTorch layout) and one-time layout / padding / bf16 prep
# ----------------------------------------------------------------------------
def _uniform(key, shape, fan_in):
    bound = 1.0 / math.sqrt(fan_in)
    return jax.random.uniform(key, shape, jnp.float32, -bound, bound)


def init_params(key, *, hidden1, hidden2, num_classes, fc1_in):
    ch1, ch2, ch3 = _CH
    k1, k2, k3 = _KSIZE
    keys = jax.random.split(key, 12)
    p = {}
    p["w1"] = _uniform(keys[0], (ch1, 3) + k1, 3 * math.prod(k1))
    p["b1"] = _uniform(keys[1], (ch1,), 3 * math.prod(k1))
    p["g1"] = jnp.ones((ch1,), jnp.float32)
    p["be1"] = jnp.zeros((ch1,), jnp.float32)
    p["w2"] = _uniform(keys[2], (ch2, ch1) + k2, ch1 * math.prod(k2))
    p["b2"] = _uniform(keys[3], (ch2,), ch1 * math.prod(k2))
    p["g2"] = jnp.ones((ch2,), jnp.float32)
    p["be2"] = jnp.zeros((ch2,), jnp.float32)
    p["w3"] = _uniform(keys[4], (ch3, ch2) + k3, ch2 * math.prod(k3))
    p["b3"] = _uniform(keys[5], (ch3,), ch2 * math.prod(k3))
    p["g3"] = jnp.ones((ch3,), jnp.float32)
    p["be3"] = jnp.zeros((ch3,), jnp.float32)
    p["fc1_w"] = _uniform(keys[6], (hidden1, fc1_in), fc1_in)
    p["fc1_b"] = _uniform(keys[7], (hidden1,), fc1_in)
    p["fc2_w"] = _uniform(keys[8], (hidden2, hidden1), hidden1)
    p["fc2_b"] = _uniform(keys[9], (hidden2,), hidden1)
    p["fc3_w"] = _uniform(keys[10], (num_classes, hidden2), hidden2)
    p["fc3_b"] = _uniform(keys[11], (num_classes,), hidden2)
    return p


def prepare_params(p, conv3_output_shape):
    """One-time conversion to kernel layout: conv weights (kd,kh,kw,Cin,Cout)->(Kp,Np) bf16,
    fc weights transposed/permuted to (Kp,Np) bf16, all vectors padded to (1,Np) f32."""
    def prep_conv(w, b, gamma, beta):
        cout, cin, kd, kh, kw = w.shape
        k = kd * kh * kw * cin
        kp, np_ = _round_up(k, 128), _round_up(cout, 128)
        # Matches the channels-last im2col ordering: kernel offsets outer, Cin innermost.
        w2 = jnp.transpose(w, (2, 3, 4, 1, 0)).reshape(k, cout).astype(jnp.bfloat16)
        return {
            "w": jnp.zeros((kp, np_), jnp.bfloat16).at[:k, :cout].set(w2),
            "b": jnp.zeros((1, np_), jnp.float32).at[:, :cout].set(b.astype(jnp.float32)),
            "gamma": jnp.zeros((1, np_), jnp.float32).at[:, :cout].set(gamma),
            "beta": jnp.zeros((1, np_), jnp.float32).at[:, :cout].set(beta),
        }

    def prep_fc(w, b):
        out_f, in_f = w.shape
        kp, np_ = _round_up(in_f, 128), _round_up(out_f, 128)
        wt = w.T.astype(jnp.bfloat16)                      # (in, out)
        return (jnp.zeros((kp, np_), jnp.bfloat16).at[:in_f, :out_f].set(wt),
                jnp.zeros((1, np_), jnp.float32).at[:, :out_f].set(b.astype(jnp.float32)))

    q = {"conv1": prep_conv(p["w1"], p["b1"], p["g1"], p["be1"]),
         "conv2": prep_conv(p["w2"], p["b2"], p["g2"], p["be2"]),
         "conv3": prep_conv(p["w3"], p["b3"], p["g3"], p["be3"])}

    # fc1 consumed PyTorch's (C,D,H,W) flatten order; our activations flatten as (D,H,W,C).
    ch3 = p["w3"].shape[0]
    do, ho, wo = conv3_output_shape
    h1, fin = p["fc1_w"].shape
    fc1_w = (p["fc1_w"].reshape(h1, ch3, do, ho, wo)
             .transpose(0, 2, 3, 4, 1).reshape(h1, fin))
    q["fc1_w"], q["fc1_b"] = prep_fc(fc1_w, p["fc1_b"])
    q["fc2_w"], q["fc2_b"] = prep_fc(p["fc2_w"], p["fc2_b"])
    q["fc3_w"], q["fc3_b"] = prep_fc(p["fc3_w"], p["fc3_b"])
    return q


if __name__ == "__main__":
    # Small configuration consistent with the module's shape arithmetic:
    # sample_size=48, sample_duration=16 -> conv1 (7,21,21), conv2 (3,8,8), conv3 (1,2,2)
    batch = 2
    sample_size = 48
    sample_duration = 16
    hidden1, hidden2, num_classes = 64, 32, 10

    def out_shape3d(dhw, k, s):
        return tuple((dhw[i] - k[i]) // s[i] + 1 for i in range(3))

    c1 = out_shape3d((sample_duration, sample_size, sample_size), _KSIZE[0], _STRIDE[0])
    c2 = out_shape3d(c1, _KSIZE[1], _STRIDE[1])
    c3 = out_shape3d(c2, _KSIZE[2], _STRIDE[2])
    fc1_in = _CH[2] * c3[0] * c3[1] * c3[2]

    key = jax.random.PRNGKey(0)
    k_params, k_x = jax.random.split(key)
    raw = init_params(k_params, hidden1=hidden1, hidden2=hidden2,
                      num_classes=num_classes, fc1_in=fc1_in)
    params = prepare_params(raw, c3)       # one-time layout / pad / bf16 prep (outside jit)

    x = jax.random.normal(k_x, (batch, 3, sample_duration, sample_size, sample_size),
                          jnp.float32)

    fwd = jax.jit(partial(cnn3d_forward, num_classes=num_classes))
    out = fwd(x, params)
    out = jax.block_until_ready(out)
    assert out.shape == (batch, num_classes), out.shape
    assert bool(jnp.all(jnp.isfinite(out)))
    print("KERNEL_OK")
</pallas_src>

<mosaic_0001>
module attributes {stable_mosaic.version = 11 : i64} {
  func.func @conv_gemm_stats_kernel(%arg0: i32, %arg1: memref<512x512xbf16, #tpu.memory_space<vmem>>, %arg2: memref<512x128xbf16, #tpu.memory_space<vmem>>, %arg3: memref<1x128xf32, #tpu.memory_space<vmem>>, %arg4: memref<512x128xf32, #tpu.memory_space<vmem>>, %arg5: memref<1x1x128xf32, #tpu.memory_space<vmem>>, %arg6: memref<1x1x128xf32, #tpu.memory_space<vmem>>) attributes {dimension_semantics = [#tpu.dimension_semantics<parallel>], iteration_bounds = array<i64: 13>, scalar_prefetch = 0 : i64, scratch_operands = 0 : i64, tpu.core_type = #tpu.core_type<tc>, window_params = [{transform_indices = @transform_0, window_bounds = array<i64: 512, 512>}, {pipeline_mode = #tpu.pipeline_mode<synchronous>, transform_indices = @transform_1, window_bounds = array<i64: 512, 128>}, {pipeline_mode = #tpu.pipeline_mode<synchronous>, transform_indices = @transform_2, window_bounds = array<i64: 1, 128>}, {transform_indices = @transform_3, window_bounds = array<i64: 512, 128>}, {transform_indices = @transform_4, window_bounds = array<i64: 1, 1, 128>}, {transform_indices = @transform_5, window_bounds = array<i64: 1, 1, 128>}]} {
    %c0 = arith.constant 0 : index
    %c0_0 = arith.constant 0 : index
    %0 = vector.load %arg1[%c0, %c0_0] : memref<512x512xbf16, #tpu.memory_space<vmem>>, vector<512x512xbf16>
    %c0_1 = arith.constant 0 : index
    %c0_2 = arith.constant 0 : index
    %1 = vector.load %arg2[%c0_1, %c0_2] : memref<512x128xbf16, #tpu.memory_space<vmem>>, vector<512x128xbf16>
    %cst = arith.constant dense<0.000000e+00> : vector<512x128xf32>
    %2 = tpu.matmul %0, %1, %cst {dimension_numbers = #tpu.dot_dimension_numbers<[1], [0], [0], [1], [0, 0, 1, 1], [], []>} : vector<512x512xbf16>, vector<512x128xbf16>, vector<512x128xf32> -> vector<512x128xf32>
    %c0_3 = arith.constant 0 : index
    %c0_4 = arith.constant 0 : index
    %3 = vector.load %arg3[%c0_3, %c0_4] : memref<1x128xf32, #tpu.memory_space<vmem>>, vector<1x128xf32>
    %4 = vector.broadcast %3 : vector<1x128xf32> to vector<512x128xf32>
    %5 = arith.addf %2, %4 : vector<512x128xf32>
    %c0_5 = arith.constant 0 : index
    %c0_6 = arith.constant 0 : index
    %6 = vector.load %arg4[%c0_5, %c0_6] : memref<512x128xf32, #tpu.memory_space<vmem>>, vector<512x128xf32>
    tpu.vector_store %arg4[%c0_5, %c0_6], %5 {strides = array<i32>} : memref<512x128xf32, #tpu.memory_space<vmem>>, vector<512x128xf32>,
    %7 = tpu.iota {dimensions = array<i32: 0>} : vector<512x128xi32>
    %c512_i32 = arith.constant 512 : i32
    %8 = arith.muli %arg0, %c512_i32 : i32
    %9 = vector.broadcast %8 : i32 to vector<512x128xi32>
    %10 = arith.addi %7, %9 : vector<512x128xi32>
    %c6174_i32 = arith.constant 6174 : i32
    %11 = vector.broadcast %c6174_i32 : i32 to vector<512x128xi32>
    %12 = arith.cmpi slt, %10, %11 : vector<512x128xi32>
    %cst_7 = arith.constant 0.000000e+00 : f32
    %13 = vector.broadcast %cst_7 : f32 to vector<512x128xf32>
    %14 = arith.select %12, %5, %13 : vector<512x128xi1>, vector<512x128xf32>
    %cst_8 = arith.constant dense<0.000000e+00> : vector<128xf32>
    %15 = vector.multi_reduction <add>, %14, %cst_8 [0] : vector<512x128xf32> to vector<128xf32>
    %16 = vector.shape_cast %15 : vector<128xf32> to vector<1x128xf32>
    %17 = vector.shape_cast %16 : vector<1x128xf32> to vector<1x1x128xf32>
    %c0_9 = arith.constant 0 : index
    %c0_10 = arith.constant 0 : index
    %c0_11 = arith.constant 0 : index
    %18 = vector.load %arg5[%c0_9, %c0_10, %c0_11] : memref<1x1x128xf32, #tpu.memory_space<vmem>>, vector<1x1x128xf32>
    tpu.vector_store %arg5[%c0_9, %c0_10, %c0_11], %17 {strides = array<i32>} : memref<1x1x128xf32, #tpu.memory_space<vmem>>, vector<1x1x128xf32>,
    %19 = arith.mulf %14, %14 : vector<512x128xf32>
    %cst_12 = arith.constant dense<0.000000e+00> : vector<128xf32>
    %20 = vector.multi_reduction <add>, %19, %cst_12 [0] : vector<512x128xf32> to vector<128xf32>
    %21 = vector.shape_cast %20 : vector<128xf32> to vector<1x128xf32>
    %22 = vector.shape_cast %21 : vector<1x128xf32> to vector<1x1x128xf32>
    %c0_13 = arith.constant 0 : index
    %c0_14 = arith.constant 0 : index
    %c0_15 = arith.constant 0 : index
    %23 = vector.load %arg6[%c0_13, %c0_14, %c0_15] : memref<1x1x128xf32, #tpu.memory_space<vmem>>, vector<1x1x128xf32>
    tpu.vector_store %arg6[%c0_13, %c0_14, %c0_15], %22 {strides = array<i32>} : memref<1x1x128xf32, #tpu.memory_space<vmem>>, vector<1x1x128xf32>,
    return
  }
  func.func @transform_0(%arg0: i32) -> (i32, i32) {
    %c0_i32 = arith.constant 0 : i32
    %c0_i32_0 = arith.constant 0 : i32
    return %arg0, %c0_i32 : i32, i32
  }
  func.func @transform_1(%arg0: i32) -> (i32, i32) {
    %c0_i32 = arith.constant 0 : i32
    %c0_i32_0 = arith.constant 0 : i32
    %c0_i32_1 = arith.constant 0 : i32
    return %c0_i32, %c0_i32_0 : i32, i32
  }
  func.func @transform_2(%arg0: i32) -> (i32, i32) {
    %c0_i32 = arith.constant 0 : i32
    %c0_i32_0 = arith.constant 0 : i32
    %c0_i32_1 = arith.constant 0 : i32
    return %c0_i32, %c0_i32_0 : i32, i32
  }
  func.func @transform_3(%arg0: i32) -> (i32, i32) {
    %c0_i32 = arith.constant 0 : i32
    %c0_i32_0 = arith.constant 0 : i32
    return %arg0, %c0_i32 : i32, i32
  }
  func.func @transform_4(%arg0: i32) -> (i32, i32, i32) {
    %c0_i32 = arith.constant 0 : i32
    %c0_i32_0 = arith.constant 0 : i32
    %c0_i32_1 = arith.constant 0 : i32
    return %arg0, %c0_i32, %c0_i32_0 : i32, i32, i32
  }
  func.func @transform_5(%arg0: i32) -> (i32, i32, i32) {
    %c0_i32 = arith.constant 0 : i32
    %c0_i32_0 = arith.constant 0 : i32
    %c0_i32_1 = arith.constant 0 : i32
    return %arg0, %c0_i32, %c0_i32_0 : i32, i32, i32
  }
}

module attributes {stable_mosaic.version = 11 : i64} {
  func.func @bn_relu_kernel(%arg0: i32, %arg1: memref<512x128xf32, #tpu.memory_space<vmem>>, %arg2: memref<1x128xf32, #tpu.memory_space<vmem>>, %arg3: memref<1x128xf32, #tpu.memory_space<vmem>>, %arg4: memref<512x32xbf16, #tpu.memory_space<vmem>>) attributes {dimension_semantics = [#tpu.dimension_semantics<parallel>], iteration_bounds = array<i64: 13>, scalar_prefetch = 0 : i64, scratch_operands = 0 : i64, tpu.core_type = #tpu.core_type<tc>, window_params = [{transform_indices = @transform_0, window_bounds = array<i64: 512, 128>}, {pipeline_mode = #tpu.pipeline_mode<synchronous>, transform_indices = @transform_1, window_bounds = array<i64: 1, 128>}, {pipeline_mode = #tpu.pipeline_mode<synchronous>, transform_indices = @transform_2, window_bounds = array<i64: 1, 128>}, {transform_indices = @transform_3, window_bounds = array<i64: 512, 32>}]} {
    %c0 = arith.constant 0 : index
    %c0_0 = arith.constant 0 : index
    %0 = vector.load %arg1[%c0, %c0_0] : memref<512x128xf32, #tpu.memory_space<vmem>>, vector<512x128xf32>
    %c0_1 = arith.constant 0 : index
    %c0_2 = arith.constant 0 : index
    %1 = vector.load %arg2[%c0_1, %c0_2] : memref<1x128xf32, #tpu.memory_space<vmem>>, vector<1x128xf32>
    %2 = vector.broadcast %1 : vector<1x128xf32> to vector<512x128xf32>
    %3 = arith.mulf %0, %2 : vector<512x128xf32>
    %c0_3 = arith.constant 0 : index
    %c0_4 = arith.constant 0 : index
    %4 = vector.load %arg3[%c0_3, %c0_4] : memref<1x128xf32, #tpu.memory_space<vmem>>, vector<1x128xf32>
    %5 = vector.broadcast %4 : vector<1x128xf32> to vector<512x128xf32>
    %6 = arith.addf %3, %5 : vector<512x128xf32>
    %cst = arith.constant 0.000000e+00 : f32
    %7 = vector.broadcast %cst : f32 to vector<512x128xf32>
    %8 = arith.maximumf %6, %7 : vector<512x128xf32>
    %9 = vector.extract_strided_slice %8 {offsets = [0, 0], sizes = [512, 32], strides = [1, 1]} : vector<512x128xf32> to vector<512x32xf32>
    %10 = arith.truncf %9 : vector<512x32xf32> to vector<512x32xbf16>
    %c0_5 = arith.constant 0 : index
    %c0_6 = arith.constant 0 : index
    %11 = vector.load %arg4[%c0_5, %c0_6] : memref<512x32xbf16, #tpu.memory_space<vmem>>, vector<512x32xbf16>
    tpu.vector_store %arg4[%c0_5, %c0_6], %10 {strides = array<i32>} : memref<512x32xbf16, #tpu.memory_space<vmem>>, vector<512x32xbf16>,
    return
  }
  func.func @transform_0(%arg0: i32) -> (i32, i32) {
    %c0_i32 = arith.constant 0 : i32
    %c0_i32_0 = arith.constant 0 : i32
    return %arg0, %c0_i32 : i32, i32
  }
  func.func @transform_1(%arg0: i32) -> (i32, i32) {
    %c0_i32 = arith.constant 0 : i32
    %c0_i32_0 = arith.constant 0 : i32
    %c0_i32_1 = arith.constant 0 : i32
    return %c0_i32, %c0_i32_0 : i32, i32
  }
  func.func @transform_2(%arg0: i32) -> (i32, i32) {
    %c0_i32 = arith.constant 0 : i32
    %c0_i32_0 = arith.constant 0 : i32
    %c0_i32_1 = arith.constant 0 : i32
    return %c0_i32, %c0_i32_0 : i32, i32
  }
  func.func @transform_3(%arg0: i32) -> (i32, i32) {
    %c0_i32 = arith.constant 0 : i32
    %c0_i32_0 = arith.constant 0 : i32
    return %arg0, %c0_i32 : i32, i32
  }
}

module attributes {stable_mosaic.version = 11 : i64} {
  func.func @conv_gemm_stats_kernel(%arg0: i32, %arg1: memref<128x4736xbf16, #tpu.memory_space<vmem>>, %arg2: memref<4736x128xbf16, #tpu.memory_space<vmem>>, %arg3: memref<1x128xf32, #tpu.memory_space<vmem>>, %arg4: memref<128x128xf32, #tpu.memory_space<vmem>>, %arg5: memref<1x1x128xf32, #tpu.memory_space<vmem>>, %arg6: memref<1x1x128xf32, #tpu.memory_space<vmem>>) attributes {dimension_semantics = [#tpu.dimension_semantics<parallel>], iteration_bounds = array<i64: 3>, scalar_prefetch = 0 : i64, scratch_operands = 0 : i64, tpu.core_type = #tpu.core_type<tc>, window_params = [{transform_indices = @transform_0, window_bounds = array<i64: 128, 4736>}, {pipeline_mode = #tpu.pipeline_mode<synchronous>, transform_indices = @transform_1, window_bounds = array<i64: 4736, 128>}, {pipeline_mode = #tpu.pipeline_mode<synchronous>, transform_indices = @transform_2, window_bounds = array<i64: 1, 128>}, {transform_indices = @transform_3, window_bounds = array<i64: 128, 128>}, {transform_indices = @transform_4, window_bounds = array<i64: 1, 1, 128>}, {transform_indices = @transform_5, window_bounds = array<i64: 1, 1, 128>}]} {
    %c0 = arith.constant 0 : index
    %c0_0 = arith.constant 0 : index
    %0 = vector.load %arg1[%c0, %c0_0] : memref<128x4736xbf16, #tpu.memory_space<vmem>>, vector<128x4736xbf16>
    %c0_1 = arith.constant 0 : index
    %c0_2 = arith.constant 0 : index
    %1 = vector.load %arg2[%c0_1, %c0_2] : memref<4736x128xbf16, #tpu.memory_space<vmem>>, vector<4736x128xbf16>
    %cst = arith.constant dense<0.000000e+00> : vector<128x128xf32>
    %2 = tpu.matmul %0, %1, %cst {dimension_numbers = #tpu.dot_dimension_numbers<[1], [0], [0], [1], [0, 0, 1, 1], [], []>} : vector<128x4736xbf16>, vector<4736x128xbf16>, vector<128x128xf32> -> vector<128x128xf32>
    %c0_3 = arith.constant 0 : index
    %c0_4 = arith.constant 0 : index
    %3 = vector.load %arg3[%c0_3, %c0_4] : memref<1x128xf32, #tpu.memory_space<vmem>>, vector<1x128xf32>
    %4 = vector.broadcast %3 : vector<1x128xf32> to vector<128x128xf32>
    %5 = arith.addf %2, %4 : vector<128x128xf32>
    %c0_5 = arith.constant 0 : index
    %c0_6 = arith.constant 0 : index
    %6 = vector.load %arg4[%c0_5, %c0_6] : memref<128x128xf32, #tpu.memory_space<vmem>>, vector<128x128xf32>
    tpu.vector_store %arg4[%c0_5, %c0_6], %5 {strides = array<i32>} : memref<128x128xf32, #tpu.memory_space<vmem>>, vector<128x128xf32>,
    %7 = tpu.iota {dimensions = array<i32: 0>} : vector<128x128xi32>
    %c128_i32 = arith.constant 128 : i32
    %8 = arith.muli %arg0, %c128_i32 : i32
    %9 = vector.broadcast %8 : i32 to vector<128x128xi32>
    %10 = arith.addi %7, %9 : vector<128x128xi32>
    %c384_i32 = arith.constant 384 : i32
    %11 = vector.broadcast %c384_i32 : i32 to vector<128x128xi32>
    %12 = arith.cmpi slt, %10, %11 : vector<128x128xi32>
    %cst_7 = arith.constant 0.000000e+00 : f32
    %13 = vector.broadcast %cst_7 : f32 to vector<128x128xf32>
    %14 = arith.select %12, %5, %13 : vector<128x128xi1>, vector<128x128xf32>
    %cst_8 = arith.constant dense<0.000000e+00> : vector<128xf32>
    %15 = vector.multi_reduction <add>, %14, %cst_8 [0] : vector<128x128xf32> to vector<128xf32>
    %16 = vector.shape_cast %15 : vector<128xf32> to vector<1x128xf32>
    %17 = vector.shape_cast %16 : vector<1x128xf32> to vector<1x1x128xf32>
    %c0_9 = arith.constant 0 : index
    %c0_10 = arith.constant 0 : index
    %c0_11 = arith.constant 0 : index
    %18 = vector.load %arg5[%c0_9, %c0_10, %c0_11] : memref<1x1x128xf32, #tpu.memory_space<vmem>>, vector<1x1x128xf32>
    tpu.vector_store %arg5[%c0_9, %c0_10, %c0_11], %17 {strides = array<i32>} : memref<1x1x128xf32, #tpu.memory_space<vmem>>, vector<1x1x128xf32>,
    %19 = arith.mulf %14, %14 : vector<128x128xf32>
    %cst_12 = arith.constant dense<0.000000e+00> : vector<128xf32>
    %20 = vector.multi_reduction <add>, %19, %cst_12 [0] : vector<128x128xf32> to vector<128xf32>
    %21 = vector.shape_cast %20 : vector<128xf32> to vector<1x128xf32>
    %22 = vector.shape_cast %21 : vector<1x128xf32> to vector<1x1x128xf32>
    %c0_13 = arith.constant 0 : index
    %c0_14 = arith.constant 0 : index
    %c0_15 = arith.constant 0 : index
    %23 = vector.load %arg6[%c0_13, %c0_14, %c0_15] : memref<1x1x128xf32, #tpu.memory_space<vmem>>, vector<1x1x128xf32>
    tpu.vector_store %arg6[%c0_13, %c0_14, %c0_15], %22 {strides = array<i32>} : memref<1x1x128xf32, #tpu.memory_space<vmem>>, vector<1x1x128xf32>,
    return
  }
  func.func @transform_0(%arg0: i32) -> (i32, i32) {
    %c0_i32 = arith.constant 0 : i32
    %c0_i32_0 = arith.constant 0 : i32
    return %arg0, %c0_i32 : i32, i32
  }
  func.func @transform_1(%arg0: i32) -> (i32, i32) {
    %c0_i32 = arith.constant 0 : i32
    %c0_i32_0 = arith.constant 0 : i32
    %c0_i32_1 = arith.constant 0 : i32
    return %c0_i32, %c0_i32_0 : i32, i32
  }
  func.func @transform_2(%arg0: i32) -> (i32, i32) {
    %c0_i32 = arith.constant 0 : i32
    %c0_i32_0 = arith.constant 0 : i32
    %c0_i32_1 = arith.constant 0 : i32
    return %c0_i32, %c0_i32_0 : i32, i32
  }
  func.func @transform_3(%arg0: i32) -> (i32, i32) {
    %c0_i32 = arith.constant 0 : i32
    %c0_i32_0 = arith.constant 0 : i32
    return %arg0, %c0_i32 : i32, i32
  }
  func.func @transform_4(%arg0: i32) -> (i32, i32, i32) {
    %c0_i32 = arith.constant 0 : i32
    %c0_i32_0 = arith.constant 0 : i32
    %c0_i32_1 = arith.constant 0 : i32
    return %arg0, %c0_i32, %c0_i32_0 : i32, i32, i32
  }
  func.func @transform_5(%arg0: i32) -> (i32, i32, i32) {
    %c0_i32 = arith.constant 0 : i32
    %c0_i32_0 = arith.constant 0 : i32
    %c0_i32_1 = arith.constant 0 : i32
    return %arg0, %c0_i32, %c0_i32_0 : i32, i32, i32
  }
}

module attributes {stable_mosaic.version = 11 : i64} {
  func.func @bn_relu_kernel(%arg0: i32, %arg1: memref<384x128xf32, #tpu.memory_space<vmem>>, %arg2: memref<1x128xf32, #tpu.memory_space<vmem>>, %arg3: memref<1x128xf32, #tpu.memory_space<vmem>>, %arg4: memref<384x48xbf16, #tpu.memory_space<vmem>>) attributes {dimension_semantics = [#tpu.dimension_semantics<parallel>], iteration_bounds = array<i64: 1>, scalar_prefetch = 0 : i64, scratch_operands = 0 : i64, tpu.core_type = #tpu.core_type<tc>, window_params = [{transform_indices = @transform_0, window_bounds = array<i64: 384, 128>}, {pipeline_mode = #tpu.pipeline_mode<synchronous>, transform_indices = @transform_1, window_bounds = array<i64: 1, 128>}, {pipeline_mode = #tpu.pipeline_mode<synchronous>, transform_indices = @transform_2, window_bounds = array<i64: 1, 128>}, {transform_indices = @transform_3, window_bounds = array<i64: 384, 48>}]} {
    %c0 = arith.constant 0 : index
    %c0_0 = arith.constant 0 : index
    %0 = vector.load %arg1[%c0, %c0_0] : memref<384x128xf32, #tpu.memory_space<vmem>>, vector<384x128xf32>
    %c0_1 = arith.constant 0 : index
    %c0_2 = arith.constant 0 : index
    %1 = vector.load %arg2[%c0_1, %c0_2] : memref<1x128xf32, #tpu.memory_space<vmem>>, vector<1x128xf32>
    %2 = vector.broadcast %1 : vector<1x128xf32> to vector<384x128xf32>
    %3 = arith.mulf %0, %2 : vector<384x128xf32>
    %c0_3 = arith.constant 0 : index
    %c0_4 = arith.constant 0 : index
    %4 = vector.load %arg3[%c0_3, %c0_4] : memref<1x128xf32, #tpu.memory_space<vmem>>, vector<1x128xf32>
    %5 = vector.broadcast %4 : vector<1x128xf32> to vector<384x128xf32>
    %6 = arith.addf %3, %5 : vector<384x128xf32>
    %cst = arith.constant 0.000000e+00 : f32
    %7 = vector.broadcast %cst : f32 to vector<384x128xf32>
    %8 = arith.maximumf %6, %7 : vector<384x128xf32>
    %9 = vector.extract_strided_slice %8 {offsets = [0, 0], sizes = [384, 48], strides = [1, 1]} : vector<384x128xf32> to vector<384x48xf32>
    %10 = arith.truncf %9 : vector<384x48xf32> to vector<384x48xbf16>
    %c0_5 = arith.constant 0 : index
    %c0_6 = arith.constant 0 : index
    %11 = vector.load %arg4[%c0_5, %c0_6] : memref<384x48xbf16, #tpu.memory_space<vmem>>, vector<384x48xbf16>
    tpu.vector_store %arg4[%c0_5, %c0_6], %10 {strides = array<i32>} : memref<384x48xbf16, #tpu.memory_space<vmem>>, vector<384x48xbf16>,
    return
  }
  func.func @transform_0(%arg0: i32) -> (i32, i32) {
    %c0_i32 = arith.constant 0 : i32
    %c0_i32_0 = arith.constant 0 : i32
    return %arg0, %c0_i32 : i32, i32
  }
  func.func @transform_1(%arg0: i32) -> (i32, i32) {
    %c0_i32 = arith.constant 0 : i32
    %c0_i32_0 = arith.constant 0 : i32
    %c0_i32_1 = arith.constant 0 : i32
    return %c0_i32, %c0_i32_0 : i32, i32
  }
  func.func @transform_2(%arg0: i32) -> (i32, i32) {
    %c0_i32 = arith.constant 0 : i32
    %c0_i32_0 = arith.constant 0 : i32
    %c0_i32_1 = arith.constant 0 : i32
    return %c0_i32, %c0_i32_0 : i32, i32
  }
  func.func @transform_3(%arg0: i32) -> (i32, i32) {
    %c0_i32 = arith.constant 0 : i32
    %c0_i32_0 = arith.constant 0 : i32
    return %arg0, %c0_i32 : i32, i32
  }
}

module attributes {stable_mosaic.version = 11 : i64} {
  func.func @conv_gemm_stats_kernel(%arg0: i32, %arg1: memref<8x3712xbf16, #tpu.memory_space<vmem>>, %arg2: memref<3712x128xbf16, #tpu.memory_space<vmem>>, %arg3: memref<1x128xf32, #tpu.memory_space<vmem>>, %arg4: memref<8x128xf32, #tpu.memory_space<vmem>>, %arg5: memref<1x1x128xf32, #tpu.memory_space<vmem>>, %arg6: memref<1x1x128xf32, #tpu.memory_space<vmem>>) attributes {dimension_semantics = [#tpu.dimension_semantics<parallel>], iteration_bounds = array<i64: 1>, scalar_prefetch = 0 : i64, scratch_operands = 0 : i64, tpu.core_type = #tpu.core_type<tc>, window_params = [{transform_indices = @transform_0, window_bounds = array<i64: 8, 3712>}, {pipeline_mode = #tpu.pipeline_mode<synchronous>, transform_indices = @transform_1, window_bounds = array<i64: 3712, 128>}, {pipeline_mode = #tpu.pipeline_mode<synchronous>, transform_indices = @transform_2, window_bounds = array<i64: 1, 128>}, {transform_indices = @transform_3, window_bounds = array<i64: 8, 128>}, {transform_indices = @transform_4, window_bounds = array<i64: 1, 1, 128>}, {transform_indices = @transform_5, window_bounds = array<i64: 1, 1, 128>}]} {
    %c0 = arith.constant 0 : index
    %c0_0 = arith.constant 0 : index
    %0 = vector.load %arg1[%c0, %c0_0] : memref<8x3712xbf16, #tpu.memory_space<vmem>>, vector<8x3712xbf16>
    %c0_1 = arith.constant 0 : index
    %c0_2 = arith.constant 0 : index
    %1 = vector.load %arg2[%c0_1, %c0_2] : memref<3712x128xbf16, #tpu.memory_space<vmem>>, vector<3712x128xbf16>
    %cst = arith.constant dense<0.000000e+00> : vector<8x128xf32>
    %2 = tpu.matmul %0, %1, %cst {dimension_numbers = #tpu.dot_dimension_numbers<[1], [0], [0], [1], [0, 0, 1, 1], [], []>} : vector<8x3712xbf16>, vector<3712x128xbf16>, vector<8x128xf32> -> vector<8x128xf32>
    %c0_3 = arith.constant 0 : index
    %c0_4 = arith.constant 0 : index
    %3 = vector.load %arg3[%c0_3, %c0_4] : memref<1x128xf32, #tpu.memory_space<vmem>>, vector<1x128xf32>
    %4 = vector.broadcast %3 : vector<1x128xf32> to vector<8x128xf32>
    %5 = arith.addf %2, %4 : vector<8x128xf32>
    %c0_5 = arith.constant 0 : index
    %c0_6 = arith.constant 0 : index
    %6 = vector.load %arg4[%c0_5, %c0_6] : memref<8x128xf32, #tpu.memory_space<vmem>>, vector<8x128xf32>
    tpu.vector_store %arg4[%c0_5, %c0_6], %5 {strides = array<i32>} : memref<8x128xf32, #tpu.memory_space<vmem>>, vector<8x128xf32>,
    %7 = tpu.iota {dimensions = array<i32: 0>} : vector<8x128xi32>
    %c8_i32 = arith.constant 8 : i32
    %8 = arith.muli %arg0, %c8_i32 : i32
    %9 = vector.broadcast %8 : i32 to vector<8x128xi32>
    %10 = arith.addi %7, %9 : vector<8x128xi32>
    %c8_i32_7 = arith.constant 8 : i32
    %11 = vector.broadcast %c8_i32_7 : i32 to vector<8x128xi32>
    %12 = arith.cmpi slt, %10, %11 : vector<8x128xi32>
    %cst_8 = arith.constant 0.000000e+00 : f32
    %13 = vector.broadcast %cst_8 : f32 to vector<8x128xf32>
    %14 = arith.select %12, %5, %13 : vector<8x128xi1>, vector<8x128xf32>
    %cst_9 = arith.constant dense<0.000000e+00> : vector<128xf32>
    %15 = vector.multi_reduction <add>, %14, %cst_9 [0] : vector<8x128xf32> to vector<128xf32>
    %16 = vector.shape_cast %15 : vector<128xf32> to vector<1x128xf32>
    %17 = vector.shape_cast %16 : vector<1x128xf32> to vector<1x1x128xf32>
    %c0_10 = arith.constant 0 : index
    %c0_11 = arith.constant 0 : index
    %c0_12 = arith.constant 0 : index
    %18 = vector.load %arg5[%c0_10, %c0_11, %c0_12] : memref<1x1x128xf32, #tpu.memory_space<vmem>>, vector<1x1x128xf32>
    tpu.vector_store %arg5[%c0_10, %c0_11, %c0_12], %17 {strides = array<i32>} : memref<1x1x128xf32, #tpu.memory_space<vmem>>, vector<1x1x128xf32>,
    %19 = arith.mulf %14, %14 : vector<8x128xf32>
    %cst_13 = arith.constant dense<0.000000e+00> : vector<128xf32>
    %20 = vector.multi_reduction <add>, %19, %cst_13 [0] : vector<8x128xf32> to vector<128xf32>
    %21 = vector.shape_cast %20 : vector<128xf32> to vector<1x128xf32>
    %22 = vector.shape_cast %21 : vector<1x128xf32> to vector<1x1x128xf32>
    %c0_14 = arith.constant 0 : index
    %c0_15 = arith.constant 0 : index
    %c0_16 = arith.constant 0 : index
    %23 = vector.load %arg6[%c0_14, %c0_15, %c0_16] : memref<1x1x128xf32, #tpu.memory_space<vmem>>, vector<1x1x128xf32>
    tpu.vector_store %arg6[%c0_14, %c0_15, %c0_16], %22 {strides = array<i32>} : memref<1x1x128xf32, #tpu.memory_space<vmem>>, vector<1x1x128xf32>,
    return
  }
  func.func @transform_0(%arg0: i32) -> (i32, i32) {
    %c0_i32 = arith.constant 0 : i32
    %c0_i32_0 = arith.constant 0 : i32
    return %arg0, %c0_i32 : i32, i32
  }
  func.func @transform_1(%arg0: i32) -> (i32, i32) {
    %c0_i32 = arith.constant 0 : i32
    %c0_i32_0 = arith.constant 0 : i32
    %c0_i32_1 = arith.constant 0 : i32
    return %c0_i32, %c0_i32_0 : i32, i32
  }
  func.func @transform_2(%arg0: i32) -> (i32, i32) {
    %c0_i32 = arith.constant 0 : i32
    %c0_i32_0 = arith.constant 0 : i32
    %c0_i32_1 = arith.constant 0 : i32
    return %c0_i32, %c0_i32_0 : i32, i32
  }
  func.func @transform_3(%arg0: i32) -> (i32, i32) {
    %c0_i32 = arith.constant 0 : i32
    %c0_i32_0 = arith.constant 0 : i32
    return %arg0, %c0_i32 : i32, i32
  }
  func.func @transform_4(%arg0: i32) -> (i32, i32, i32) {
    %c0_i32 = arith.constant 0 : i32
    %c0_i32_0 = arith.constant 0 : i32
    %c0_i32_1 = arith.constant 0 : i32
    return %arg0, %c0_i32, %c0_i32_0 : i32, i32, i32
  }
  func.func @transform_5(%arg0: i32) -> (i32, i32, i32) {
    %c0_i32 = arith.constant 0 : i32
    %c0_i32_0 = arith.constant 0 : i32
    %c0_i32_1 = arith.constant 0 : i32
    return %arg0, %c0_i32, %c0_i32_0 : i32, i32, i32
  }
}

module attributes {stable_mosaic.version = 11 : i64} {
  func.func @bn_relu_kernel(%arg0: i32, %arg1: memref<8x128xf32, #tpu.memory_space<vmem>>, %arg2: memref<1x128xf32, #tpu.memory_space<vmem>>, %arg3: memref<1x128xf32, #tpu.memory_space<vmem>>, %arg4: memref<8x48xbf16, #tpu.memory_space<vmem>>) attributes {dimension_semantics = [#tpu.dimension_semantics<parallel>], iteration_bounds = array<i64: 1>, scalar_prefetch = 0 : i64, scratch_operands = 0 : i64, tpu.core_type = #tpu.core_type<tc>, window_params = [{transform_indices = @transform_0, window_bounds = array<i64: 8, 128>}, {pipeline_mode = #tpu.pipeline_mode<synchronous>, transform_indices = @transform_1, window_bounds = array<i64: 1, 128>}, {pipeline_mode = #tpu.pipeline_mode<synchronous>, transform_indices = @transform_2, window_bounds = array<i64: 1, 128>}, {transform_indices = @transform_3, window_bounds = array<i64: 8, 48>}]} {
    %c0 = arith.constant 0 : index
    %c0_0 = arith.constant 0 : index
    %0 = vector.load %arg1[%c0, %c0_0] : memref<8x128xf32, #tpu.memory_space<vmem>>, vector<8x128xf32>
    %c0_1 = arith.constant 0 : index
    %c0_2 = arith.constant 0 : index
    %1 = vector.load %arg2[%c0_1, %c0_2] : memref<1x128xf32, #tpu.memory_space<vmem>>, vector<1x128xf32>
    %2 = vector.broadcast %1 : vector<1x128xf32> to vector<8x128xf32>
    %3 = arith.mulf %0, %2 : vector<8x128xf32>
    %c0_3 = arith.constant 0 : index
    %c0_4 = arith.constant 0 : index
    %4 = vector.load %arg3[%c0_3, %c0_4] : memref<1x128xf32, #tpu.memory_space<vmem>>, vector<1x128xf32>
    %5 = vector.broadcast %4 : vector<1x128xf32> to vector<8x128xf32>
    %6 = arith.addf %3, %5 : vector<8x128xf32>
    %cst = arith.constant 0.000000e+00 : f32
    %7 = vector.broadcast %cst : f32 to vector<8x128xf32>
    %8 = arith.maximumf %6, %7 : vector<8x128xf32>
    %9 = vector.extract_strided_slice %8 {offsets = [0, 0], sizes = [8, 48], strides = [1, 1]} : vector<8x128xf32> to vector<8x48xf32>
    %10 = arith.truncf %9 : vector<8x48xf32> to vector<8x48xbf16>
    %c0_5 = arith.constant 0 : index
    %c0_6 = arith.constant 0 : index
    %11 = vector.load %arg4[%c0_5, %c0_6] : memref<8x48xbf16, #tpu.memory_space<vmem>>, vector<8x48xbf16>
    tpu.vector_store %arg4[%c0_5, %c0_6], %10 {strides = array<i32>} : memref<8x48xbf16, #tpu.memory_space<vmem>>, vector<8x48xbf16>,
    return
  }
  func.func @transform_0(%arg0: i32) -> (i32, i32) {
    %c0_i32 = arith.constant 0 : i32
    %c0_i32_0 = arith.constant 0 : i32
    return %arg0, %c0_i32 : i32, i32
  }
  func.func @transform_1(%arg0: i32) -> (i32, i32) {
    %c0_i32 = arith.constant 0 : i32
    %c0_i32_0 = arith.constant 0 : i32
    %c0_i32_1 = arith.constant 0 : i32
    return %c0_i32, %c0_i32_0 : i32, i32
  }
  func.func @transform_2(%arg0: i32) -> (i32, i32) {
    %c0_i32 = arith.constant 0 : i32
    %c0_i32_0 = arith.constant 0 : i32
    %c0_i32_1 = arith.constant 0 : i32
    return %c0_i32, %c0_i32_0 : i32, i32
  }
  func.func @transform_3(%arg0: i32) -> (i32, i32) {
    %c0_i32 = arith.constant 0 : i32
    %c0_i32_0 = arith.constant 0 : i32
    return %arg0, %c0_i32 : i32, i32
  }
}

module attributes {stable_mosaic.version = 11 : i64} {
  func.func @fused_mlp_kernel(%arg0: i32, %arg1: memref<8x256xbf16, #tpu.memory_space<vmem>>, %arg2: memref<256x128xbf16, #tpu.memory_space<vmem>>, %arg3: memref<1x128xf32, #tpu.memory_space<vmem>>, %arg4: memref<128x128xbf16, #tpu.memory_space<vmem>>, %arg5: memref<1x128xf32, #tpu.memory_space<vmem>>, %arg6: memref<128x128xbf16, #tpu.memory_space<vmem>>, %arg7: memref<1x128xf32, #tpu.memory_space<vmem>>, %arg8: memref<8x128xf32, #tpu.memory_space<vmem>>) attributes {dimension_semantics = [#tpu.dimension_semantics<arbitrary>], iteration_bounds = array<i64: 1>, scalar_prefetch = 0 : i64, scratch_operands = 0 : i64, tpu.core_type = #tpu.core_type<tc>, window_params = [{pipeline_mode = #tpu.pipeline_mode<synchronous>, transform_indices = @transform_0, window_bounds = array<i64: 8, 256>}, {pipeline_mode = #tpu.pipeline_mode<synchronous>, transform_indices = @transform_1, window_bounds = array<i64: 256, 128>}, {pipeline_mode = #tpu.pipeline_mode<synchronous>, transform_indices = @transform_2, window_bounds = array<i64: 1, 128>}, {pipeline_mode = #tpu.pipeline_mode<synchronous>, transform_indices = @transform_3, window_bounds = array<i64: 128, 128>}, {pipeline_mode = #tpu.pipeline_mode<synchronous>, transform_indices = @transform_4, window_bounds = array<i64: 1, 128>}, {pipeline_mode = #tpu.pipeline_mode<synchronous>, transform_indices = @transform_5, window_bounds = array<i64: 128, 128>}, {pipeline_mode = #tpu.pipeline_mode<synchronous>, transform_indices = @transform_6, window_bounds = array<i64: 1, 128>}, {pipeline_mode = #tpu.pipeline_mode<synchronous>, transform_indices = @transform_7, window_bounds = array<i64: 8, 128>}]} {
    %c0 = arith.constant 0 : index
    %c0_0 = arith.constant 0 : index
    %0 = vector.load %arg1[%c0, %c0_0] : memref<8x256xbf16, #tpu.memory_space<vmem>>, vector<8x256xbf16>
    %c0_1 = arith.constant 0 : index
    %c0_2 = arith.constant 0 : index
    %1 = vector.load %arg2[%c0_1, %c0_2] : memref<256x128xbf16, #tpu.memory_space<vmem>>, vector<256x128xbf16>
    %cst = arith.constant dense<0.000000e+00> : vector<8x128xf32>
    %2 = tpu.matmul %0, %1, %cst {dimension_numbers = #tpu.dot_dimension_numbers<[1], [0], [0], [1], [0, 0, 1, 1], [], []>} : vector<8x256xbf16>, vector<256x128xbf16>, vector<8x128xf32> -> vector<8x128xf32>
    %c0_3 = arith.constant 0 : index
    %c0_4 = arith.constant 0 : index
    %3 = vector.load %arg3[%c0_3, %c0_4] : memref<1x128xf32, #tpu.memory_space<vmem>>, vector<1x128xf32>
    %4 = vector.broadcast %3 : vector<1x128xf32> to vector<8x128xf32>
    %5 = arith.addf %2, %4 : vector<8x128xf32>
    %cst_5 = arith.constant 0.000000e+00 : f32
    %6 = vector.broadcast %cst_5 : f32 to vector<8x128xf32>
    %7 = arith.maximumf %5, %6 : vector<8x128xf32>
    %8 = arith.truncf %7 : vector<8x128xf32> to vector<8x128xbf16>
    %c0_6 = arith.constant 0 : index
    %c0_7 = arith.constant 0 : index
    %9 = vector.load %arg4[%c0_6, %c0_7] : memref<128x128xbf16, #tpu.memory_space<vmem>>, vector<128x128xbf16>
    %cst_8 = arith.constant dense<0.000000e+00> : vector<8x128xf32>
    %10 = tpu.matmul %8, %9, %cst_8 {dimension_numbers = #tpu.dot_dimension_numbers<[1], [0], [0], [1], [0, 0, 1, 1], [], []>} : vector<8x128xbf16>, vector<128x128xbf16>, vector<8x128xf32> -> vector<8x128xf32>
    %c0_9 = arith.constant 0 : index
    %c0_10 = arith.constant 0 : index
    %11 = vector.load %arg5[%c0_9, %c0_10] : memref<1x128xf32, #tpu.memory_space<vmem>>, vector<1x128xf32>
    %12 = vector.broadcast %11 : vector<1x128xf32> to vector<8x128xf32>
    %13 = arith.addf %10, %12 : vector<8x128xf32>
    %cst_11 = arith.constant 0.000000e+00 : f32
    %14 = vector.broadcast %cst_11 : f32 to vector<8x128xf32>
    %15 = arith.maximumf %13, %14 : vector<8x128xf32>
    %16 = arith.truncf %15 : vector<8x128xf32> to vector<8x128xbf16>
    %c0_12 = arith.constant 0 : index
    %c0_13 = arith.constant 0 : index
    %17 = vector.load %arg6[%c0_12, %c0_13] : memref<128x128xbf16, #tpu.memory_space<vmem>>, vector<128x128xbf16>
    %cst_14 = arith.constant dense<0.000000e+00> : vector<8x128xf32>
    %18 = tpu.matmul %16, %17, %cst_14 {dimension_numbers = #tpu.dot_dimension_numbers<[1], [0], [0], [1], [0, 0, 1, 1], [], []>} : vector<8x128xbf16>, vector<128x128xbf16>, vector<8x128xf32> -> vector<8x128xf32>
    %c0_15 = arith.constant 0 : index
    %c0_16 = arith.constant 0 : index
    %19 = vector.load %arg7[%c0_15, %c0_16] : memref<1x128xf32, #tpu.memory_space<vmem>>, vector<1x128xf32>
    %20 = vector.broadcast %19 : vector<1x128xf32> to vector<8x128xf32>
    %21 = arith.addf %18, %20 : vector<8x128xf32>
    %c0_17 = arith.constant 0 : index
    %c0_18 = arith.constant 0 : index
    %22 = vector.load %arg8[%c0_17, %c0_18] : memref<8x128xf32, #tpu.memory_space<vmem>>, vector<8x128xf32>
    tpu.vector_store %arg8[%c0_17, %c0_18], %21 {strides = array<i32>} : memref<8x128xf32, #tpu.memory_space<vmem>>, vector<8x128xf32>,
    return
  }
  func.func @transform_0(%arg0: i32) -> (i32, i32) {
    %c0_i32 = arith.constant 0 : i32
    %c0_i32_0 = arith.constant 0 : i32
    %c0_i32_1 = arith.constant 0 : i32
    return %c0_i32, %c0_i32_0 : i32, i32
  }
  func.func @transform_1(%arg0: i32) -> (i32, i32) {
    %c0_i32 = arith.constant 0 : i32
    %c0_i32_0 = arith.constant 0 : i32
    %c0_i32_1 = arith.constant 0 : i32
    return %c0_i32, %c0_i32_0 : i32, i32
  }
  func.func @transform_2(%arg0: i32) -> (i32, i32) {
    %c0_i32 = arith.constant 0 : i32
    %c0_i32_0 = arith.constant 0 : i32
    %c0_i32_1 = arith.constant 0 : i32
    return %c0_i32, %c0_i32_0 : i32, i32
  }
  func.func @transform_3(%arg0: i32) -> (i32, i32) {
    %c0_i32 = arith.constant 0 : i32
    %c0_i32_0 = arith.constant 0 : i32
    %c0_i32_1 = arith.constant 0 : i32
    return %c0_i32, %c0_i32_0 : i32, i32
  }
  func.func @transform_4(%arg0: i32) -> (i32, i32) {
    %c0_i32 = arith.constant 0 : i32
    %c0_i32_0 = arith.constant 0 : i32
    %c0_i32_1 = arith.constant 0 : i32
    return %c0_i32, %c0_i32_0 : i32, i32
  }
  func.func @transform_5(%arg0: i32) -> (i32, i32) {
    %c0_i32 = arith.constant 0 : i32
    %c0_i32_0 = arith.constant 0 : i32
    %c0_i32_1 = arith.constant 0 : i32
    return %c0_i32, %c0_i32_0 : i32, i32
  }
  func.func @transform_6(%arg0: i32) -> (i32, i32) {
    %c0_i32 = arith.constant 0 : i32
    %c0_i32_0 = arith.constant 0 : i32
    %c0_i32_1 = arith.constant 0 : i32
    return %c0_i32, %c0_i32_0 : i32, i32
  }
  func.func @transform_7(%arg0: i32) -> (i32, i32) {
    %c0_i32 = arith.constant 0 : i32
    %c0_i32_0 = arith.constant 0 : i32
    %c0_i32_1 = arith.constant 0 : i32
    return %c0_i32, %c0_i32_0 : i32, i32
  }
}

</mosaic_0001>

<bundles_post_ra>
// kernel: cnn3d_forward.8
= control target key start
LH: loop header
LB: loop body
LE: loop exit
PB: predicated region body
PF: predicated region fallthrough
CT: control target
= control target key end

     0   :  { %s1150_s12 = smov 0   ;;  %s1152_s13 = smov 0   ;;  %s1667_s0 = inlined_call_operand.vmem [shape: f32[6174,128], index: 0, kind: input, shape index: {}]   ;;  %s1668_s1 = inlined_call_operand.vmem [shape: f32[1,128], index: 1, kind: input, shape index: {}]   ;;  %s1669_s2 = inlined_call_operand.vmem [shape: f32[1,128], index: 2, kind: input, shape index: {}]   ;;  %s1670_s3 = inlined_call_operand.vmem [shape: bf16[6174,32], index: 3, kind: output, shape index: {}]  }
   0x1   :  { %s1154_s14 = smov 0  }
   0x2 LB: > { %s1163_s15 = sadd.s32 4294967295, %s1096_s14   ;;  %s1165_s16 = sadd.s32 1, %s1096_s14   ;;  %s1096_s14 = sphi %s1154_s14, %s1679_s14   ;;  %s1092_s13 = sphi %s1152_s13, %s1678_s13   ;;  %s1088_s12 = sphi %s1150_s12, %s1677_s12  }
   0x3   : > { %s85_s17 = ssub.s32 %s1096_s14, %s1165_s16  ;;  %s88_s18 = sadd.s32 1, %s1092_s13 }
   0x4   : > { %p86_p0 = scmp.eq.s32.totalorder %s85_s17, 0  ;;  %p98_p1 = scmp.ne.s32.totalorder %s1092_s13, %s1088_s12 }
   0x5   : > { %p99_p2 = scmp.eq.s32.totalorder %s1163_s15, 12  ;;  %p928_p3 = scmp.ge.s32.totalorder %s1096_s14, 1 }
   0x6   : > { %s1173_s19 = scalar_select %p86_p0, %s1092_s13, %s88_s18  }
   0x7   : > { %p1175_p4 = por %p99_p2, %p98_p1  ;;  %p146_p5 = scmp.lt.s32.totalorder %s1096_s14, 14 }
   0x9   : > { %p147_p6 = pnand %p928_p3, %p146_p5 }
   0xa   : > { %s1180_s21 = sshll.u32 (!%p147_p6), %s1163_s15, 6  ;;  %s170_s26 = sand.u32 (!%p147_p6), 1, %s1088_s12  }
   0xb   : > { %150 = sbr.rel (%p147_p6) target bundleno = 157 (0x9d), region = 32  ;;  %p178_p7 = scmp.lt.s32.totalorder (!%p147_p6), %s1180_s21, 771 }
   0xc   : > { %s1209_s5 = sshll.u32 (!%p147_p6), %s170_s26, 8 }
   0xd   : > { %s1234_s6 = scalar_lea.vmem (!%p147_p6), [#allocation2], %s1209_s5  }
  0x10   : > { %s179_s22 = scalar_select %p178_p7, %s1180_s21, 771  ;;  %v1187_v0 = vld [vmem:[%s1668_s1] ss:$0 sm:$0xff]  ;;  %vm520_vm0 = vcmask 257024  }
  0x11   : > { %v1198_v1 = vld [vmem:[%s1669_s2] ss:$0 sm:$0xff]  ;;  %s593_s7 = ssub.s32 (%p1175_p4), 772, %s1180_s21  ;;  %s949_s8 = sshll.u32 (%p1175_p4), %s1163_s15, 8 }
  0x12   : > { %s931_s25 = sshll.u32 %s179_s22, 3  ;;  %p594_p8 = scmp.lt.s32.totalorder (%p1175_p4), %s593_s7, 64 }
  0x13   : > { %s1193_s29 = scalar_lea.vmem %s1667_s0, %s931_s25  ;;  %s1532_s11 = scalar_lea.vmem (%p1175_p4), %s1670_s3, %s949_s8  }
  0x14   : > { %v192_v2 = vld [vmem:[%s1193_s29] sm:$0xff]  ;;  %v193_v3 = vld [vmem:[%s1193_s29 + $0x8] sm:$0xff]  ;;  %v194_v4 = vld [vmem:[%s1193_s29 + $0x10] sm:$0xff] }
  0x15   : > { %v260_v5 = vmul.f32 %v1187_v0, %v192_v2  ;;  %v261_v6 = vmul.f32 %v1187_v0, %v193_v3  ;;  %v262_v7 = vmul.f32 %v1187_v0, %v194_v4  ;;  %v195_v8 = vld [vmem:[%s1193_s29 + $0x18] sm:$0xff]  ;;  %v196_v9 = vld [vmem:[%s1193_s29 + $0x20] sm:$0xff]  ;;  %v197_v10 = vld [vmem:[%s1193_s29 + $0x28] sm:$0xff] }
  0x16   : > { %v263_v11 = vmul.f32 %v1187_v0, %v195_v8  ;;  %v264_v12 = vmul.f32 %v1187_v0, %v196_v9  ;;  %v265_v13 = vmul.f32 %v1187_v0, %v197_v10  ;;  %v198_v14 = vld [vmem:[%s1193_s29 + $0x30] sm:$0xff]  ;;  %v199_v15 = vld [vmem:[%s1193_s29 + $0x38] sm:$0xff]  ;;  %v200_v32 = vld [vmem:[%s1193_s29 + $0x40] sm:$0xff] }
  0x17   : > { %v328_v16 = vadd.f32 %v1198_v1, %v260_v5  ;;  %v329_v17 = vadd.f32 %v1198_v1, %v261_v6  ;;  %v330_v18 = vadd.f32 %v1198_v1, %v262_v7  ;;  %v266_v19 = vmul.f32 %v1187_v0, %v198_v14  ;;  %v201_v33 = vld [vmem:[%s1193_s29 + $0x48] sm:$0xff]  ;;  %v202_v34 = vld [vmem:[%s1193_s29 + $0x50] sm:$0xff]  ;;  %v203_v39 = vld [vmem:[%s1193_s29 + $0x58] sm:$0xff] }
  0x18   : > { %v331_v20 = vadd.f32 %v1198_v1, %v263_v11  ;;  %v332_v21 = vadd.f32 %v1198_v1, %v264_v12  ;;  %v333_v22 = vadd.f32 %v1198_v1, %v265_v13  ;;  %v267_v23 = vmul.f32 %v1187_v0, %v199_v15  ;;  %v204_v40 = vld [vmem:[%s1193_s29 + $0x60] sm:$0xff]  ;;  %v205_v41 = vld [vmem:[%s1193_s29 + $0x68] sm:$0xff]  ;;  %v206_v46 = vld [vmem:[%s1193_s29 + $0x70] sm:$0xff] }
  0x19   : > { %v392_v24 = vmax.f32 %v328_v16, 0.0  ;;  %v393_v25 = vmax.f32 %v329_v17, 0.0  ;;  %v394_v26 = vmax.f32 %v330_v18, 0.0  ;;  %v334_v27 = vadd.f32 %v1198_v1, %v266_v19  ;;  %v207_v51 = vld [vmem:[%s1193_s29 + $0x78] sm:$0xff]  ;;  %v208_v2 = vld [vmem:[%s1193_s29 + $0x80] sm:$0xff]  ;;  %v209_v7 = vld [vmem:[%s1193_s29 + $0x88] sm:$0xff] }
  0x1a   : > { %v395_v28 = vmax.f32 %v331_v20, 0.0  ;;  %v396_v29 = vmax.f32 %v332_v21, 0.0  ;;  %v397_v30 = vmax.f32 %v333_v22, 0.0  ;;  %v335_v31 = vadd.f32 %v1198_v1, %v267_v23  ;;  %v210_v12 = vld [vmem:[%s1193_s29 + $0x90] sm:$0xff]  ;;  %v211_v17 = vld [vmem:[%s1193_s29 + $0x98] sm:$0xff]  ;;  %v212_v18 = vld [vmem:[%s1193_s29 + $0xa0] sm:$0xff] }
  0x1b   : > { %v456_v35 = vpack.c.bf16 %v392_v24, %v392_v24  ;;  %v457_v36 = vpack.c.bf16 %v393_v25, %v393_v25  ;;  %v458_v37 = vpack.c.bf16 %v394_v26, %v394_v26  ;;  %v398_v38 = vmax.f32 %v334_v27, 0.0  ;;  %v213_v19 = vld [vmem:[%s1193_s29 + $0xa8] sm:$0xff]  ;;  %v214_v24 = vld [vmem:[%s1193_s29 + $0xb0] sm:$0xff] }
  0x1c   : > { %v459_v42 = vpack.c.bf16 %v395_v28, %v395_v28  ;;  %v460_v43 = vpack.c.bf16 %v396_v29, %v396_v29  ;;  %v461_v44 = vpack.c.bf16 %v397_v30, %v397_v30  ;;  %v399_v45 = vmax.f32 %v335_v31, 0.0  ;;  %v215_v29 = vld [vmem:[%s1193_s29 + $0xb8] sm:$0xff] }
  0x1d   : > { %521 = vst.msk [vmem:[%s1234_s6] sm:$0xf] %vm520_vm0, %v456_v35  ;;  %v462_v47 = vpack.c.bf16 %v398_v38, %v398_v38  ;;  %v268_v48 = vmul.f32 %v1187_v0, %v200_v32  ;;  %v269_v49 = vmul.f32 %v1187_v0, %v201_v33  ;;  %v270_v50 = vmul.f32 %v1187_v0, %v202_v34 }
  0x1e   : > { %522 = vst.msk [vmem:[%s1234_s6 + $0x4] sm:$0xf] %vm520_vm0, %v457_v36  ;;  %v463_v52 = vpack.c.bf16 %v399_v45, %v399_v45  ;;  %v271_v53 = vmul.f32 %v1187_v0, %v203_v39  ;;  %v272_v54 = vmul.f32 %v1187_v0, %v204_v40  ;;  %v273_v55 = vmul.f32 %v1187_v0, %v205_v41 }
  0x1f   : > { %523 = vst.msk [vmem:[%s1234_s6 + $0x8] sm:$0xf] %vm520_vm0, %v458_v37  ;;  %v336_v56 = vadd.f32 %v1198_v1, %v268_v48  ;;  %v337_v57 = vadd.f32 %v1198_v1, %v269_v49  ;;  %v338_v58 = vadd.f32 %v1198_v1, %v270_v50  ;;  %v274_v59 = vmul.f32 %v1187_v0, %v206_v46 }
  0x20   : > { %524 = vst.msk [vmem:[%s1234_s6 + $0xc] sm:$0xf] %vm520_vm0, %v459_v42  ;;  %v339_v60 = vadd.f32 %v1198_v1, %v271_v53  ;;  %v340_v61 = vadd.f32 %v1198_v1, %v272_v54  ;;  %v341_v62 = vadd.f32 %v1198_v1, %v273_v55  ;;  %v275_v63 = vmul.f32 %v1187_v0, %v207_v51  ;;  %v216_v42 = vld [vmem:[%s1193_s29 + $0xc0] sm:$0xff] }
  0x21   : > { %525 = vst.msk [vmem:[%s1234_s6 + $0x10] sm:$0xf] %vm520_vm0, %v460_v43  ;;  %v400_v3 = vmax.f32 %v336_v56, 0.0  ;;  %v401_v4 = vmax.f32 %v337_v57, 0.0  ;;  %v402_v5 = vmax.f32 %v338_v58, 0.0  ;;  %v342_v6 = vadd.f32 %v1198_v1, %v274_v59  ;;  %v219_v57 = vld [vmem:[%s1193_s29 + $0xd8] sm:$0xff] }
  0x22   : > { %526 = vst.msk [vmem:[%s1234_s6 + $0x14] sm:$0xf] %vm520_vm0, %v461_v44  ;;  %v403_v8 = vmax.f32 %v339_v60, 0.0  ;;  %v404_v9 = vmax.f32 %v340_v61, 0.0  ;;  %v405_v10 = vmax.f32 %v341_v62, 0.0  ;;  %v343_v11 = vadd.f32 %v1198_v1, %v275_v63  ;;  %v220_v58 = vld [vmem:[%s1193_s29 + $0xe0] sm:$0xff] }
  0x23   : > { %527 = vst.msk [vmem:[%s1234_s6 + $0x18] sm:$0xf] %vm520_vm0, %v462_v47  ;;  %v464_v13 = vpack.c.bf16 %v400_v3, %v400_v3  ;;  %v465_v14 = vpack.c.bf16 %v401_v4, %v401_v4  ;;  %v466_v15 = vpack.c.bf16 %v402_v5, %v402_v5  ;;  %v406_v16 = vmax.f32 %v342_v6, 0.0  ;;  %v217_v47 = vld [vmem:[%s1193_s29 + $0xc8] sm:$0xff] }
  0x24   : > { %528 = vst.msk [vmem:[%s1234_s6 + $0x1c] sm:$0xf] %vm520_vm0, %v463_v52  ;;  %v467_v20 = vpack.c.bf16 %v403_v8, %v403_v8  ;;  %v468_v21 = vpack.c.bf16 %v404_v9, %v404_v9  ;;  %v469_v22 = vpack.c.bf16 %v405_v10, %v405_v10  ;;  %v407_v23 = vmax.f32 %v343_v11, 0.0  ;;  %v218_v52 = vld [vmem:[%s1193_s29 + $0xd0] sm:$0xff]  ;;  %v221_v59 = vld [vmem:[%s1193_s29 + $0xe8] sm:$0xff] }
  0x25   : > { %529 = vst.msk [vmem:[%s1234_s6 + $0x20] sm:$0xf] %vm520_vm0, %v464_v13  ;;  %v470_v25 = vpack.c.bf16 %v406_v16, %v406_v16  ;;  %v276_v26 = vmul.f32 %v1187_v0, %v208_v2  ;;  %v277_v27 = vmul.f32 %v1187_v0, %v209_v7  ;;  %v278_v28 = vmul.f32 %v1187_v0, %v210_v12  ;;  %v222_v2 = vld [vmem:[%s1193_s29 + $0xf0] sm:$0xff]  ;;  %v223_v7 = vld [vmem:[%s1193_s29 + $0xf8] sm:$0xff] }
  0x26   : > { %530 = vst.msk [vmem:[%s1234_s6 + $0x24] sm:$0xf] %vm520_vm0, %v465_v14  ;;  %v471_v30 = vpack.c.bf16 %v407_v23, %v407_v23  ;;  %v279_v31 = vmul.f32 %v1187_v0, %v211_v17  ;;  %v280_v32 = vmul.f32 %v1187_v0, %v212_v18  ;;  %v281_v33 = vmul.f32 %v1187_v0, %v213_v19 }
  0x27   : > { %531 = vst.msk [vmem:[%s1234_s6 + $0x28] sm:$0xf] %vm520_vm0, %v466_v15  ;;  %v344_v34 = vadd.f32 %v1198_v1, %v276_v26  ;;  %v345_v35 = vadd.f32 %v1198_v1, %v277_v27  ;;  %v346_v36 = vadd.f32 %v1198_v1, %v278_v28  ;;  %v282_v37 = vmul.f32 %v1187_v0, %v214_v24 }
  0x28   : > { %532 = vst.msk [vmem:[%s1234_s6 + $0x2c] sm:$0xf] %vm520_vm0, %v467_v20  ;;  %v347_v38 = vadd.f32 %v1198_v1, %v279_v31  ;;  %v348_v39 = vadd.f32 %v1198_v1, %v280_v32  ;;  %v349_v40 = vadd.f32 %v1198_v1, %v281_v33  ;;  %v283_v41 = vmul.f32 %v1187_v0, %v215_v29  ;;  %v224_v20 = vld [vmem:[%s1193_s29 + $0x100] sm:$0xff] }
  0x29   : > { %533 = vst.msk [vmem:[%s1234_s6 + $0x30] sm:$0xf] %vm520_vm0, %v468_v21  ;;  %v408_v43 = vmax.f32 %v344_v34, 0.0  ;;  %v409_v44 = vmax.f32 %v345_v35, 0.0  ;;  %v410_v45 = vmax.f32 %v346_v36, 0.0  ;;  %v350_v46 = vadd.f32 %v1198_v1, %v282_v37  ;;  %v227_v35 = vld [vmem:[%s1193_s29 + $0x118] sm:$0xff] }
  0x2a   : > { %534 = vst.msk [vmem:[%s1234_s6 + $0x34] sm:$0xf] %vm520_vm0, %v469_v22  ;;  %v411_v48 = vmax.f32 %v347_v38, 0.0  ;;  %v412_v49 = vmax.f32 %v348_v39, 0.0  ;;  %v413_v50 = vmax.f32 %v349_v40, 0.0  ;;  %v351_v51 = vadd.f32 %v1198_v1, %v283_v41  ;;  %v228_v36 = vld [vmem:[%s1193_s29 + $0x120] sm:$0xff] }
  0x2b   : > { %535 = vst.msk [vmem:[%s1234_s6 + $0x38] sm:$0xf] %vm520_vm0, %v470_v25  ;;  %v472_v53 = vpack.c.bf16 %v408_v43, %v408_v43  ;;  %v473_v54 = vpack.c.bf16 %v409_v44, %v409_v44  ;;  %v474_v55 = vpack.c.bf16 %v410_v45, %v410_v45  ;;  %v414_v56 = vmax.f32 %v350_v46, 0.0  ;;  %v225_v25 = vld [vmem:[%s1193_s29 + $0x108] sm:$0xff] }
  0x2c   : > { %536 = vst.msk [vmem:[%s1234_s6 + $0x3c] sm:$0xf] %vm520_vm0, %v471_v30  ;;  %v475_v60 = vpack.c.bf16 %v411_v48, %v411_v48  ;;  %v476_v61 = vpack.c.bf16 %v412_v49, %v412_v49  ;;  %v477_v62 = vpack.c.bf16 %v413_v50, %v413_v50  ;;  %v415_v63 = vmax.f32 %v351_v51, 0.0  ;;  %v226_v30 = vld [vmem:[%s1193_s29 + $0x110] sm:$0xff]  ;;  %v229_v37 = vld [vmem:[%s1193_s29 + $0x128] sm:$0xff] }
  0x2d   : > { %537 = vst.msk [vmem:[%s1234_s6 + $0x40] sm:$0xf] %vm520_vm0, %v472_v53  ;;  %v478_v3 = vpack.c.bf16 %v414_v56, %v414_v56  ;;  %v284_v4 = vmul.f32 %v1187_v0, %v216_v42  ;;  %v285_v5 = vmul.f32 %v1187_v0, %v217_v47  ;;  %v286_v6 = vmul.f32 %v1187_v0, %v218_v52  ;;  %v230_v42 = vld [vmem:[%s1193_s29 + $0x130] sm:$0xff]  ;;  %v231_v47 = vld [vmem:[%s1193_s29 + $0x138] sm:$0xff] }
  0x2e   : > { %538 = vst.msk [vmem:[%s1234_s6 + $0x44] sm:$0xf] %vm520_vm0, %v473_v54  ;;  %v479_v8 = vpack.c.bf16 %v415_v63, %v415_v63  ;;  %v287_v9 = vmul.f32 %v1187_v0, %v219_v57  ;;  %v288_v10 = vmul.f32 %v1187_v0, %v220_v58  ;;  %v289_v11 = vmul.f32 %v1187_v0, %v221_v59 }
  0x2f   : > { %539 = vst.msk [vmem:[%s1234_s6 + $0x48] sm:$0xf] %vm520_vm0, %v474_v55  ;;  %v352_v12 = vadd.f32 %v1198_v1, %v284_v4  ;;  %v353_v13 = vadd.f32 %v1198_v1, %v285_v5  ;;  %v354_v14 = vadd.f32 %v1198_v1, %v286_v6  ;;  %v290_v15 = vmul.f32 %v1187_v0, %v222_v2 }
  0x30   : > { %540 = vst.msk [vmem:[%s1234_s6 + $0x4c] sm:$0xf] %vm520_vm0, %v475_v60  ;;  %v355_v16 = vadd.f32 %v1198_v1, %v287_v9  ;;  %v356_v17 = vadd.f32 %v1198_v1, %v288_v10  ;;  %v357_v18 = vadd.f32 %v1198_v1, %v289_v11  ;;  %v291_v19 = vmul.f32 %v1187_v0, %v223_v7  ;;  %v232_v60 = vld [vmem:[%s1193_s29 + $0x140] sm:$0xff] }
  0x31   : > { %541 = vst.msk [vmem:[%s1234_s6 + $0x50] sm:$0xf] %vm520_vm0, %v476_v61  ;;  %v416_v21 = vmax.f32 %v352_v12, 0.0  ;;  %v417_v22 = vmax.f32 %v353_v13, 0.0  ;;  %v418_v23 = vmax.f32 %v354_v14, 0.0  ;;  %v358_v24 = vadd.f32 %v1198_v1, %v290_v15  ;;  %v235_v13 = vld [vmem:[%s1193_s29 + $0x158] sm:$0xff] }
  0x32   : > { %542 = vst.msk [vmem:[%s1234_s6 + $0x54] sm:$0xf] %vm520_vm0, %v477_v62  ;;  %v419_v26 = vmax.f32 %v355_v16, 0.0  ;;  %v420_v27 = vmax.f32 %v356_v17, 0.0  ;;  %v421_v28 = vmax.f32 %v357_v18, 0.0  ;;  %v359_v29 = vadd.f32 %v1198_v1, %v291_v19  ;;  %v236_v14 = vld [vmem:[%s1193_s29 + $0x160] sm:$0xff] }
  0x33   : > { %543 = vst.msk [vmem:[%s1234_s6 + $0x58] sm:$0xf] %vm520_vm0, %v478_v3  ;;  %v480_v31 = vpack.c.bf16 %v416_v21, %v416_v21  ;;  %v481_v32 = vpack.c.bf16 %v417_v22, %v417_v22  ;;  %v482_v33 = vpack.c.bf16 %v418_v23, %v418_v23  ;;  %v422_v34 = vmax.f32 %v358_v24, 0.0  ;;  %v233_v3 = vld [vmem:[%s1193_s29 + $0x148] sm:$0xff] }
  0x34   : > { %544 = vst.msk [vmem:[%s1234_s6 + $0x5c] sm:$0xf] %vm520_vm0, %v479_v8  ;;  %v483_v38 = vpack.c.bf16 %v419_v26, %v419_v26  ;;  %v484_v39 = vpack.c.bf16 %v420_v27, %v420_v27  ;;  %v485_v40 = vpack.c.bf16 %v421_v28, %v421_v28  ;;  %v423_v41 = vmax.f32 %v359_v29, 0.0  ;;  %v234_v8 = vld [vmem:[%s1193_s29 + $0x150] sm:$0xff]  ;;  %v237_v15 = vld [vmem:[%s1193_s29 + $0x168] sm:$0xff] }
  0x35   : > { %545 = vst.msk [vmem:[%s1234_s6 + $0x60] sm:$0xf] %vm520_vm0, %v480_v31  ;;  %v486_v43 = vpack.c.bf16 %v422_v34, %v422_v34  ;;  %v292_v44 = vmul.f32 %v1187_v0, %v224_v20  ;;  %v293_v45 = vmul.f32 %v1187_v0, %v225_v25  ;;  %v294_v46 = vmul.f32 %v1187_v0, %v226_v30  ;;  %v238_v20 = vld [vmem:[%s1193_s29 + $0x170] sm:$0xff]  ;;  %v239_v25 = vld [vmem:[%s1193_s29 + $0x178] sm:$0xff] }
  0x36   : > { %546 = vst.msk [vmem:[%s1234_s6 + $0x64] sm:$0xf] %vm520_vm0, %v481_v32  ;;  %v487_v48 = vpack.c.bf16 %v423_v41, %v423_v41  ;;  %v295_v49 = vmul.f32 %v1187_v0, %v227_v35  ;;  %v296_v50 = vmul.f32 %v1187_v0, %v228_v36  ;;  %v297_v51 = vmul.f32 %v1187_v0, %v229_v37 }
  0x37   : > { %547 = vst.msk [vmem:[%s1234_s6 + $0x68] sm:$0xf] %vm520_vm0, %v482_v33  ;;  %v360_v52 = vadd.f32 %v1198_v1, %v292_v44  ;;  %v361_v53 = vadd.f32 %v1198_v1, %v293_v45  ;;  %v362_v54 = vadd.f32 %v1198_v1, %v294_v46  ;;  %v298_v55 = vmul.f32 %v1187_v0, %v230_v42 }
  0x38   : > { %548 = vst.msk [vmem:[%s1234_s6 + $0x6c] sm:$0xf] %vm520_vm0, %v483_v38  ;;  %v363_v56 = vadd.f32 %v1198_v1, %v295_v49  ;;  %v364_v57 = vadd.f32 %v1198_v1, %v296_v50  ;;  %v365_v58 = vadd.f32 %v1198_v1, %v297_v51  ;;  %v299_v59 = vmul.f32 %v1187_v0, %v231_v47  ;;  %v240_v38 = vld [vmem:[%s1193_s29 + $0x180] sm:$0xff] }
  0x39   : > { %549 = vst.msk [vmem:[%s1234_s6 + $0x70] sm:$0xf] %vm520_vm0, %v484_v39  ;;  %v424_v61 = vmax.f32 %v360_v52, 0.0  ;;  %v425_v62 = vmax.f32 %v361_v53, 0.0  ;;  %v426_v63 = vmax.f32 %v362_v54, 0.0  ;;  %v366_v2 = vadd.f32 %v1198_v1, %v298_v55  ;;  %v243_v53 = vld [vmem:[%s1193_s29 + $0x198] sm:$0xff] }
  0x3a   : > { %550 = vst.msk [vmem:[%s1234_s6 + $0x74] sm:$0xf] %vm520_vm0, %v485_v40  ;;  %v427_v4 = vmax.f32 %v363_v56, 0.0  ;;  %v428_v5 = vmax.f32 %v364_v57, 0.0  ;;  %v429_v6 = vmax.f32 %v365_v58, 0.0  ;;  %v367_v7 = vadd.f32 %v1198_v1, %v299_v59  ;;  %v244_v54 = vld [vmem:[%s1193_s29 + $0x1a0] sm:$0xff] }
  0x3b   : > { %551 = vst.msk [vmem:[%s1234_s6 + $0x78] sm:$0xf] %vm520_vm0, %v486_v43  ;;  %v488_v9 = vpack.c.bf16 %v424_v61, %v424_v61  ;;  %v489_v10 = vpack.c.bf16 %v425_v62, %v425_v62  ;;  %v490_v11 = vpack.c.bf16 %v426_v63, %v426_v63  ;;  %v430_v12 = vmax.f32 %v366_v2, 0.0  ;;  %v241_v43 = vld [vmem:[%s1193_s29 + $0x188] sm:$0xff] }
  0x3c   : > { %552 = vst.msk [vmem:[%s1234_s6 + $0x7c] sm:$0xf] %vm520_vm0, %v487_v48  ;;  %v491_v16 = vpack.c.bf16 %v427_v4, %v427_v4  ;;  %v492_v17 = vpack.c.bf16 %v428_v5, %v428_v5  ;;  %v493_v18 = vpack.c.bf16 %v429_v6, %v429_v6  ;;  %v431_v19 = vmax.f32 %v367_v7, 0.0  ;;  %v242_v48 = vld [vmem:[%s1193_s29 + $0x190] sm:$0xff]  ;;  %v245_v55 = vld [vmem:[%s1193_s29 + $0x1a8] sm:$0xff] }
  0x3d   : > { %553 = vst.msk [vmem:[%s1234_s6 + $0x80] sm:$0xf] %vm520_vm0, %v488_v9  ;;  %v494_v21 = vpack.c.bf16 %v430_v12, %v430_v12  ;;  %v300_v22 = vmul.f32 %v1187_v0, %v232_v60  ;;  %v301_v23 = vmul.f32 %v1187_v0, %v233_v3  ;;  %v302_v24 = vmul.f32 %v1187_v0, %v234_v8  ;;  %v246_v60 = vld [vmem:[%s1193_s29 + $0x1b0] sm:$0xff]  ;;  %v247_v3 = vld [vmem:[%s1193_s29 + $0x1b8] sm:$0xff] }
  0x3e   : > { %554 = vst.msk [vmem:[%s1234_s6 + $0x84] sm:$0xf] %vm520_vm0, %v489_v10  ;;  %v495_v26 = vpack.c.bf16 %v431_v19, %v431_v19  ;;  %v303_v27 = vmul.f32 %v1187_v0, %v235_v13  ;;  %v304_v28 = vmul.f32 %v1187_v0, %v236_v14  ;;  %v305_v29 = vmul.f32 %v1187_v0, %v237_v15 }
  0x3f   : > { %555 = vst.msk [vmem:[%s1234_s6 + $0x88] sm:$0xf] %vm520_vm0, %v490_v11  ;;  %v368_v30 = vadd.f32 %v1198_v1, %v300_v22  ;;  %v369_v31 = vadd.f32 %v1198_v1, %v301_v23  ;;  %v370_v32 = vadd.f32 %v1198_v1, %v302_v24  ;;  %v306_v33 = vmul.f32 %v1187_v0, %v238_v20 }
  0x40   : > { %556 = vst.msk [vmem:[%s1234_s6 + $0x8c] sm:$0xf] %vm520_vm0, %v491_v16  ;;  %v371_v34 = vadd.f32 %v1198_v1, %v303_v27  ;;  %v372_v35 = vadd.f32 %v1198_v1, %v304_v28  ;;  %v373_v36 = vadd.f32 %v1198_v1, %v305_v29  ;;  %v307_v37 = vmul.f32 %v1187_v0, %v239_v25  ;;  %v248_v16 = vld [vmem:[%s1193_s29 + $0x1c0] sm:$0xff] }
  0x41   : > { %557 = vst.msk [vmem:[%s1234_s6 + $0x90] sm:$0xf] %vm520_vm0, %v492_v17  ;;  %v432_v39 = vmax.f32 %v368_v30, 0.0  ;;  %v433_v40 = vmax.f32 %v369_v31, 0.0  ;;  %v434_v41 = vmax.f32 %v370_v32, 0.0  ;;  %v374_v42 = vadd.f32 %v1198_v1, %v306_v33  ;;  %v251_v31 = vld [vmem:[%s1193_s29 + $0x1d8] sm:$0xff] }
  0x42   : > { %558 = vst.msk [vmem:[%s1234_s6 + $0x94] sm:$0xf] %vm520_vm0, %v493_v18  ;;  %v435_v44 = vmax.f32 %v371_v34, 0.0  ;;  %v436_v45 = vmax.f32 %v372_v35, 0.0  ;;  %v437_v46 = vmax.f32 %v373_v36, 0.0  ;;  %v375_v47 = vadd.f32 %v1198_v1, %v307_v37  ;;  %v252_v32 = vld [vmem:[%s1193_s29 + $0x1e0] sm:$0xff] }
  0x43   : > { %559 = vst.msk [vmem:[%s1234_s6 + $0x98] sm:$0xf] %vm520_vm0, %v494_v21  ;;  %v496_v49 = vpack.c.bf16 %v432_v39, %v432_v39  ;;  %v497_v50 = vpack.c.bf16 %v433_v40, %v433_v40  ;;  %v498_v51 = vpack.c.bf16 %v434_v41, %v434_v41  ;;  %v438_v52 = vmax.f32 %v374_v42, 0.0  ;;  %v249_v21 = vld [vmem:[%s1193_s29 + $0x1c8] sm:$0xff] }
  0x44   : > { %560 = vst.msk [vmem:[%s1234_s6 + $0x9c] sm:$0xf] %vm520_vm0, %v495_v26  ;;  %v499_v56 = vpack.c.bf16 %v435_v44, %v435_v44  ;;  %v500_v57 = vpack.c.bf16 %v436_v45, %v436_v45  ;;  %v501_v58 = vpack.c.bf16 %v437_v46, %v437_v46  ;;  %v439_v59 = vmax.f32 %v375_v47, 0.0  ;;  %v250_v26 = vld [vmem:[%s1193_s29 + $0x1d0] sm:$0xff]  ;;  %v253_v33 = vld [vmem:[%s1193_s29 + $0x1e8] sm:$0xff] }
  0x45   : > { %561 = vst.msk [vmem:[%s1234_s6 + $0xa0] sm:$0xf] %vm520_vm0, %v496_v49  ;;  %v502_v61 = vpack.c.bf16 %v438_v52, %v438_v52  ;;  %v308_v62 = vmul.f32 %v1187_v0, %v240_v38  ;;  %v309_v63 = vmul.f32 %v1187_v0, %v241_v43  ;;  %v310_v2 = vmul.f32 %v1187_v0, %v242_v48  ;;  %v254_v38 = vld [vmem:[%s1193_s29 + $0x1f0] sm:$0xff]  ;;  %v255_v43 = vld [vmem:[%s1193_s29 + $0x1f8] sm:$0xff] }
  0x46   : > { %562 = vst.msk [vmem:[%s1234_s6 + $0xa4] sm:$0xf] %vm520_vm0, %v497_v50  ;;  %v503_v4 = vpack.c.bf16 %v439_v59, %v439_v59  ;;  %v311_v5 = vmul.f32 %v1187_v0, %v243_v53  ;;  %v312_v6 = vmul.f32 %v1187_v0, %v244_v54  ;;  %v313_v7 = vmul.f32 %v1187_v0, %v245_v55 }
  0x47   : > { %563 = vst.msk [vmem:[%s1234_s6 + $0xa8] sm:$0xf] %vm520_vm0, %v498_v51  ;;  %v376_v8 = vadd.f32 %v1198_v1, %v308_v62  ;;  %v377_v9 = vadd.f32 %v1198_v1, %v309_v63  ;;  %v378_v10 = vadd.f32 %v1198_v1, %v310_v2  ;;  %v314_v11 = vmul.f32 %v1187_v0, %v246_v60 }
  0x48   : > { %564 = vst.msk [vmem:[%s1234_s6 + $0xac] sm:$0xf] %vm520_vm0, %v499_v56  ;;  %v379_v12 = vadd.f32 %v1198_v1, %v311_v5  ;;  %v380_v13 = vadd.f32 %v1198_v1, %v312_v6  ;;  %v381_v14 = vadd.f32 %v1198_v1, %v313_v7  ;;  %v315_v15 = vmul.f32 %v1187_v0, %v247_v3 }
  0x49   : > { %565 = vst.msk [vmem:[%s1234_s6 + $0xb0] sm:$0xf] %vm520_vm0, %v500_v57  ;;  %v440_v17 = vmax.f32 %v376_v8, 0.0  ;;  %v441_v18 = vmax.f32 %v377_v9, 0.0  ;;  %v442_v19 = vmax.f32 %v378_v10, 0.0  ;;  %v382_v20 = vadd.f32 %v1198_v1, %v314_v11 }
  0x4a   : > { %566 = vst.msk [vmem:[%s1234_s6 + $0xb4] sm:$0xf] %vm520_vm0, %v501_v58  ;;  %v443_v22 = vmax.f32 %v379_v12, 0.0  ;;  %v444_v23 = vmax.f32 %v380_v13, 0.0  ;;  %v445_v24 = vmax.f32 %v381_v14, 0.0  ;;  %v383_v25 = vadd.f32 %v1198_v1, %v315_v15 }
  0x4b   : > { %567 = vst.msk [vmem:[%s1234_s6 + $0xb8] sm:$0xf] %vm520_vm0, %v502_v61  ;;  %v504_v27 = vpack.c.bf16 %v440_v17, %v440_v17  ;;  %v505_v28 = vpack.c.bf16 %v441_v18, %v441_v18  ;;  %v506_v29 = vpack.c.bf16 %v442_v19, %v442_v19  ;;  %v446_v30 = vmax.f32 %v382_v20, 0.0 }
  0x4c   : > { %568 = vst.msk [vmem:[%s1234_s6 + $0xbc] sm:$0xf] %vm520_vm0, %v503_v4  ;;  %v507_v34 = vpack.c.bf16 %v443_v22, %v443_v22  ;;  %v508_v35 = vpack.c.bf16 %v444_v23, %v444_v23  ;;  %v509_v36 = vpack.c.bf16 %v445_v24, %v445_v24  ;;  %v447_v37 = vmax.f32 %v383_v25, 0.0 }
  0x4d   : > { %569 = vst.msk [vmem:[%s1234_s6 + $0xc0] sm:$0xf] %vm520_vm0, %v504_v27  ;;  %v510_v39 = vpack.c.bf16 %v446_v30, %v446_v30  ;;  %v316_v40 = vmul.f32 %v1187_v0, %v248_v16  ;;  %v317_v41 = vmul.f32 %v1187_v0, %v249_v21  ;;  %v318_v42 = vmul.f32 %v1187_v0, %v250_v26 }
  0x4e   : > { %570 = vst.msk [vmem:[%s1234_s6 + $0xc4] sm:$0xf] %vm520_vm0, %v505_v28  ;;  %v511_v44 = vpack.c.bf16 %v447_v37, %v447_v37  ;;  %v319_v45 = vmul.f32 %v1187_v0, %v251_v31  ;;  %v320_v46 = vmul.f32 %v1187_v0, %v252_v32  ;;  %v321_v47 = vmul.f32 %v1187_v0, %v253_v33 }
  0x4f   : > { %571 = vst.msk [vmem:[%s1234_s6 + $0xc8] sm:$0xf] %vm520_vm0, %v506_v29  ;;  %v384_v48 = vadd.f32 %v1198_v1, %v316_v40  ;;  %v385_v49 = vadd.f32 %v1198_v1, %v317_v41  ;;  %v386_v50 = vadd.f32 %v1198_v1, %v318_v42  ;;  %v322_v51 = vmul.f32 %v1187_v0, %v254_v38 }
  0x50   : > { %572 = vst.msk [vmem:[%s1234_s6 + $0xcc] sm:$0xf] %vm520_vm0, %v507_v34  ;;  %v387_v52 = vadd.f32 %v1198_v1, %v319_v45  ;;  %v388_v53 = vadd.f32 %v1198_v1, %v320_v46  ;;  %v389_v54 = vadd.f32 %v1198_v1, %v321_v47  ;;  %v323_v55 = vmul.f32 %v1187_v0, %v255_v43 }
  0x51   : > { %573 = vst.msk [vmem:[%s1234_s6 + $0xd0] sm:$0xf] %vm520_vm0, %v508_v35  ;;  %v448_v56 = vmax.f32 %v384_v48, 0.0  ;;  %v449_v57 = vmax.f32 %v385_v49, 0.0  ;;  %v450_v58 = vmax.f32 %v386_v50, 0.0  ;;  %v390_v59 = vadd.f32 %v1198_v1, %v322_v51 }
  0x52   : > { %574 = vst.msk [vmem:[%s1234_s6 + $0xd4] sm:$0xf] %vm520_vm0, %v509_v36  ;;  %v451_v60 = vmax.f32 %v387_v52, 0.0  ;;  %v452_v61 = vmax.f32 %v388_v53, 0.0  ;;  %v453_v62 = vmax.f32 %v389_v54, 0.0  ;;  %v391_v63 = vadd.f32 %v1198_v1, %v323_v55 }
  0x53   : > { %575 = vst.msk [vmem:[%s1234_s6 + $0xd8] sm:$0xf] %vm520_vm0, %v510_v39  ;;  %v512_v0 = vpack.c.bf16 %v448_v56, %v448_v56  ;;  %v513_v2 = vpack.c.bf16 %v449_v57, %v449_v57  ;;  %v514_v3 = vpack.c.bf16 %v450_v58, %v450_v58  ;;  %v454_v4 = vmax.f32 %v390_v59, 0.0 }
  0x54   : > { %576 = vst.msk [vmem:[%s1234_s6 + $0xdc] sm:$0xf] %vm520_vm0, %v511_v44  ;;  %v515_v5 = vpack.c.bf16 %v451_v60, %v451_v60  ;;  %v455_v6 = vmax.f32 %v391_v63, 0.0  ;;  %v516_v7 = vpack.c.bf16 %v452_v61, %v452_v61  ;;  %v517_v1 = vpack.c.bf16 %v453_v62, %v453_v62 }
  0x55   : > { %577 = vst.msk [vmem:[%s1234_s6 + $0xe0] sm:$0xf] %vm520_vm0, %v512_v0  ;;  %v518_v8 = vpack.c.bf16 %v454_v4, %v454_v4 }
  0x56   : > { %578 = vst.msk [vmem:[%s1234_s6 + $0xe4] sm:$0xf] %vm520_vm0, %v513_v2  ;;  %v519_v9 = vpack.c.bf16 %v455_v6, %v455_v6 }
  0x57   : > { %579 = vst.msk [vmem:[%s1234_s6 + $0xe8] sm:$0xf] %vm520_vm0, %v514_v3 }
  0x58   : > { %580 = vst.msk [vmem:[%s1234_s6 + $0xec] sm:$0xf] %vm520_vm0, %v515_v5  ;;  %591 = sbr.rel (!%p1175_p4) target bundleno = 157 (0x9d), region = 36 }
  0x59   : > { %581 = vst.msk [vmem:[%s1234_s6 + $0xf0] sm:$0xf] %vm520_vm0, %v516_v7 }
  0x5a   : > { %582 = vst.msk [vmem:[%s1234_s6 + $0xf4] sm:$0xf] %vm520_vm0, %v517_v1 }
  0x5b   : > { %583 = vst.msk [vmem:[%s1234_s6 + $0xf8] sm:$0xf] %vm520_vm0, %v518_v8 }
  0x5c   : > { %584 = vst.msk [vmem:[%s1234_s6 + $0xfc] sm:$0xf] %vm520_vm0, %v519_v9 }
  0x5d   : > { %s1681_s7 = smov (!%p594_p8, %s593_s7), 64 }
  0x5e   : > { %s934_s12 = sshll.u32 %s1681_s7, 2 }
  0x5f   : > { %p937_p9 = scmp.eq.s32.totalorder %s934_s12, 0 }
  0x60   : > { %s1538_s14 = sshrl.u32 (!%p937_p9), %s1681_s7, 5 }
  0x61   : > { %602 = sbr.rel (%p937_p9) target bundleno = 157 (0x9d), region = 40  ;;  %p938_p10 = scmp.le.s32.totalorder (!%p937_p9), %s1538_s14, 0 }
  0x66   : > { %881 = sbr.rel (%p938_p10) target bundleno = 140 (0x8c), region = 112  ;;  %s1672_s15 = smov (!%p938_p10), %s1532_s11 }
  0x67   : > { %s1673_s17 = smov (!%p938_p10), %s1234_s6  ;;  %s1547_s18 = smov (!%p938_p10), 0  }
  0x68   : > { %s1549_s20 = smov (!%p938_p10), 0  }
  0x6b LB: >> { %v619_v10 = vld [vmem:[%s1104_s17] sm:$0xf]  ;;  %v621_v11 = vld [vmem:[%s1104_s17 + $0x4] sm:$0xf]  ;;  %v623_v12 = vld [vmem:[%s1104_s17 + $0x8] sm:$0xf]  ;;  %s1112_s20 = sphi %s1549_s20, %s613_s20   ;;  %s1108_s18 = sphi %s1547_s18, %s1676_s18   ;;  %s1104_s17 = sphi %s1673_s17, %s1675_s17   ;;  %s1100_s15 = sphi %s1672_s15, %s1674_s15  }
  0x6c   : >> { %620 = vst [vmem:[%s1100_s15] sm:$0xf] %v619_v10  ;;  %v625_v13 = vld [vmem:[%s1104_s17 + $0xc] sm:$0xf]  ;;  %v627_v14 = vld [vmem:[%s1104_s17 + $0x10] sm:$0xf]  ;;  %s683_s21 = sadd.s32 1, %s1108_s18 }
  0x6d   : >> { %622 = vst [vmem:[%s1100_s15 + $0x4] sm:$0xf] %v621_v11  ;;  %v629_v15 = vld [vmem:[%s1104_s17 + $0x14] sm:$0xf]  ;;  %v631_v16 = vld [vmem:[%s1104_s17 + $0x18] sm:$0xf]  ;;  %p684_p11 = scmp.ge.s32.totalorder %s683_s21, %s1538_s14 }
  0x6e   : >> { %624 = vst [vmem:[%s1100_s15 + $0x8] sm:$0xf] %v623_v12  ;;  %v633_v17 = vld [vmem:[%s1104_s17 + $0x1c] sm:$0xf]  ;;  %v635_v18 = vld [vmem:[%s1104_s17 + $0x20] sm:$0xf] }
  0x6f   : >> { %626 = vst [vmem:[%s1100_s15 + $0xc] sm:$0xf] %v625_v13  ;;  %v637_v19 = vld [vmem:[%s1104_s17 + $0x24] sm:$0xf]  ;;  %v639_v20 = vld [vmem:[%s1104_s17 + $0x28] sm:$0xf] }
  0x70   : >> { %628 = vst [vmem:[%s1100_s15 + $0x10] sm:$0xf] %v627_v14  ;;  %v641_v21 = vld [vmem:[%s1104_s17 + $0x2c] sm:$0xf]  ;;  %v643_v22 = vld [vmem:[%s1104_s17 + $0x30] sm:$0xf] }
  0x71   : >> { %630 = vst [vmem:[%s1100_s15 + $0x14] sm:$0xf] %v629_v15  ;;  %v645_v23 = vld [vmem:[%s1104_s17 + $0x34] sm:$0xf]  ;;  %v647_v24 = vld [vmem:[%s1104_s17 + $0x38] sm:$0xf] }
  0x72   : >> { %632 = vst [vmem:[%s1100_s15 + $0x18] sm:$0xf] %v631_v16  ;;  %v649_v25 = vld [vmem:[%s1104_s17 + $0x3c] sm:$0xf]  ;;  %v651_v26 = vld [vmem:[%s1104_s17 + $0x40] sm:$0xf] }
  0x73   : >> { %634 = vst [vmem:[%s1100_s15 + $0x1c] sm:$0xf] %v633_v17  ;;  %v653_v27 = vld [vmem:[%s1104_s17 + $0x44] sm:$0xf]  ;;  %s1683_s21 = smov (%p684_p11, %s683_s21), 0  ;;  %s613_s20 = sadd.s32 1, %s1112_s20  }
  0x74   : >> { %636 = vst [vmem:[%s1100_s15 + $0x20] sm:$0xf] %v635_v18  ;;  %v655_v28 = vld [vmem:[%s1104_s17 + $0x48] sm:$0xf]  ;;  %v657_v29 = vld [vmem:[%s1104_s17 + $0x4c] sm:$0xf]  ;;  %p612_p12 = scmp.ge.s32.totalorder %s613_s20, %s1538_s14  ;;  %s1676_s18 = smov %s1683_s21 }
  0x75   : >> { %638 = vst [vmem:[%s1100_s15 + $0x24] sm:$0xf] %v637_v19  ;;  %s939_s22 = sshll.u32 %s1683_s21, 7  ;;  %v659_v30 = vld [vmem:[%s1104_s17 + $0x50] sm:$0xf] }
  0x76   : >> { %640 = vst [vmem:[%s1100_s15 + $0x28] sm:$0xf] %v639_v20  ;;  %s1608_s23 = scalar_lea.vmem %s1234_s6, %s939_s22 [#allocation2]   ;;  %s689_s24 = scalar_lea.vmem %s1532_s11, %s939_s22   ;;  %v661_v31 = vld [vmem:[%s1104_s17 + $0x54] sm:$0xf]  ;;  %v663_v32 = vld [vmem:[%s1104_s17 + $0x58] sm:$0xf] }
  0x77   : >> { %642 = vst [vmem:[%s1100_s15 + $0x2c] sm:$0xf] %v641_v21  ;;  %v665_v33 = vld [vmem:[%s1104_s17 + $0x5c] sm:$0xf]  ;;  %v667_v34 = vld [vmem:[%s1104_s17 + $0x60] sm:$0xf] }
  0x78   : >> { %644 = vst [vmem:[%s1100_s15 + $0x30] sm:$0xf] %v643_v22  ;;  %v669_v35 = vld [vmem:[%s1104_s17 + $0x64] sm:$0xf]  ;;  %v671_v36 = vld [vmem:[%s1104_s17 + $0x68] sm:$0xf] }
  0x79   : >> { %646 = vst [vmem:[%s1100_s15 + $0x34] sm:$0xf] %v645_v23  ;;  %v673_v37 = vld [vmem:[%s1104_s17 + $0x6c] sm:$0xf]  ;;  %v675_v38 = vld [vmem:[%s1104_s17 + $0x70] sm:$0xf] }
  0x7a   : >> { %648 = vst [vmem:[%s1100_s15 + $0x38] sm:$0xf] %v647_v24  ;;  %v677_v39 = vld [vmem:[%s1104_s17 + $0x74] sm:$0xf]  ;;  %v679_v40 = vld [vmem:[%s1104_s17 + $0x78] sm:$0xf] }
  0x7b   : >> { %650 = vst [vmem:[%s1100_s15 + $0x3c] sm:$0xf] %v649_v25  ;;  %v681_v41 = vld [vmem:[%s1104_s17 + $0x7c] sm:$0xf]  ;;  %s1675_s17 = smov %s1608_s23 }
  0x7c   : >> { %652 = vst [vmem:[%s1100_s15 + $0x40] sm:$0xf] %v651_v26 }
  0x7d   : >> { %654 = vst [vmem:[%s1100_s15 + $0x44] sm:$0xf] %v653_v27 }
  0x7e   : >> { %656 = vst [vmem:[%s1100_s15 + $0x48] sm:$0xf] %v655_v28 }
  0x7f   : >> { %658 = vst [vmem:[%s1100_s15 + $0x4c] sm:$0xf] %v657_v29 }
  0x80   : >> { %660 = vst [vmem:[%s1100_s15 + $0x50] sm:$0xf] %v659_v30 }
  0x81   : >> { %662 = vst [vmem:[%s1100_s15 + $0x54] sm:$0xf] %v661_v31 }
  0x82   : >> { %664 = vst [vmem:[%s1100_s15 + $0x58] sm:$0xf] %v663_v32 }
  0x83   : >> { %666 = vst [vmem:[%s1100_s15 + $0x5c] sm:$0xf] %v665_v33 }
  0x84   : >> { %668 = vst [vmem:[%s1100_s15 + $0x60] sm:$0xf] %v667_v34 }
  0x85   : >> { %670 = vst [vmem:[%s1100_s15 + $0x64] sm:$0xf] %v669_v35 }
  0x86   : >> { %672 = vst [vmem:[%s1100_s15 + $0x68] sm:$0xf] %v671_v36 }
  0x87   : >> { %674 = vst [vmem:[%s1100_s15 + $0x6c] sm:$0xf] %v673_v37  ;;  %615 = sbr.rel (!%p612_p12) target bundleno = 107 (0x6b), region = 118 }
  0x88   : >> { %676 = vst [vmem:[%s1100_s15 + $0x70] sm:$0xf] %v675_v38 }
  0x89   : >> { %678 = vst [vmem:[%s1100_s15 + $0x74] sm:$0xf] %v677_v39 }
  0x8a   : >> { %680 = vst [vmem:[%s1100_s15 + $0x78] sm:$0xf] %v679_v40 }
  0x8b   : >> { %682 = vst [vmem:[%s1100_s15 + $0x7c] sm:$0xf] %v681_v41  ;;  %s1674_s15 = smov %s689_s24 }
  0x8c PF: > { %s1649_s25 = sand.u32 31, %s1681_s7   ;;  %s950_s26 = sshll.u32 %s1538_s14, 7 }
  0x8d   : > { %s694_s27 = scalar_lea.vmem %s1234_s6, %s950_s26 [#allocation2]   ;;  %s696_s28 = scalar_lea.vmem %s1532_s11, %s950_s26  }
  0x8e   : > { %p944_p13 = scmp.le.s32.totalorder %s1649_s25, 0 }
  0x8f   : > { %s1114_s29 = smov (!%p944_p13), %s696_s28   ;;  %s1118_s30 = smov (!%p944_p13), %s694_s27  }
  0x90   : > { %895 = sbr.rel (%p944_p13) target bundleno = 157 (0x9d), region = 123  ;;  %s1122_s4 = smov (!%p944_p13), 0  }
  0x91   : > { %s1126_s5 = smov (!%p944_p13), 0  }
  0x95 LB: >> { %v706_v42 = vld [vmem:[%s1120_s30] sm:$0xf]  ;;  %s708_s7 = sadd.s32 1, %s1124_s4  ;;  %s700_s5 = sadd.s32 1, %s1128_s5   ;;  %s1128_s5 = sphi %s1126_s5, %s700_s5   ;;  %s1124_s4 = sphi %s1122_s4, %s1123_s4   ;;  %s1120_s30 = sphi %s1118_s30, %s713_s30   ;;  %s1116_s29 = sphi %s1114_s29, %s714_s29  }
  0x96   : >> { %707 = vst [vmem:[%s1116_s29] sm:$0xf] %v706_v42  ;;  %p709_p0 = scmp.ge.s32.totalorder %s708_s7, %s1649_s25  ;;  %p699_p1 = scmp.ge.s32.totalorder %s700_s5, %s1649_s25 }
  0x98   : >> { %s1685_s7 = smov (%p709_p0, %s708_s7), 0  ;;  %702 = sbr.rel (!%p699_p1) target bundleno = 149 (0x95), region = 129 }
  0x99   : >> { %s945_s6 = sshll.u32 %s1685_s7, 2  ;;  %s1123_s4 = smov %s1685_s7  }
  0x9a   : >> { %s713_s30 = scalar_lea.vmem %s694_s27, %s945_s6 [#allocation2]   ;;  %s714_s29 = scalar_lea.vmem %s696_s28, %s945_s6  }
  0x9d PF: > { %p10_p2 = scmp.ge.s32.totalorder %s1165_s16, 15   ;;  %s1677_s12 = smov %s1092_s13 }
  0x9e   : > { %s1678_s13 = smov %s1173_s19  ;;  %s1679_s14 = smov %s1165_s16 }
  0x9f   :  { %12 = sbr.rel (!%p10_p2) target bundleno = 2 (0x2), region = 140 }

// kernel: cnn3d_forward.7
= control target key start
LH: loop header
LB: loop body
LE: loop exit
PB: predicated region body
PF: predicated region fallthrough
CT: control target
= control target key end

     0   :  { %s3931_s18 = smov 0   ;;  %s3933_s19 = smov 0   ;;  %s4789_s0 = inlined_call_operand.vmem [shape: bf16[6174,512], index: 0, kind: input, shape index: {}]   ;;  %s4790_s1 = inlined_call_operand.vmem [shape: bf16[512,128], index: 1, kind: input, shape index: {}]   ;;  %s4791_s2 = inlined_call_operand.vmem [shape: f32[1,128], index: 2, kind: input, shape index: {}]   ;;  %s4792_s3 = inlined_call_operand.vmem [shape: f32[6174,128], index: 3, kind: output, shape index: {0}]   ;;  %s4793_s4 = inlined_call_operand.vmem [shape: f32[13,1,128], index: 4, kind: output, shape index: {1}]   ;;  %s4794_s5 = inlined_call_operand.vmem [shape: f32[13,1,128], index: 5, kind: output, shape index: {2}]  }
   0x1   :  { %s3935_s20 = smov 0  }
   0x2 LB: > { %s3944_s21 = sadd.s32 4294967295, %s3867_s20   ;;  %s3946_s22 = sadd.s32 1, %s3867_s20   ;;  %s3867_s20 = sphi %s3935_s20, %s4803_s20   ;;  %s3863_s19 = sphi %s3933_s19, %s4802_s19   ;;  %s3859_s18 = sphi %s3931_s18, %s4801_s18  }
   0x3   : > { %s88_s23 = ssub.s32 %s3867_s20, %s3946_s22  ;;  %s91_s24 = sadd.s32 1, %s3863_s19 }
   0x4   : > { %p89_p0 = scmp.eq.s32.totalorder %s88_s23, 0  ;;  %p101_p1 = scmp.ne.s32.totalorder %s3863_s19, %s3859_s18 }
   0x5   : > { %p102_p2 = scmp.eq.s32.totalorder %s3944_s21, 12  ;;  %p2895_p3 = scmp.ge.s32.totalorder %s3867_s20, 1 }
   0x6   : > { %s3954_s25 = scalar_select %p89_p0, %s3863_s19, %s91_s24  }
   0x7   : > { %p3956_p4 = por %p102_p2, %p101_p1  ;;  %p204_p5 = scmp.lt.s32.totalorder %s3867_s20, 14 }
   0x9   : > { %p205_p6 = pnand %p2895_p3, %p204_p5 }
   0xa   : > { %s3997_s7 = sshll.u32 (!%p205_p6), %s3944_s21, 6  ;;  %s230_s23 = sand.u32 (!%p205_p6), 1, %s3859_s18  }
   0xb   : > { %208 = sbr.rel (%p205_p6) target bundleno = 772 (0x304), region = 32  ;;  %p249_p7 = scmp.lt.s32.totalorder (!%p205_p6), %s3997_s7, 771 }
   0xc   : > { %s3540_s24 = sshll.u32 (!%p205_p6), %s3944_s21, 9  ;;  %s2896_s27 = sshll.u32 (!%p205_p6), %s230_s23, 9 }
   0xd   : > { %s4158_s18 = scalar_lea.vmem (!%p205_p6), [#allocation2], %s2896_s27   ;;  %p265_p8 = scmp.lt.s32.totalorder (!%p205_p6), %s3944_s21, 12 }
  0x10   : > { %v3694_v0 = vld [vmem:[%s4790_s1 + $0x38] sm:$0xff]  ;;  %v3693_v4 = vld [vmem:[%s4790_s1 + $0x30] sm:$0xff]  ;;  %v3692_v8 = vld [vmem:[%s4790_s1 + $0x28] sm:$0xff]  ;;  %s250_s30 = scalar_select %p249_p7, %s3997_s7, 771 }
  0x11   : > { %v3702_v1 = vld [vmem:[%s4790_s1 + $0x78] sm:$0xff]  ;;  %1299 = vmatpush.bf16.msra.mxu0 %v3694_v0  ;;  %v3701_v5 = vld [vmem:[%s4790_s1 + $0x70] sm:$0xff]  ;;  %v3700_v9 = vld [vmem:[%s4790_s1 + $0x68] sm:$0xff]  ;;  %s4654_s20 = scalar_lea.vmem (%p3956_p4), %s4792_s3, %s3540_s24  }
  0x12   : > { %v3710_v2 = vld [vmem:[%s4790_s1 + $0xb8] sm:$0xff]  ;;  %1468 = vmatpush.bf16.msra.mxu1 %v3702_v1  ;;  %v3709_v6 = vld [vmem:[%s4790_s1 + $0xb0] sm:$0xff]  ;;  %v3708_v10 = vld [vmem:[%s4790_s1 + $0xa8] sm:$0xff]  ;;  %s3558_s15 = sshll.u32 %s250_s30, 4 }
  0x13   : > { %v3718_v3 = vld [vmem:[%s4790_s1 + $0xf8] sm:$0xff]  ;;  %1637 = vmatpush.bf16.msra.mxu2 %v3710_v2  ;;  %v3717_v7 = vld [vmem:[%s4790_s1 + $0xf0] sm:$0xff]  ;;  %v3716_v11 = vld [vmem:[%s4790_s1 + $0xe8] sm:$0xff]  ;;  %s4046_s28 = scalar_lea.vmem %s4789_s0, %s3558_s15  ;;  %s2516_s15 = ssub.s32 (%p3956_p4), 772, %s3997_s7 }
  0x14   : > { %1806 = vmatpush.bf16.msra.mxu3 %v3718_v3  ;;  %v3691_v12 = vld [vmem:[%s4790_s1 + $0x20] sm:$0xff]  ;;  %v3690_v16 = vld [vmem:[%s4790_s1 + $0x18] sm:$0xff]  ;;  %v3689_v20 = vld [vmem:[%s4790_s1 + $0x10] sm:$0xff]  ;;  %p2517_p9 = scmp.lt.s32.totalorder (%p3956_p4), %s2516_s15, 64 }
  0x15   : > { %1300 = vmatpush.bf16.msra.mxu0 %v3693_v4  ;;  %v3699_v13 = vld [vmem:[%s4790_s1 + $0x60] sm:$0xff]  ;;  %v3698_v17 = vld [vmem:[%s4790_s1 + $0x58] sm:$0xff]  ;;  %v3697_v21 = vld [vmem:[%s4790_s1 + $0x50] sm:$0xff] }
  0x16   : > { %1469 = vmatpush.bf16.msra.mxu1 %v3701_v5  ;;  %v3707_v14 = vld [vmem:[%s4790_s1 + $0xa0] sm:$0xff]  ;;  %v3706_v18 = vld [vmem:[%s4790_s1 + $0x98] sm:$0xff]  ;;  %v3705_v22 = vld [vmem:[%s4790_s1 + $0x90] sm:$0xff] }
  0x17   : > { %1638 = vmatpush.bf16.msra.mxu2 %v3709_v6  ;;  %v3715_v15 = vld [vmem:[%s4790_s1 + $0xe0] sm:$0xff]  ;;  %v3714_v19 = vld [vmem:[%s4790_s1 + $0xd8] sm:$0xff]  ;;  %v3713_v23 = vld [vmem:[%s4790_s1 + $0xd0] sm:$0xff] }
  0x18   : > { %1807 = vmatpush.bf16.msra.mxu3 %v3717_v7  ;;  %v3688_v24 = vld [vmem:[%s4790_s1 + $0x8] sm:$0xff]  ;;  %v3687_v28 = vld [vmem:[%s4790_s1] sm:$0xff]  ;;  %v3561_v33 = vld [vmem:[%s4046_s28 + $0xc] sm:$0xf0] }
  0x19   : > { %1301 = vmatpush.bf16.msra.mxu0 %v3692_v8  ;;  %v3696_v25 = vld [vmem:[%s4790_s1 + $0x48] sm:$0xff]  ;;  %v3695_v29 = vld [vmem:[%s4790_s1 + $0x40] sm:$0xff]  ;;  %v2904_v35 = vld [vmem:[%s4046_s28 + $0x10] sm:$0xf0] }
  0x1a   : > { %1470 = vmatpush.bf16.msra.mxu1 %v3700_v9  ;;  %v3704_v26 = vld [vmem:[%s4790_s1 + $0x88] sm:$0xff]  ;;  %v3703_v30 = vld [vmem:[%s4790_s1 + $0x80] sm:$0xff]  ;;  %v3562_v37 = vld [vmem:[%s4046_s28 + $0x14] sm:$0xf0] }
  0x1b   : > { %1639 = vmatpush.bf16.msra.mxu2 %v3708_v10  ;;  %v3712_v27 = vld [vmem:[%s4790_s1 + $0xc8] sm:$0xff]  ;;  %v3711_v31 = vld [vmem:[%s4790_s1 + $0xc0] sm:$0xff]  ;;  %v2912_v39 = vld [vmem:[%s4046_s28 + $0x18] sm:$0xf0] }
  0x1c   : > { %1808 = vmatpush.bf16.msra.mxu3 %v3716_v11  ;;  %v2902_v32 = vld [vmem:[%s4046_s28] sm:$0xf]  ;;  %v3559_v34 = vld [vmem:[%s4046_s28 + $0x4] sm:$0xf]  ;;  %v2910_v36 = vld [vmem:[%s4046_s28 + $0x8] sm:$0xf] }
  0x1d   : > { %1302 = vmatpush.bf16.msra.mxu0 %v3691_v12  ;;  %v3560_v38 = vld [vmem:[%s4046_s28 + $0xc] sm:$0xf]  ;;  %v2903_v40 = vor.u32 %v3561_v33, %v2902_v32  ;;  %v2907_v41 = vor.u32 %v3559_v34, %v2904_v35  ;;  %v2911_v42 = vor.u32 %v3562_v37, %v2910_v36  ;;  %v2918_v44 = vld [vmem:[%s4046_s28 + $0x20] sm:$0xf]  ;;  %v3565_v45 = vld [vmem:[%s4046_s28 + $0x2c] sm:$0xf0] }
  0x1e   : > { %1471 = vmatpush.bf16.msra.mxu1 %v3699_v13  ;;  %v2915_v43 = vor.u32 %v3560_v38, %v2912_v39  ;;  %v3563_v46 = vld [vmem:[%s4046_s28 + $0x24] sm:$0xf]  ;;  %v2920_v47 = vld [vmem:[%s4046_s28 + $0x30] sm:$0xf0]  ;;  %v2926_v48 = vld [vmem:[%s4046_s28 + $0x28] sm:$0xf]  ;;  %v2919_v52 = vor.u32 %v3565_v45, %v2918_v44 }
  0x1f   : > { %1640 = vmatpush.bf16.msra.mxu2 %v3707_v14  ;;  %v3566_v49 = vld [vmem:[%s4046_s28 + $0x34] sm:$0xf0]  ;;  %v3564_v50 = vld [vmem:[%s4046_s28 + $0x2c] sm:$0xf]  ;;  %v2928_v51 = vld [vmem:[%s4046_s28 + $0x38] sm:$0xf0]  ;;  %v2923_v53 = vor.u32 %v3563_v46, %v2920_v47 }
  0x20   : > { %1809 = vmatpush.bf16.msra.mxu3 %v3715_v15  ;;  %v2927_v54 = vor.u32 %v3566_v49, %v2926_v48  ;;  %v2931_v55 = vor.u32 %v3564_v50, %v2928_v51  ;;  %v2934_v56 = vld [vmem:[%s4046_s28 + $0x40] sm:$0xf]  ;;  %v3569_v57 = vld [vmem:[%s4046_s28 + $0x4c] sm:$0xf0]  ;;  %v3567_v58 = vld [vmem:[%s4046_s28 + $0x44] sm:$0xf] }
  0x21   : > { %1303 = vmatpush.bf16.msra.mxu0 %v3690_v16  ;;  %v2936_v59 = vld [vmem:[%s4046_s28 + $0x50] sm:$0xf0]  ;;  %v2942_v60 = vld [vmem:[%s4046_s28 + $0x48] sm:$0xf]  ;;  %v3570_v61 = vld [vmem:[%s4046_s28 + $0x54] sm:$0xf0]  ;;  %v2935_v0 = vor.u32 %v3569_v57, %v2934_v56 }
  0x22   : > { %1472 = vmatpush.bf16.msra.mxu1 %v3698_v17  ;;  %v3568_v62 = vld [vmem:[%s4046_s28 + $0x4c] sm:$0xf]  ;;  %v2944_v63 = vld [vmem:[%s4046_s28 + $0x58] sm:$0xf0]  ;;  %v2939_v1 = vor.u32 %v3567_v58, %v2936_v59  ;;  %v2943_v2 = vor.u32 %v3570_v61, %v2942_v60  ;;  %v2950_v4 = vld [vmem:[%s4046_s28 + $0x60] sm:$0xf] }
  0x23   : > { %1641 = vmatpush.bf16.msra.mxu2 %v3706_v18  ;;  %v2947_v3 = vor.u32 %v3568_v62, %v2944_v63  ;;  %v3573_v5 = vld [vmem:[%s4046_s28 + $0x6c] sm:$0xf0]  ;;  %v3571_v6 = vld [vmem:[%s4046_s28 + $0x64] sm:$0xf]  ;;  %v2952_v7 = vld [vmem:[%s4046_s28 + $0x70] sm:$0xf0] }
  0x24   : > { %1810 = vmatpush.bf16.msra.mxu3 %v3714_v19  ;;  %v2958_v8 = vld [vmem:[%s4046_s28 + $0x68] sm:$0xf]  ;;  %v3574_v9 = vld [vmem:[%s4046_s28 + $0x74] sm:$0xf0]  ;;  %v3572_v10 = vld [vmem:[%s4046_s28 + $0x6c] sm:$0xf]  ;;  %v2951_v12 = vor.u32 %v3573_v5, %v2950_v4  ;;  %v2955_v13 = vor.u32 %v3571_v6, %v2952_v7 }
  0x25   : > { %1304 = vmatpush.bf16.msra.mxu0 %v3689_v20  ;;  %v2960_v11 = vld [vmem:[%s4046_s28 + $0x78] sm:$0xf0]  ;;  %v2959_v14 = vor.u32 %v3574_v9, %v2958_v8  ;;  %v2966_v16 = vld [vmem:[%s4046_s28 + $0x80] sm:$0xf]  ;;  %v3577_v17 = vld [vmem:[%s4046_s28 + $0x8c] sm:$0xf0] }
  0x26   : > { %1473 = vmatpush.bf16.msra.mxu1 %v3697_v21  ;;  %v2963_v15 = vor.u32 %v3572_v10, %v2960_v11  ;;  %v3575_v18 = vld [vmem:[%s4046_s28 + $0x84] sm:$0xf]  ;;  %v2968_v19 = vld [vmem:[%s4046_s28 + $0x90] sm:$0xf0]  ;;  %v2974_v20 = vld [vmem:[%s4046_s28 + $0x88] sm:$0xf] }
  0x27   : > { %1642 = vmatpush.bf16.msra.mxu2 %v3705_v22  ;;  %v3578_v21 = vld [vmem:[%s4046_s28 + $0x94] sm:$0xf0]  ;;  %v3576_v22 = vld [vmem:[%s4046_s28 + $0x8c] sm:$0xf]  ;;  %v2990_v32 = vld [vmem:[%s4046_s28 + $0xa8] sm:$0xf] }
  0x28   : > { %1811 = vmatpush.bf16.msra.mxu3 %v3713_v23  ;;  %v2976_v23 = vld [vmem:[%s4046_s28 + $0x98] sm:$0xf0]  ;;  %v3582_v33 = vld [vmem:[%s4046_s28 + $0xb4] sm:$0xf0]  ;;  %v3580_v34 = vld [vmem:[%s4046_s28 + $0xac] sm:$0xf] }
  0x29   : > { %1305 = vmatpush.bf16.msra.mxu0 %v3688_v24  ;;  %v2967_v24 = vor.u32 %v3577_v17, %v2966_v16  ;;  %v2992_v35 = vld [vmem:[%s4046_s28 + $0xb8] sm:$0xf0]  ;;  %v2991_v38 = vor.u32 %v3582_v33, %v2990_v32  ;;  %v3006_v44 = vld [vmem:[%s4046_s28 + $0xc8] sm:$0xf]  ;;  %v3586_v45 = vld [vmem:[%s4046_s28 + $0xd4] sm:$0xf0]  ;;  %v2039_v16 = vlaneseq }
  0x2a   : > { %1474 = vmatpush.bf16.msra.mxu1 %v3696_v25  ;;  %v2971_v25 = vor.u32 %v3575_v18, %v2968_v19  ;;  %v2995_v39 = vor.u32 %v3580_v34, %v2992_v35  ;;  %v3584_v46 = vld [vmem:[%s4046_s28 + $0xcc] sm:$0xf]  ;;  %v3008_v47 = vld [vmem:[%s4046_s28 + $0xd8] sm:$0xf0]  ;;  %v3007_v50 = vor.u32 %v3586_v45, %v3006_v44  ;;  %v3022_v56 = vld [vmem:[%s4046_s28 + $0xe8] sm:$0xf] }
  0x2b   : > { %1643 = vmatpush.bf16.msra.mxu2 %v3704_v26  ;;  %v2975_v26 = vor.u32 %v3578_v21, %v2974_v20  ;;  %v3011_v51 = vor.u32 %v3584_v46, %v3008_v47  ;;  %v3590_v57 = vld [vmem:[%s4046_s28 + $0xf4] sm:$0xf0]  ;;  %v3588_v58 = vld [vmem:[%s4046_s28 + $0xec] sm:$0xf]  ;;  %v3024_v59 = vld [vmem:[%s4046_s28 + $0xf8] sm:$0xf0] }
  0x2c   : > { %1812 = vmatpush.bf16.msra.mxu3 %v3712_v27  ;;  %v2979_v27 = vor.u32 %v3576_v22, %v2976_v23  ;;  %v3023_v62 = vor.u32 %v3590_v57, %v3022_v56  ;;  %v3027_v63 = vor.u32 %v3588_v58, %v3024_v59  ;;  %v3032_v4 = vld [vmem:[%s4046_s28 + $0x110] sm:$0xf0]  ;;  %v3038_v5 = vld [vmem:[%s4046_s28 + $0x108] sm:$0xf]  ;;  %v3594_v6 = vld [vmem:[%s4046_s28 + $0x114] sm:$0xf0]  ;;  %v4150_v22 = vstv %s3540_s24 }
  0x2d   : > { %1306 = vmatpush.bf16.msra.mxu0 %v3687_v28  ;;  %v2982_v28 = vld [vmem:[%s4046_s28 + $0xa0] sm:$0xf]  ;;  %v3592_v7 = vld [vmem:[%s4046_s28 + $0x10c] sm:$0xf]  ;;  %v3040_v8 = vld [vmem:[%s4046_s28 + $0x118] sm:$0xf0] }
  0x2e   : > { %1475 = vmatpush.bf16.msra.mxu1 %v3695_v29  ;;  %v3581_v29 = vld [vmem:[%s4046_s28 + $0xac] sm:$0xf0]  ;;  %v4146_v20 = vshrl.u32 %v2039_v16, 7  ;;  %v3048_v32 = vld [vmem:[%s4046_s28 + $0x130] sm:$0xf0] }
  0x2f   : > { %1644 = vmatpush.bf16.msra.mxu2 %v3703_v30  ;;  %v3579_v30 = vld [vmem:[%s4046_s28 + $0xa4] sm:$0xf]  ;;  %v2983_v36 = vor.u32 %v3581_v29, %v2982_v28  ;;  %v3046_v29 = vld [vmem:[%s4046_s28 + $0x120] sm:$0xf]  ;;  %v3054_v33 = vld [vmem:[%s4046_s28 + $0x128] sm:$0xf] }
  0x30   : > { %1813 = vmatpush.bf16.msra.mxu3 %v3711_v31  ;;  %1307 = vmatmul.bf16.vlgmr.msra.gmra.mxu0 %v2903_v40  ;;  %v2984_v31 = vld [vmem:[%s4046_s28 + $0xb0] sm:$0xf0]  ;;  %v2998_v40 = vld [vmem:[%s4046_s28 + $0xc0] sm:$0xf]  ;;  %v2106_v28 = vadd.s32 %v4150_v22, %v4146_v20  ;;  %v3598_v35 = vld [vmem:[%s4046_s28 + $0x134] sm:$0xf0] }
  0x31   : > { %1476 = vmatmul.bf16.vlgmr.msra.gmra.mxu1 %v2907_v41  ;;  %v2987_v37 = vor.u32 %v3579_v30, %v2984_v31  ;;  %v3585_v41 = vld [vmem:[%s4046_s28 + $0xcc] sm:$0xf0]  ;;  %v3595_v31 = vld [vmem:[%s4046_s28 + $0x124] sm:$0xf]  ;;  %v3055_v46 = vor.u32 %v3598_v35, %v3054_v33 }
  0x32   : > { %1645 = vmatmul.bf16.vlgmr.msra.gmra.mxu2 %v2911_v42  ;;  %v3583_v42 = vld [vmem:[%s4046_s28 + $0xc4] sm:$0xf]  ;;  %v2999_v48 = vor.u32 %v3585_v41, %v2998_v40  ;;  %v3597_v30 = vld [vmem:[%s4046_s28 + $0x12c] sm:$0xf0]  ;;  %vm2170_vm0 = vcmp.lt.s32.totalorder %v2106_v28, 6174 }
  0x33   : > { %1814 = vmatmul.bf16.vlgmr.msra.gmra.mxu3 %v2915_v43  ;;  %v3000_v43 = vld [vmem:[%s4046_s28 + $0xd0] sm:$0xf0]  ;;  %v3047_v41 = vor.u32 %v3597_v30, %v3046_v29  ;;  %v2044_v30 = vadd.s32 32, %v4146_v20 }
  0x34   : > { %v3003_v49 = vor.u32 %v3583_v42, %v3000_v43  ;;  %v3051_v42 = vor.u32 %v3595_v31, %v3048_v32 }
  0x40   : > { %1312 = vmatmul.bf16.gmra.mxu0 %v2919_v52  ;;  %v3014_v52 = vld [vmem:[%s4046_s28 + $0xe0] sm:$0xf] }
  0x41   : > { %1481 = vmatmul.bf16.gmra.mxu1 %v2923_v53  ;;  %v3589_v53 = vld [vmem:[%s4046_s28 + $0xec] sm:$0xf0] }
  0x42   : > { %1650 = vmatmul.bf16.gmra.mxu2 %v2927_v54  ;;  %v3587_v54 = vld [vmem:[%s4046_s28 + $0xe4] sm:$0xf]  ;;  %v3015_v60 = vor.u32 %v3589_v53, %v3014_v52 }
  0x43   : > { %1819 = vmatmul.bf16.gmra.mxu3 %v2931_v55  ;;  %v3016_v55 = vld [vmem:[%s4046_s28 + $0xf0] sm:$0xf0] }
  0x44   : > { %v3019_v61 = vor.u32 %v3587_v54, %v3016_v55 }
  0x50   : > { %1317 = vmatmul.bf16.gmra.mxu0 %v2935_v0  ;;  %v4133_v0 = vld [vmem:[%s4791_s2] ss:$0 sm:$0xff] }
  0x51   : > { %1486 = vmatmul.bf16.gmra.mxu1 %v2939_v1  ;;  %v3030_v1 = vld [vmem:[%s4046_s28 + $0x100] sm:$0xf] }
  0x52   : > { %1655 = vmatmul.bf16.gmra.mxu2 %v2943_v2  ;;  %v3593_v2 = vld [vmem:[%s4046_s28 + $0x10c] sm:$0xf0] }
  0x53   : > { %1824 = vmatmul.bf16.gmra.mxu3 %v2947_v3  ;;  %v3591_v3 = vld [vmem:[%s4046_s28 + $0x104] sm:$0xf]  ;;  %v3031_v9 = vor.u32 %v3593_v2, %v3030_v1  ;;  %v2043_v1 = vadd.s32 24, %v4146_v20 }
  0x54   : > { %v3035_v10 = vor.u32 %v3591_v3, %v3032_v4  ;;  %v3062_v4 = vld [vmem:[%s4046_s28 + $0x140] sm:$0xf] }
  0x60   : > { %1322 = vmatmul.bf16.gmra.mxu0 %v2951_v12 }
  0x61   : > { %1491 = vmatmul.bf16.gmra.mxu1 %v2955_v13  ;;  %v3039_v13 = vor.u32 %v3594_v6, %v3038_v5  ;;  %v3601_v5 = vld [vmem:[%s4046_s28 + $0x14c] sm:$0xf0]  ;;  %v3599_v6 = vld [vmem:[%s4046_s28 + $0x144] sm:$0xf] }
  0x62   : > { %1660 = vmatmul.bf16.gmra.mxu2 %v2959_v14  ;;  %v3043_v14 = vor.u32 %v3592_v7, %v3040_v8  ;;  %v3064_v8 = vld [vmem:[%s4046_s28 + $0x150] sm:$0xf0] }
  0x63   : > { %1829 = vmatmul.bf16.gmra.mxu3 %v2963_v15 }
  0x70   : > { %1327 = vmatmul.bf16.gmra.mxu0 %v2967_v24 }
  0x71   : > { %1496 = vmatmul.bf16.gmra.mxu1 %v2971_v25  ;;  %v2041_v25 = vadd.s32 8, %v4146_v20 }
  0x72   : > { %1665 = vmatmul.bf16.gmra.mxu2 %v2975_v26 }
  0x73   : > { %1834 = vmatmul.bf16.gmra.mxu3 %v2979_v27  ;;  %v2107_v34 = vadd.s32 %v4150_v22, %v2041_v25 }
  0x75   : > { %vm2171_vm1 = vcmp.lt.s32.totalorder %v2107_v34, 6174 }
  0x80   : > { %1332 = vmatmul.bf16.gmra.mxu0 %v2983_v36  ;;  %v3596_v36 = vld [vmem:[%s4046_s28 + $0x12c] sm:$0xf] }
  0x81   : > { %1501 = vmatmul.bf16.gmra.mxu1 %v2987_v37  ;;  %v3056_v37 = vld [vmem:[%s4046_s28 + $0x138] sm:$0xf0] }
  0x82   : > { %1670 = vmatmul.bf16.gmra.mxu2 %v2991_v38  ;;  %v3059_v47 = vor.u32 %v3596_v36, %v3056_v37  ;;  %v2110_v36 = vadd.s32 %v4150_v22, %v2044_v30  ;;  %v3102_v30 = vld [vmem:[%s4046_s28 + $0x188] sm:$0xf] }
  0x83   : > { %1839 = vmatmul.bf16.gmra.mxu3 %v2995_v39 }
  0x84   : > { %vm2174_vm4 = vcmp.lt.s32.totalorder %v2110_v36, 6174  ;;  %v3104_v36 = vld [vmem:[%s4046_s28 + $0x198] sm:$0xf0] }
  0x90   : > { %1337 = vmatmul.bf16.gmra.mxu0 %v2999_v48 }
  0x91   : > { %1506 = vmatmul.bf16.gmra.mxu1 %v3003_v49  ;;  %v2042_v49 = vadd.s32 16, %v4146_v20 }
  0x92   : > { %1675 = vmatmul.bf16.gmra.mxu2 %v3007_v50 }
  0x93   : > { %1844 = vmatmul.bf16.gmra.mxu3 %v3011_v51  ;;  %v2108_v57 = vadd.s32 %v4150_v22, %v2042_v49 }
  0x95   : > { %vm2172_vm2 = vcmp.lt.s32.totalorder %v2108_v57, 6174  ;;  %v3088_v57 = vld [vmem:[%s4046_s28 + $0x178] sm:$0xf0] }
  0xa0   : > { %1342 = vmatmul.bf16.gmra.mxu0 %v3015_v60 }
  0xa1   : > { %1511 = vmatmul.bf16.gmra.mxu1 %v3019_v61 }
  0xa2   : > { %1680 = vmatmul.bf16.gmra.mxu2 %v3023_v62 }
  0xa3   : > { %1849 = vmatmul.bf16.gmra.mxu3 %v3027_v63 }
  0xad   : > { %v1308_v11 = vpop.f32.mrf.mxu0 }
  0xae   : > { %v1477_v12 = vpop.f32.mrf.mxu1  ;;  %v1309_v15 = vadd.f32 %v4133_v0, %v1308_v11 }
  0xb0   : > { %1347 = vmatmul.bf16.gmra.mxu0 %v3031_v9  ;;  %v1478_v17 = vadd.f32 %v1477_v12, %v1309_v15  ;;  %v3070_v9 = vld [vmem:[%s4046_s28 + $0x148] sm:$0xf]  ;;  %v2109_v12 = vadd.s32 %v4150_v22, %v2043_v1  ;;  %v3072_v15 = vld [vmem:[%s4046_s28 + $0x158] sm:$0xf0] }
  0xb1   : > { %1516 = vmatmul.bf16.gmra.mxu1 %v3035_v10 }
  0xb2   : > { %1685 = vmatmul.bf16.gmra.mxu2 %v3039_v13  ;;  %v3602_v13 = vld [vmem:[%s4046_s28 + $0x154] sm:$0xf0]  ;;  %vm2173_vm3 = vcmp.lt.s32.totalorder %v2109_v12, 6174 }
  0xb3   : > { %1854 = vmatmul.bf16.gmra.mxu3 %v3043_v14  ;;  %v3600_v14 = vld [vmem:[%s4046_s28 + $0x14c] sm:$0xf] }
  0xb4   : > { %v3075_v28 = vor.u32 %v3600_v14, %v3072_v15 }
  0xb5   : > { %v1646_v18 = vpop.f32.mrf.mxu2  ;;  %v1310_v23 = vpop.f32.mrf.mxu0 }
  0xb6   : > { %v1815_v19 = vpop.f32.mrf.mxu3  ;;  %v1647_v21 = vadd.f32 %v1646_v18, %v1478_v17  ;;  %v1479_v24 = vpop.f32.mrf.mxu1  ;;  %v1311_v27 = vadd.f32 %v4133_v0, %v1310_v23  ;;  %v3067_v23 = vor.u32 %v3599_v6, %v3064_v8 }
  0xb8   : > { %v1816_v26 = vadd.f32 %v1815_v19, %v1647_v21  ;;  %v1480_v38 = vadd.f32 %v1479_v24, %v1311_v27  ;;  %v3063_v21 = vor.u32 %v3601_v5, %v3062_v4  ;;  %v3071_v27 = vor.u32 %v3602_v13, %v3070_v9 }
  0xba   : > { %1975 = vst [vmem:[%s4158_s18] sm:$0xff] %v1816_v26  ;;  %v2234_v50 = vsel %vm2170_vm0, %v1816_v26, 0.0 }
  0xbb   : > { %v2368_v54 = vmul.f32 %v2234_v50, %v2234_v50 }
  0xbd   : > { %v1648_v39 = vpop.f32.mrf.mxu2  ;;  %v1313_v44 = vpop.f32.mrf.mxu0 }
  0xbe   : > { %v1817_v40 = vpop.f32.mrf.mxu3  ;;  %v1649_v43 = vadd.f32 %v1648_v39, %v1480_v38  ;;  %v1482_v45 = vpop.f32.mrf.mxu1  ;;  %v1314_v48 = vadd.f32 %v4133_v0, %v1313_v44 }
  0xc0   : > { %v1818_v51 = vadd.f32 %v1817_v40, %v1649_v43  ;;  %1352 = vmatmul.bf16.gmra.mxu0 %v3047_v41  ;;  %v1483_v53 = vadd.f32 %v1482_v45, %v1314_v48  ;;  %v2045_v43 = vadd.s32 40, %v4146_v20  ;;  %v3603_v48 = vld [vmem:[%s4046_s28 + $0x164] sm:$0xf] }
  0xc1   : > { %1521 = vmatmul.bf16.gmra.mxu1 %v3051_v42 }
  0xc2   : > { %1976 = vst [vmem:[%s4158_s18 + $0x8] sm:$0xff] %v1818_v51  ;;  %v2235_v52 = vsel %vm2171_vm1, %v1818_v51, 0.0  ;;  %1690 = vmatmul.bf16.gmra.mxu2 %v3055_v46  ;;  %v3078_v46 = vld [vmem:[%s4046_s28 + $0x160] sm:$0xf]  ;;  %v3086_v51 = vld [vmem:[%s4046_s28 + $0x168] sm:$0xf] }
  0xc3   : > { %1859 = vmatmul.bf16.gmra.mxu3 %v3059_v47  ;;  %v2298_v55 = vadd.f32 %v2235_v52, %v2234_v50  ;;  %v2369_v56 = vmul.f32 %v2235_v52, %v2235_v52  ;;  %v3605_v47 = vld [vmem:[%s4046_s28 + $0x16c] sm:$0xf0]  ;;  %v3080_v50 = vld [vmem:[%s4046_s28 + $0x170] sm:$0xf0] }
  0xc5   : > { %v2432_v58 = vadd.f32 %v2369_v56, %v2368_v54  ;;  %v1651_v59 = vpop.f32.mrf.mxu2  ;;  %v1315_v62 = vpop.f32.mrf.mxu0  ;;  %v2111_v54 = vadd.s32 %v4150_v22, %v2045_v43  ;;  %v3604_v56 = vld [vmem:[%s4046_s28 + $0x16c] sm:$0xf] }
  0xc6   : > { %v1820_v60 = vpop.f32.mrf.mxu3  ;;  %v1652_v61 = vadd.f32 %v1651_v59, %v1483_v53  ;;  %v1484_v63 = vpop.f32.mrf.mxu1  ;;  %v1316_v3 = vadd.f32 %v4133_v0, %v1315_v62  ;;  %v3079_v62 = vor.u32 %v3605_v47, %v3078_v46  ;;  %v3091_v5 = vor.u32 %v3604_v56, %v3088_v57 }
  0xc7   : > { %vm2175_vm5 = vcmp.lt.s32.totalorder %v2111_v54, 6174 }
  0xc8   : > { %v1821_v2 = vadd.f32 %v1820_v60, %v1652_v61  ;;  %v1485_v16 = vadd.f32 %v1484_v63, %v1316_v3  ;;  %v3083_v63 = vor.u32 %v3603_v48, %v3080_v50 }
  0xca   : > { %1977 = vst [vmem:[%s4158_s18 + $0x10] sm:$0xff] %v1821_v2  ;;  %v2236_v7 = vsel %vm2172_vm2, %v1821_v2, 0.0 }
  0xcb   : > { %v2299_v10 = vadd.f32 %v2298_v55, %v2236_v7  ;;  %v2370_v11 = vmul.f32 %v2236_v7, %v2236_v7  ;;  %v3606_v55 = vld [vmem:[%s4046_s28 + $0x174] sm:$0xf0]  ;;  %v2046_v7 = vadd.s32 48, %v4146_v20 }
  0xcc   : > { %v3087_v4 = vor.u32 %v3606_v55, %v3086_v51 }
  0xcd   : > { %v2433_v17 = vadd.f32 %v2432_v58, %v2370_v11  ;;  %v1653_v18 = vpop.f32.mrf.mxu2  ;;  %v1318_v25 = vpop.f32.mrf.mxu0  ;;  %v2112_v13 = vadd.s32 %v4150_v22, %v2046_v7  ;;  %v3118_v7 = vld [vmem:[%s4046_s28 + $0x1a8] sm:$0xf] }
  0xce   : > { %v1822_v19 = vpop.f32.mrf.mxu3  ;;  %v1654_v24 = vadd.f32 %v1653_v18, %v1485_v16  ;;  %v1487_v26 = vpop.f32.mrf.mxu1  ;;  %v1319_v29 = vadd.f32 %v4133_v0, %v1318_v25  ;;  %v3094_v25 = vld [vmem:[%s4046_s28 + $0x180] sm:$0xf] }
  0xcf   : > { %vm2176_vm6 = vcmp.lt.s32.totalorder %v2112_v13, 6174  ;;  %v3120_v13 = vld [vmem:[%s4046_s28 + $0x1b8] sm:$0xf0] }
  0xd0   : > { %v1823_v31 = vadd.f32 %v1822_v19, %v1654_v24  ;;  %1357 = vmatmul.bf16.gmra.mxu0 %v3063_v21  ;;  %v1488_v33 = vadd.f32 %v1487_v26, %v1319_v29  ;;  %v2047_v21 = vadd.s32 56, %v4146_v20  ;;  %v3609_v26 = vld [vmem:[%s4046_s28 + $0x18c] sm:$0xf0]  ;;  %v3096_v29 = vld [vmem:[%s4046_s28 + $0x190] sm:$0xf0] }
  0xd1   : > { %1526 = vmatmul.bf16.gmra.mxu1 %v3067_v23 }
  0xd2   : > { %1978 = vst [vmem:[%s4158_s18 + $0x18] sm:$0xff] %v1823_v31  ;;  %v2237_v32 = vsel %vm2173_vm3, %v1823_v31, 0.0  ;;  %1695 = vmatmul.bf16.gmra.mxu2 %v3071_v27  ;;  %v3607_v27 = vld [vmem:[%s4046_s28 + $0x184] sm:$0xf] }
  0xd3   : > { %1864 = vmatmul.bf16.gmra.mxu3 %v3075_v28  ;;  %v2300_v34 = vadd.f32 %v2299_v10, %v2237_v32  ;;  %v2371_v35 = vmul.f32 %v2237_v32, %v2237_v32 }
  0xd5   : > { %v2434_v37 = vadd.f32 %v2433_v17, %v2371_v35  ;;  %v1656_v38 = vpop.f32.mrf.mxu2  ;;  %v1320_v41 = vpop.f32.mrf.mxu0  ;;  %v3608_v35 = vld [vmem:[%s4046_s28 + $0x18c] sm:$0xf] }
  0xd6   : > { %v1825_v39 = vpop.f32.mrf.mxu3  ;;  %v1657_v40 = vadd.f32 %v1656_v38, %v1488_v33  ;;  %v1489_v42 = vpop.f32.mrf.mxu1  ;;  %v1321_v45 = vadd.f32 %v4133_v0, %v1320_v41  ;;  %v2113_v33 = vadd.s32 %v4150_v22, %v2047_v21  ;;  %v3095_v41 = vor.u32 %v3609_v26, %v3094_v25 }
  0xd7   : > { %v3107_v47 = vor.u32 %v3608_v35, %v3104_v36 }
  0xd8   : > { %v1826_v44 = vadd.f32 %v1825_v39, %v1657_v40  ;;  %v1490_v58 = vadd.f32 %v1489_v42, %v1321_v45  ;;  %v3099_v42 = vor.u32 %v3607_v27, %v3096_v29  ;;  %vm2177_vm7 = vcmp.lt.s32.totalorder %v2113_v33, 6174 }
  0xda   : > { %1979 = vst [vmem:[%s4158_s18 + $0x20] sm:$0xff] %v1826_v44  ;;  %v2238_v49 = vsel %vm2174_vm4, %v1826_v44, 0.0 }
  0xdb   : > { %v2301_v52 = vadd.f32 %v2300_v34, %v2238_v49  ;;  %v2372_v53 = vmul.f32 %v2238_v49, %v2238_v49  ;;  %v3610_v34 = vld [vmem:[%s4046_s28 + $0x194] sm:$0xf0]  ;;  %v2048_v49 = vadd.s32 64, %v4146_v20 }
  0xdc   : > { %v3103_v46 = vor.u32 %v3610_v34, %v3102_v30 }
  0xdd   : > { %v2435_v59 = vadd.f32 %v2434_v37, %v2372_v53  ;;  %v1658_v60 = vpop.f32.mrf.mxu2  ;;  %v1323_v2 = vpop.f32.mrf.mxu0  ;;  %v2114_v55 = vadd.s32 %v4150_v22, %v2048_v49  ;;  %v3134_v49 = vld [vmem:[%s4046_s28 + $0x1c8] sm:$0xf] }
  0xde   : > { %v1827_v61 = vpop.f32.mrf.mxu3  ;;  %v1659_v1 = vadd.f32 %v1658_v60, %v1490_v58  ;;  %v1492_v3 = vpop.f32.mrf.mxu1  ;;  %v1324_v6 = vadd.f32 %v4133_v0, %v1323_v2  ;;  %v3110_v2 = vld [vmem:[%s4046_s28 + $0x1a0] sm:$0xf] }
  0xdf   : > { %vm2178_vm8 = vcmp.lt.s32.totalorder %v2114_v55, 6174  ;;  %v3136_v55 = vld [vmem:[%s4046_s28 + $0x1d8] sm:$0xf0] }
  0xe0   : > { %v1828_v8 = vadd.f32 %v1827_v61, %v1659_v1  ;;  %1362 = vmatmul.bf16.gmra.mxu0 %v3079_v62  ;;  %v1493_v10 = vadd.f32 %v1492_v3, %v1324_v6  ;;  %v2049_v62 = vadd.s32 72, %v4146_v20  ;;  %v3613_v3 = vld [vmem:[%s4046_s28 + $0x1ac] sm:$0xf0]  ;;  %v3112_v6 = vld [vmem:[%s4046_s28 + $0x1b0] sm:$0xf0] }
  0xe1   : > { %1531 = vmatmul.bf16.gmra.mxu1 %v3083_v63 }
  0xe2   : > { %1980 = vst [vmem:[%s4158_s18 + $0x28] sm:$0xff] %v1828_v8  ;;  %v2239_v9 = vsel %vm2175_vm5, %v1828_v8, 0.0  ;;  %1700 = vmatmul.bf16.gmra.mxu2 %v3087_v4  ;;  %v3611_v4 = vld [vmem:[%s4046_s28 + $0x1a4] sm:$0xf] }
  0xe3   : > { %1869 = vmatmul.bf16.gmra.mxu3 %v3091_v5  ;;  %v2302_v11 = vadd.f32 %v2301_v52, %v2239_v9  ;;  %v2373_v12 = vmul.f32 %v2239_v9, %v2239_v9 }
  0xe5   : > { %v2436_v14 = vadd.f32 %v2435_v59, %v2373_v12  ;;  %v1661_v15 = vpop.f32.mrf.mxu2  ;;  %v1325_v18 = vpop.f32.mrf.mxu0  ;;  %v3612_v12 = vld [vmem:[%s4046_s28 + $0x1ac] sm:$0xf] }
  0xe6   : > { %v1830_v16 = vpop.f32.mrf.mxu3  ;;  %v1662_v17 = vadd.f32 %v1661_v15, %v1493_v10  ;;  %v1494_v19 = vpop.f32.mrf.mxu1  ;;  %v1326_v24 = vadd.f32 %v4133_v0, %v1325_v18  ;;  %v2115_v10 = vadd.s32 %v4150_v22, %v2049_v62  ;;  %v3111_v18 = vor.u32 %v3613_v3, %v3110_v2 }
  0xe7   : > { %v3123_v26 = vor.u32 %v3612_v12, %v3120_v13 }
  0xe8   : > { %v1831_v23 = vadd.f32 %v1830_v16, %v1662_v17  ;;  %v1495_v37 = vadd.f32 %v1494_v19, %v1326_v24  ;;  %v3115_v19 = vor.u32 %v3611_v4, %v3112_v6  ;;  %vm2179_vm9 = vcmp.lt.s32.totalorder %v2115_v10, 6174 }
  0xea   : > { %1981 = vst [vmem:[%s4158_s18 + $0x30] sm:$0xff] %v1831_v23  ;;  %v2240_v28 = vsel %vm2176_vm6, %v1831_v23, 0.0 }
  0xeb   : > { %v2303_v31 = vadd.f32 %v2302_v11, %v2240_v28  ;;  %v2374_v32 = vmul.f32 %v2240_v28, %v2240_v28  ;;  %v3614_v11 = vld [vmem:[%s4046_s28 + $0x1b4] sm:$0xf0]  ;;  %v2050_v28 = vadd.s32 80, %v4146_v20 }
  0xec   : > { %v3119_v25 = vor.u32 %v3614_v11, %v3118_v7 }
  0xed   : > { %v2437_v38 = vadd.f32 %v2436_v14, %v2374_v32  ;;  %v1663_v39 = vpop.f32.mrf.mxu2  ;;  %v1328_v44 = vpop.f32.mrf.mxu0  ;;  %v2116_v34 = vadd.s32 %v4150_v22, %v2050_v28  ;;  %v3150_v28 = vld [vmem:[%s4046_s28 + $0x1e8] sm:$0xf] }
  0xee   : > { %v1832_v40 = vpop.f32.mrf.mxu3  ;;  %v1664_v43 = vadd.f32 %v1663_v39, %v1495_v37  ;;  %v1497_v45 = vpop.f32.mrf.mxu1  ;;  %v1329_v48 = vadd.f32 %v4133_v0, %v1328_v44  ;;  %v3126_v44 = vld [vmem:[%s4046_s28 + $0x1c0] sm:$0xf] }
  0xef   : > { %vm2180_vm10 = vcmp.lt.s32.totalorder %v2116_v34, 6174  ;;  %v3152_v34 = vld [vmem:[%s4046_s28 + $0x1f8] sm:$0xf0] }
  0xf0   : > { %v1833_v50 = vadd.f32 %v1832_v40, %v1664_v43  ;;  %1367 = vmatmul.bf16.gmra.mxu0 %v3095_v41  ;;  %v1498_v52 = vadd.f32 %v1497_v45, %v1329_v48  ;;  %v2051_v41 = vadd.s32 88, %v4146_v20  ;;  %v3617_v45 = vld [vmem:[%s4046_s28 + $0x1cc] sm:$0xf0]  ;;  %v3128_v48 = vld [vmem:[%s4046_s28 + $0x1d0] sm:$0xf0] }
  0xf1   : > { %1536 = vmatmul.bf16.gmra.mxu1 %v3099_v42 }
  0xf2   : > { %1982 = vst [vmem:[%s4158_s18 + $0x38] sm:$0xff] %v1833_v50  ;;  %v2241_v51 = vsel %vm2177_vm7, %v1833_v50, 0.0  ;;  %1705 = vmatmul.bf16.gmra.mxu2 %v3103_v46  ;;  %v3615_v46 = vld [vmem:[%s4046_s28 + $0x1c4] sm:$0xf] }
  0xf3   : > { %1874 = vmatmul.bf16.gmra.mxu3 %v3107_v47  ;;  %v2304_v53 = vadd.f32 %v2303_v31, %v2241_v51  ;;  %v2375_v54 = vmul.f32 %v2241_v51, %v2241_v51 }
  0xf5   : > { %v2438_v56 = vadd.f32 %v2437_v38, %v2375_v54  ;;  %v1666_v57 = vpop.f32.mrf.mxu2  ;;  %v1330_v60 = vpop.f32.mrf.mxu0  ;;  %v3616_v54 = vld [vmem:[%s4046_s28 + $0x1cc] sm:$0xf] }
  0xf6   : > { %v1835_v58 = vpop.f32.mrf.mxu3  ;;  %v1667_v59 = vadd.f32 %v1666_v57, %v1498_v52  ;;  %v1499_v61 = vpop.f32.mrf.mxu1  ;;  %v1331_v1 = vadd.f32 %v4133_v0, %v1330_v60  ;;  %v2117_v52 = vadd.s32 %v4150_v22, %v2051_v41  ;;  %v3127_v60 = vor.u32 %v3617_v45, %v3126_v44 }
  0xf7   : > { %v3139_v3 = vor.u32 %v3616_v54, %v3136_v55 }
  0xf8   : > { %v1836_v63 = vadd.f32 %v1835_v58, %v1667_v59  ;;  %v1500_v14 = vadd.f32 %v1499_v61, %v1331_v1  ;;  %v3131_v61 = vor.u32 %v3615_v46, %v3128_v48  ;;  %vm2181_vm11 = vcmp.lt.s32.totalorder %v2117_v52, 6174 }
  0xfa   : > { %1983 = vst [vmem:[%s4158_s18 + $0x40] sm:$0xff] %v1836_v63  ;;  %v2242_v5 = vsel %vm2178_vm8, %v1836_v63, 0.0 }
  0xfb   : > { %v2305_v8 = vadd.f32 %v2304_v53, %v2242_v5  ;;  %v2376_v9 = vmul.f32 %v2242_v5, %v2242_v5  ;;  %v3618_v53 = vld [vmem:[%s4046_s28 + $0x1d4] sm:$0xf0]  ;;  %v2052_v5 = vadd.s32 96, %v4146_v20 }
  0xfc   : > { %v3135_v2 = vor.u32 %v3618_v53, %v3134_v49 }
  0xfd   : > { %v2439_v15 = vadd.f32 %v2438_v56, %v2376_v9  ;;  %v1668_v16 = vpop.f32.mrf.mxu2  ;;  %v1333_v23 = vpop.f32.mrf.mxu0  ;;  %v2118_v11 = vadd.s32 %v4150_v22, %v2052_v5  ;;  %v3166_v5 = vld [vmem:[%s4046_s28 + $0x208] sm:$0xf] }
  0xfe   : > { %v1837_v17 = vpop.f32.mrf.mxu3  ;;  %v1669_v21 = vadd.f32 %v1668_v16, %v1500_v14  ;;  %v1502_v24 = vpop.f32.mrf.mxu1  ;;  %v1334_v27 = vadd.f32 %v4133_v0, %v1333_v23  ;;  %v3142_v23 = vld [vmem:[%s4046_s28 + $0x1e0] sm:$0xf] }
  0xff   : > { %vm2182_vm12 = vcmp.lt.s32.totalorder %v2118_v11, 6174  ;;  %v3168_v11 = vld [vmem:[%s4046_s28 + $0x218] sm:$0xf0] }
 0x100   : > { %v1838_v29 = vadd.f32 %v1837_v17, %v1669_v21  ;;  %1372 = vmatmul.bf16.gmra.mxu0 %v3111_v18  ;;  %v1503_v31 = vadd.f32 %v1502_v24, %v1334_v27  ;;  %v2053_v18 = vadd.s32 104, %v4146_v20  ;;  %v3621_v24 = vld [vmem:[%s4046_s28 + $0x1ec] sm:$0xf0]  ;;  %v3144_v27 = vld [vmem:[%s4046_s28 + $0x1f0] sm:$0xf0] }
 0x101   : > { %1541 = vmatmul.bf16.gmra.mxu1 %v3115_v19 }
 0x102   : > { %1984 = vst [vmem:[%s4158_s18 + $0x48] sm:$0xff] %v1838_v29  ;;  %v2243_v30 = vsel %vm2179_vm9, %v1838_v29, 0.0  ;;  %1710 = vmatmul.bf16.gmra.mxu2 %v3119_v25  ;;  %v3619_v25 = vld [vmem:[%s4046_s28 + $0x1e4] sm:$0xf] }
 0x103   : > { %1879 = vmatmul.bf16.gmra.mxu3 %v3123_v26  ;;  %v2306_v32 = vadd.f32 %v2305_v8, %v2243_v30  ;;  %v2377_v33 = vmul.f32 %v2243_v30, %v2243_v30 }
 0x105   : > { %v2440_v35 = vadd.f32 %v2439_v15, %v2377_v33  ;;  %v1671_v36 = vpop.f32.mrf.mxu2  ;;  %v1335_v39 = vpop.f32.mrf.mxu0  ;;  %v3620_v33 = vld [vmem:[%s4046_s28 + $0x1ec] sm:$0xf] }
 0x106   : > { %v1840_v37 = vpop.f32.mrf.mxu3  ;;  %v1672_v38 = vadd.f32 %v1671_v36, %v1503_v31  ;;  %v1504_v40 = vpop.f32.mrf.mxu1  ;;  %v1336_v43 = vadd.f32 %v4133_v0, %v1335_v39  ;;  %v2119_v31 = vadd.s32 %v4150_v22, %v2053_v18  ;;  %v3143_v39 = vor.u32 %v3621_v24, %v3142_v23 }
 0x107   : > { %v3155_v45 = vor.u32 %v3620_v33, %v3152_v34 }
 0x108   : > { %v1841_v42 = vadd.f32 %v1840_v37, %v1672_v38  ;;  %v1505_v56 = vadd.f32 %v1504_v40, %v1336_v43  ;;  %v3147_v40 = vor.u32 %v3619_v25, %v3144_v27  ;;  %vm2183_vm13 = vcmp.lt.s32.totalorder %v2119_v31, 6174 }
 0x10a   : > { %1985 = vst [vmem:[%s4158_s18 + $0x50] sm:$0xff] %v1841_v42  ;;  %v2244_v47 = vsel %vm2180_vm10, %v1841_v42, 0.0 }
 0x10b   : > { %v2307_v50 = vadd.f32 %v2306_v32, %v2244_v47  ;;  %v2378_v51 = vmul.f32 %v2244_v47, %v2244_v47  ;;  %v3622_v32 = vld [vmem:[%s4046_s28 + $0x1f4] sm:$0xf0]  ;;  %v2054_v47 = vadd.s32 112, %v4146_v20 }
 0x10c   : > { %v3151_v44 = vor.u32 %v3622_v32, %v3150_v28 }
 0x10d   : > { %v2441_v57 = vadd.f32 %v2440_v35, %v2378_v51  ;;  %v1673_v58 = vpop.f32.mrf.mxu2  ;;  %v1338_v63 = vpop.f32.mrf.mxu0  ;;  %v2120_v53 = vadd.s32 %v4150_v22, %v2054_v47  ;;  %v3182_v47 = vld [vmem:[%s4046_s28 + $0x228] sm:$0xf] }
 0x10e   : > { %v1842_v59 = vpop.f32.mrf.mxu3  ;;  %v1674_v62 = vadd.f32 %v1673_v58, %v1505_v56  ;;  %v1507_v1 = vpop.f32.mrf.mxu1  ;;  %v1339_v4 = vadd.f32 %v4133_v0, %v1338_v63  ;;  %v3158_v63 = vld [vmem:[%s4046_s28 + $0x200] sm:$0xf] }
 0x10f   : > { %vm2184_vm14 = vcmp.lt.s32.totalorder %v2120_v53, 6174  ;;  %v3184_v53 = vld [vmem:[%s4046_s28 + $0x238] sm:$0xf0] }
 0x110   : > { %v1843_v6 = vadd.f32 %v1842_v59, %v1674_v62  ;;  %1377 = vmatmul.bf16.gmra.mxu0 %v3127_v60  ;;  %v1508_v8 = vadd.f32 %v1507_v1, %v1339_v4  ;;  %v2055_v60 = vadd.s32 120, %v4146_v20  ;;  %v3625_v1 = vld [vmem:[%s4046_s28 + $0x20c] sm:$0xf0]  ;;  %v3160_v4 = vld [vmem:[%s4046_s28 + $0x210] sm:$0xf0] }
 0x111   : > { %1546 = vmatmul.bf16.gmra.mxu1 %v3131_v61 }
 0x112   : > { %1986 = vst [vmem:[%s4158_s18 + $0x58] sm:$0xff] %v1843_v6  ;;  %v2245_v7 = vsel %vm2181_vm11, %v1843_v6, 0.0  ;;  %1715 = vmatmul.bf16.gmra.mxu2 %v3135_v2  ;;  %v3623_v2 = vld [vmem:[%s4046_s28 + $0x204] sm:$0xf] }
 0x113   : > { %1884 = vmatmul.bf16.gmra.mxu3 %v3139_v3  ;;  %v2308_v9 = vadd.f32 %v2307_v50, %v2245_v7  ;;  %v2379_v10 = vmul.f32 %v2245_v7, %v2245_v7 }
 0x115   : > { %v2442_v12 = vadd.f32 %v2441_v57, %v2379_v10  ;;  %v1676_v13 = vpop.f32.mrf.mxu2  ;;  %v1340_v16 = vpop.f32.mrf.mxu0  ;;  %v3624_v10 = vld [vmem:[%s4046_s28 + $0x20c] sm:$0xf] }
 0x116   : > { %v1845_v14 = vpop.f32.mrf.mxu3  ;;  %v1677_v15 = vadd.f32 %v1676_v13, %v1508_v8  ;;  %v1509_v17 = vpop.f32.mrf.mxu1  ;;  %v1341_v21 = vadd.f32 %v4133_v0, %v1340_v16  ;;  %v2121_v8 = vadd.s32 %v4150_v22, %v2055_v60  ;;  %v3159_v16 = vor.u32 %v3625_v1, %v3158_v63 }
 0x117   : > { %v3171_v24 = vor.u32 %v3624_v10, %v3168_v11 }
 0x118   : > { %v1846_v19 = vadd.f32 %v1845_v14, %v1677_v15  ;;  %v1510_v35 = vadd.f32 %v1509_v17, %v1341_v21  ;;  %v3163_v17 = vor.u32 %v3623_v2, %v3160_v4  ;;  %vm2185_vm15 = vcmp.lt.s32.totalorder %v2121_v8, 6174 }
 0x11a   : > { %1987 = vst [vmem:[%s4158_s18 + $0x60] sm:$0xff] %v1846_v19  ;;  %v2246_v26 = vsel %vm2182_vm12, %v1846_v19, 0.0 }
 0x11b   : > { %v2309_v29 = vadd.f32 %v2308_v9, %v2246_v26  ;;  %v2380_v30 = vmul.f32 %v2246_v26, %v2246_v26  ;;  %v3626_v9 = vld [vmem:[%s4046_s28 + $0x214] sm:$0xf0]  ;;  %v2056_v26 = vadd.s32 128, %v4146_v20 }
 0x11c   : > { %v3167_v23 = vor.u32 %v3626_v9, %v3166_v5 }
 0x11d   : > { %v2443_v36 = vadd.f32 %v2442_v12, %v2380_v30  ;;  %v1678_v37 = vpop.f32.mrf.mxu2  ;;  %v1343_v42 = vpop.f32.mrf.mxu0  ;;  %v2122_v32 = vadd.s32 %v4150_v22, %v2056_v26  ;;  %v3198_v26 = vld [vmem:[%s4046_s28 + $0x248] sm:$0xf] }
 0x11e   : > { %v1847_v38 = vpop.f32.mrf.mxu3  ;;  %v1679_v41 = vadd.f32 %v1678_v37, %v1510_v35  ;;  %v1512_v43 = vpop.f32.mrf.mxu1  ;;  %v1344_v46 = vadd.f32 %v4133_v0, %v1343_v42  ;;  %v3174_v42 = vld [vmem:[%s4046_s28 + $0x220] sm:$0xf] }
 0x11f   : > { %vm2186_vm0 = vcmp.lt.s32.totalorder %v2122_v32, 6174  ;;  %v3200_v32 = vld [vmem:[%s4046_s28 + $0x258] sm:$0xf0] }
 0x120   : > { %v1848_v48 = vadd.f32 %v1847_v38, %v1679_v41  ;;  %1382 = vmatmul.bf16.gmra.mxu0 %v3143_v39  ;;  %v1513_v50 = vadd.f32 %v1512_v43, %v1344_v46  ;;  %v2057_v39 = vadd.s32 136, %v4146_v20  ;;  %v3629_v43 = vld [vmem:[%s4046_s28 + $0x22c] sm:$0xf0]  ;;  %v3176_v46 = vld [vmem:[%s4046_s28 + $0x230] sm:$0xf0] }
 0x121   : > { %1551 = vmatmul.bf16.gmra.mxu1 %v3147_v40 }
 0x122   : > { %1988 = vst [vmem:[%s4158_s18 + $0x68] sm:$0xff] %v1848_v48  ;;  %v2247_v49 = vsel %vm2183_vm13, %v1848_v48, 0.0  ;;  %1720 = vmatmul.bf16.gmra.mxu2 %v3151_v44  ;;  %v3627_v44 = vld [vmem:[%s4046_s28 + $0x224] sm:$0xf] }
 0x123   : > { %1889 = vmatmul.bf16.gmra.mxu3 %v3155_v45  ;;  %v2310_v51 = vadd.f32 %v2309_v29, %v2247_v49  ;;  %v2381_v52 = vmul.f32 %v2247_v49, %v2247_v49 }
 0x125   : > { %v2444_v54 = vadd.f32 %v2443_v36, %v2381_v52  ;;  %v1681_v55 = vpop.f32.mrf.mxu2  ;;  %v1345_v58 = vpop.f32.mrf.mxu0  ;;  %v3628_v52 = vld [vmem:[%s4046_s28 + $0x22c] sm:$0xf] }
 0x126   : > { %v1850_v56 = vpop.f32.mrf.mxu3  ;;  %v1682_v57 = vadd.f32 %v1681_v55, %v1513_v50  ;;  %v1514_v59 = vpop.f32.mrf.mxu1  ;;  %v1346_v62 = vadd.f32 %v4133_v0, %v1345_v58  ;;  %v2123_v50 = vadd.s32 %v4150_v22, %v2057_v39  ;;  %v3175_v58 = vor.u32 %v3629_v43, %v3174_v42 }
 0x127   : > { %v3187_v1 = vor.u32 %v3628_v52, %v3184_v53 }
 0x128   : > { %v1851_v61 = vadd.f32 %v1850_v56, %v1682_v57  ;;  %v1515_v12 = vadd.f32 %v1514_v59, %v1346_v62  ;;  %v3179_v59 = vor.u32 %v3627_v44, %v3176_v46  ;;  %vm2187_vm1 = vcmp.lt.s32.totalorder %v2123_v50, 6174 }
 0x12a   : > { %1989 = vst [vmem:[%s4158_s18 + $0x70] sm:$0xff] %v1851_v61  ;;  %v2248_v3 = vsel %vm2184_vm14, %v1851_v61, 0.0 }
 0x12b   : > { %v2311_v6 = vadd.f32 %v2310_v51, %v2248_v3  ;;  %v2382_v7 = vmul.f32 %v2248_v3, %v2248_v3  ;;  %v3630_v51 = vld [vmem:[%s4046_s28 + $0x234] sm:$0xf0]  ;;  %v2058_v3 = vadd.s32 144, %v4146_v20 }
 0x12c   : > { %v3183_v63 = vor.u32 %v3630_v51, %v3182_v47 }
 0x12d   : > { %v2445_v13 = vadd.f32 %v2444_v54, %v2382_v7  ;;  %v1683_v14 = vpop.f32.mrf.mxu2  ;;  %v1348_v19 = vpop.f32.mrf.mxu0  ;;  %v2124_v9 = vadd.s32 %v4150_v22, %v2058_v3  ;;  %v3214_v3 = vld [vmem:[%s4046_s28 + $0x268] sm:$0xf] }
 0x12e   : > { %v1852_v15 = vpop.f32.mrf.mxu3  ;;  %v1684_v18 = vadd.f32 %v1683_v14, %v1515_v12  ;;  %v1517_v21 = vpop.f32.mrf.mxu1  ;;  %v1349_v25 = vadd.f32 %v4133_v0, %v1348_v19  ;;  %v3190_v19 = vld [vmem:[%s4046_s28 + $0x240] sm:$0xf] }
 0x12f   : > { %vm2188_vm2 = vcmp.lt.s32.totalorder %v2124_v9, 6174  ;;  %v3216_v9 = vld [vmem:[%s4046_s28 + $0x278] sm:$0xf0] }
 0x130   : > { %v1853_v27 = vadd.f32 %v1852_v15, %v1684_v18  ;;  %1387 = vmatmul.bf16.gmra.mxu0 %v3159_v16  ;;  %v1518_v29 = vadd.f32 %v1517_v21, %v1349_v25  ;;  %v2059_v16 = vadd.s32 152, %v4146_v20  ;;  %v3633_v21 = vld [vmem:[%s4046_s28 + $0x24c] sm:$0xf0]  ;;  %v3192_v25 = vld [vmem:[%s4046_s28 + $0x250] sm:$0xf0] }
 0x131   : > { %1556 = vmatmul.bf16.gmra.mxu1 %v3163_v17 }
 0x132   : > { %1990 = vst [vmem:[%s4158_s18 + $0x78] sm:$0xff] %v1853_v27  ;;  %v2249_v28 = vsel %vm2185_vm15, %v1853_v27, 0.0  ;;  %1725 = vmatmul.bf16.gmra.mxu2 %v3167_v23  ;;  %v3631_v23 = vld [vmem:[%s4046_s28 + $0x244] sm:$0xf] }
 0x133   : > { %1894 = vmatmul.bf16.gmra.mxu3 %v3171_v24  ;;  %v2312_v30 = vadd.f32 %v2311_v6, %v2249_v28  ;;  %v2383_v31 = vmul.f32 %v2249_v28, %v2249_v28 }
 0x135   : > { %v2446_v33 = vadd.f32 %v2445_v13, %v2383_v31  ;;  %v1686_v34 = vpop.f32.mrf.mxu2  ;;  %v1350_v37 = vpop.f32.mrf.mxu0  ;;  %v3632_v31 = vld [vmem:[%s4046_s28 + $0x24c] sm:$0xf] }
 0x136   : > { %v1855_v35 = vpop.f32.mrf.mxu3  ;;  %v1687_v36 = vadd.f32 %v1686_v34, %v1518_v29  ;;  %v1519_v38 = vpop.f32.mrf.mxu1  ;;  %v1351_v41 = vadd.f32 %v4133_v0, %v1350_v37  ;;  %v2125_v29 = vadd.s32 %v4150_v22, %v2059_v16  ;;  %v3191_v37 = vor.u32 %v3633_v21, %v3190_v19 }
 0x137   : > { %v3203_v43 = vor.u32 %v3632_v31, %v3200_v32 }
 0x138   : > { %v1856_v40 = vadd.f32 %v1855_v35, %v1687_v36  ;;  %v1520_v54 = vadd.f32 %v1519_v38, %v1351_v41  ;;  %v3195_v38 = vor.u32 %v3631_v23, %v3192_v25  ;;  %vm2189_vm3 = vcmp.lt.s32.totalorder %v2125_v29, 6174 }
 0x13a   : > { %1991 = vst [vmem:[%s4158_s18 + $0x80] sm:$0xff] %v1856_v40  ;;  %v2250_v45 = vsel %vm2186_vm0, %v1856_v40, 0.0 }
 0x13b   : > { %v2313_v48 = vadd.f32 %v2312_v30, %v2250_v45  ;;  %v2384_v49 = vmul.f32 %v2250_v45, %v2250_v45  ;;  %v3634_v30 = vld [vmem:[%s4046_s28 + $0x254] sm:$0xf0]  ;;  %v2060_v45 = vadd.s32 160, %v4146_v20 }
 0x13c   : > { %v3199_v42 = vor.u32 %v3634_v30, %v3198_v26 }
 0x13d   : > { %v2447_v55 = vadd.f32 %v2446_v33, %v2384_v49  ;;  %v1688_v56 = vpop.f32.mrf.mxu2  ;;  %v1353_v61 = vpop.f32.mrf.mxu0  ;;  %v2126_v51 = vadd.s32 %v4150_v22, %v2060_v45  ;;  %v3230_v45 = vld [vmem:[%s4046_s28 + $0x288] sm:$0xf] }
 0x13e   : > { %v1857_v57 = vpop.f32.mrf.mxu3  ;;  %v1689_v60 = vadd.f32 %v1688_v56, %v1520_v54  ;;  %v1522_v62 = vpop.f32.mrf.mxu1  ;;  %v1354_v2 = vadd.f32 %v4133_v0, %v1353_v61  ;;  %v3206_v61 = vld [vmem:[%s4046_s28 + $0x260] sm:$0xf] }
 0x13f   : > { %vm2190_vm4 = vcmp.lt.s32.totalorder %v2126_v51, 6174  ;;  %v3232_v51 = vld [vmem:[%s4046_s28 + $0x298] sm:$0xf0] }
 0x140   : > { %v1858_v4 = vadd.f32 %v1857_v57, %v1689_v60  ;;  %1392 = vmatmul.bf16.gmra.mxu0 %v3175_v58  ;;  %v1523_v6 = vadd.f32 %v1522_v62, %v1354_v2  ;;  %v2061_v57 = vadd.s32 168, %v4146_v20  ;;  %v3637_v62 = vld [vmem:[%s4046_s28 + $0x26c] sm:$0xf0]  ;;  %v3208_v2 = vld [vmem:[%s4046_s28 + $0x270] sm:$0xf0] }
 0x141   : > { %1561 = vmatmul.bf16.gmra.mxu1 %v3179_v59  ;;  %v4320_v59 = vld [vmem:[%s4791_s2] ss:$0 sm:$0xff] }
 0x142   : > { %1992 = vst [vmem:[%s4158_s18 + $0x88] sm:$0xff] %v1858_v4  ;;  %v2251_v5 = vsel %vm2187_vm1, %v1858_v4, 0.0  ;;  %1730 = vmatmul.bf16.gmra.mxu2 %v3183_v63  ;;  %v3635_v63 = vld [vmem:[%s4046_s28 + $0x264] sm:$0xf] }
 0x143   : > { %1899 = vmatmul.bf16.gmra.mxu3 %v3187_v1  ;;  %v2314_v7 = vadd.f32 %v2313_v48, %v2251_v5  ;;  %v2385_v8 = vmul.f32 %v2251_v5, %v2251_v5 }
 0x145   : > { %v2448_v10 = vadd.f32 %v2447_v55, %v2385_v8  ;;  %v1691_v11 = vpop.f32.mrf.mxu2  ;;  %v1355_v14 = vpop.f32.mrf.mxu0  ;;  %v3636_v8 = vld [vmem:[%s4046_s28 + $0x26c] sm:$0xf] }
 0x146   : > { %v1860_v12 = vpop.f32.mrf.mxu3  ;;  %v1692_v13 = vadd.f32 %v1691_v11, %v1523_v6  ;;  %v1524_v15 = vpop.f32.mrf.mxu1  ;;  %v1356_v18 = vadd.f32 %v4133_v0, %v1355_v14  ;;  %v2127_v6 = vadd.s32 %v4150_v22, %v2061_v57  ;;  %v3207_v14 = vor.u32 %v3637_v62, %v3206_v61 }
 0x147   : > { %v3219_v21 = vor.u32 %v3636_v8, %v3216_v9 }
 0x148   : > { %v1861_v17 = vadd.f32 %v1860_v12, %v1692_v13  ;;  %v1525_v33 = vadd.f32 %v1524_v15, %v1356_v18  ;;  %v3211_v15 = vor.u32 %v3635_v63, %v3208_v2  ;;  %vm2191_vm5 = vcmp.lt.s32.totalorder %v2127_v6, 6174 }
 0x14a   : > { %1993 = vst [vmem:[%s4158_s18 + $0x90] sm:$0xff] %v1861_v17  ;;  %v2252_v24 = vsel %vm2188_vm2, %v1861_v17, 0.0 }
 0x14b   : > { %v2315_v27 = vadd.f32 %v2314_v7, %v2252_v24  ;;  %v2386_v28 = vmul.f32 %v2252_v24, %v2252_v24  ;;  %v3638_v7 = vld [vmem:[%s4046_s28 + $0x274] sm:$0xf0]  ;;  %v2062_v24 = vadd.s32 176, %v4146_v20 }
 0x14c   : > { %v3215_v19 = vor.u32 %v3638_v7, %v3214_v3 }
 0x14d   : > { %v2449_v34 = vadd.f32 %v2448_v10, %v2386_v28  ;;  %v1693_v35 = vpop.f32.mrf.mxu2  ;;  %v1358_v40 = vpop.f32.mrf.mxu0  ;;  %v2128_v30 = vadd.s32 %v4150_v22, %v2062_v24  ;;  %v3246_v24 = vld [vmem:[%s4046_s28 + $0x2a8] sm:$0xf] }
 0x14e   : > { %v1862_v36 = vpop.f32.mrf.mxu3  ;;  %v1694_v39 = vadd.f32 %v1693_v35, %v1525_v33  ;;  %v1527_v41 = vpop.f32.mrf.mxu1  ;;  %v1359_v44 = vadd.f32 %v4133_v0, %v1358_v40  ;;  %v3222_v40 = vld [vmem:[%s4046_s28 + $0x280] sm:$0xf] }
 0x14f   : > { %vm2192_vm6 = vcmp.lt.s32.totalorder %v2128_v30, 6174  ;;  %v3248_v30 = vld [vmem:[%s4046_s28 + $0x2b8] sm:$0xf0] }
 0x150   : > { %v1863_v46 = vadd.f32 %v1862_v36, %v1694_v39  ;;  %1397 = vmatmul.bf16.gmra.mxu0 %v3191_v37  ;;  %v1528_v48 = vadd.f32 %v1527_v41, %v1359_v44  ;;  %v2063_v37 = vadd.s32 184, %v4146_v20  ;;  %v3641_v41 = vld [vmem:[%s4046_s28 + $0x28c] sm:$0xf0]  ;;  %v3224_v44 = vld [vmem:[%s4046_s28 + $0x290] sm:$0xf0] }
 0x151   : > { %1566 = vmatmul.bf16.gmra.mxu1 %v3195_v38 }
 0x152   : > { %1994 = vst [vmem:[%s4158_s18 + $0x98] sm:$0xff] %v1863_v46  ;;  %v2253_v47 = vsel %vm2189_vm3, %v1863_v46, 0.0  ;;  %1735 = vmatmul.bf16.gmra.mxu2 %v3199_v42  ;;  %v3639_v42 = vld [vmem:[%s4046_s28 + $0x284] sm:$0xf] }
 0x153   : > { %1904 = vmatmul.bf16.gmra.mxu3 %v3203_v43  ;;  %v2316_v49 = vadd.f32 %v2315_v27, %v2253_v47  ;;  %v2387_v50 = vmul.f32 %v2253_v47, %v2253_v47 }
 0x155   : > { %v2450_v52 = vadd.f32 %v2449_v34, %v2387_v50  ;;  %v1696_v0 = vpop.f32.mrf.mxu2  ;;  %v1360_v55 = vpop.f32.mrf.mxu0  ;;  %v3640_v50 = vld [vmem:[%s4046_s28 + $0x28c] sm:$0xf] }
 0x156   : > { %v1865_v53 = vpop.f32.mrf.mxu3  ;;  %v1697_v54 = vadd.f32 %v1696_v0, %v1528_v48  ;;  %v1529_v56 = vpop.f32.mrf.mxu1  ;;  %v1361_v60 = vadd.f32 %v4320_v59, %v1360_v55  ;;  %v2129_v48 = vadd.s32 %v4150_v22, %v2063_v37  ;;  %v3223_v55 = vor.u32 %v3641_v41, %v3222_v40 }
 0x157   : > { %v3235_v62 = vor.u32 %v3640_v50, %v3232_v51 }
 0x158   : > { %v1866_v58 = vadd.f32 %v1865_v53, %v1697_v54  ;;  %v1530_v10 = vadd.f32 %v1529_v56, %v1361_v60  ;;  %v3227_v56 = vor.u32 %v3639_v42, %v3224_v44  ;;  %vm2193_vm7 = vcmp.lt.s32.totalorder %v2129_v48, 6174 }
 0x15a   : > { %1995 = vst [vmem:[%s4158_s18 + $0xa0] sm:$0xff] %v1866_v58  ;;  %v2254_v1 = vsel %vm2190_vm4, %v1866_v58, 0.0 }
 0x15b   : > { %v2317_v4 = vadd.f32 %v2316_v49, %v2254_v1  ;;  %v2388_v5 = vmul.f32 %v2254_v1, %v2254_v1  ;;  %v3642_v49 = vld [vmem:[%s4046_s28 + $0x294] sm:$0xf0]  ;;  %v2064_v1 = vadd.s32 192, %v4146_v20 }
 0x15c   : > { %v3231_v61 = vor.u32 %v3642_v49, %v3230_v45 }
 0x15d   : > { %v2451_v11 = vadd.f32 %v2450_v52, %v2388_v5  ;;  %v1698_v12 = vpop.f32.mrf.mxu2  ;;  %v1363_v17 = vpop.f32.mrf.mxu0  ;;  %v2130_v7 = vadd.s32 %v4150_v22, %v2064_v1  ;;  %v3262_v1 = vld [vmem:[%s4046_s28 + $0x2c8] sm:$0xf] }
 0x15e   : > { %v1867_v13 = vpop.f32.mrf.mxu3  ;;  %v1699_v16 = vadd.f32 %v1698_v12, %v1530_v10  ;;  %v1532_v18 = vpop.f32.mrf.mxu1  ;;  %v1364_v23 = vadd.f32 %v4320_v59, %v1363_v17  ;;  %v3238_v17 = vld [vmem:[%s4046_s28 + $0x2a0] sm:$0xf] }
 0x15f   : > { %vm2194_vm8 = vcmp.lt.s32.totalorder %v2130_v7, 6174  ;;  %v3264_v7 = vld [vmem:[%s4046_s28 + $0x2d8] sm:$0xf0] }
 0x160   : > { %v1868_v25 = vadd.f32 %v1867_v13, %v1699_v16  ;;  %1402 = vmatmul.bf16.gmra.mxu0 %v3207_v14  ;;  %v1533_v27 = vadd.f32 %v1532_v18, %v1364_v23  ;;  %v2065_v14 = vadd.s32 200, %v4146_v20  ;;  %v3645_v18 = vld [vmem:[%s4046_s28 + $0x2ac] sm:$0xf0]  ;;  %v3240_v23 = vld [vmem:[%s4046_s28 + $0x2b0] sm:$0xf0] }
 0x161   : > { %1571 = vmatmul.bf16.gmra.mxu1 %v3211_v15 }
 0x162   : > { %1996 = vst [vmem:[%s4158_s18 + $0xa8] sm:$0xff] %v1868_v25  ;;  %v2255_v26 = vsel %vm2191_vm5, %v1868_v25, 0.0  ;;  %1740 = vmatmul.bf16.gmra.mxu2 %v3215_v19  ;;  %v3643_v19 = vld [vmem:[%s4046_s28 + $0x2a4] sm:$0xf] }
 0x163   : > { %1909 = vmatmul.bf16.gmra.mxu3 %v3219_v21  ;;  %v2318_v28 = vadd.f32 %v2317_v4, %v2255_v26  ;;  %v2389_v29 = vmul.f32 %v2255_v26, %v2255_v26 }
 0x165   : > { %v2452_v31 = vadd.f32 %v2451_v11, %v2389_v29  ;;  %v1701_v32 = vpop.f32.mrf.mxu2  ;;  %v1365_v35 = vpop.f32.mrf.mxu0  ;;  %v3644_v29 = vld [vmem:[%s4046_s28 + $0x2ac] sm:$0xf] }
 0x166   : > { %v1870_v33 = vpop.f32.mrf.mxu3  ;;  %v1702_v34 = vadd.f32 %v1701_v32, %v1533_v27  ;;  %v1534_v36 = vpop.f32.mrf.mxu1  ;;  %v1366_v39 = vadd.f32 %v4320_v59, %v1365_v35  ;;  %v2131_v27 = vadd.s32 %v4150_v22, %v2065_v14  ;;  %v3239_v35 = vor.u32 %v3645_v18, %v3238_v17 }
 0x167   : > { %v3251_v41 = vor.u32 %v3644_v29, %v3248_v30 }
 0x168   : > { %v1871_v38 = vadd.f32 %v1870_v33, %v1702_v34  ;;  %v1535_v52 = vadd.f32 %v1534_v36, %v1366_v39  ;;  %v3243_v36 = vor.u32 %v3643_v19, %v3240_v23  ;;  %vm2195_vm9 = vcmp.lt.s32.totalorder %v2131_v27, 6174 }
 0x16a   : > { %1997 = vst [vmem:[%s4158_s18 + $0xb0] sm:$0xff] %v1871_v38  ;;  %v2256_v43 = vsel %vm2192_vm6, %v1871_v38, 0.0 }
 0x16b   : > { %v2319_v46 = vadd.f32 %v2318_v28, %v2256_v43  ;;  %v2390_v47 = vmul.f32 %v2256_v43, %v2256_v43  ;;  %v3646_v28 = vld [vmem:[%s4046_s28 + $0x2b4] sm:$0xf0]  ;;  %v2066_v43 = vadd.s32 208, %v4146_v20 }
 0x16c   : > { %v3247_v40 = vor.u32 %v3646_v28, %v3246_v24 }
 0x16d   : > { %v2453_v0 = vadd.f32 %v2452_v31, %v2390_v47  ;;  %v1703_v53 = vpop.f32.mrf.mxu2  ;;  %v1368_v58 = vpop.f32.mrf.mxu0  ;;  %v2132_v49 = vadd.s32 %v4150_v22, %v2066_v43  ;;  %v3278_v43 = vld [vmem:[%s4046_s28 + $0x2e8] sm:$0xf] }
 0x16e   : > { %v1872_v54 = vpop.f32.mrf.mxu3  ;;  %v1704_v57 = vadd.f32 %v1703_v53, %v1535_v52  ;;  %v1537_v60 = vpop.f32.mrf.mxu1  ;;  %v1369_v63 = vadd.f32 %v4320_v59, %v1368_v58  ;;  %v3254_v58 = vld [vmem:[%s4046_s28 + $0x2c0] sm:$0xf] }
 0x16f   : > { %vm2196_vm10 = vcmp.lt.s32.totalorder %v2132_v49, 6174  ;;  %v3280_v49 = vld [vmem:[%s4046_s28 + $0x2f8] sm:$0xf0] }
 0x170   : > { %v1873_v2 = vadd.f32 %v1872_v54, %v1704_v57  ;;  %1407 = vmatmul.bf16.gmra.mxu0 %v3223_v55  ;;  %v1538_v4 = vadd.f32 %v1537_v60, %v1369_v63  ;;  %v2067_v55 = vadd.s32 216, %v4146_v20  ;;  %v3649_v60 = vld [vmem:[%s4046_s28 + $0x2cc] sm:$0xf0]  ;;  %v3256_v63 = vld [vmem:[%s4046_s28 + $0x2d0] sm:$0xf0] }
 0x171   : > { %1576 = vmatmul.bf16.gmra.mxu1 %v3227_v56 }
 0x172   : > { %1998 = vst [vmem:[%s4158_s18 + $0xb8] sm:$0xff] %v1873_v2  ;;  %v2257_v3 = vsel %vm2193_vm7, %v1873_v2, 0.0  ;;  %1745 = vmatmul.bf16.gmra.mxu2 %v3231_v61  ;;  %v3647_v61 = vld [vmem:[%s4046_s28 + $0x2c4] sm:$0xf] }
 0x173   : > { %1914 = vmatmul.bf16.gmra.mxu3 %v3235_v62  ;;  %v2320_v5 = vadd.f32 %v2319_v46, %v2257_v3  ;;  %v2391_v6 = vmul.f32 %v2257_v3, %v2257_v3 }
 0x175   : > { %v2454_v8 = vadd.f32 %v2453_v0, %v2391_v6  ;;  %v1706_v9 = vpop.f32.mrf.mxu2  ;;  %v1370_v12 = vpop.f32.mrf.mxu0  ;;  %v3648_v6 = vld [vmem:[%s4046_s28 + $0x2cc] sm:$0xf] }
 0x176   : > { %v1875_v10 = vpop.f32.mrf.mxu3  ;;  %v1707_v11 = vadd.f32 %v1706_v9, %v1538_v4  ;;  %v1539_v13 = vpop.f32.mrf.mxu1  ;;  %v1371_v16 = vadd.f32 %v4320_v59, %v1370_v12  ;;  %v2133_v4 = vadd.s32 %v4150_v22, %v2067_v55  ;;  %v3255_v12 = vor.u32 %v3649_v60, %v3254_v58 }
 0x177   : > { %v3267_v18 = vor.u32 %v3648_v6, %v3264_v7 }
 0x178   : > { %v1876_v15 = vadd.f32 %v1875_v10, %v1707_v11  ;;  %v1540_v31 = vadd.f32 %v1539_v13, %v1371_v16  ;;  %v3259_v13 = vor.u32 %v3647_v61, %v3256_v63  ;;  %vm2197_vm11 = vcmp.lt.s32.totalorder %v2133_v4, 6174 }
 0x17a   : > { %1999 = vst [vmem:[%s4158_s18 + $0xc0] sm:$0xff] %v1876_v15  ;;  %v2258_v21 = vsel %vm2194_vm8, %v1876_v15, 0.0 }
 0x17b   : > { %v2321_v25 = vadd.f32 %v2320_v5, %v2258_v21  ;;  %v2392_v26 = vmul.f32 %v2258_v21, %v2258_v21  ;;  %v3650_v5 = vld [vmem:[%s4046_s28 + $0x2d4] sm:$0xf0]  ;;  %v2068_v21 = vadd.s32 224, %v4146_v20 }
 0x17c   : > { %v3263_v17 = vor.u32 %v3650_v5, %v3262_v1 }
 0x17d   : > { %v2455_v32 = vadd.f32 %v2454_v8, %v2392_v26  ;;  %v1708_v33 = vpop.f32.mrf.mxu2  ;;  %v1373_v38 = vpop.f32.mrf.mxu0  ;;  %v2134_v28 = vadd.s32 %v4150_v22, %v2068_v21  ;;  %v3294_v21 = vld [vmem:[%s4046_s28 + $0x308] sm:$0xf] }
 0x17e   : > { %v1877_v34 = vpop.f32.mrf.mxu3  ;;  %v1709_v37 = vadd.f32 %v1708_v33, %v1540_v31  ;;  %v1542_v39 = vpop.f32.mrf.mxu1  ;;  %v1374_v42 = vadd.f32 %v4320_v59, %v1373_v38  ;;  %v3270_v38 = vld [vmem:[%s4046_s28 + $0x2e0] sm:$0xf] }
 0x17f   : > { %vm2198_vm12 = vcmp.lt.s32.totalorder %v2134_v28, 6174  ;;  %v3296_v28 = vld [vmem:[%s4046_s28 + $0x318] sm:$0xf0] }
 0x180   : > { %v1878_v44 = vadd.f32 %v1877_v34, %v1709_v37  ;;  %1412 = vmatmul.bf16.gmra.mxu0 %v3239_v35  ;;  %v1543_v46 = vadd.f32 %v1542_v39, %v1374_v42  ;;  %v2069_v35 = vadd.s32 232, %v4146_v20  ;;  %v3653_v39 = vld [vmem:[%s4046_s28 + $0x2ec] sm:$0xf0]  ;;  %v3272_v42 = vld [vmem:[%s4046_s28 + $0x2f0] sm:$0xf0] }
 0x181   : > { %1581 = vmatmul.bf16.gmra.mxu1 %v3243_v36 }
 0x182   : > { %2000 = vst [vmem:[%s4158_s18 + $0xc8] sm:$0xff] %v1878_v44  ;;  %v2259_v45 = vsel %vm2195_vm9, %v1878_v44, 0.0  ;;  %1750 = vmatmul.bf16.gmra.mxu2 %v3247_v40  ;;  %v3651_v40 = vld [vmem:[%s4046_s28 + $0x2e4] sm:$0xf] }
 0x183   : > { %1919 = vmatmul.bf16.gmra.mxu3 %v3251_v41  ;;  %v2322_v47 = vadd.f32 %v2321_v25, %v2259_v45  ;;  %v2393_v48 = vmul.f32 %v2259_v45, %v2259_v45 }
 0x185   : > { %v2456_v50 = vadd.f32 %v2455_v32, %v2393_v48  ;;  %v1711_v51 = vpop.f32.mrf.mxu2  ;;  %v1375_v53 = vpop.f32.mrf.mxu0  ;;  %v3652_v48 = vld [vmem:[%s4046_s28 + $0x2ec] sm:$0xf] }
 0x186   : > { %v1880_v52 = vpop.f32.mrf.mxu3  ;;  %v1712_v0 = vadd.f32 %v1711_v51, %v1543_v46  ;;  %v1544_v54 = vpop.f32.mrf.mxu1  ;;  %v1376_v57 = vadd.f32 %v4320_v59, %v1375_v53  ;;  %v2135_v46 = vadd.s32 %v4150_v22, %v2069_v35  ;;  %v3271_v53 = vor.u32 %v3653_v39, %v3270_v38 }
 0x187   : > { %v3283_v60 = vor.u32 %v3652_v48, %v3280_v49 }
 0x188   : > { %v1881_v56 = vadd.f32 %v1880_v52, %v1712_v0  ;;  %v1545_v8 = vadd.f32 %v1544_v54, %v1376_v57  ;;  %v3275_v54 = vor.u32 %v3651_v40, %v3272_v42  ;;  %vm2199_vm13 = vcmp.lt.s32.totalorder %v2135_v46, 6174 }
 0x18a   : > { %2001 = vst [vmem:[%s4158_s18 + $0xd0] sm:$0xff] %v1881_v56  ;;  %v2260_v62 = vsel %vm2196_vm10, %v1881_v56, 0.0 }
 0x18b   : > { %v2323_v2 = vadd.f32 %v2322_v47, %v2260_v62  ;;  %v2394_v3 = vmul.f32 %v2260_v62, %v2260_v62  ;;  %v3654_v47 = vld [vmem:[%s4046_s28 + $0x2f4] sm:$0xf0]  ;;  %v2070_v62 = vadd.s32 240, %v4146_v20 }
 0x18c   : > { %v3279_v58 = vor.u32 %v3654_v47, %v3278_v43 }
 0x18d   : > { %v2457_v9 = vadd.f32 %v2456_v50, %v2394_v3  ;;  %v1713_v10 = vpop.f32.mrf.mxu2  ;;  %v1378_v15 = vpop.f32.mrf.mxu0  ;;  %v2136_v5 = vadd.s32 %v4150_v22, %v2070_v62  ;;  %v3310_v62 = vld [vmem:[%s4046_s28 + $0x328] sm:$0xf] }
 0x18e   : > { %v1882_v11 = vpop.f32.mrf.mxu3  ;;  %v1714_v14 = vadd.f32 %v1713_v10, %v1545_v8  ;;  %v1547_v16 = vpop.f32.mrf.mxu1  ;;  %v1379_v19 = vadd.f32 %v4320_v59, %v1378_v15  ;;  %v3286_v15 = vld [vmem:[%s4046_s28 + $0x300] sm:$0xf] }
 0x18f   : > { %vm2200_vm14 = vcmp.lt.s32.totalorder %v2136_v5, 6174  ;;  %v3312_v5 = vld [vmem:[%s4046_s28 + $0x338] sm:$0xf0] }
 0x190   : > { %v1883_v23 = vadd.f32 %v1882_v11, %v1714_v14  ;;  %1417 = vmatmul.bf16.gmra.mxu0 %v3255_v12  ;;  %v1548_v25 = vadd.f32 %v1547_v16, %v1379_v19  ;;  %v2071_v12 = vadd.s32 248, %v4146_v20  ;;  %v3657_v16 = vld [vmem:[%s4046_s28 + $0x30c] sm:$0xf0]  ;;  %v3288_v19 = vld [vmem:[%s4046_s28 + $0x310] sm:$0xf0] }
 0x191   : > { %1586 = vmatmul.bf16.gmra.mxu1 %v3259_v13 }
 0x192   : > { %2002 = vst [vmem:[%s4158_s18 + $0xd8] sm:$0xff] %v1883_v23  ;;  %v2261_v24 = vsel %vm2197_vm11, %v1883_v23, 0.0  ;;  %1755 = vmatmul.bf16.gmra.mxu2 %v3263_v17  ;;  %v3655_v17 = vld [vmem:[%s4046_s28 + $0x304] sm:$0xf] }
 0x193   : > { %1924 = vmatmul.bf16.gmra.mxu3 %v3267_v18  ;;  %v2324_v26 = vadd.f32 %v2323_v2, %v2261_v24  ;;  %v2395_v27 = vmul.f32 %v2261_v24, %v2261_v24 }
 0x195   : > { %v2458_v29 = vadd.f32 %v2457_v9, %v2395_v27  ;;  %v1716_v30 = vpop.f32.mrf.mxu2  ;;  %v1380_v33 = vpop.f32.mrf.mxu0  ;;  %v3656_v27 = vld [vmem:[%s4046_s28 + $0x30c] sm:$0xf] }
 0x196   : > { %v1885_v31 = vpop.f32.mrf.mxu3  ;;  %v1717_v32 = vadd.f32 %v1716_v30, %v1548_v25  ;;  %v1549_v34 = vpop.f32.mrf.mxu1  ;;  %v1381_v37 = vadd.f32 %v4320_v59, %v1380_v33  ;;  %v2137_v25 = vadd.s32 %v4150_v22, %v2071_v12  ;;  %v3287_v33 = vor.u32 %v3657_v16, %v3286_v15 }
 0x197   : > { %v3299_v39 = vor.u32 %v3656_v27, %v3296_v28 }
 0x198   : > { %v1886_v36 = vadd.f32 %v1885_v31, %v1717_v32  ;;  %v1550_v50 = vadd.f32 %v1549_v34, %v1381_v37  ;;  %v3291_v34 = vor.u32 %v3655_v17, %v3288_v19  ;;  %vm2201_vm15 = vcmp.lt.s32.totalorder %v2137_v25, 6174 }
 0x19a   : > { %2003 = vst [vmem:[%s4158_s18 + $0xe0] sm:$0xff] %v1886_v36  ;;  %v2262_v41 = vsel %vm2198_vm12, %v1886_v36, 0.0 }
 0x19b   : > { %v2325_v44 = vadd.f32 %v2324_v26, %v2262_v41  ;;  %v2396_v45 = vmul.f32 %v2262_v41, %v2262_v41  ;;  %v3658_v26 = vld [vmem:[%s4046_s28 + $0x314] sm:$0xf0]  ;;  %v2072_v41 = vadd.s32 256, %v4146_v20 }
 0x19c   : > { %v3295_v38 = vor.u32 %v3658_v26, %v3294_v21 }
 0x19d   : > { %v2459_v51 = vadd.f32 %v2458_v29, %v2396_v45  ;;  %v1718_v52 = vpop.f32.mrf.mxu2  ;;  %v1383_v56 = vpop.f32.mrf.mxu0  ;;  %v2138_v47 = vadd.s32 %v4150_v22, %v2072_v41  ;;  %v3326_v41 = vld [vmem:[%s4046_s28 + $0x348] sm:$0xf] }
 0x19e   : > { %v1887_v0 = vpop.f32.mrf.mxu3  ;;  %v1719_v55 = vadd.f32 %v1718_v52, %v1550_v50  ;;  %v1552_v57 = vpop.f32.mrf.mxu1  ;;  %v1384_v61 = vadd.f32 %v4320_v59, %v1383_v56  ;;  %v3302_v56 = vld [vmem:[%s4046_s28 + $0x320] sm:$0xf] }
 0x19f   : > { %vm2202_vm0 = vcmp.lt.s32.totalorder %v2138_v47, 6174  ;;  %v3328_v47 = vld [vmem:[%s4046_s28 + $0x358] sm:$0xf0] }
 0x1a0   : > { %v1888_v63 = vadd.f32 %v1887_v0, %v1719_v55  ;;  %1422 = vmatmul.bf16.gmra.mxu0 %v3271_v53  ;;  %v1553_v2 = vadd.f32 %v1552_v57, %v1384_v61  ;;  %v2073_v53 = vadd.s32 264, %v4146_v20  ;;  %v3661_v57 = vld [vmem:[%s4046_s28 + $0x32c] sm:$0xf0]  ;;  %v3304_v61 = vld [vmem:[%s4046_s28 + $0x330] sm:$0xf0] }
 0x1a1   : > { %1591 = vmatmul.bf16.gmra.mxu1 %v3275_v54 }
 0x1a2   : > { %2004 = vst [vmem:[%s4158_s18 + $0xe8] sm:$0xff] %v1888_v63  ;;  %v2263_v1 = vsel %vm2199_vm13, %v1888_v63, 0.0  ;;  %1760 = vmatmul.bf16.gmra.mxu2 %v3279_v58  ;;  %v3659_v58 = vld [vmem:[%s4046_s28 + $0x324] sm:$0xf] }
 0x1a3   : > { %1929 = vmatmul.bf16.gmra.mxu3 %v3283_v60  ;;  %v2326_v3 = vadd.f32 %v2325_v44, %v2263_v1  ;;  %v2397_v4 = vmul.f32 %v2263_v1, %v2263_v1 }
 0x1a5   : > { %v2460_v6 = vadd.f32 %v2459_v51, %v2397_v4  ;;  %v1721_v7 = vpop.f32.mrf.mxu2  ;;  %v1385_v10 = vpop.f32.mrf.mxu0  ;;  %v3660_v4 = vld [vmem:[%s4046_s28 + $0x32c] sm:$0xf] }
 0x1a6   : > { %v1890_v8 = vpop.f32.mrf.mxu3  ;;  %v1722_v9 = vadd.f32 %v1721_v7, %v1553_v2  ;;  %v1554_v11 = vpop.f32.mrf.mxu1  ;;  %v1386_v14 = vadd.f32 %v4320_v59, %v1385_v10  ;;  %v2139_v2 = vadd.s32 %v4150_v22, %v2073_v53  ;;  %v3303_v10 = vor.u32 %v3661_v57, %v3302_v56 }
 0x1a7   : > { %v3315_v16 = vor.u32 %v3660_v4, %v3312_v5 }
 0x1a8   : > { %v1891_v13 = vadd.f32 %v1890_v8, %v1722_v9  ;;  %v1555_v29 = vadd.f32 %v1554_v11, %v1386_v14  ;;  %v3307_v11 = vor.u32 %v3659_v58, %v3304_v61  ;;  %vm2203_vm1 = vcmp.lt.s32.totalorder %v2139_v2, 6174 }
 0x1aa   : > { %2005 = vst [vmem:[%s4158_s18 + $0xf0] sm:$0xff] %v1891_v13  ;;  %v2264_v18 = vsel %vm2200_vm14, %v1891_v13, 0.0 }
 0x1ab   : > { %v2327_v23 = vadd.f32 %v2326_v3, %v2264_v18  ;;  %v2398_v24 = vmul.f32 %v2264_v18, %v2264_v18  ;;  %v3662_v3 = vld [vmem:[%s4046_s28 + $0x334] sm:$0xf0]  ;;  %v2074_v18 = vadd.s32 272, %v4146_v20 }
 0x1ac   : > { %v3311_v15 = vor.u32 %v3662_v3, %v3310_v62 }
 0x1ad   : > { %v2461_v30 = vadd.f32 %v2460_v6, %v2398_v24  ;;  %v1723_v31 = vpop.f32.mrf.mxu2  ;;  %v1388_v36 = vpop.f32.mrf.mxu0  ;;  %v2140_v26 = vadd.s32 %v4150_v22, %v2074_v18  ;;  %v3342_v18 = vld [vmem:[%s4046_s28 + $0x368] sm:$0xf] }
 0x1ae   : > { %v1892_v32 = vpop.f32.mrf.mxu3  ;;  %v1724_v35 = vadd.f32 %v1723_v31, %v1555_v29  ;;  %v1557_v37 = vpop.f32.mrf.mxu1  ;;  %v1389_v40 = vadd.f32 %v4320_v59, %v1388_v36  ;;  %v3318_v36 = vld [vmem:[%s4046_s28 + $0x340] sm:$0xf] }
 0x1af   : > { %vm2204_vm2 = vcmp.lt.s32.totalorder %v2140_v26, 6174  ;;  %v3344_v26 = vld [vmem:[%s4046_s28 + $0x378] sm:$0xf0] }
 0x1b0   : > { %v1893_v42 = vadd.f32 %v1892_v32, %v1724_v35  ;;  %1427 = vmatmul.bf16.gmra.mxu0 %v3287_v33  ;;  %v1558_v44 = vadd.f32 %v1557_v37, %v1389_v40  ;;  %v2075_v33 = vadd.s32 280, %v4146_v20  ;;  %v3665_v37 = vld [vmem:[%s4046_s28 + $0x34c] sm:$0xf0]  ;;  %v3320_v40 = vld [vmem:[%s4046_s28 + $0x350] sm:$0xf0] }
 0x1b1   : > { %1596 = vmatmul.bf16.gmra.mxu1 %v3291_v34 }
 0x1b2   : > { %2006 = vst [vmem:[%s4158_s18 + $0xf8] sm:$0xff] %v1893_v42  ;;  %v2265_v43 = vsel %vm2201_vm15, %v1893_v42, 0.0  ;;  %1765 = vmatmul.bf16.gmra.mxu2 %v3295_v38  ;;  %v3663_v38 = vld [vmem:[%s4046_s28 + $0x344] sm:$0xf] }
 0x1b3   : > { %1934 = vmatmul.bf16.gmra.mxu3 %v3299_v39  ;;  %v2328_v45 = vadd.f32 %v2327_v23, %v2265_v43  ;;  %v2399_v46 = vmul.f32 %v2265_v43, %v2265_v43 }
 0x1b5   : > { %v2462_v48 = vadd.f32 %v2461_v30, %v2399_v46  ;;  %v1726_v49 = vpop.f32.mrf.mxu2  ;;  %v1390_v52 = vpop.f32.mrf.mxu0  ;;  %v3664_v46 = vld [vmem:[%s4046_s28 + $0x34c] sm:$0xf] }
 0x1b6   : > { %v1895_v50 = vpop.f32.mrf.mxu3  ;;  %v1727_v51 = vadd.f32 %v1726_v49, %v1558_v44  ;;  %v1559_v0 = vpop.f32.mrf.mxu1  ;;  %v1391_v55 = vadd.f32 %v4320_v59, %v1390_v52  ;;  %v2141_v44 = vadd.s32 %v4150_v22, %v2075_v33  ;;  %v3319_v52 = vor.u32 %v3665_v37, %v3318_v36 }
 0x1b7   : > { %v3331_v57 = vor.u32 %v3664_v46, %v3328_v47 }
 0x1b8   : > { %v1896_v54 = vadd.f32 %v1895_v50, %v1727_v51  ;;  %v1560_v6 = vadd.f32 %v1559_v0, %v1391_v55  ;;  %v3323_v0 = vor.u32 %v3663_v38, %v3320_v40  ;;  %vm2205_vm3 = vcmp.lt.s32.totalorder %v2141_v44, 6174 }
 0x1ba   : > { %2007 = vst [vmem:[%s4158_s18 + $0x100] sm:$0xff] %v1896_v54  ;;  %v2266_v60 = vsel %vm2202_vm0, %v1896_v54, 0.0 }
 0x1bb   : > { %v2329_v63 = vadd.f32 %v2328_v45, %v2266_v60  ;;  %v2400_v1 = vmul.f32 %v2266_v60, %v2266_v60  ;;  %v3666_v45 = vld [vmem:[%s4046_s28 + $0x354] sm:$0xf0]  ;;  %v2076_v60 = vadd.s32 288, %v4146_v20 }
 0x1bc   : > { %v3327_v56 = vor.u32 %v3666_v45, %v3326_v41 }
 0x1bd   : > { %v2463_v7 = vadd.f32 %v2462_v48, %v2400_v1  ;;  %v1728_v8 = vpop.f32.mrf.mxu2  ;;  %v1393_v13 = vpop.f32.mrf.mxu0  ;;  %v2142_v3 = vadd.s32 %v4150_v22, %v2076_v60  ;;  %v3358_v60 = vld [vmem:[%s4046_s28 + $0x388] sm:$0xf] }
 0x1be   : > { %v1897_v9 = vpop.f32.mrf.mxu3  ;;  %v1729_v12 = vadd.f32 %v1728_v8, %v1560_v6  ;;  %v1562_v14 = vpop.f32.mrf.mxu1  ;;  %v1394_v17 = vadd.f32 %v4320_v59, %v1393_v13  ;;  %v3334_v13 = vld [vmem:[%s4046_s28 + $0x360] sm:$0xf] }
 0x1bf   : > { %vm2206_vm4 = vcmp.lt.s32.totalorder %v2142_v3, 6174  ;;  %v3360_v3 = vld [vmem:[%s4046_s28 + $0x398] sm:$0xf0] }
 0x1c0   : > { %v1898_v19 = vadd.f32 %v1897_v9, %v1729_v12  ;;  %1432 = vmatmul.bf16.gmra.mxu0 %v3303_v10  ;;  %v1563_v23 = vadd.f32 %v1562_v14, %v1394_v17  ;;  %v2077_v10 = vadd.s32 296, %v4146_v20  ;;  %v3669_v14 = vld [vmem:[%s4046_s28 + $0x36c] sm:$0xf0]  ;;  %v3336_v17 = vld [vmem:[%s4046_s28 + $0x370] sm:$0xf0] }
 0x1c1   : > { %1601 = vmatmul.bf16.gmra.mxu1 %v3307_v11 }
 0x1c2   : > { %2008 = vst [vmem:[%s4158_s18 + $0x108] sm:$0xff] %v1898_v19  ;;  %v2267_v21 = vsel %vm2203_vm1, %v1898_v19, 0.0  ;;  %1770 = vmatmul.bf16.gmra.mxu2 %v3311_v15  ;;  %v3667_v15 = vld [vmem:[%s4046_s28 + $0x364] sm:$0xf] }
 0x1c3   : > { %1939 = vmatmul.bf16.gmra.mxu3 %v3315_v16  ;;  %v2330_v24 = vadd.f32 %v2329_v63, %v2267_v21  ;;  %v2401_v25 = vmul.f32 %v2267_v21, %v2267_v21 }
 0x1c5   : > { %v2464_v27 = vadd.f32 %v2463_v7, %v2401_v25  ;;  %v1731_v28 = vpop.f32.mrf.mxu2  ;;  %v1395_v31 = vpop.f32.mrf.mxu0  ;;  %v3668_v25 = vld [vmem:[%s4046_s28 + $0x36c] sm:$0xf] }
 0x1c6   : > { %v1900_v29 = vpop.f32.mrf.mxu3  ;;  %v1732_v30 = vadd.f32 %v1731_v28, %v1563_v23  ;;  %v1564_v32 = vpop.f32.mrf.mxu1  ;;  %v1396_v35 = vadd.f32 %v4320_v59, %v1395_v31  ;;  %v2143_v23 = vadd.s32 %v4150_v22, %v2077_v10  ;;  %v3335_v31 = vor.u32 %v3669_v14, %v3334_v13 }
 0x1c7   : > { %v3347_v37 = vor.u32 %v3668_v25, %v3344_v26 }
 0x1c8   : > { %v1901_v34 = vadd.f32 %v1900_v29, %v1732_v30  ;;  %v1565_v48 = vadd.f32 %v1564_v32, %v1396_v35  ;;  %v3339_v32 = vor.u32 %v3667_v15, %v3336_v17  ;;  %vm2207_vm5 = vcmp.lt.s32.totalorder %v2143_v23, 6174 }
 0x1ca   : > { %2009 = vst [vmem:[%s4158_s18 + $0x110] sm:$0xff] %v1901_v34  ;;  %v2268_v39 = vsel %vm2204_vm2, %v1901_v34, 0.0 }
 0x1cb   : > { %v2331_v42 = vadd.f32 %v2330_v24, %v2268_v39  ;;  %v2402_v43 = vmul.f32 %v2268_v39, %v2268_v39  ;;  %v3670_v24 = vld [vmem:[%s4046_s28 + $0x374] sm:$0xf0]  ;;  %v2078_v39 = vadd.s32 304, %v4146_v20 }
 0x1cc   : > { %v3343_v36 = vor.u32 %v3670_v24, %v3342_v18 }
 0x1cd   : > { %v2465_v49 = vadd.f32 %v2464_v27, %v2402_v43  ;;  %v1733_v50 = vpop.f32.mrf.mxu2  ;;  %v1398_v54 = vpop.f32.mrf.mxu0  ;;  %v2144_v45 = vadd.s32 %v4150_v22, %v2078_v39  ;;  %v3374_v39 = vld [vmem:[%s4046_s28 + $0x3a8] sm:$0xf] }
 0x1ce   : > { %v1902_v51 = vpop.f32.mrf.mxu3  ;;  %v1734_v53 = vadd.f32 %v1733_v50, %v1565_v48  ;;  %v1567_v55 = vpop.f32.mrf.mxu1  ;;  %v1399_v58 = vadd.f32 %v4320_v59, %v1398_v54  ;;  %v3350_v54 = vld [vmem:[%s4046_s28 + $0x380] sm:$0xf] }
 0x1cf   : > { %vm2208_vm6 = vcmp.lt.s32.totalorder %v2144_v45, 6174  ;;  %v3376_v45 = vld [vmem:[%s4046_s28 + $0x3b8] sm:$0xf0] }
 0x1d0   : > { %v1903_v61 = vadd.f32 %v1902_v51, %v1734_v53  ;;  %1437 = vmatmul.bf16.gmra.mxu0 %v3319_v52  ;;  %v1568_v63 = vadd.f32 %v1567_v55, %v1399_v58  ;;  %v2079_v52 = vadd.s32 312, %v4146_v20  ;;  %v3673_v55 = vld [vmem:[%s4046_s28 + $0x38c] sm:$0xf0]  ;;  %v3352_v58 = vld [vmem:[%s4046_s28 + $0x390] sm:$0xf0] }
 0x1d1   : > { %1606 = vmatmul.bf16.gmra.mxu1 %v3323_v0 }
 0x1d2   : > { %2010 = vst [vmem:[%s4158_s18 + $0x118] sm:$0xff] %v1903_v61  ;;  %v2269_v62 = vsel %vm2205_vm3, %v1903_v61, 0.0  ;;  %1775 = vmatmul.bf16.gmra.mxu2 %v3327_v56  ;;  %v3671_v56 = vld [vmem:[%s4046_s28 + $0x384] sm:$0xf] }
 0x1d3   : > { %1944 = vmatmul.bf16.gmra.mxu3 %v3331_v57  ;;  %v2332_v1 = vadd.f32 %v2331_v42, %v2269_v62  ;;  %v2403_v2 = vmul.f32 %v2269_v62, %v2269_v62 }
 0x1d5   : > { %v2466_v4 = vadd.f32 %v2465_v49, %v2403_v2  ;;  %v1736_v5 = vpop.f32.mrf.mxu2  ;;  %v1400_v8 = vpop.f32.mrf.mxu0  ;;  %v3672_v2 = vld [vmem:[%s4046_s28 + $0x38c] sm:$0xf] }
 0x1d6   : > { %v1905_v6 = vpop.f32.mrf.mxu3  ;;  %v1737_v7 = vadd.f32 %v1736_v5, %v1568_v63  ;;  %v1569_v9 = vpop.f32.mrf.mxu1  ;;  %v1401_v12 = vadd.f32 %v4320_v59, %v1400_v8  ;;  %v2145_v63 = vadd.s32 %v4150_v22, %v2079_v52  ;;  %v3351_v8 = vor.u32 %v3673_v55, %v3350_v54 }
 0x1d7   : > { %v3363_v14 = vor.u32 %v3672_v2, %v3360_v3 }
 0x1d8   : > { %v1906_v11 = vadd.f32 %v1905_v6, %v1737_v7  ;;  %v1570_v27 = vadd.f32 %v1569_v9, %v1401_v12  ;;  %v3355_v9 = vor.u32 %v3671_v56, %v3352_v58  ;;  %vm2209_vm7 = vcmp.lt.s32.totalorder %v2145_v63, 6174 }
 0x1da   : > { %2011 = vst [vmem:[%s4158_s18 + $0x120] sm:$0xff] %v1906_v11  ;;  %v2270_v16 = vsel %vm2206_vm4, %v1906_v11, 0.0 }
 0x1db   : > { %v2333_v19 = vadd.f32 %v2332_v1, %v2270_v16  ;;  %v2404_v21 = vmul.f32 %v2270_v16, %v2270_v16  ;;  %v3674_v1 = vld [vmem:[%s4046_s28 + $0x394] sm:$0xf0]  ;;  %v2080_v16 = vadd.s32 320, %v4146_v20 }
 0x1dc   : > { %v3359_v13 = vor.u32 %v3674_v1, %v3358_v60 }
 0x1dd   : > { %v2467_v28 = vadd.f32 %v2466_v4, %v2404_v21  ;;  %v1738_v29 = vpop.f32.mrf.mxu2  ;;  %v1403_v34 = vpop.f32.mrf.mxu0  ;;  %v2146_v24 = vadd.s32 %v4150_v22, %v2080_v16  ;;  %v3390_v16 = vld [vmem:[%s4046_s28 + $0x3c8] sm:$0xf] }
 0x1de   : > { %v1907_v30 = vpop.f32.mrf.mxu3  ;;  %v1739_v33 = vadd.f32 %v1738_v29, %v1570_v27  ;;  %v1572_v35 = vpop.f32.mrf.mxu1  ;;  %v1404_v38 = vadd.f32 %v4320_v59, %v1403_v34  ;;  %v3366_v34 = vld [vmem:[%s4046_s28 + $0x3a0] sm:$0xf] }
 0x1df   : > { %vm2210_vm8 = vcmp.lt.s32.totalorder %v2146_v24, 6174  ;;  %v3392_v24 = vld [vmem:[%s4046_s28 + $0x3d8] sm:$0xf0] }
 0x1e0   : > { %v1908_v40 = vadd.f32 %v1907_v30, %v1739_v33  ;;  %1442 = vmatmul.bf16.gmra.mxu0 %v3335_v31  ;;  %v1573_v42 = vadd.f32 %v1572_v35, %v1404_v38  ;;  %v2081_v31 = vadd.s32 328, %v4146_v20  ;;  %v3677_v35 = vld [vmem:[%s4046_s28 + $0x3ac] sm:$0xf0]  ;;  %v3368_v38 = vld [vmem:[%s4046_s28 + $0x3b0] sm:$0xf0] }
 0x1e1   : > { %1611 = vmatmul.bf16.gmra.mxu1 %v3339_v32 }
 0x1e2   : > { %2012 = vst [vmem:[%s4158_s18 + $0x128] sm:$0xff] %v1908_v40  ;;  %v2271_v41 = vsel %vm2207_vm5, %v1908_v40, 0.0  ;;  %1780 = vmatmul.bf16.gmra.mxu2 %v3343_v36  ;;  %v3675_v36 = vld [vmem:[%s4046_s28 + $0x3a4] sm:$0xf] }
 0x1e3   : > { %1949 = vmatmul.bf16.gmra.mxu3 %v3347_v37  ;;  %v2334_v43 = vadd.f32 %v2333_v19, %v2271_v41  ;;  %v2405_v44 = vmul.f32 %v2271_v41, %v2271_v41 }
 0x1e5   : > { %v2468_v46 = vadd.f32 %v2467_v28, %v2405_v44  ;;  %v1741_v47 = vpop.f32.mrf.mxu2  ;;  %v1405_v50 = vpop.f32.mrf.mxu0  ;;  %v3676_v44 = vld [vmem:[%s4046_s28 + $0x3ac] sm:$0xf] }
 0x1e6   : > { %v1910_v48 = vpop.f32.mrf.mxu3  ;;  %v1742_v49 = vadd.f32 %v1741_v47, %v1573_v42  ;;  %v1574_v51 = vpop.f32.mrf.mxu1  ;;  %v1406_v53 = vadd.f32 %v4320_v59, %v1405_v50  ;;  %v2147_v42 = vadd.s32 %v4150_v22, %v2081_v31  ;;  %v3367_v50 = vor.u32 %v3677_v35, %v3366_v34 }
 0x1e7   : > { %v3379_v55 = vor.u32 %v3676_v44, %v3376_v45 }
 0x1e8   : > { %v1911_v0 = vadd.f32 %v1910_v48, %v1742_v49  ;;  %v1575_v4 = vadd.f32 %v1574_v51, %v1406_v53  ;;  %v3371_v51 = vor.u32 %v3675_v36, %v3368_v38  ;;  %vm2211_vm9 = vcmp.lt.s32.totalorder %v2147_v42, 6174 }
 0x1ea   : > { %2013 = vst [vmem:[%s4158_s18 + $0x130] sm:$0xff] %v1911_v0  ;;  %v2272_v57 = vsel %vm2208_vm6, %v1911_v0, 0.0 }
 0x1eb   : > { %v2335_v61 = vadd.f32 %v2334_v43, %v2272_v57  ;;  %v2406_v62 = vmul.f32 %v2272_v57, %v2272_v57  ;;  %v3678_v43 = vld [vmem:[%s4046_s28 + $0x3b4] sm:$0xf0]  ;;  %v2082_v57 = vadd.s32 336, %v4146_v20 }
 0x1ec   : > { %v3375_v54 = vor.u32 %v3678_v43, %v3374_v39 }
 0x1ed   : > { %v2469_v5 = vadd.f32 %v2468_v46, %v2406_v62  ;;  %v1743_v6 = vpop.f32.mrf.mxu2  ;;  %v1408_v11 = vpop.f32.mrf.mxu0  ;;  %v2148_v1 = vadd.s32 %v4150_v22, %v2082_v57  ;;  %v3406_v57 = vld [vmem:[%s4046_s28 + $0x3e8] sm:$0xf] }
 0x1ee   : > { %v1912_v7 = vpop.f32.mrf.mxu3  ;;  %v1744_v10 = vadd.f32 %v1743_v6, %v1575_v4  ;;  %v1577_v12 = vpop.f32.mrf.mxu1  ;;  %v1409_v15 = vadd.f32 %v4320_v59, %v1408_v11  ;;  %v3382_v11 = vld [vmem:[%s4046_s28 + $0x3c0] sm:$0xf] }
 0x1ef   : > { %vm2212_vm10 = vcmp.lt.s32.totalorder %v2148_v1, 6174  ;;  %v3408_v1 = vld [vmem:[%s4046_s28 + $0x3f8] sm:$0xf0] }
 0x1f0   : > { %v1913_v17 = vadd.f32 %v1912_v7, %v1744_v10  ;;  %1447 = vmatmul.bf16.gmra.mxu0 %v3351_v8  ;;  %v1578_v19 = vadd.f32 %v1577_v12, %v1409_v15  ;;  %v2083_v7 = vadd.s32 344, %v4146_v20  ;;  %v3681_v12 = vld [vmem:[%s4046_s28 + $0x3cc] sm:$0xf0]  ;;  %v3384_v15 = vld [vmem:[%s4046_s28 + $0x3d0] sm:$0xf0] }
 0x1f1   : > { %1616 = vmatmul.bf16.gmra.mxu1 %v3355_v9  ;;  %v4501_v9 = vld [vmem:[%s4791_s2] ss:$0 sm:$0xff] }
 0x1f2   : > { %2014 = vst [vmem:[%s4158_s18 + $0x138] sm:$0xff] %v1913_v17  ;;  %v2273_v18 = vsel %vm2209_vm7, %v1913_v17, 0.0  ;;  %1785 = vmatmul.bf16.gmra.mxu2 %v3359_v13  ;;  %v3679_v13 = vld [vmem:[%s4046_s28 + $0x3c4] sm:$0xf] }
 0x1f3   : > { %1954 = vmatmul.bf16.gmra.mxu3 %v3363_v14  ;;  %v2336_v21 = vadd.f32 %v2335_v61, %v2273_v18  ;;  %v2407_v23 = vmul.f32 %v2273_v18, %v2273_v18 }
 0x1f5   : > { %v2470_v25 = vadd.f32 %v2469_v5, %v2407_v23  ;;  %v1746_v26 = vpop.f32.mrf.mxu2  ;;  %v1410_v29 = vpop.f32.mrf.mxu0  ;;  %v3680_v23 = vld [vmem:[%s4046_s28 + $0x3cc] sm:$0xf] }
 0x1f6   : > { %v1915_v27 = vpop.f32.mrf.mxu3  ;;  %v1747_v28 = vadd.f32 %v1746_v26, %v1578_v19  ;;  %v1579_v30 = vpop.f32.mrf.mxu1  ;;  %v1411_v33 = vadd.f32 %v4320_v59, %v1410_v29  ;;  %v2149_v19 = vadd.s32 %v4150_v22, %v2083_v7  ;;  %v3383_v29 = vor.u32 %v3681_v12, %v3382_v11 }
 0x1f7   : > { %v3395_v35 = vor.u32 %v3680_v23, %v3392_v24 }
 0x1f8   : > { %v1916_v32 = vadd.f32 %v1915_v27, %v1747_v28  ;;  %v1580_v46 = vadd.f32 %v1579_v30, %v1411_v33  ;;  %v3387_v30 = vor.u32 %v3679_v13, %v3384_v15  ;;  %vm2213_vm11 = vcmp.lt.s32.totalorder %v2149_v19, 6174 }
 0x1fa   : > { %2015 = vst [vmem:[%s4158_s18 + $0x140] sm:$0xff] %v1916_v32  ;;  %v2274_v37 = vsel %vm2210_vm8, %v1916_v32, 0.0 }
 0x1fb   : > { %v2337_v40 = vadd.f32 %v2336_v21, %v2274_v37  ;;  %v2408_v41 = vmul.f32 %v2274_v37, %v2274_v37  ;;  %v3682_v21 = vld [vmem:[%s4046_s28 + $0x3d4] sm:$0xf0]  ;;  %v2084_v37 = vadd.s32 352, %v4146_v20 }
 0x1fc   : > { %v3391_v34 = vor.u32 %v3682_v21, %v3390_v16 }
 0x1fd   : > { %v2471_v47 = vadd.f32 %v2470_v25, %v2408_v41  ;;  %v1748_v48 = vpop.f32.mrf.mxu2  ;;  %v1413_v0 = vpop.f32.mrf.mxu0  ;;  %v2150_v43 = vadd.s32 %v4150_v22, %v2084_v37 }
 0x1fe   : > { %v1917_v49 = vpop.f32.mrf.mxu3  ;;  %v1749_v52 = vadd.f32 %v1748_v48, %v1580_v46  ;;  %v1582_v53 = vpop.f32.mrf.mxu1  ;;  %v1414_v56 = vadd.f32 %v4320_v59, %v1413_v0  ;;  %v3398_v0 = vld [vmem:[%s4046_s28 + $0x3e0] sm:$0xf] }
 0x1ff   : > { %vm2214_vm12 = vcmp.lt.s32.totalorder %v2150_v43, 6174 }
 0x200   : > { %v1918_v58 = vadd.f32 %v1917_v49, %v1749_v52  ;;  %1452 = vmatmul.bf16.gmra.mxu0 %v3367_v50  ;;  %v1583_v61 = vadd.f32 %v1582_v53, %v1414_v56  ;;  %v2085_v50 = vadd.s32 360, %v4146_v20  ;;  %v3685_v53 = vld [vmem:[%s4046_s28 + $0x3ec] sm:$0xf0]  ;;  %v3400_v56 = vld [vmem:[%s4046_s28 + $0x3f0] sm:$0xf0] }
 0x201   : > { %1621 = vmatmul.bf16.gmra.mxu1 %v3371_v51 }
 0x202   : > { %2016 = vst [vmem:[%s4158_s18 + $0x148] sm:$0xff] %v1918_v58  ;;  %v2275_v60 = vsel %vm2211_vm9, %v1918_v58, 0.0  ;;  %1790 = vmatmul.bf16.gmra.mxu2 %v3375_v54  ;;  %v3683_v54 = vld [vmem:[%s4046_s28 + $0x3e4] sm:$0xf] }
 0x203   : > { %1959 = vmatmul.bf16.gmra.mxu3 %v3379_v55  ;;  %v2338_v62 = vadd.f32 %v2337_v40, %v2275_v60  ;;  %v2409_v63 = vmul.f32 %v2275_v60, %v2275_v60 }
 0x205   : > { %v2472_v2 = vadd.f32 %v2471_v47, %v2409_v63  ;;  %v1751_v59 = vpop.f32.mrf.mxu2  ;;  %v1415_v5 = vpop.f32.mrf.mxu0  ;;  %v3684_v63 = vld [vmem:[%s4046_s28 + $0x3ec] sm:$0xf] }
 0x206   : > { %v1920_v3 = vpop.f32.mrf.mxu3  ;;  %v1752_v4 = vadd.f32 %v1751_v59, %v1583_v61  ;;  %v1584_v6 = vpop.f32.mrf.mxu1  ;;  %v1416_v10 = vadd.f32 %v4501_v9, %v1415_v5  ;;  %v2151_v61 = vadd.s32 %v4150_v22, %v2085_v50  ;;  %v3399_v5 = vor.u32 %v3685_v53, %v3398_v0 }
 0x207   : > { %v3411_v12 = vor.u32 %v3684_v63, %v3408_v1 }
 0x208   : > { %v1921_v8 = vadd.f32 %v1920_v3, %v1752_v4  ;;  %v1585_v25 = vadd.f32 %v1584_v6, %v1416_v10  ;;  %v3403_v6 = vor.u32 %v3683_v54, %v3400_v56  ;;  %vm2215_vm13 = vcmp.lt.s32.totalorder %v2151_v61, 6174 }
 0x209   : > { %v2089_v56 = vadd.s32 392, %v4146_v20 }
 0x20a   : > { %2017 = vst [vmem:[%s4158_s18 + $0x150] sm:$0xff] %v1921_v8  ;;  %v2276_v14 = vsel %vm2212_vm10, %v1921_v8, 0.0 }
 0x20b   : > { %v2339_v17 = vadd.f32 %v2338_v62, %v2276_v14  ;;  %v2410_v18 = vmul.f32 %v2276_v14, %v2276_v14  ;;  %v3686_v62 = vld [vmem:[%s4046_s28 + $0x3f4] sm:$0xf0]  ;;  %v2086_v14 = vadd.s32 368, %v4146_v20  ;;  %v2155_v63 = vadd.s32 %v4150_v22, %v2089_v56  ;;  %s266_s28 = scalar_select %p265_p8, %s3944_s21, 12 }
 0x20c   : > { %v3407_v11 = vor.u32 %v3686_v62, %v3406_v57 }
 0x20d   : > { %v2473_v26 = vadd.f32 %v2472_v2, %v2410_v18  ;;  %v1753_v27 = vpop.f32.mrf.mxu2  ;;  %v1418_v32 = vpop.f32.mrf.mxu0  ;;  %v2152_v21 = vadd.s32 %v4150_v22, %v2086_v14  ;;  %vm2219_vm1 = vcmp.lt.s32.totalorder %v2155_v63, 6174  ;;  %s267_s11 = scalar_lea.vmem %s4793_s4, %s266_s28  ;;  %s270_s14 = scalar_lea.vmem %s4794_s5, %s266_s28 }
 0x20e   : > { %v1922_v28 = vpop.f32.mrf.mxu3  ;;  %v1754_v31 = vadd.f32 %v1753_v27, %v1585_v25  ;;  %v1587_v33 = vpop.f32.mrf.mxu1  ;;  %v1419_v36 = vadd.f32 %v4501_v9, %v1418_v32 }
 0x20f   : > { %vm2216_vm14 = vcmp.lt.s32.totalorder %v2152_v21, 6174 }
 0x210   : > { %v1923_v38 = vadd.f32 %v1922_v28, %v1754_v31  ;;  %1457 = vmatmul.bf16.gmra.mxu0 %v3383_v29  ;;  %v1588_v40 = vadd.f32 %v1587_v33, %v1419_v36  ;;  %v2087_v29 = vadd.s32 376, %v4146_v20 }
 0x211   : > { %1626 = vmatmul.bf16.gmra.mxu1 %v3387_v30 }
 0x212   : > { %2018 = vst [vmem:[%s4158_s18 + $0x158] sm:$0xff] %v1923_v38  ;;  %v2277_v39 = vsel %vm2213_vm11, %v1923_v38, 0.0  ;;  %1795 = vmatmul.bf16.gmra.mxu2 %v3391_v34 }
 0x213   : > { %1964 = vmatmul.bf16.gmra.mxu3 %v3395_v35  ;;  %v2340_v41 = vadd.f32 %v2339_v17, %v2277_v39  ;;  %v2411_v42 = vmul.f32 %v2277_v39, %v2277_v39  ;;  %v2153_v35 = vadd.s32 %v4150_v22, %v2087_v29 }
 0x215   : > { %v2474_v44 = vadd.f32 %v2473_v26, %v2411_v42  ;;  %v1756_v45 = vpop.f32.mrf.mxu2  ;;  %v1420_v48 = vpop.f32.mrf.mxu0  ;;  %vm2217_vm15 = vcmp.lt.s32.totalorder %v2153_v35, 6174 }
 0x216   : > { %v1925_v46 = vpop.f32.mrf.mxu3  ;;  %v1757_v47 = vadd.f32 %v1756_v45, %v1588_v40  ;;  %v1589_v49 = vpop.f32.mrf.mxu1  ;;  %v1421_v52 = vadd.f32 %v4501_v9, %v1420_v48 }
 0x218   : > { %v1926_v51 = vadd.f32 %v1925_v46, %v1757_v47  ;;  %v1590_v2 = vadd.f32 %v1589_v49, %v1421_v52 }
 0x21a   : > { %2019 = vst [vmem:[%s4158_s18 + $0x160] sm:$0xff] %v1926_v51  ;;  %v2278_v55 = vsel %vm2214_vm12, %v1926_v51, 0.0 }
 0x21b   : > { %v2341_v58 = vadd.f32 %v2340_v41, %v2278_v55  ;;  %v2412_v60 = vmul.f32 %v2278_v55, %v2278_v55 }
 0x21d   : > { %v2475_v59 = vadd.f32 %v2474_v44, %v2412_v60  ;;  %v1758_v3 = vpop.f32.mrf.mxu2  ;;  %v1423_v8 = vpop.f32.mrf.mxu0  ;;  %v2088_v44 = vadd.s32 384, %v4146_v20 }
 0x21e   : > { %v1927_v4 = vpop.f32.mrf.mxu3  ;;  %v1759_v7 = vadd.f32 %v1758_v3, %v1590_v2  ;;  %v1592_v10 = vpop.f32.mrf.mxu1  ;;  %v1424_v13 = vadd.f32 %v4501_v9, %v1423_v8  ;;  %v2090_v8 = vadd.s32 400, %v4146_v20 }
 0x21f   : > { %v2154_v50 = vadd.s32 %v4150_v22, %v2088_v44 }
 0x220   : > { %v1928_v15 = vadd.f32 %v1927_v4, %v1759_v7  ;;  %1462 = vmatmul.bf16.gmra.mxu0 %v3399_v5  ;;  %v1593_v17 = vadd.f32 %v1592_v10, %v1424_v13 }
 0x221   : > { %1631 = vmatmul.bf16.gmra.mxu1 %v3403_v6  ;;  %vm2218_vm0 = vcmp.lt.s32.totalorder %v2154_v50, 6174 }
 0x222   : > { %2020 = vst [vmem:[%s4158_s18 + $0x168] sm:$0xff] %v1928_v15  ;;  %v2279_v16 = vsel %vm2215_vm13, %v1928_v15, 0.0  ;;  %1800 = vmatmul.bf16.gmra.mxu2 %v3407_v11  ;;  %v2156_v15 = vadd.s32 %v4150_v22, %v2090_v8 }
 0x223   : > { %1969 = vmatmul.bf16.gmra.mxu3 %v3411_v12  ;;  %v2342_v18 = vadd.f32 %v2341_v58, %v2279_v16  ;;  %v2413_v19 = vmul.f32 %v2279_v16, %v2279_v16 }
 0x224   : > { %vm2220_vm2 = vcmp.lt.s32.totalorder %v2156_v15, 6174 }
 0x225   : > { %v2476_v23 = vadd.f32 %v2475_v59, %v2413_v19  ;;  %v1761_v24 = vpop.f32.mrf.mxu2  ;;  %v1425_v27 = vpop.f32.mrf.mxu0 }
 0x226   : > { %v1930_v25 = vpop.f32.mrf.mxu3  ;;  %v1762_v26 = vadd.f32 %v1761_v24, %v1593_v17  ;;  %v1594_v28 = vpop.f32.mrf.mxu1  ;;  %v1426_v31 = vadd.f32 %v4501_v9, %v1425_v27  ;;  %v2091_v24 = vadd.s32 408, %v4146_v20 }
 0x228   : > { %v1931_v30 = vadd.f32 %v1930_v25, %v1762_v26  ;;  %v1595_v36 = vadd.f32 %v1594_v28, %v1426_v31 }
 0x22a   : > { %2021 = vst [vmem:[%s4158_s18 + $0x170] sm:$0xff] %v1931_v30  ;;  %v2280_v32 = vsel %vm2216_vm14, %v1931_v30, 0.0  ;;  %v2157_v30 = vadd.s32 %v4150_v22, %v2091_v24 }
 0x22b   : > { %v2343_v33 = vadd.f32 %v2342_v18, %v2280_v32  ;;  %v2414_v34 = vmul.f32 %v2280_v32, %v2280_v32 }
 0x22c   : > { %vm2221_vm3 = vcmp.lt.s32.totalorder %v2157_v30, 6174 }
 0x22d   : > { %v2477_v37 = vadd.f32 %v2476_v23, %v2414_v34  ;;  %v1763_v38 = vpop.f32.mrf.mxu2  ;;  %v1428_v41 = vpop.f32.mrf.mxu0 }
 0x22e   : > { %v1932_v39 = vpop.f32.mrf.mxu3  ;;  %v1764_v40 = vadd.f32 %v1763_v38, %v1595_v36  ;;  %v1597_v42 = vpop.f32.mrf.mxu1  ;;  %v1429_v43 = vadd.f32 %v4501_v9, %v1428_v41 }
 0x230   : > { %v1933_v45 = vadd.f32 %v1932_v39, %v1764_v40  ;;  %v1598_v47 = vadd.f32 %v1597_v42, %v1429_v43  ;;  %v2092_v39 = vadd.s32 416, %v4146_v20 }
 0x232   : > { %2022 = vst [vmem:[%s4158_s18 + $0x178] sm:$0xff] %v1933_v45  ;;  %v2281_v46 = vsel %vm2217_vm15, %v1933_v45, 0.0  ;;  %v2158_v45 = vadd.s32 %v4150_v22, %v2092_v39 }
 0x233   : > { %v2344_v48 = vadd.f32 %v2343_v33, %v2281_v46  ;;  %v2415_v49 = vmul.f32 %v2281_v46, %v2281_v46 }
 0x234   : > { %vm2222_vm4 = vcmp.lt.s32.totalorder %v2158_v45, 6174 }
 0x235   : > { %v2478_v51 = vadd.f32 %v2477_v37, %v2415_v49  ;;  %v1766_v52 = vpop.f32.mrf.mxu2  ;;  %v1430_v54 = vpop.f32.mrf.mxu0 }
 0x236   : > { %v1935_v0 = vpop.f32.mrf.mxu3  ;;  %v1767_v53 = vadd.f32 %v1766_v52, %v1598_v47  ;;  %v1599_v55 = vpop.f32.mrf.mxu1  ;;  %v1431_v58 = vadd.f32 %v4501_v9, %v1430_v54 }
 0x238   : > { %v1936_v57 = vadd.f32 %v1935_v0, %v1767_v53  ;;  %v1600_v1 = vadd.f32 %v1599_v55, %v1431_v58 }
 0x23a   : > { %2023 = vst [vmem:[%s4158_s18 + $0x180] sm:$0xff] %v1936_v57  ;;  %v2282_v60 = vsel %vm2218_vm0, %v1936_v57, 0.0 }
 0x23b   : > { %v2345_v61 = vadd.f32 %v2344_v48, %v2282_v60  ;;  %v2416_v62 = vmul.f32 %v2282_v60, %v2282_v60 }
 0x23d   : > { %v2479_v2 = vadd.f32 %v2478_v51, %v2416_v62  ;;  %v1768_v59 = vpop.f32.mrf.mxu2  ;;  %v1433_v5 = vpop.f32.mrf.mxu0 }
 0x23e   : > { %v1937_v3 = vpop.f32.mrf.mxu3  ;;  %v1769_v4 = vadd.f32 %v1768_v59, %v1600_v1  ;;  %v1602_v6 = vpop.f32.mrf.mxu1  ;;  %v1434_v7 = vadd.f32 %v4501_v9, %v1433_v5 }
 0x240   : > { %v1938_v10 = vadd.f32 %v1937_v3, %v1769_v4  ;;  %v1603_v12 = vadd.f32 %v1602_v6, %v1434_v7 }
 0x242   : > { %2024 = vst [vmem:[%s4158_s18 + $0x188] sm:$0xff] %v1938_v10  ;;  %v2283_v11 = vsel %vm2219_vm1, %v1938_v10, 0.0 }
 0x243   : > { %v2346_v13 = vadd.f32 %v2345_v61, %v2283_v11  ;;  %v2417_v14 = vmul.f32 %v2283_v11, %v2283_v11 }
 0x245   : > { %v2480_v16 = vadd.f32 %v2479_v2, %v2417_v14  ;;  %v1771_v17 = vpop.f32.mrf.mxu2  ;;  %v1435_v21 = vpop.f32.mrf.mxu0 }
 0x246   : > { %v1940_v18 = vpop.f32.mrf.mxu3  ;;  %v1772_v19 = vadd.f32 %v1771_v17, %v1603_v12  ;;  %v1604_v23 = vpop.f32.mrf.mxu1  ;;  %v1436_v26 = vadd.f32 %v4501_v9, %v1435_v21 }
 0x248   : > { %v1941_v25 = vadd.f32 %v1940_v18, %v1772_v19  ;;  %v1605_v31 = vadd.f32 %v1604_v23, %v1436_v26 }
 0x24a   : > { %2025 = vst [vmem:[%s4158_s18 + $0x190] sm:$0xff] %v1941_v25  ;;  %v2284_v27 = vsel %vm2220_vm2, %v1941_v25, 0.0 }
 0x24b   : > { %v2347_v28 = vadd.f32 %v2346_v13, %v2284_v27  ;;  %v2418_v29 = vmul.f32 %v2284_v27, %v2284_v27 }
 0x24d   : > { %v2481_v32 = vadd.f32 %v2480_v16, %v2418_v29  ;;  %v1773_v33 = vpop.f32.mrf.mxu2  ;;  %v1438_v36 = vpop.f32.mrf.mxu0 }
 0x24e   : > { %v1942_v34 = vpop.f32.mrf.mxu3  ;;  %v1774_v35 = vadd.f32 %v1773_v33, %v1605_v31  ;;  %v1607_v37 = vpop.f32.mrf.mxu1  ;;  %v1439_v38 = vadd.f32 %v4501_v9, %v1438_v36 }
 0x250   : > { %v1943_v40 = vadd.f32 %v1942_v34, %v1774_v35  ;;  %v1608_v42 = vadd.f32 %v1607_v37, %v1439_v38 }
 0x252   : > { %2026 = vst [vmem:[%s4158_s18 + $0x198] sm:$0xff] %v1943_v40  ;;  %v2285_v41 = vsel %vm2221_vm3, %v1943_v40, 0.0 }
 0x253   : > { %v2348_v43 = vadd.f32 %v2347_v28, %v2285_v41  ;;  %v2419_v44 = vmul.f32 %v2285_v41, %v2285_v41 }
 0x255   : > { %v2482_v46 = vadd.f32 %v2481_v32, %v2419_v44  ;;  %v1776_v47 = vpop.f32.mrf.mxu2  ;;  %v1440_v50 = vpop.f32.mrf.mxu0 }
 0x256   : > { %v1945_v48 = vpop.f32.mrf.mxu3  ;;  %v1777_v49 = vadd.f32 %v1776_v47, %v1608_v42  ;;  %v1609_v51 = vpop.f32.mrf.mxu1  ;;  %v1441_v0 = vadd.f32 %v4501_v9, %v1440_v50 }
 0x258   : > { %v1946_v52 = vadd.f32 %v1945_v48, %v1777_v49  ;;  %v1610_v56 = vadd.f32 %v1609_v51, %v1441_v0  ;;  %v2093_v48 = vadd.s32 424, %v4146_v20  ;;  %v2094_v0 = vadd.s32 432, %v4146_v20 }
 0x25a   : > { %2027 = vst [vmem:[%s4158_s18 + $0x1a0] sm:$0xff] %v1946_v52  ;;  %v2286_v53 = vsel %vm2222_vm4, %v1946_v52, 0.0 }
 0x25b   : > { %v4560_v54 = vadd.f32 %v2348_v43, %v2286_v53  ;;  %v2420_v55 = vmul.f32 %v2286_v53, %v2286_v53 }
 0x25d   : > { %v4562_v57 = vadd.f32 %v2482_v46, %v2420_v55  ;;  %v1778_v58 = vpop.f32.mrf.mxu2  ;;  %v1443_v62 = vpop.f32.mrf.mxu0  ;;  %v2159_v55 = vadd.s32 %v4150_v22, %v2093_v48 }
 0x25e   : > { %v1947_v60 = vpop.f32.mrf.mxu3  ;;  %v1779_v61 = vadd.f32 %v1778_v58, %v1610_v56  ;;  %v1612_v63 = vpop.f32.mrf.mxu1  ;;  %v1444_v1 = vadd.f32 %v4501_v9, %v1443_v62  ;;  %v2095_v56 = vadd.s32 440, %v4146_v20 }
 0x25f   : > { %vm2223_vm5 = vcmp.lt.s32.totalorder %v2159_v55, 6174 }
 0x260   : > { %v4565_v2 = vadd.f32 %v1947_v60, %v1779_v61  ;;  %v1613_v59 = vadd.f32 %v1612_v63, %v1444_v1  ;;  %v2160_v60 = vadd.s32 %v4150_v22, %v2094_v0  ;;  %v2096_v61 = vadd.s32 448, %v4146_v20 }
 0x261   : > { %v2161_v1 = vadd.s32 %v4150_v22, %v2095_v56 }
 0x262   : > { %2028 = vst [vmem:[%s4158_s18 + $0x1a8] sm:$0xff] %v4565_v2  ;;  %vm2224_vm6 = vcmp.lt.s32.totalorder %v2160_v60, 6174 }
 0x263   : > { %vm2225_vm7 = vcmp.lt.s32.totalorder %v2161_v1, 6174 }
 0x265   : > { %v1781_v3 = vpop.f32.mrf.mxu2  ;;  %v1445_v6 = vpop.f32.mrf.mxu0 }
 0x266   : > { %v1950_v4 = vpop.f32.mrf.mxu3  ;;  %v1782_v5 = vadd.f32 %v1781_v3, %v1613_v59  ;;  %v1614_v7 = vpop.f32.mrf.mxu1  ;;  %v1446_v10 = vadd.f32 %v4501_v9, %v1445_v6  ;;  %v2097_v59 = vadd.s32 456, %v4146_v20  ;;  %v2162_v6 = vadd.s32 %v4150_v22, %v2096_v61 }
 0x268   : > { %v4569_v8 = vadd.f32 %v1950_v4, %v1782_v5  ;;  %v1615_v11 = vadd.f32 %v1614_v7, %v1446_v10  ;;  %vm2226_vm8 = vcmp.lt.s32.totalorder %v2162_v6, 6174 }
 0x26a   : > { %2029 = vst [vmem:[%s4158_s18 + $0x1b0] sm:$0xff] %v4569_v8 }
 0x26d   : > { %v1783_v12 = vpop.f32.mrf.mxu2  ;;  %v1448_v15 = vpop.f32.mrf.mxu0 }
 0x26e   : > { %v1952_v13 = vpop.f32.mrf.mxu3  ;;  %v1784_v14 = vadd.f32 %v1783_v12, %v1615_v11  ;;  %v1617_v16 = vpop.f32.mrf.mxu1  ;;  %v1449_v17 = vadd.f32 %v4501_v9, %v1448_v15  ;;  %v2287_v11 = vsel %vm2223_vm5, %v4565_v2, 0.0  ;;  %v2098_v12 = vadd.s32 464, %v4146_v20 }
 0x26f   : > { %v2099_v15 = vadd.s32 472, %v4146_v20 }
 0x270   : > { %v4575_v18 = vadd.f32 %v1952_v13, %v1784_v14  ;;  %v1618_v19 = vadd.f32 %v1617_v16, %v1449_v17  ;;  %v2163_v13 = vadd.s32 %v4150_v22, %v2097_v59  ;;  %v2288_v14 = vsel %vm2224_vm6, %v4569_v8, 0.0 }
 0x271   : > { %v2421_v16 = vmul.f32 %v2287_v11, %v2287_v11 }
 0x272   : > { %2030 = vst [vmem:[%s4158_s18 + $0x1b8] sm:$0xff] %v4575_v18  ;;  %vm2227_vm9 = vcmp.lt.s32.totalorder %v2163_v13, 6174 }
 0x275   : > { %v1786_v21 = vpop.f32.mrf.mxu2  ;;  %v1450_v25 = vpop.f32.mrf.mxu0 }
 0x276   : > { %v1955_v23 = vpop.f32.mrf.mxu3  ;;  %v1787_v24 = vadd.f32 %v1786_v21, %v1618_v19  ;;  %v1619_v26 = vpop.f32.mrf.mxu1  ;;  %v1451_v28 = vadd.f32 %v4501_v9, %v1450_v25  ;;  %v2289_v19 = vsel %vm2225_vm7, %v4575_v18, 0.0  ;;  %v2164_v21 = vadd.s32 %v4150_v22, %v2098_v12 }
 0x277   : > { %v2350_v25 = vadd.f32 %v4560_v54, %v2287_v11 }
 0x278   : > { %v4579_v27 = vadd.f32 %v1955_v23, %v1787_v24  ;;  %v1620_v29 = vadd.f32 %v1619_v26, %v1451_v28  ;;  %v2100_v23 = vadd.s32 480, %v4146_v20  ;;  %v2422_v26 = vmul.f32 %v2288_v14, %v2288_v14 }
 0x279   : > { %vm2228_vm10 = vcmp.lt.s32.totalorder %v2164_v21, 6174 }
 0x27a   : > { %2031 = vst [vmem:[%s4158_s18 + $0x1c0] sm:$0xff] %v4579_v27  ;;  %v2290_v8 = vsel %vm2226_vm8, %v4579_v27, 0.0  ;;  %v2166_v54 = vadd.s32 %v4150_v22, %v2100_v23 }
 0x27c   : > { %vm2230_vm12 = vcmp.lt.s32.totalorder %v2166_v54, 6174 }
 0x27d   : > { %v1788_v30 = vpop.f32.mrf.mxu2  ;;  %v1453_v33 = vpop.f32.mrf.mxu0 }
 0x27e   : > { %v1957_v31 = vpop.f32.mrf.mxu3  ;;  %v1789_v32 = vadd.f32 %v1788_v30, %v1620_v29  ;;  %v1622_v34 = vpop.f32.mrf.mxu1  ;;  %v1454_v35 = vadd.f32 %v4501_v9, %v1453_v33  ;;  %v2165_v30 = vadd.s32 %v4150_v22, %v2099_v15  ;;  %v2423_v33 = vmul.f32 %v2289_v19, %v2289_v19 }
 0x280   : > { %v4585_v36 = vadd.f32 %v1957_v31, %v1789_v32  ;;  %v1623_v37 = vadd.f32 %v1622_v34, %v1454_v35  ;;  %v2101_v31 = vadd.s32 488, %v4146_v20  ;;  %v2484_v32 = vadd.f32 %v4562_v57, %v2421_v16 }
 0x281   : > { %v2351_v35 = vadd.f32 %v2350_v25, %v2288_v14  ;;  %vm2229_vm11 = vcmp.lt.s32.totalorder %v2165_v30, 6174 }
 0x282   : > { %2032 = vst [vmem:[%s4158_s18 + $0x1c8] sm:$0xff] %v4585_v36  ;;  %v2291_v27 = vsel %vm2227_vm9, %v4585_v36, 0.0  ;;  %v2167_v57 = vadd.s32 %v4150_v22, %v2101_v31 }
 0x284   : > { %vm2231_vm13 = vcmp.lt.s32.totalorder %v2167_v57, 6174 }
 0x285   : > { %v1791_v38 = vpop.f32.mrf.mxu2  ;;  %v1455_v41 = vpop.f32.mrf.mxu0 }
 0x286   : > { %v1960_v39 = vpop.f32.mrf.mxu3  ;;  %v1792_v40 = vadd.f32 %v1791_v38, %v1623_v37  ;;  %v1624_v42 = vpop.f32.mrf.mxu1  ;;  %v1456_v44 = vadd.f32 %v4501_v9, %v1455_v41  ;;  %v2102_v38 = vadd.s32 496, %v4146_v20 }
 0x288   : > { %v4589_v43 = vadd.f32 %v1960_v39, %v1792_v40  ;;  %v1625_v45 = vadd.f32 %v1624_v42, %v1456_v44  ;;  %v2485_v39 = vadd.f32 %v2484_v32, %v2422_v26  ;;  %v2424_v40 = vmul.f32 %v2290_v8, %v2290_v8 }
 0x289   : > { %v2352_v42 = vadd.f32 %v2351_v35, %v2289_v19 }
 0x28a   : > { %2033 = vst [vmem:[%s4158_s18 + $0x1d0] sm:$0xff] %v4589_v43  ;;  %v2486_v44 = vadd.f32 %v2485_v39, %v2423_v33 }
 0x28d   : > { %v1793_v46 = vpop.f32.mrf.mxu2  ;;  %v1458_v50 = vpop.f32.mrf.mxu0 }
 0x28e   : > { %v1962_v47 = vpop.f32.mrf.mxu3  ;;  %v1794_v49 = vadd.f32 %v1793_v46, %v1625_v45  ;;  %v1627_v51 = vpop.f32.mrf.mxu1  ;;  %v1459_v52 = vadd.f32 %v4501_v9, %v1458_v50  ;;  %v2292_v45 = vsel %vm2228_vm10, %v4589_v43, 0.0  ;;  %v2353_v46 = vadd.f32 %v2352_v42, %v2290_v8 }
 0x28f   : > { %v2168_v50 = vadd.s32 %v4150_v22, %v2102_v38  ;;  %v2426_v56 = vmul.f32 %v2292_v45, %v2292_v45 }
 0x290   : > { %v4597_v53 = vadd.f32 %v1962_v47, %v1794_v49  ;;  %v1628_v58 = vadd.f32 %v1627_v51, %v1459_v52  ;;  %v2425_v47 = vmul.f32 %v2291_v27, %v2291_v27  ;;  %v2487_v51 = vadd.f32 %v2486_v44, %v2424_v40 }
 0x291   : > { %v2354_v55 = vadd.f32 %v2353_v46, %v2291_v27  ;;  %vm2232_vm14 = vcmp.lt.s32.totalorder %v2168_v50, 6174 }
 0x292   : > { %2034 = vst [vmem:[%s4158_s18 + $0x1d8] sm:$0xff] %v4597_v53  ;;  %v2293_v36 = vsel %vm2229_vm11, %v4597_v53, 0.0 }
 0x293   : > { %v2427_v1 = vmul.f32 %v2293_v36, %v2293_v36 }
 0x295   : > { %v1796_v62 = vpop.f32.mrf.mxu2  ;;  %v1460_v4 = vpop.f32.mrf.mxu0 }
 0x296   : > { %v1965_v63 = vpop.f32.mrf.mxu3  ;;  %v1797_v3 = vadd.f32 %v1796_v62, %v1628_v58  ;;  %v1629_v5 = vpop.f32.mrf.mxu1  ;;  %v1461_v10 = vadd.f32 %v4501_v9, %v1460_v4  ;;  %v2103_v58 = vadd.s32 504, %v4146_v20  ;;  %v2488_v62 = vadd.f32 %v2487_v51, %v2425_v47 }
 0x298   : > { %v1966_v7 = vadd.f32 %v1965_v63, %v1797_v3  ;;  %v1630_v17 = vadd.f32 %v1629_v5, %v1461_v10  ;;  %v2355_v63 = vadd.f32 %v2354_v55, %v2292_v45  ;;  %v2489_v3 = vadd.f32 %v2488_v62, %v2426_v56 }
 0x299   : > { %v2169_v6 = vadd.s32 %v4150_v22, %v2103_v58 }
 0x29a   : > { %2035 = vst [vmem:[%s4158_s18 + $0x1e0] sm:$0xff] %v1966_v7  ;;  %v2294_v60 = vsel %vm2230_vm12, %v1966_v7, 0.0  ;;  %v2356_v4 = vadd.f32 %v2355_v63, %v2293_v36  ;;  %v2490_v20 = vadd.f32 %v2489_v3, %v2427_v1 }
 0x29b   : > { %v2428_v53 = vmul.f32 %v2294_v60, %v2294_v60  ;;  %vm2233_vm15 = vcmp.lt.s32.totalorder %v2169_v6, 6174 }
 0x29c   : > { %v2357_v7 = vadd.f32 %v2356_v4, %v2294_v60 }
 0x29d   : > { %v1798_v2 = vpop.f32.mrf.mxu2  ;;  %v1463_v29 = vpop.f32.mrf.mxu0  ;;  %v2491_v14 = vadd.f32 %v2490_v20, %v2428_v53 }
 0x29e   : > { %v1967_v24 = vpop.f32.mrf.mxu3  ;;  %v1799_v28 = vadd.f32 %v1798_v2, %v1630_v17  ;;  %v1464_v18 = vadd.f32 %v4501_v9, %v1463_v29  ;;  %v1632_v37 = vpop.f32.mrf.mxu1 }
 0x2a0   : > { %v1968_v34 = vadd.f32 %v1967_v24, %v1799_v28  ;;  %v1633_v41 = vadd.f32 %v1632_v37, %v1464_v18 }
 0x2a2   : > { %2036 = vst [vmem:[%s4158_s18 + $0x1e8] sm:$0xff] %v1968_v34  ;;  %v2295_v59 = vsel %vm2231_vm13, %v1968_v34, 0.0 }
 0x2a3   : > { %v2429_v12 = vmul.f32 %v2295_v59, %v2295_v59  ;;  %v2358_v15 = vadd.f32 %v2357_v7, %v2295_v59 }
 0x2a5   : > { %v1801_v48 = vpop.f32.mrf.mxu2  ;;  %v1465_v0 = vpop.f32.mrf.mxu0  ;;  %v2492_v21 = vadd.f32 %v2491_v14, %v2429_v12 }
 0x2a6   : > { %v1970_v49 = vpop.f32.mrf.mxu3  ;;  %v1802_v52 = vadd.f32 %v1801_v48, %v1633_v41  ;;  %v1466_v61 = vadd.f32 %v4501_v9, %v1465_v0  ;;  %v1634_v5 = vpop.f32.mrf.mxu1 }
 0x2a8   : > { %v1971_v43 = vadd.f32 %v1970_v49, %v1802_v52  ;;  %v1635_v11 = vadd.f32 %v1634_v5, %v1466_v61 }
 0x2aa   : > { %2037 = vst [vmem:[%s4158_s18 + $0x1f0] sm:$0xff] %v1971_v43  ;;  %v2296_v10 = vsel %vm2232_vm14, %v1971_v43, 0.0 }
 0x2ab   : > { %v2430_v16 = vmul.f32 %v2296_v10, %v2296_v10  ;;  %v2359_v23 = vadd.f32 %v2358_v15, %v2296_v10 }
 0x2ad   : > { %v1803_v13 = vpop.f32.mrf.mxu2  ;;  %v2493_v2 = vadd.f32 %v2492_v21, %v2430_v16 }
 0x2ae   : > { %v1804_v9 = vadd.f32 %v1803_v13, %v1635_v11  ;;  %v1972_v17 = vpop.f32.mrf.mxu3 }
 0x2b0   : > { %v1973_v19 = vadd.f32 %v1972_v17, %v1804_v9 }
 0x2b2   : > { %2038 = vst [vmem:[%s4158_s18 + $0x1f8] sm:$0xff] %v1973_v19  ;;  %v2297_v22 = vsel %vm2233_vm15, %v1973_v19, 0.0 }
 0x2b3   : > { %v2360_v24 = vadd.f32 %v2359_v23, %v2297_v22  ;;  %v2431_v25 = vmul.f32 %v2297_v22, %v2297_v22 }
 0x2b5   : > { %v2361_v26 = vrot.slane %v2360_v24, 4  ;;  %v2494_v28 = vadd.f32 %v2493_v2, %v2431_v25 }
 0x2b7   : > { %v2362_v29 = vadd.f32 %v2361_v26, %v2360_v24  ;;  %v2495_v8 = vrot.slane %v2494_v28, 4 }
 0x2b9   : > { %v2363_v30 = vrot.slane %v2362_v29, 2  ;;  %v2496_v31 = vadd.f32 %v2495_v8, %v2494_v28 }
 0x2bb   : > { %v2364_v18 = vadd.f32 %v2363_v30, %v2362_v29  ;;  %v2497_v32 = vrot.slane %v2496_v31, 2 }
 0x2bd   : > { %v2365_v33 = vrot.slane %v2364_v18, 1  ;;  %v2498_v34 = vadd.f32 %v2497_v32, %v2496_v31 }
 0x2bf   : > { %v2366_v35 = vadd.f32 %v2365_v33, %v2364_v18  ;;  %v2499_v54 = vrot.slane %v2498_v34, 1  ;;  %2514 = sbr.rel (!%p3956_p4) target bundleno = 772 (0x304), region = 36 }
 0x2c1   : > { %2367 = vst [vmem:[%s267_s11] sm:$0x1] %v2366_v35  ;;  %v2500_v37 = vadd.f32 %v2499_v54, %v2498_v34 }
 0x2c3   : > { %2501 = vst [vmem:[%s270_s14] sm:$0x1] %v2500_v37 }
 0x2c4   : > { %s4805_s15 = smov (!%p2517_p9, %s2516_s15), 64 }
 0x2c5   : > { %s3543_s23 = sshll.u32 %s4805_s15, 3 }
 0x2c6   : > { %p3546_p10 = scmp.eq.s32.totalorder %s3543_s23, 0 }
 0x2c7   : > { %s4660_s27 = sshrl.u32 (!%p3546_p10), %s4805_s15, 5 }
 0x2c8   : > { %2525 = sbr.rel (%p3546_p10) target bundleno = 772 (0x304), region = 40  ;;  %p3547_p11 = scmp.le.s32.totalorder (!%p3546_p10), %s4660_s27, 0 }
 0x2cd   : > { %2830 = sbr.rel (%p3547_p11) target bundleno = 755 (0x2f3), region = 140  ;;  %s4796_s21 = smov (!%p3547_p11), %s4654_s20 }
 0x2ce   : > { %s4797_s26 = smov (!%p3547_p11), %s4158_s18  ;;  %s4669_s7 = smov (!%p3547_p11), 0  }
 0x2cf   : > { %s4671_s24 = smov (!%p3547_p11), 0  }
 0x2d2 LB: >> { %v2650_v38 = vld [vmem:[%s3875_s26] sm:$0xff]  ;;  %v2652_v39 = vld [vmem:[%s3875_s26 + $0x8] sm:$0xff]  ;;  %v2654_v40 = vld [vmem:[%s3875_s26 + $0x10] sm:$0xff]  ;;  %s2714_s29 = sadd.s32 1, %s3879_s7  ;;  %s2644_s24 = sadd.s32 1, %s3883_s24   ;;  %s3883_s24 = sphi %s4671_s24, %s2644_s24   ;;  %s3879_s7 = sphi %s4669_s7, %s4800_s7   ;;  %s3875_s26 = sphi %s4797_s26, %s4799_s26   ;;  %s3871_s21 = sphi %s4796_s21, %s4798_s21  }
 0x2d3   : >> { %2651 = vst [vmem:[%s3871_s21] sm:$0xff] %v2650_v38  ;;  %v2656_v27 = vld [vmem:[%s3875_s26 + $0x18] sm:$0xff]  ;;  %p2715_p12 = scmp.ge.s32.totalorder %s2714_s29, %s4660_s27  ;;  %v2658_v41 = vld [vmem:[%s3875_s26 + $0x20] sm:$0xff]  ;;  %v2660_v42 = vld [vmem:[%s3875_s26 + $0x28] sm:$0xff]  ;;  %p2643_p13 = scmp.ge.s32.totalorder %s2644_s24, %s4660_s27 }
 0x2d4   : >> { %2653 = vst [vmem:[%s3871_s21 + $0x8] sm:$0xff] %v2652_v39  ;;  %v2662_v57 = vld [vmem:[%s3875_s26 + $0x30] sm:$0xff]  ;;  %v2664_v44 = vld [vmem:[%s3875_s26 + $0x38] sm:$0xff]  ;;  %v2666_v45 = vld [vmem:[%s3875_s26 + $0x40] sm:$0xff] }
 0x2d5   : >> { %2655 = vst [vmem:[%s3871_s21 + $0x10] sm:$0xff] %v2654_v40  ;;  %s4807_s29 = smov (%p2715_p12, %s2714_s29), 0  ;;  %v2668_v46 = vld [vmem:[%s3875_s26 + $0x48] sm:$0xff]  ;;  %v2670_v47 = vld [vmem:[%s3875_s26 + $0x50] sm:$0xff]  ;;  %v2672_v48 = vld [vmem:[%s3875_s26 + $0x58] sm:$0xff] }
 0x2d6   : >> { %2657 = vst [vmem:[%s3871_s21 + $0x18] sm:$0xff] %v2656_v27  ;;  %s3548_s30 = sshll.u32 %s4807_s29, 8  ;;  %v2674_v49 = vld [vmem:[%s3875_s26 + $0x60] sm:$0xff]  ;;  %v2676_v50 = vld [vmem:[%s3875_s26 + $0x68] sm:$0xff]  ;;  %v2678_v51 = vld [vmem:[%s3875_s26 + $0x70] sm:$0xff]  ;;  %s4800_s7 = smov %s4807_s29 }
 0x2d7   : >> { %2659 = vst [vmem:[%s3871_s21 + $0x20] sm:$0xff] %v2658_v41  ;;  %s4703_s6 = scalar_lea.vmem %s4158_s18, %s3548_s30 [#allocation2]   ;;  %s4706_s8 = scalar_lea.vmem %s4654_s20, %s3548_s30   ;;  %v2680_v36 = vld [vmem:[%s3875_s26 + $0x78] sm:$0xff]  ;;  %v2682_v52 = vld [vmem:[%s3875_s26 + $0x80] sm:$0xff]  ;;  %v2684_v0 = vld [vmem:[%s3875_s26 + $0x88] sm:$0xff] }
 0x2d8   : >> { %2661 = vst [vmem:[%s3871_s21 + $0x28] sm:$0xff] %v2660_v42  ;;  %v2686_v55 = vld [vmem:[%s3875_s26 + $0x90] sm:$0xff]  ;;  %v2688_v56 = vld [vmem:[%s3875_s26 + $0x98] sm:$0xff]  ;;  %v2690_v58 = vld [vmem:[%s3875_s26 + $0xa0] sm:$0xff] }
 0x2d9   : >> { %2663 = vst [vmem:[%s3871_s21 + $0x30] sm:$0xff] %v2662_v57  ;;  %v2692_v60 = vld [vmem:[%s3875_s26 + $0xa8] sm:$0xff]  ;;  %v2694_v43 = vld [vmem:[%s3875_s26 + $0xb0] sm:$0xff]  ;;  %v2696_v61 = vld [vmem:[%s3875_s26 + $0xb8] sm:$0xff] }
 0x2da   : >> { %2665 = vst [vmem:[%s3871_s21 + $0x38] sm:$0xff] %v2664_v44  ;;  %v2698_v62 = vld [vmem:[%s3875_s26 + $0xc0] sm:$0xff]  ;;  %v2700_v63 = vld [vmem:[%s3875_s26 + $0xc8] sm:$0xff]  ;;  %v2702_v1 = vld [vmem:[%s3875_s26 + $0xd0] sm:$0xff] }
 0x2db   : >> { %2667 = vst [vmem:[%s3871_s21 + $0x40] sm:$0xff] %v2666_v45  ;;  %v2704_v59 = vld [vmem:[%s3875_s26 + $0xd8] sm:$0xff]  ;;  %v2706_v3 = vld [vmem:[%s3875_s26 + $0xe0] sm:$0xff]  ;;  %v2708_v4 = vld [vmem:[%s3875_s26 + $0xe8] sm:$0xff] }
 0x2dc   : >> { %2669 = vst [vmem:[%s3871_s21 + $0x48] sm:$0xff] %v2668_v46  ;;  %v2710_v53 = vld [vmem:[%s3875_s26 + $0xf0] sm:$0xff]  ;;  %v2712_v5 = vld [vmem:[%s3875_s26 + $0xf8] sm:$0xff]  ;;  %s4799_s26 = smov %s4703_s6 }
 0x2dd   : >> { %2671 = vst [vmem:[%s3871_s21 + $0x50] sm:$0xff] %v2670_v47 }
 0x2de   : >> { %2673 = vst [vmem:[%s3871_s21 + $0x58] sm:$0xff] %v2672_v48 }
 0x2df   : >> { %2675 = vst [vmem:[%s3871_s21 + $0x60] sm:$0xff] %v2674_v49 }
 0x2e0   : >> { %2677 = vst [vmem:[%s3871_s21 + $0x68] sm:$0xff] %v2676_v50 }
 0x2e1   : >> { %2679 = vst [vmem:[%s3871_s21 + $0x70] sm:$0xff] %v2678_v51 }
 0x2e2   : >> { %2681 = vst [vmem:[%s3871_s21 + $0x78] sm:$0xff] %v2680_v36 }
 0x2e3   : >> { %2683 = vst [vmem:[%s3871_s21 + $0x80] sm:$0xff] %v2682_v52 }
 0x2e4   : >> { %2685 = vst [vmem:[%s3871_s21 + $0x88] sm:$0xff] %v2684_v0 }
 0x2e5   : >> { %2687 = vst [vmem:[%s3871_s21 + $0x90] sm:$0xff] %v2686_v55 }
 0x2e6   : >> { %2689 = vst [vmem:[%s3871_s21 + $0x98] sm:$0xff] %v2688_v56 }
 0x2e7   : >> { %2691 = vst [vmem:[%s3871_s21 + $0xa0] sm:$0xff] %v2690_v58 }
 0x2e8   : >> { %2693 = vst [vmem:[%s3871_s21 + $0xa8] sm:$0xff] %v2692_v60 }
 0x2e9   : >> { %2695 = vst [vmem:[%s3871_s21 + $0xb0] sm:$0xff] %v2694_v43 }
 0x2ea   : >> { %2697 = vst [vmem:[%s3871_s21 + $0xb8] sm:$0xff] %v2696_v61 }
 0x2eb   : >> { %2699 = vst [vmem:[%s3871_s21 + $0xc0] sm:$0xff] %v2698_v62 }
 0x2ec   : >> { %2701 = vst [vmem:[%s3871_s21 + $0xc8] sm:$0xff] %v2700_v63 }
 0x2ed   : >> { %2703 = vst [vmem:[%s3871_s21 + $0xd0] sm:$0xff] %v2702_v1 }
 0x2ee   : >> { %2705 = vst [vmem:[%s3871_s21 + $0xd8] sm:$0xff] %v2704_v59  ;;  %2646 = sbr.rel (!%p2643_p13) target bundleno = 722 (0x2d2), region = 146 }
 0x2ef   : >> { %2707 = vst [vmem:[%s3871_s21 + $0xe0] sm:$0xff] %v2706_v3 }
 0x2f0   : >> { %2709 = vst [vmem:[%s3871_s21 + $0xe8] sm:$0xff] %v2708_v4 }
 0x2f1   : >> { %2711 = vst [vmem:[%s3871_s21 + $0xf0] sm:$0xff] %v2710_v53 }
 0x2f2   : >> { %2713 = vst [vmem:[%s3871_s21 + $0xf8] sm:$0xff] %v2712_v5  ;;  %s4798_s21 = smov %s4706_s8 }
 0x2f3 PF: > { %s4771_s28 = sand.u32 31, %s4805_s15   ;;  %s3720_s9 = sshll.u32 %s4660_s27, 8 }
 0x2f4   : > { %s2725_s10 = scalar_lea.vmem %s4158_s18, %s3720_s9 [#allocation2]   ;;  %s2727_s11 = scalar_lea.vmem %s4654_s20, %s3720_s9  }
 0x2f5   : > { %p3553_p0 = scmp.le.s32.totalorder %s4771_s28, 0 }
 0x2f6   : > { %s3885_s12 = smov (!%p3553_p0), %s2727_s11   ;;  %s3889_s13 = smov (!%p3553_p0), %s2725_s10  }
 0x2f7   : > { %2844 = sbr.rel (%p3553_p0) target bundleno = 772 (0x304), region = 151  ;;  %s3893_s14 = smov (!%p3553_p0), 0  }
 0x2f8   : > { %s3897_s16 = smov (!%p3553_p0), 0  }
 0x2fc LB: >> { %v2737_v6 = vld [vmem:[%s3891_s13] sm:$0xff]  ;;  %s2739_s15 = sadd.s32 1, %s3895_s14  ;;  %s2731_s16 = sadd.s32 1, %s3899_s16   ;;  %s3899_s16 = sphi %s3897_s16, %s2731_s16   ;;  %s3895_s14 = sphi %s3893_s14, %s3894_s14   ;;  %s3891_s13 = sphi %s3889_s13, %s2744_s13   ;;  %s3887_s12 = sphi %s3885_s12, %s2745_s12  }
 0x2fd   : >> { %2738 = vst [vmem:[%s3887_s12] sm:$0xff] %v2737_v6  ;;  %p2740_p1 = scmp.ge.s32.totalorder %s2739_s15, %s4771_s28  ;;  %p2730_p2 = scmp.ge.s32.totalorder %s2731_s16, %s4771_s28 }
 0x2ff   : >> { %s4809_s15 = smov (%p2740_p1, %s2739_s15), 0  ;;  %2733 = sbr.rel (!%p2730_p2) target bundleno = 764 (0x2fc), region = 157 }
 0x300   : >> { %s3554_s18 = sshll.u32 %s4809_s15, 3  ;;  %s3894_s14 = smov %s4809_s15  }
 0x301   : >> { %s2744_s13 = scalar_lea.vmem %s2725_s10, %s3554_s18 [#allocation2]   ;;  %s2745_s12 = scalar_lea.vmem %s2727_s11, %s3554_s18  }
 0x304 PF: > { %p13_p3 = scmp.ge.s32.totalorder %s3946_s22, 15   ;;  %s4801_s18 = smov %s3863_s19 }
 0x305   : > { %s4802_s19 = smov %s3954_s25  ;;  %s4803_s20 = smov %s3946_s22 }
 0x306   :  { %15 = sbr.rel (!%p13_p3) target bundleno = 2 (0x2), region = 168 }

// kernel: cnn3d_forward.10
= control target key start
LH: loop header
LB: loop body
LE: loop exit
PB: predicated region body
PF: predicated region fallthrough
CT: control target
= control target key end

     0   :  { %vm262_vm0 = vcmask 388096   ;;  %s779_s0 = inlined_call_operand.vmem [shape: f32[384,128], index: 0, kind: input, shape index: {}]   ;;  %s780_s1 = inlined_call_operand.vmem [shape: f32[1,128], index: 1, kind: input, shape index: {}]   ;;  %s781_s2 = inlined_call_operand.vmem [shape: f32[1,128], index: 2, kind: input, shape index: {}]   ;;  %s782_s3 = inlined_call_operand.vmem [shape: bf16[384,48], index: 3, kind: output, shape index: {}]  }
   0x1   :  { %v14_v0 = vld [vmem:[%s779_s0] sm:$0xff]  ;;  %v15_v3 = vld [vmem:[%s779_s0 + $0x8] sm:$0xff]  ;;  %v16_v6 = vld [vmem:[%s779_s0 + $0x10] sm:$0xff] }
   0x2   :  { %v343_v1 = vld [vmem:[%s780_s1] ss:$0 sm:$0xff]  ;;  %v17_v7 = vld [vmem:[%s779_s0 + $0x18] sm:$0xff]  ;;  %v19_v12 = vld [vmem:[%s779_s0 + $0x28] sm:$0xff] }
   0x3   :  { %v348_v2 = vld [vmem:[%s781_s2] ss:$0 sm:$0xff]  ;;  %v66_v4 = vmul.f32 %v343_v1, %v14_v0  ;;  %v67_v5 = vmul.f32 %v343_v1, %v15_v3  ;;  %v68_v9 = vmul.f32 %v343_v1, %v16_v6  ;;  %v69_v10 = vmul.f32 %v343_v1, %v17_v7  ;;  %v20_v13 = vld [vmem:[%s779_s0 + $0x30] sm:$0xff]  ;;  %v21_v14 = vld [vmem:[%s779_s0 + $0x38] sm:$0xff] }
   0x4   :  { %v18_v8 = vld [vmem:[%s779_s0 + $0x20] sm:$0xff]  ;;  %v71_v17 = vmul.f32 %v343_v1, %v19_v12  ;;  %v72_v18 = vmul.f32 %v343_v1, %v20_v13  ;;  %v73_v22 = vmul.f32 %v343_v1, %v21_v14  ;;  %v23_v32 = vld [vmem:[%s779_s0 + $0x48] sm:$0xff]  ;;  %v24_v37 = vld [vmem:[%s779_s0 + $0x50] sm:$0xff] }
   0x5   :  { %v70_v11 = vmul.f32 %v343_v1, %v18_v8  ;;  %v118_v15 = vadd.f32 %v348_v2, %v66_v4  ;;  %v119_v16 = vadd.f32 %v348_v2, %v67_v5  ;;  %v120_v19 = vadd.f32 %v348_v2, %v68_v9  ;;  %v22_v31 = vld [vmem:[%s779_s0 + $0x40] sm:$0xff]  ;;  %v25_v38 = vld [vmem:[%s779_s0 + $0x58] sm:$0xff]  ;;  %v27_v44 = vld [vmem:[%s779_s0 + $0x68] sm:$0xff] }
   0x6   :  { %v121_v20 = vadd.f32 %v348_v2, %v69_v10  ;;  %v123_v25 = vadd.f32 %v348_v2, %v71_v17  ;;  %v124_v26 = vadd.f32 %v348_v2, %v72_v18  ;;  %v125_v30 = vadd.f32 %v348_v2, %v73_v22  ;;  %v26_v39 = vld [vmem:[%s779_s0 + $0x60] sm:$0xff]  ;;  %v28_v45 = vld [vmem:[%s779_s0 + $0x70] sm:$0xff]  ;;  %v29_v50 = vld [vmem:[%s779_s0 + $0x78] sm:$0xff] }
   0x7   :  { %v122_v21 = vadd.f32 %v348_v2, %v70_v11  ;;  %v166_v23 = vmax.f32 %v118_v15, 0.0  ;;  %v167_v24 = vmax.f32 %v119_v16, 0.0  ;;  %v168_v27 = vmax.f32 %v120_v19, 0.0  ;;  %v30_v5 = vld [vmem:[%s779_s0 + $0x80] sm:$0xff]  ;;  %v31_v6 = vld [vmem:[%s779_s0 + $0x88] sm:$0xff]  ;;  %v32_v11 = vld [vmem:[%s779_s0 + $0x90] sm:$0xff] }
   0x8   :  { %v169_v28 = vmax.f32 %v121_v20, 0.0  ;;  %v171_v35 = vmax.f32 %v123_v25, 0.0  ;;  %v172_v36 = vmax.f32 %v124_v26, 0.0  ;;  %v173_v43 = vmax.f32 %v125_v30, 0.0  ;;  %v33_v16 = vld [vmem:[%s779_s0 + $0x98] sm:$0xff]  ;;  %v34_v17 = vld [vmem:[%s779_s0 + $0xa0] sm:$0xff] }
   0x9   :  { %v170_v29 = vmax.f32 %v122_v21, 0.0  ;;  %v214_v33 = vpack.c.bf16 %v166_v23, %v166_v23  ;;  %v215_v34 = vpack.c.bf16 %v167_v24, %v167_v24  ;;  %v216_v40 = vpack.c.bf16 %v168_v27, %v168_v27  ;;  %v35_v22 = vld [vmem:[%s779_s0 + $0xa8] sm:$0xff]  ;;  %v36_v23 = vld [vmem:[%s779_s0 + $0xb0] sm:$0xff] }
   0xa   :  { %v217_v41 = vpack.c.bf16 %v169_v28, %v169_v28  ;;  %v219_v46 = vpack.c.bf16 %v171_v35, %v171_v35  ;;  %v220_v47 = vpack.c.bf16 %v172_v36, %v172_v36  ;;  %v74_v48 = vmul.f32 %v343_v1, %v22_v31  ;;  %v37_v28 = vld [vmem:[%s779_s0 + $0xb8] sm:$0xff] }
   0xb   :  { %v218_v42 = vpack.c.bf16 %v170_v29, %v170_v29  ;;  %263 = vst.msk [vmem:[%s782_s3] sm:$0xf] %vm262_vm0, %v214_v33  ;;  %v75_v49 = vmul.f32 %v343_v1, %v23_v32  ;;  %v221_v51 = vpack.c.bf16 %v173_v43, %v173_v43  ;;  %v76_v52 = vmul.f32 %v343_v1, %v24_v37 }
   0xc   :  { %264 = vst.msk [vmem:[%s782_s3 + $0x4] sm:$0xf] %vm262_vm0, %v215_v34  ;;  %v77_v53 = vmul.f32 %v343_v1, %v25_v38  ;;  %v78_v54 = vmul.f32 %v343_v1, %v26_v39  ;;  %v126_v55 = vadd.f32 %v348_v2, %v74_v48  ;;  %v79_v57 = vmul.f32 %v343_v1, %v27_v44 }
   0xd   :  { %265 = vst.msk [vmem:[%s782_s3 + $0x8] sm:$0xf] %vm262_vm0, %v216_v40  ;;  %v127_v56 = vadd.f32 %v348_v2, %v75_v49  ;;  %v80_v58 = vmul.f32 %v343_v1, %v28_v45  ;;  %v128_v59 = vadd.f32 %v348_v2, %v76_v52  ;;  %v81_v62 = vmul.f32 %v343_v1, %v29_v50  ;;  %v38_v45 = vld [vmem:[%s779_s0 + $0xc0] sm:$0xff] }
   0xe   :  { %266 = vst.msk [vmem:[%s782_s3 + $0xc] sm:$0xf] %vm262_vm0, %v217_v41  ;;  %v129_v60 = vadd.f32 %v348_v2, %v77_v53  ;;  %v130_v61 = vadd.f32 %v348_v2, %v78_v54  ;;  %v174_v63 = vmax.f32 %v126_v55, 0.0  ;;  %v131_v3 = vadd.f32 %v348_v2, %v79_v57  ;;  %v42_v57 = vld [vmem:[%s779_s0 + $0xe0] sm:$0xff] }
   0xf   :  { %267 = vst.msk [vmem:[%s782_s3 + $0x10] sm:$0xf] %vm262_vm0, %v218_v42  ;;  %v175_v0 = vmax.f32 %v127_v56, 0.0  ;;  %v132_v4 = vadd.f32 %v348_v2, %v80_v58  ;;  %v176_v7 = vmax.f32 %v128_v59, 0.0  ;;  %v133_v10 = vadd.f32 %v348_v2, %v81_v62  ;;  %v41_v56 = vld [vmem:[%s779_s0 + $0xd8] sm:$0xff]  ;;  %v43_v62 = vld [vmem:[%s779_s0 + $0xe8] sm:$0xff] }
  0x10   :  { %268 = vst.msk [vmem:[%s782_s3 + $0x14] sm:$0xf] %vm262_vm0, %v219_v46  ;;  %v177_v8 = vmax.f32 %v129_v60, 0.0  ;;  %v178_v9 = vmax.f32 %v130_v61, 0.0  ;;  %v222_v12 = vpack.c.bf16 %v174_v63, %v174_v63  ;;  %v179_v14 = vmax.f32 %v131_v3, 0.0  ;;  %v39_v46 = vld [vmem:[%s779_s0 + $0xc8] sm:$0xff] }
  0x11   :  { %269 = vst.msk [vmem:[%s782_s3 + $0x18] sm:$0xf] %vm262_vm0, %v220_v47  ;;  %v223_v13 = vpack.c.bf16 %v175_v0, %v175_v0  ;;  %v180_v15 = vmax.f32 %v132_v4, 0.0  ;;  %v224_v18 = vpack.c.bf16 %v176_v7, %v176_v7  ;;  %v181_v21 = vmax.f32 %v133_v10, 0.0  ;;  %v44_v63 = vld [vmem:[%s779_s0 + $0xf0] sm:$0xff] }
  0x12   :  { %270 = vst.msk [vmem:[%s782_s3 + $0x1c] sm:$0xf] %vm262_vm0, %v221_v51  ;;  %v225_v19 = vpack.c.bf16 %v177_v8, %v177_v8  ;;  %v226_v20 = vpack.c.bf16 %v178_v9, %v178_v9  ;;  %v227_v24 = vpack.c.bf16 %v179_v14, %v179_v14  ;;  %v82_v26 = vmul.f32 %v343_v1, %v30_v5  ;;  %v40_v51 = vld [vmem:[%s779_s0 + $0xd0] sm:$0xff] }
  0x13   :  { %271 = vst.msk [vmem:[%s782_s3 + $0x20] sm:$0xf] %vm262_vm0, %v222_v12  ;;  %v228_v25 = vpack.c.bf16 %v180_v15, %v180_v15  ;;  %v83_v27 = vmul.f32 %v343_v1, %v31_v6  ;;  %v229_v29 = vpack.c.bf16 %v181_v21, %v181_v21  ;;  %v84_v30 = vmul.f32 %v343_v1, %v32_v11  ;;  %v45_v6 = vld [vmem:[%s779_s0 + $0xf8] sm:$0xff] }
  0x14   :  { %272 = vst.msk [vmem:[%s782_s3 + $0x24] sm:$0xf] %vm262_vm0, %v223_v13  ;;  %v85_v31 = vmul.f32 %v343_v1, %v33_v16  ;;  %v86_v32 = vmul.f32 %v343_v1, %v34_v17  ;;  %v134_v33 = vadd.f32 %v348_v2, %v82_v26  ;;  %v87_v35 = vmul.f32 %v343_v1, %v35_v22 }
  0x15   :  { %273 = vst.msk [vmem:[%s782_s3 + $0x28] sm:$0xf] %vm262_vm0, %v224_v18  ;;  %v135_v34 = vadd.f32 %v348_v2, %v83_v27  ;;  %v88_v36 = vmul.f32 %v343_v1, %v36_v23  ;;  %v136_v37 = vadd.f32 %v348_v2, %v84_v30  ;;  %v89_v40 = vmul.f32 %v343_v1, %v37_v28  ;;  %v46_v23 = vld [vmem:[%s779_s0 + $0x100] sm:$0xff] }
  0x16   :  { %274 = vst.msk [vmem:[%s782_s3 + $0x2c] sm:$0xf] %vm262_vm0, %v225_v19  ;;  %v137_v38 = vadd.f32 %v348_v2, %v85_v31  ;;  %v138_v39 = vadd.f32 %v348_v2, %v86_v32  ;;  %v182_v41 = vmax.f32 %v134_v33, 0.0  ;;  %v139_v43 = vadd.f32 %v348_v2, %v87_v35  ;;  %v50_v35 = vld [vmem:[%s779_s0 + $0x120] sm:$0xff] }
  0x17   :  { %275 = vst.msk [vmem:[%s782_s3 + $0x30] sm:$0xf] %vm262_vm0, %v226_v20  ;;  %v183_v42 = vmax.f32 %v135_v34, 0.0  ;;  %v140_v44 = vadd.f32 %v348_v2, %v88_v36  ;;  %v184_v47 = vmax.f32 %v136_v37, 0.0  ;;  %v141_v50 = vadd.f32 %v348_v2, %v89_v40  ;;  %v49_v34 = vld [vmem:[%s779_s0 + $0x118] sm:$0xff]  ;;  %v51_v40 = vld [vmem:[%s779_s0 + $0x128] sm:$0xff] }
  0x18   :  { %276 = vst.msk [vmem:[%s782_s3 + $0x34] sm:$0xf] %vm262_vm0, %v227_v24  ;;  %v185_v48 = vmax.f32 %v137_v38, 0.0  ;;  %v186_v49 = vmax.f32 %v138_v39, 0.0  ;;  %v230_v52 = vpack.c.bf16 %v182_v41, %v182_v41  ;;  %v187_v54 = vmax.f32 %v139_v43, 0.0  ;;  %v47_v24 = vld [vmem:[%s779_s0 + $0x108] sm:$0xff] }
  0x19   :  { %277 = vst.msk [vmem:[%s782_s3 + $0x38] sm:$0xf] %vm262_vm0, %v228_v25  ;;  %v231_v53 = vpack.c.bf16 %v183_v42, %v183_v42  ;;  %v188_v55 = vmax.f32 %v140_v44, 0.0  ;;  %v232_v58 = vpack.c.bf16 %v184_v47, %v184_v47  ;;  %v189_v61 = vmax.f32 %v141_v50, 0.0  ;;  %v52_v41 = vld [vmem:[%s779_s0 + $0x130] sm:$0xff] }
  0x1a   :  { %278 = vst.msk [vmem:[%s782_s3 + $0x3c] sm:$0xf] %vm262_vm0, %v229_v29  ;;  %v233_v59 = vpack.c.bf16 %v185_v48, %v185_v48  ;;  %v234_v60 = vpack.c.bf16 %v186_v49, %v186_v49  ;;  %v235_v0 = vpack.c.bf16 %v187_v54, %v187_v54  ;;  %v90_v4 = vmul.f32 %v343_v1, %v38_v45  ;;  %v48_v29 = vld [vmem:[%s779_s0 + $0x110] sm:$0xff] }
  0x1b   :  { %279 = vst.msk [vmem:[%s782_s3 + $0x40] sm:$0xf] %vm262_vm0, %v230_v52  ;;  %v236_v3 = vpack.c.bf16 %v188_v55, %v188_v55  ;;  %v91_v5 = vmul.f32 %v343_v1, %v39_v46  ;;  %v237_v7 = vpack.c.bf16 %v189_v61, %v189_v61  ;;  %v92_v8 = vmul.f32 %v343_v1, %v40_v51  ;;  %v53_v46 = vld [vmem:[%s779_s0 + $0x138] sm:$0xff] }
  0x1c   :  { %280 = vst.msk [vmem:[%s782_s3 + $0x44] sm:$0xf] %vm262_vm0, %v231_v53  ;;  %v93_v9 = vmul.f32 %v343_v1, %v41_v56  ;;  %v94_v10 = vmul.f32 %v343_v1, %v42_v57  ;;  %v142_v11 = vadd.f32 %v348_v2, %v90_v4  ;;  %v95_v13 = vmul.f32 %v343_v1, %v43_v62 }
  0x1d   :  { %281 = vst.msk [vmem:[%s782_s3 + $0x48] sm:$0xf] %vm262_vm0, %v232_v58  ;;  %v143_v12 = vadd.f32 %v348_v2, %v91_v5  ;;  %v96_v14 = vmul.f32 %v343_v1, %v44_v63  ;;  %v144_v15 = vadd.f32 %v348_v2, %v92_v8  ;;  %v97_v18 = vmul.f32 %v343_v1, %v45_v6  ;;  %v54_v63 = vld [vmem:[%s779_s0 + $0x140] sm:$0xff] }
  0x1e   :  { %282 = vst.msk [vmem:[%s782_s3 + $0x4c] sm:$0xf] %vm262_vm0, %v233_v59  ;;  %v145_v16 = vadd.f32 %v348_v2, %v93_v9  ;;  %v146_v17 = vadd.f32 %v348_v2, %v94_v10  ;;  %v190_v19 = vmax.f32 %v142_v11, 0.0  ;;  %v147_v21 = vadd.f32 %v348_v2, %v95_v13  ;;  %v58_v13 = vld [vmem:[%s779_s0 + $0x160] sm:$0xff] }
  0x1f   :  { %283 = vst.msk [vmem:[%s782_s3 + $0x50] sm:$0xf] %vm262_vm0, %v234_v60  ;;  %v191_v20 = vmax.f32 %v143_v12, 0.0  ;;  %v148_v22 = vadd.f32 %v348_v2, %v96_v14  ;;  %v192_v25 = vmax.f32 %v144_v15, 0.0  ;;  %v149_v28 = vadd.f32 %v348_v2, %v97_v18  ;;  %v57_v12 = vld [vmem:[%s779_s0 + $0x158] sm:$0xff]  ;;  %v59_v18 = vld [vmem:[%s779_s0 + $0x168] sm:$0xff] }
  0x20   :  { %284 = vst.msk [vmem:[%s782_s3 + $0x54] sm:$0xf] %vm262_vm0, %v235_v0  ;;  %v193_v26 = vmax.f32 %v145_v16, 0.0  ;;  %v194_v27 = vmax.f32 %v146_v17, 0.0  ;;  %v238_v30 = vpack.c.bf16 %v190_v19, %v190_v19  ;;  %v195_v32 = vmax.f32 %v147_v21, 0.0  ;;  %v55_v0 = vld [vmem:[%s779_s0 + $0x148] sm:$0xff] }
  0x21   :  { %285 = vst.msk [vmem:[%s782_s3 + $0x58] sm:$0xf] %vm262_vm0, %v236_v3  ;;  %v239_v31 = vpack.c.bf16 %v191_v20, %v191_v20  ;;  %v196_v33 = vmax.f32 %v148_v22, 0.0  ;;  %v240_v36 = vpack.c.bf16 %v192_v25, %v192_v25  ;;  %v197_v39 = vmax.f32 %v149_v28, 0.0  ;;  %v60_v19 = vld [vmem:[%s779_s0 + $0x170] sm:$0xff] }
  0x22   :  { %286 = vst.msk [vmem:[%s782_s3 + $0x5c] sm:$0xf] %vm262_vm0, %v237_v7  ;;  %v241_v37 = vpack.c.bf16 %v193_v26, %v193_v26  ;;  %v242_v38 = vpack.c.bf16 %v194_v27, %v194_v27  ;;  %v243_v42 = vpack.c.bf16 %v195_v32, %v195_v32  ;;  %v98_v44 = vmul.f32 %v343_v1, %v46_v23  ;;  %v56_v7 = vld [vmem:[%s779_s0 + $0x150] sm:$0xff] }
  0x23   :  { %287 = vst.msk [vmem:[%s782_s3 + $0x60] sm:$0xf] %vm262_vm0, %v238_v30  ;;  %v244_v43 = vpack.c.bf16 %v196_v33, %v196_v33  ;;  %v99_v45 = vmul.f32 %v343_v1, %v47_v24  ;;  %v245_v47 = vpack.c.bf16 %v197_v39, %v197_v39  ;;  %v100_v48 = vmul.f32 %v343_v1, %v48_v29  ;;  %v61_v24 = vld [vmem:[%s779_s0 + $0x178] sm:$0xff] }
  0x24   :  { %288 = vst.msk [vmem:[%s782_s3 + $0x64] sm:$0xf] %vm262_vm0, %v239_v31  ;;  %v101_v49 = vmul.f32 %v343_v1, %v49_v34  ;;  %v102_v50 = vmul.f32 %v343_v1, %v50_v35  ;;  %v150_v51 = vadd.f32 %v348_v2, %v98_v44  ;;  %v103_v53 = vmul.f32 %v343_v1, %v51_v40 }
  0x25   :  { %289 = vst.msk [vmem:[%s782_s3 + $0x68] sm:$0xf] %vm262_vm0, %v240_v36  ;;  %v151_v52 = vadd.f32 %v348_v2, %v99_v45  ;;  %v104_v54 = vmul.f32 %v343_v1, %v52_v41  ;;  %v152_v55 = vadd.f32 %v348_v2, %v100_v48  ;;  %v105_v58 = vmul.f32 %v343_v1, %v53_v46 }
  0x26   :  { %290 = vst.msk [vmem:[%s782_s3 + $0x6c] sm:$0xf] %vm262_vm0, %v241_v37  ;;  %v153_v56 = vadd.f32 %v348_v2, %v101_v49  ;;  %v154_v57 = vadd.f32 %v348_v2, %v102_v50  ;;  %v198_v59 = vmax.f32 %v150_v51, 0.0  ;;  %v155_v61 = vadd.f32 %v348_v2, %v103_v53 }
  0x27   :  { %291 = vst.msk [vmem:[%s782_s3 + $0x70] sm:$0xf] %vm262_vm0, %v242_v38  ;;  %v199_v60 = vmax.f32 %v151_v52, 0.0  ;;  %v156_v62 = vadd.f32 %v348_v2, %v104_v54  ;;  %v200_v3 = vmax.f32 %v152_v55, 0.0  ;;  %v157_v6 = vadd.f32 %v348_v2, %v105_v58 }
  0x28   :  { %292 = vst.msk [vmem:[%s782_s3 + $0x74] sm:$0xf] %vm262_vm0, %v243_v42  ;;  %v201_v4 = vmax.f32 %v153_v56, 0.0  ;;  %v202_v5 = vmax.f32 %v154_v57, 0.0  ;;  %v246_v8 = vpack.c.bf16 %v198_v59, %v198_v59  ;;  %v203_v10 = vmax.f32 %v155_v61, 0.0 }
  0x29   :  { %293 = vst.msk [vmem:[%s782_s3 + $0x78] sm:$0xf] %vm262_vm0, %v244_v43  ;;  %v247_v9 = vpack.c.bf16 %v199_v60, %v199_v60  ;;  %v204_v11 = vmax.f32 %v156_v62, 0.0  ;;  %v248_v14 = vpack.c.bf16 %v200_v3, %v200_v3  ;;  %v205_v17 = vmax.f32 %v157_v6, 0.0 }
  0x2a   :  { %294 = vst.msk [vmem:[%s782_s3 + $0x7c] sm:$0xf] %vm262_vm0, %v245_v47  ;;  %v249_v15 = vpack.c.bf16 %v201_v4, %v201_v4  ;;  %v250_v16 = vpack.c.bf16 %v202_v5, %v202_v5  ;;  %v251_v20 = vpack.c.bf16 %v203_v10, %v203_v10  ;;  %v106_v22 = vmul.f32 %v343_v1, %v54_v63 }
  0x2b   :  { %295 = vst.msk [vmem:[%s782_s3 + $0x80] sm:$0xf] %vm262_vm0, %v246_v8  ;;  %v252_v21 = vpack.c.bf16 %v204_v11, %v204_v11  ;;  %v107_v23 = vmul.f32 %v343_v1, %v55_v0  ;;  %v253_v25 = vpack.c.bf16 %v205_v17, %v205_v17  ;;  %v108_v26 = vmul.f32 %v343_v1, %v56_v7 }
  0x2c   :  { %296 = vst.msk [vmem:[%s782_s3 + $0x84] sm:$0xf] %vm262_vm0, %v247_v9  ;;  %v109_v27 = vmul.f32 %v343_v1, %v57_v12  ;;  %v110_v28 = vmul.f32 %v343_v1, %v58_v13  ;;  %v158_v29 = vadd.f32 %v348_v2, %v106_v22  ;;  %v111_v31 = vmul.f32 %v343_v1, %v59_v18 }
  0x2d   :  { %297 = vst.msk [vmem:[%s782_s3 + $0x88] sm:$0xf] %vm262_vm0, %v248_v14  ;;  %v159_v30 = vadd.f32 %v348_v2, %v107_v23  ;;  %v112_v32 = vmul.f32 %v343_v1, %v60_v19  ;;  %v160_v33 = vadd.f32 %v348_v2, %v108_v26  ;;  %v113_v36 = vmul.f32 %v343_v1, %v61_v24 }
  0x2e   :  { %298 = vst.msk [vmem:[%s782_s3 + $0x8c] sm:$0xf] %vm262_vm0, %v249_v15  ;;  %v161_v34 = vadd.f32 %v348_v2, %v109_v27  ;;  %v162_v35 = vadd.f32 %v348_v2, %v110_v28  ;;  %v206_v37 = vmax.f32 %v158_v29, 0.0  ;;  %v163_v39 = vadd.f32 %v348_v2, %v111_v31 }
  0x2f   :  { %299 = vst.msk [vmem:[%s782_s3 + $0x90] sm:$0xf] %vm262_vm0, %v250_v16  ;;  %v207_v38 = vmax.f32 %v159_v30, 0.0  ;;  %v164_v40 = vadd.f32 %v348_v2, %v112_v32  ;;  %v208_v41 = vmax.f32 %v160_v33, 0.0  ;;  %v165_v1 = vadd.f32 %v348_v2, %v113_v36 }
  0x30   :  { %300 = vst.msk [vmem:[%s782_s3 + $0x94] sm:$0xf] %vm262_vm0, %v251_v20  ;;  %v209_v42 = vmax.f32 %v161_v34, 0.0  ;;  %v210_v43 = vmax.f32 %v162_v35, 0.0  ;;  %v254_v44 = vpack.c.bf16 %v206_v37, %v206_v37  ;;  %v211_v46 = vmax.f32 %v163_v39, 0.0 }
  0x31   :  { %301 = vst.msk [vmem:[%s782_s3 + $0x98] sm:$0xf] %vm262_vm0, %v252_v21  ;;  %v255_v45 = vpack.c.bf16 %v207_v38, %v207_v38  ;;  %v212_v47 = vmax.f32 %v164_v40, 0.0  ;;  %v256_v48 = vpack.c.bf16 %v208_v41, %v208_v41  ;;  %v213_v50 = vmax.f32 %v165_v1, 0.0 }
  0x32   :  { %302 = vst.msk [vmem:[%s782_s3 + $0x9c] sm:$0xf] %vm262_vm0, %v253_v25  ;;  %v257_v49 = vpack.c.bf16 %v209_v42, %v209_v42  ;;  %v258_v2 = vpack.c.bf16 %v210_v43, %v210_v43  ;;  %v259_v51 = vpack.c.bf16 %v211_v46, %v211_v46 }
  0x33   :  { %303 = vst.msk [vmem:[%s782_s3 + $0xa0] sm:$0xf] %vm262_vm0, %v254_v44  ;;  %v260_v52 = vpack.c.bf16 %v212_v47, %v212_v47  ;;  %v261_v53 = vpack.c.bf16 %v213_v50, %v213_v50 }
  0x34   :  { %304 = vst.msk [vmem:[%s782_s3 + $0xa4] sm:$0xf] %vm262_vm0, %v255_v45 }
  0x35   :  { %305 = vst.msk [vmem:[%s782_s3 + $0xa8] sm:$0xf] %vm262_vm0, %v256_v48 }
  0x36   :  { %306 = vst.msk [vmem:[%s782_s3 + $0xac] sm:$0xf] %vm262_vm0, %v257_v49 }
  0x37   :  { %307 = vst.msk [vmem:[%s782_s3 + $0xb0] sm:$0xf] %vm262_vm0, %v258_v2 }
  0x38   :  { %308 = vst.msk [vmem:[%s782_s3 + $0xb4] sm:$0xf] %vm262_vm0, %v259_v51 }
  0x39   :  { %309 = vst.msk [vmem:[%s782_s3 + $0xb8] sm:$0xf] %vm262_vm0, %v260_v52 }
  0x3a   :  { %310 = vst.msk [vmem:[%s782_s3 + $0xbc] sm:$0xf] %vm262_vm0, %v261_v53 }

// kernel: cnn3d_forward.9
= control target key start
LH: loop header
LB: loop body
LE: loop exit
PB: predicated region body
PF: predicated region fallthrough
CT: control target
= control target key end

     0   :  { %s9518_s18 = smov 0   ;;  %s11540_s0 = inlined_call_operand.vmem [shape: bf16[384,4736], index: 0, kind: input, shape index: {}]   ;;  %s11541_s1 = inlined_call_operand.vmem [shape: bf16[4736,128], index: 1, kind: input, shape index: {}]   ;;  %s11542_s2 = inlined_call_operand.vmem [shape: f32[1,128], index: 2, kind: input, shape index: {}]   ;;  %s11543_s3 = inlined_call_operand.vmem [shape: f32[384,128], index: 3, kind: output, shape index: {0}]   ;;  %s11544_s4 = inlined_call_operand.vmem [shape: f32[3,1,128], index: 4, kind: output, shape index: {1}]   ;;  %s11545_s5 = inlined_call_operand.vmem [shape: f32[3,1,128], index: 5, kind: output, shape index: {2}]  }
   0x1 LB: > { %s9524_s19 = sadd.s32 4294967295, %s9486_s18   ;;  %p6478_p0 = scmp.ge.s32.totalorder %s9486_s18, 1  ;;  %s9486_s18 = sphi %s9518_s18, %s16_s18  }
   0x2   : > { %p194_p1 = scmp.lt.s32.totalorder %s9486_s18, 4 }
   0x4   : > { %p195_p2 = pnand %p6478_p0, %p194_p1 }
   0x5   : > { %s6479_s26 = sshll.u32 (!%p195_p2), %s9524_s19, 4  ;;  %p242_p4 = scmp.lt.s32.totalorder (!%p195_p2), %s9524_s19, 2 }
   0x6   : > { %198 = sbr.rel (%p195_p2) target bundleno = 1375 (0x55f), region = 32  ;;  %p230_p3 = scmp.lt.s32.totalorder (!%p195_p2), %s6479_s26, 47 }
   0xb   : > { %v9157_v0 = vld [vmem:[%s11541_s1 + $0x38] sm:$0xff]  ;;  %v9156_v1 = vld [vmem:[%s11541_s1 + $0x30] sm:$0xff]  ;;  %v9155_v2 = vld [vmem:[%s11541_s1 + $0x28] sm:$0xff]  ;;  %s11547_s26 = smov (!%p230_p3, %s6479_s26), 47 }
   0xc   : > { %9446 = vmatpush.bf16.msra.mxu1 %v9157_v0  ;;  %9447 = vmatpush.bf16.msra.mxu2 %v9157_v0  ;;  %v9154_v3 = vld [vmem:[%s11541_s1 + $0x20] sm:$0xff]  ;;  %v9153_v4 = vld [vmem:[%s11541_s1 + $0x18] sm:$0xff]  ;;  %v9152_v5 = vld [vmem:[%s11541_s1 + $0x10] sm:$0xff]  ;;  %s9470_s8 = smul.u32 148, %s11547_s26  ;;  %s6482_s30 = sshll.u32 %s11547_s26, 3 }
   0xd   : > { %9448 = vmatpush.bf16.msra.mxu3 %v9157_v0  ;;  %4412 = vmatpush.bf16.msra.mxu0 %v9157_v0  ;;  %v9151_v6 = vld [vmem:[%s11541_s1 + $0x8] sm:$0xff]  ;;  %v9150_v7 = vld [vmem:[%s11541_s1] sm:$0xff]  ;;  %v9173_v16 = vld [vmem:[%s11541_s1 + $0xb8] sm:$0xff] }
   0xe   : > { %s9556_s13 = scalar_lea.vmem %s11540_s0, %s9470_s8  ;;  %v9165_v17 = vld [vmem:[%s11541_s1 + $0x78] sm:$0xff]  ;;  %v9172_v24 = vld [vmem:[%s11541_s1 + $0xb0] sm:$0xff]  ;;  %v9171_v28 = vld [vmem:[%s11541_s1 + $0xa8] sm:$0xff]  ;;  %s11464_s8 = scalar_lea.vmem %s11543_s3, %s6482_s30 }
   0xf   : > { %v6781_v8 = vld [vmem:[%s9556_s13 + $0x250] sm:$0xf]  ;;  %v8946_v9 = vld [vmem:[%s9556_s13 + $0x2e0] sm:$0xf0]  ;;  %v7077_v10 = vld [vmem:[%s9556_s13 + $0x4a0] sm:$0xf] }
  0x10   : > { %9449 = vmatpush.bf16.msra.mxu1 %v9156_v1  ;;  %9450 = vmatpush.bf16.msra.mxu2 %v9156_v1  ;;  %v9020_v11 = vld [vmem:[%s9556_s13 + $0x530] sm:$0xf0]  ;;  %v7373_v12 = vld [vmem:[%s9556_s13 + $0x6f0] sm:$0xf]  ;;  %v9094_v13 = vld [vmem:[%s9556_s13 + $0x780] sm:$0xf0]  ;;  %v6782_v18 = vor.u32 %v8946_v9, %v6781_v8 }
  0x11   : > { %9451 = vmatpush.bf16.msra.mxu3 %v9156_v1  ;;  %4413 = vmatpush.bf16.msra.mxu0 %v9156_v1  ;;  %v6485_v14 = vld [vmem:[%s9556_s13] sm:$0xf]  ;;  %v8872_v15 = vld [vmem:[%s9556_s13 + $0x90] sm:$0xf0]  ;;  %v7078_v19 = vor.u32 %v9020_v11, %v7077_v10  ;;  %v7374_v20 = vor.u32 %v9094_v13, %v7373_v12  ;;  %v9181_v22 = vld [vmem:[%s11541_s1 + $0xf8] sm:$0xff] }
  0x12   : > { %v6486_v21 = vor.u32 %v8872_v15, %v6485_v14  ;;  %v9189_v23 = vld [vmem:[%s11541_s1 + $0x138] sm:$0xff]  ;;  %v9164_v25 = vld [vmem:[%s11541_s1 + $0x70] sm:$0xff]  ;;  %v9163_v29 = vld [vmem:[%s11541_s1 + $0x68] sm:$0xff] }
  0x13   : > { %v9180_v26 = vld [vmem:[%s11541_s1 + $0xf0] sm:$0xff]  ;;  %v9179_v30 = vld [vmem:[%s11541_s1 + $0xe8] sm:$0xff]  ;;  %v9170_v32 = vld [vmem:[%s11541_s1 + $0xa0] sm:$0xff] }
  0x14   : > { %9452 = vmatpush.bf16.msra.mxu1 %v9155_v2  ;;  %9453 = vmatpush.bf16.msra.mxu2 %v9155_v2  ;;  %v9188_v27 = vld [vmem:[%s11541_s1 + $0x130] sm:$0xff]  ;;  %v9187_v31 = vld [vmem:[%s11541_s1 + $0x128] sm:$0xff]  ;;  %v9162_v33 = vld [vmem:[%s11541_s1 + $0x60] sm:$0xff] }
  0x15   : > { %9454 = vmatpush.bf16.msra.mxu3 %v9155_v2  ;;  %4414 = vmatpush.bf16.msra.mxu0 %v9155_v2  ;;  %v9178_v34 = vld [vmem:[%s11541_s1 + $0xe0] sm:$0xff]  ;;  %v6929_v36 = vld [vmem:[%s9556_s13 + $0x378] sm:$0xf]  ;;  %v8983_v37 = vld [vmem:[%s9556_s13 + $0x408] sm:$0xf0] }
  0x16   : > { %v9186_v35 = vld [vmem:[%s11541_s1 + $0x120] sm:$0xff]  ;;  %v7225_v38 = vld [vmem:[%s9556_s13 + $0x5c8] sm:$0xf]  ;;  %v9057_v39 = vld [vmem:[%s9556_s13 + $0x658] sm:$0xf0]  ;;  %v6930_v46 = vor.u32 %v8983_v37, %v6929_v36 }
  0x17   : > { %v7521_v40 = vld [vmem:[%s9556_s13 + $0x818] sm:$0xf]  ;;  %v9131_v41 = vld [vmem:[%s9556_s13 + $0x8a8] sm:$0xf0]  ;;  %v6633_v42 = vld [vmem:[%s9556_s13 + $0x128] sm:$0xf]  ;;  %v7226_v47 = vor.u32 %v9057_v39, %v7225_v38 }
  0x18   : > { %9455 = vmatpush.bf16.msra.mxu1 %v9154_v3  ;;  %9456 = vmatpush.bf16.msra.mxu2 %v9154_v3  ;;  %v8909_v43 = vld [vmem:[%s9556_s13 + $0x1b8] sm:$0xf0]  ;;  %v7522_v48 = vor.u32 %v9131_v41, %v7521_v40  ;;  %v9168_v52 = vld [vmem:[%s11541_s1 + $0x90] sm:$0xff]  ;;  %v9167_v56 = vld [vmem:[%s11541_s1 + $0x88] sm:$0xff] }
  0x19   : > { %9457 = vmatpush.bf16.msra.mxu3 %v9154_v3  ;;  %4415 = vmatpush.bf16.msra.mxu0 %v9154_v3  ;;  %v9169_v44 = vld [vmem:[%s11541_s1 + $0x98] sm:$0xff]  ;;  %v6634_v49 = vor.u32 %v8909_v43, %v6633_v42  ;;  %v9160_v53 = vld [vmem:[%s11541_s1 + $0x50] sm:$0xff]  ;;  %v9159_v57 = vld [vmem:[%s11541_s1 + $0x48] sm:$0xff] }
  0x1a   : > { %v9161_v45 = vld [vmem:[%s11541_s1 + $0x58] sm:$0xff]  ;;  %v9176_v54 = vld [vmem:[%s11541_s1 + $0xd0] sm:$0xff]  ;;  %v9175_v58 = vld [vmem:[%s11541_s1 + $0xc8] sm:$0xff] }
  0x1b   : > { %v9177_v50 = vld [vmem:[%s11541_s1 + $0xd8] sm:$0xff]  ;;  %v9184_v55 = vld [vmem:[%s11541_s1 + $0x110] sm:$0xff]  ;;  %v9183_v59 = vld [vmem:[%s11541_s1 + $0x108] sm:$0xff] }
  0x1c   : > { %9458 = vmatpush.bf16.msra.mxu1 %v9153_v4  ;;  %9459 = vmatpush.bf16.msra.mxu2 %v9153_v4  ;;  %v9185_v51 = vld [vmem:[%s11541_s1 + $0x118] sm:$0xff]  ;;  %v9166_v60 = vld [vmem:[%s11541_s1 + $0x80] sm:$0xff]  ;;  %v6501_v8 = vld [vmem:[%s9556_s13 + $0x10] sm:$0xf] }
  0x1d   : > { %9460 = vmatpush.bf16.msra.mxu3 %v9153_v4  ;;  %4416 = vmatpush.bf16.msra.mxu0 %v9153_v4  ;;  %v9158_v61 = vld [vmem:[%s11541_s1 + $0x40] sm:$0xff]  ;;  %v6487_v1 = vld [vmem:[%s9556_s13 + $0x94] sm:$0xf0]  ;;  %v6493_v4 = vld [vmem:[%s9556_s13 + $0x8] sm:$0xf] }
  0x1e   : > { %v8854_v62 = vld [vmem:[%s9556_s13 + $0x4] sm:$0xf]  ;;  %v9205_v2 = vld [vmem:[%s11541_s1 + $0x1b8] sm:$0xff]  ;;  %v8928_v40 = vld [vmem:[%s9556_s13 + $0x254] sm:$0xf] }
  0x1f   : > { %v9174_v63 = vld [vmem:[%s11541_s1 + $0xc0] sm:$0xff]  ;;  %v9197_v3 = vld [vmem:[%s11541_s1 + $0x178] sm:$0xff]  ;;  %v6490_v12 = vor.u32 %v8854_v62, %v6487_v1  ;;  %v6783_v41 = vld [vmem:[%s9556_s13 + $0x2e4] sm:$0xf0] }
  0x20   : > { %9461 = vmatpush.bf16.msra.mxu1 %v9152_v5  ;;  %9462 = vmatpush.bf16.msra.mxu2 %v9152_v5  ;;  %v9182_v0 = vld [vmem:[%s11541_s1 + $0x100] sm:$0xff]  ;;  %v9213_v10 = vld [vmem:[%s11541_s1 + $0x1f8] sm:$0xff]  ;;  %v8947_v43 = vld [vmem:[%s9556_s13 + $0x2e8] sm:$0xf0] }
  0x21   : > { %9463 = vmatpush.bf16.msra.mxu3 %v9152_v5  ;;  %4417 = vmatpush.bf16.msra.mxu0 %v9152_v5  ;;  %v8873_v5 = vld [vmem:[%s9556_s13 + $0x98] sm:$0xf0]  ;;  %v8874_v9 = vld [vmem:[%s9556_s13 + $0xa0] sm:$0xf0]  ;;  %v6789_v42 = vld [vmem:[%s9556_s13 + $0x258] sm:$0xf] }
  0x22   : > { %v9221_v11 = vld [vmem:[%s11541_s1 + $0x238] sm:$0xff]  ;;  %v6494_v13 = vor.u32 %v8873_v5, %v6493_v4  ;;  %v6502_v15 = vor.u32 %v8874_v9, %v6501_v8  ;;  %v9202_v36 = vld [vmem:[%s11541_s1 + $0x1a0] sm:$0xff]  ;;  %v6945_v62 = vld [vmem:[%s9556_s13 + $0x388] sm:$0xf] }
  0x23   : > { %v9210_v37 = vld [vmem:[%s11541_s1 + $0x1e0] sm:$0xff]  ;;  %v9200_v4 = vld [vmem:[%s11541_s1 + $0x190] sm:$0xff]  ;;  %v7079_v9 = vld [vmem:[%s9556_s13 + $0x534] sm:$0xf0] }
  0x24   : > { %9464 = vmatpush.bf16.msra.mxu1 %v9151_v6  ;;  %9465 = vmatpush.bf16.msra.mxu2 %v9151_v6  ;;  %v9194_v38 = vld [vmem:[%s11541_s1 + $0x160] sm:$0xff]  ;;  %v9208_v5 = vld [vmem:[%s11541_s1 + $0x1d0] sm:$0xff] }
  0x25   : > { %9466 = vmatpush.bf16.msra.mxu3 %v9151_v6  ;;  %4418 = vmatpush.bf16.msra.mxu0 %v9151_v6  ;;  %v8855_v6 = vld [vmem:[%s9556_s13 + $0xc] sm:$0xf]  ;;  %v9218_v39 = vld [vmem:[%s11541_s1 + $0x220] sm:$0xff] }
  0x26   : > { %v9002_v8 = vld [vmem:[%s9556_s13 + $0x4a4] sm:$0xf] }
  0x28   : > { %9467 = vmatpush.bf16.msra.mxu1 %v9150_v7  ;;  %9468 = vmatpush.bf16.msra.mxu2 %v9150_v7 }
  0x29   : > { %9469 = vmatpush.bf16.msra.mxu3 %v9150_v7  ;;  %4419 = vmatpush.bf16.msra.mxu0 %v9150_v7  ;;  %v6495_v7 = vld [vmem:[%s9556_s13 + $0x9c] sm:$0xf0] }
  0x2a   : > { %v6498_v14 = vor.u32 %v8855_v6, %v6495_v7  ;;  %v9192_v6 = vld [vmem:[%s11541_s1 + $0x150] sm:$0xff] }
  0x2b   : > { %4430 = vmatmul.bf16.vlgmr.msra.gmra.mxu1 %v6782_v18  ;;  %4440 = vmatmul.bf16.vlgmr.msra.gmra.mxu2 %v7078_v19  ;;  %v9212_v18 = vld [vmem:[%s11541_s1 + $0x1f0] sm:$0xff] }
  0x2c   : > { %4510 = vmatpush.bf16.msrb.mxu2 %v9173_v16  ;;  %4461 = vmatpush.bf16.msrb.mxu1 %v9165_v17  ;;  %v9204_v16 = vld [vmem:[%s11541_s1 + $0x1b0] sm:$0xff] }
  0x2d   : > { %4450 = vmatmul.bf16.vlgmr.msra.gmra.mxu3 %v7374_v20  ;;  %4420 = vmatmul.bf16.vlgmr.msra.gmra.mxu0 %v6486_v21  ;;  %v9196_v17 = vld [vmem:[%s11541_s1 + $0x170] sm:$0xff]  ;;  %v9203_v20 = vld [vmem:[%s11541_s1 + $0x1a8] sm:$0xff] }
  0x2e   : > { %4559 = vmatpush.bf16.msrb.mxu3 %v9181_v22  ;;  %4608 = vmatpush.bf16.msrb.mxu0 %v9189_v23  ;;  %v9220_v19 = vld [vmem:[%s11541_s1 + $0x230] sm:$0xff]  ;;  %v9195_v21 = vld [vmem:[%s11541_s1 + $0x168] sm:$0xff] }
  0x2f   : > { %v9211_v22 = vld [vmem:[%s11541_s1 + $0x1e8] sm:$0xff]  ;;  %v9216_v7 = vld [vmem:[%s11541_s1 + $0x210] sm:$0xff] }
  0x30   : > { %4511 = vmatpush.bf16.msrb.mxu2 %v9172_v24  ;;  %4462 = vmatpush.bf16.msrb.mxu1 %v9164_v25  ;;  %v9219_v23 = vld [vmem:[%s11541_s1 + $0x228] sm:$0xff]  ;;  %v6635_v25 = vld [vmem:[%s9556_s13 + $0x1bc] sm:$0xf0] }
  0x31   : > { %v8891_v24 = vld [vmem:[%s9556_s13 + $0x12c] sm:$0xf] }
  0x32   : > { %4560 = vmatpush.bf16.msrb.mxu3 %v9180_v26  ;;  %4609 = vmatpush.bf16.msrb.mxu0 %v9188_v27  ;;  %v6641_v26 = vld [vmem:[%s9556_s13 + $0x130] sm:$0xf]  ;;  %v8910_v27 = vld [vmem:[%s9556_s13 + $0x1c0] sm:$0xf0] }
  0x34   : > { %4512 = vmatpush.bf16.msrb.mxu2 %v9171_v28  ;;  %4463 = vmatpush.bf16.msrb.mxu1 %v9163_v29  ;;  %v8892_v28 = vld [vmem:[%s9556_s13 + $0x134] sm:$0xf]  ;;  %v6643_v29 = vld [vmem:[%s9556_s13 + $0x1c4] sm:$0xf0] }
  0x36   : > { %4561 = vmatpush.bf16.msrb.mxu3 %v9179_v30  ;;  %4610 = vmatpush.bf16.msrb.mxu0 %v9187_v31  ;;  %v6649_v30 = vld [vmem:[%s9556_s13 + $0x138] sm:$0xf]  ;;  %v8911_v31 = vld [vmem:[%s9556_s13 + $0x1c8] sm:$0xf0] }
  0x38   : > { %4513 = vmatpush.bf16.msrb.mxu2 %v9170_v32  ;;  %4464 = vmatpush.bf16.msrb.mxu1 %v9162_v33  ;;  %v6638_v32 = vor.u32 %v8891_v24, %v6635_v25  ;;  %v6642_v33 = vor.u32 %v8910_v27, %v6641_v26  ;;  %v9039_v24 = vld [vmem:[%s9556_s13 + $0x5cc] sm:$0xf]  ;;  %v7227_v25 = vld [vmem:[%s9556_s13 + $0x65c] sm:$0xf0]  ;;  %v7233_v26 = vld [vmem:[%s9556_s13 + $0x5d0] sm:$0xf] }
  0x39   : > { %v9058_v27 = vld [vmem:[%s9556_s13 + $0x660] sm:$0xf0] }
  0x3a   : > { %4562 = vmatpush.bf16.msrb.mxu3 %v9178_v34  ;;  %4611 = vmatpush.bf16.msrb.mxu0 %v9186_v35  ;;  %v6646_v34 = vor.u32 %v8892_v28, %v6643_v29  ;;  %v6650_v35 = vor.u32 %v8911_v31, %v6649_v30  ;;  %v9040_v28 = vld [vmem:[%s9556_s13 + $0x5d4] sm:$0xf]  ;;  %v7235_v29 = vld [vmem:[%s9556_s13 + $0x664] sm:$0xf0]  ;;  %v7241_v30 = vld [vmem:[%s9556_s13 + $0x5d8] sm:$0xf] }
  0x3b   : > { %4435 = vmatmul.bf16.gmra.mxu1 %v6930_v46  ;;  %4445 = vmatmul.bf16.gmra.mxu2 %v7226_v47  ;;  %v6797_v46 = vld [vmem:[%s9556_s13 + $0x260] sm:$0xf]  ;;  %v8948_v47 = vld [vmem:[%s9556_s13 + $0x2f0] sm:$0xf0]  ;;  %v9059_v31 = vld [vmem:[%s9556_s13 + $0x668] sm:$0xf0] }
  0x3c   : > { %4514 = vmatpush.bf16.msrb.mxu2 %v9169_v44  ;;  %4465 = vmatpush.bf16.msrb.mxu1 %v9161_v45  ;;  %v8929_v44 = vld [vmem:[%s9556_s13 + $0x25c] sm:$0xf]  ;;  %v6791_v45 = vld [vmem:[%s9556_s13 + $0x2ec] sm:$0xf0] }
  0x3d   : > { %4455 = vmatmul.bf16.gmra.mxu3 %v7522_v48  ;;  %4425 = vmatmul.bf16.gmra.mxu0 %v6634_v49  ;;  %v6786_v48 = vor.u32 %v8928_v40, %v6783_v41  ;;  %v6790_v49 = vor.u32 %v8947_v43, %v6789_v42  ;;  %v9076_v40 = vld [vmem:[%s9556_s13 + $0x6f4] sm:$0xf]  ;;  %v7375_v41 = vld [vmem:[%s9556_s13 + $0x784] sm:$0xf0]  ;;  %v7381_v42 = vld [vmem:[%s9556_s13 + $0x6f8] sm:$0xf] }
  0x3e   : > { %4563 = vmatpush.bf16.msrb.mxu3 %v9177_v50  ;;  %4612 = vmatpush.bf16.msrb.mxu0 %v9185_v51  ;;  %v6794_v50 = vor.u32 %v8929_v44, %v6791_v45  ;;  %v6798_v51 = vor.u32 %v8948_v47, %v6797_v46  ;;  %v9095_v43 = vld [vmem:[%s9556_s13 + $0x788] sm:$0xf0]  ;;  %v9077_v44 = vld [vmem:[%s9556_s13 + $0x6fc] sm:$0xf]  ;;  %v7383_v45 = vld [vmem:[%s9556_s13 + $0x78c] sm:$0xf0] }
  0x3f   : > { %v7389_v46 = vld [vmem:[%s9556_s13 + $0x700] sm:$0xf]  ;;  %v9096_v47 = vld [vmem:[%s9556_s13 + $0x790] sm:$0xf0] }
  0x40   : > { %4515 = vmatpush.bf16.msrb.mxu2 %v9168_v52  ;;  %4466 = vmatpush.bf16.msrb.mxu1 %v9160_v53  ;;  %v9201_v52 = vld [vmem:[%s11541_s1 + $0x198] sm:$0xff] }
  0x41   : > { %v9209_v53 = vld [vmem:[%s11541_s1 + $0x1d8] sm:$0xff] }
  0x42   : > { %4564 = vmatpush.bf16.msrb.mxu3 %v9176_v54  ;;  %4613 = vmatpush.bf16.msrb.mxu0 %v9184_v55  ;;  %v9193_v54 = vld [vmem:[%s11541_s1 + $0x158] sm:$0xff] }
  0x43   : > { %v9217_v55 = vld [vmem:[%s11541_s1 + $0x218] sm:$0xff] }
  0x44   : > { %4516 = vmatpush.bf16.msrb.mxu2 %v9167_v56  ;;  %4467 = vmatpush.bf16.msrb.mxu1 %v9159_v57  ;;  %v8965_v56 = vld [vmem:[%s9556_s13 + $0x37c] sm:$0xf]  ;;  %v6931_v57 = vld [vmem:[%s9556_s13 + $0x40c] sm:$0xf0] }
  0x46   : > { %4565 = vmatpush.bf16.msrb.mxu3 %v9175_v58  ;;  %4614 = vmatpush.bf16.msrb.mxu0 %v9183_v59  ;;  %v6937_v58 = vld [vmem:[%s9556_s13 + $0x380] sm:$0xf]  ;;  %v8984_v59 = vld [vmem:[%s9556_s13 + $0x410] sm:$0xf0] }
  0x47   : > { %v6938_v1 = vor.u32 %v8984_v59, %v6937_v58 }
  0x48   : > { %4517 = vmatpush.bf16.msrb.mxu2 %v9166_v60  ;;  %4468 = vmatpush.bf16.msrb.mxu1 %v9158_v61  ;;  %v8966_v60 = vld [vmem:[%s9556_s13 + $0x384] sm:$0xf]  ;;  %v6939_v61 = vld [vmem:[%s9556_s13 + $0x414] sm:$0xf0] }
  0x4a   : > { %4566 = vmatpush.bf16.msrb.mxu3 %v9174_v63  ;;  %4615 = vmatpush.bf16.msrb.mxu0 %v9182_v0  ;;  %v8985_v63 = vld [vmem:[%s9556_s13 + $0x418] sm:$0xf0]  ;;  %v6934_v0 = vor.u32 %v8965_v56, %v6931_v57  ;;  %v9838_v56 = vld [vmem:[%s11542_s2] ss:$0 sm:$0xff] }
  0x4b   : > { %4469 = vmatmul.bf16.vlgmr.msrb.gmra.mxu1 %v6490_v12  ;;  %4518 = vmatmul.bf16.vlgmr.msrb.gmra.mxu2 %v6494_v13  ;;  %v9003_v12 = vld [vmem:[%s9556_s13 + $0x4ac] sm:$0xf]  ;;  %v7087_v13 = vld [vmem:[%s9556_s13 + $0x53c] sm:$0xf0] }
  0x4c   : > { %4706 = vmatpush.bf16.msra.mxu2 %v9205_v2  ;;  %4657 = vmatpush.bf16.msra.mxu1 %v9197_v3  ;;  %v6942_v2 = vor.u32 %v8966_v60, %v6939_v61  ;;  %v6946_v3 = vor.u32 %v8985_v63, %v6945_v62  ;;  %v9229_v63 = vld [vmem:[%s11541_s1 + $0x278] sm:$0xff] }
  0x4d   : > { %4567 = vmatmul.bf16.vlgmr.msrb.gmra.mxu3 %v6498_v14  ;;  %4616 = vmatmul.bf16.vlgmr.msrb.gmra.mxu0 %v6502_v15  ;;  %v7093_v14 = vld [vmem:[%s9556_s13 + $0x4b0] sm:$0xf]  ;;  %v9022_v15 = vld [vmem:[%s9556_s13 + $0x540] sm:$0xf0] }
  0x4e   : > { %4755 = vmatpush.bf16.msra.mxu3 %v9213_v10  ;;  %4804 = vmatpush.bf16.msra.mxu0 %v9221_v11  ;;  %v7085_v10 = vld [vmem:[%s9556_s13 + $0x4a8] sm:$0xf]  ;;  %v9021_v11 = vld [vmem:[%s9556_s13 + $0x538] sm:$0xf0] }
  0x50   : > { %4707 = vmatpush.bf16.msra.mxu2 %v9204_v16  ;;  %4658 = vmatpush.bf16.msra.mxu1 %v9196_v17  ;;  %v7082_v16 = vor.u32 %v9002_v8, %v7079_v9  ;;  %v7086_v17 = vor.u32 %v9021_v11, %v7085_v10  ;;  %v9133_v8 = vld [vmem:[%s9556_s13 + $0x8b8] sm:$0xf0] }
  0x52   : > { %4756 = vmatpush.bf16.msra.mxu3 %v9212_v18  ;;  %4805 = vmatpush.bf16.msra.mxu0 %v9220_v19  ;;  %v7090_v18 = vor.u32 %v9003_v12, %v7087_v13  ;;  %v7094_v19 = vor.u32 %v9022_v15, %v7093_v14 }
  0x54   : > { %4708 = vmatpush.bf16.msra.mxu2 %v9203_v20  ;;  %4659 = vmatpush.bf16.msra.mxu1 %v9195_v21  ;;  %v9199_v20 = vld [vmem:[%s11541_s1 + $0x188] sm:$0xff] }
  0x55   : > { %v9207_v21 = vld [vmem:[%s11541_s1 + $0x1c8] sm:$0xff] }
  0x56   : > { %4757 = vmatpush.bf16.msra.mxu3 %v9211_v22  ;;  %4806 = vmatpush.bf16.msra.mxu0 %v9219_v23  ;;  %v9191_v22 = vld [vmem:[%s11541_s1 + $0x148] sm:$0xff] }
  0x57   : > { %v9215_v23 = vld [vmem:[%s11541_s1 + $0x208] sm:$0xff] }
  0x58   : > { %4709 = vmatpush.bf16.msra.mxu2 %v9202_v36  ;;  %4660 = vmatpush.bf16.msra.mxu1 %v9194_v38  ;;  %v9198_v36 = vld [vmem:[%s11541_s1 + $0x180] sm:$0xff] }
  0x59   : > { %v9190_v38 = vld [vmem:[%s11541_s1 + $0x140] sm:$0xff] }
  0x5a   : > { %4758 = vmatpush.bf16.msra.mxu3 %v9210_v37  ;;  %4807 = vmatpush.bf16.msra.mxu0 %v9218_v39  ;;  %v9206_v37 = vld [vmem:[%s11541_s1 + $0x1c0] sm:$0xff] }
  0x5b   : > { %4474 = vmatmul.bf16.gmra.mxu1 %v6638_v32  ;;  %4523 = vmatmul.bf16.gmra.mxu2 %v6642_v33  ;;  %v7230_v32 = vor.u32 %v9039_v24, %v7227_v25  ;;  %v7234_v33 = vor.u32 %v9058_v27, %v7233_v26  ;;  %v9214_v39 = vld [vmem:[%s11541_s1 + $0x200] sm:$0xff]  ;;  %v9228_v27 = vld [vmem:[%s11541_s1 + $0x270] sm:$0xff] }
  0x5c   : > { %4710 = vmatpush.bf16.msra.mxu2 %v9201_v52  ;;  %4661 = vmatpush.bf16.msra.mxu1 %v9193_v54  ;;  %v7390_v52 = vor.u32 %v9096_v47, %v7389_v46  ;;  %v9237_v54 = vld [vmem:[%s11541_s1 + $0x2b8] sm:$0xff] }
  0x5d   : > { %4572 = vmatmul.bf16.gmra.mxu3 %v6646_v34  ;;  %4621 = vmatmul.bf16.gmra.mxu0 %v6650_v35  ;;  %v7238_v34 = vor.u32 %v9040_v28, %v7235_v29  ;;  %v7242_v35 = vor.u32 %v9059_v31, %v7241_v30  ;;  %v9252_v28 = vld [vmem:[%s11541_s1 + $0x330] sm:$0xff]  ;;  %v6503_v30 = vld [vmem:[%s9556_s13 + $0xa4] sm:$0xf0]  ;;  %v6509_v31 = vld [vmem:[%s9556_s13 + $0x18] sm:$0xf] }
  0x5e   : > { %4759 = vmatpush.bf16.msra.mxu3 %v9209_v53  ;;  %4808 = vmatpush.bf16.msra.mxu0 %v9217_v55  ;;  %v9245_v55 = vld [vmem:[%s11541_s1 + $0x2f8] sm:$0xff]  ;;  %v8856_v29 = vld [vmem:[%s9556_s13 + $0x14] sm:$0xf] }
  0x60   : > { %4711 = vmatpush.bf16.msra.mxu2 %v9200_v4  ;;  %4662 = vmatpush.bf16.msra.mxu1 %v9192_v6  ;;  %v9132_v4 = vld [vmem:[%s9556_s13 + $0x8b0] sm:$0xf0]  ;;  %v7531_v6 = vld [vmem:[%s9556_s13 + $0x8b4] sm:$0xf0] }
  0x62   : > { %4760 = vmatpush.bf16.msra.mxu3 %v9208_v5  ;;  %4809 = vmatpush.bf16.msra.mxu0 %v9216_v7  ;;  %v9114_v5 = vld [vmem:[%s9556_s13 + $0x824] sm:$0xf]  ;;  %v7537_v7 = vld [vmem:[%s9556_s13 + $0x828] sm:$0xf] }
  0x64   : > { %4712 = vmatpush.bf16.msra.mxu2 %v9199_v20  ;;  %4663 = vmatpush.bf16.msra.mxu1 %v9191_v22  ;;  %v9244_v20 = vld [vmem:[%s11541_s1 + $0x2f0] sm:$0xff] }
  0x66   : > { %4761 = vmatpush.bf16.msra.mxu3 %v9207_v21  ;;  %4810 = vmatpush.bf16.msra.mxu0 %v9215_v23 }
  0x68   : > { %4713 = vmatpush.bf16.msra.mxu2 %v9198_v36  ;;  %4664 = vmatpush.bf16.msra.mxu1 %v9190_v38  ;;  %v8876_v36 = vld [vmem:[%s9556_s13 + $0xb0] sm:$0xf0] }
  0x6a   : > { %4762 = vmatpush.bf16.msra.mxu3 %v9206_v37  ;;  %4811 = vmatpush.bf16.msra.mxu0 %v9214_v39 }
  0x6b   : > { %4479 = vmatmul.bf16.gmra.mxu1 %v6786_v48  ;;  %4528 = vmatmul.bf16.gmra.mxu2 %v6790_v49  ;;  %v7378_v48 = vor.u32 %v9076_v40, %v7375_v41  ;;  %v7382_v49 = vor.u32 %v9095_v43, %v7381_v42  ;;  %v6506_v41 = vor.u32 %v8856_v29, %v6503_v30 }
  0x6c   : > { %4902 = vmatpush.bf16.msrb.mxu2 %v9237_v54  ;;  %4853 = vmatpush.bf16.msrb.mxu1 %v9229_v63 }
  0x6d   : > { %4577 = vmatmul.bf16.gmra.mxu3 %v6794_v50  ;;  %4626 = vmatmul.bf16.gmra.mxu0 %v6798_v51  ;;  %v7386_v51 = vor.u32 %v9077_v44, %v7383_v45 }
  0x6e   : > { %4951 = vmatpush.bf16.msrb.mxu3 %v9245_v55 }
  0x70   : > { %4854 = vmatpush.bf16.msrb.mxu1 %v9228_v27 }
  0x72   : > { %4952 = vmatpush.bf16.msrb.mxu3 %v9244_v20 }
  0x7b   : > { %4484 = vmatmul.bf16.gmra.mxu1 %v6934_v0  ;;  %4533 = vmatmul.bf16.gmra.mxu2 %v6938_v1  ;;  %v9253_v0 = vld [vmem:[%s11541_s1 + $0x338] sm:$0xff] }
  0x7c   : > { %v9113_v1 = vld [vmem:[%s9556_s13 + $0x81c] sm:$0xf]  ;;  %5000 = vmatpush.bf16.msrb.mxu0 %v9253_v0 }
  0x7d   : > { %4582 = vmatmul.bf16.gmra.mxu3 %v6942_v2  ;;  %4631 = vmatmul.bf16.gmra.mxu0 %v6946_v3  ;;  %v7523_v2 = vld [vmem:[%s9556_s13 + $0x8ac] sm:$0xf0]  ;;  %v7529_v3 = vld [vmem:[%s9556_s13 + $0x820] sm:$0xf] }
  0x7e   : > { %v7526_v12 = vor.u32 %v9113_v1, %v7523_v2  ;;  %v7530_v13 = vor.u32 %v9132_v4, %v7529_v3  ;;  %v9227_v1 = vld [vmem:[%s11541_s1 + $0x268] sm:$0xff]  ;;  %v8893_v3 = vld [vmem:[%s9556_s13 + $0x13c] sm:$0xf] }
  0x7f   : > { %v9251_v2 = vld [vmem:[%s11541_s1 + $0x328] sm:$0xff]  ;;  %4855 = vmatpush.bf16.msrb.mxu1 %v9227_v1 }
  0x80   : > { %5001 = vmatpush.bf16.msrb.mxu0 %v9252_v28 }
  0x84   : > { %5002 = vmatpush.bf16.msrb.mxu0 %v9251_v2 }
  0x8b   : > { %4489 = vmatmul.bf16.gmra.mxu1 %v7082_v16  ;;  %4538 = vmatmul.bf16.gmra.mxu2 %v7086_v17  ;;  %v7534_v16 = vor.u32 %v9114_v5, %v7531_v6  ;;  %v7538_v17 = vor.u32 %v9133_v8, %v7537_v7  ;;  %v6657_v5 = vld [vmem:[%s9556_s13 + $0x140] sm:$0xf]  ;;  %v8912_v6 = vld [vmem:[%s9556_s13 + $0x1d0] sm:$0xf0]  ;;  %v8894_v7 = vld [vmem:[%s9556_s13 + $0x144] sm:$0xf] }
  0x8c   : > { %v6659_v8 = vld [vmem:[%s9556_s13 + $0x1d4] sm:$0xf0]  ;;  %v6658_v20 = vor.u32 %v8912_v6, %v6657_v5 }
  0x8d   : > { %4587 = vmatmul.bf16.gmra.mxu3 %v7090_v18  ;;  %4636 = vmatmul.bf16.gmra.mxu0 %v7094_v19  ;;  %v9236_v19 = vld [vmem:[%s11541_s1 + $0x2b0] sm:$0xff] }
  0x8e   : > { %4903 = vmatpush.bf16.msrb.mxu2 %v9236_v19 }
  0x9b   : > { %4494 = vmatmul.bf16.gmra.mxu1 %v7230_v32  ;;  %4543 = vmatmul.bf16.gmra.mxu2 %v7234_v33  ;;  %v8875_v32 = vld [vmem:[%s9556_s13 + $0xa8] sm:$0xf0]  ;;  %v8857_v33 = vld [vmem:[%s9556_s13 + $0x1c] sm:$0xf] }
  0x9c   : > { %v6510_v42 = vor.u32 %v8875_v32, %v6509_v31  ;;  %v9242_v32 = vld [vmem:[%s11541_s1 + $0x2e0] sm:$0xff] }
  0x9d   : > { %4592 = vmatmul.bf16.gmra.mxu3 %v7238_v34  ;;  %4641 = vmatmul.bf16.gmra.mxu0 %v7242_v35  ;;  %v6511_v34 = vld [vmem:[%s9556_s13 + $0xac] sm:$0xf0]  ;;  %v6517_v35 = vld [vmem:[%s9556_s13 + $0x20] sm:$0xf] }
  0x9e   : > { %v6514_v45 = vor.u32 %v8857_v33, %v6511_v34  ;;  %v6518_v46 = vor.u32 %v8876_v36, %v6517_v35 }
  0xa8   : > { %v9825_v50 = vpop.f32.mrf.mxu1 }
  0xaa   : > { %v9827_v53 = vpop.f32.mrf.mxu0 }
  0xab   : > { %4499 = vmatmul.bf16.gmra.mxu1 %v7378_v48  ;;  %4548 = vmatmul.bf16.gmra.mxu2 %v7382_v49  ;;  %v4422_v38 = vadd.f32 %v9838_v56, %v9827_v53  ;;  %v9235_v49 = vld [vmem:[%s11541_s1 + $0x2a8] sm:$0xff] }
  0xac   : > { %4904 = vmatpush.bf16.msrb.mxu2 %v9235_v49  ;;  %v8931_v49 = vld [vmem:[%s9556_s13 + $0x26c] sm:$0xf] }
  0xad   : > { %4597 = vmatmul.bf16.gmra.mxu3 %v7386_v51  ;;  %4646 = vmatmul.bf16.gmra.mxu0 %v7390_v52  ;;  %v9243_v51 = vld [vmem:[%s11541_s1 + $0x2e8] sm:$0xff] }
  0xae   : > { %v4441_v57 = vpop.f32.mrf.mxu2  ;;  %4953 = vmatpush.bf16.msrb.mxu3 %v9243_v51  ;;  %v6807_v51 = vld [vmem:[%s9556_s13 + $0x2fc] sm:$0xf0] }
  0xaf   : > { %v9841_v58 = vadd.f32 %v9838_v56, %v4441_v57  ;;  %v6810_v2 = vor.u32 %v8931_v49, %v6807_v51  ;;  %v9240_v51 = vld [vmem:[%s11541_s1 + $0x2d0] sm:$0xff] }
  0xb0   : > { %v4451_v59 = vpop.f32.mrf.mxu3  ;;  %v9846_v61 = vpop.f32.mrf.mxu1 }
  0xb1   : > { %v9844_v60 = vadd.f32 %v9838_v56, %v4451_v59 }
  0xb2   : > { %v9848_v62 = vpop.f32.mrf.mxu0  ;;  %4954 = vmatpush.bf16.msrb.mxu3 %v9242_v32  ;;  %v6955_v32 = vld [vmem:[%s9556_s13 + $0x424] sm:$0xf0] }
  0xb3   : > { %v4424_v53 = vadd.f32 %v9838_v56, %v9848_v62  ;;  %v6651_v62 = vld [vmem:[%s9556_s13 + $0x1cc] sm:$0xf0] }
  0xb4   : > { %v6654_v19 = vor.u32 %v8893_v3, %v6651_v62 }
  0xb6   : > { %v4443_v9 = vpop.f32.mrf.mxu2 }
  0xb7   : > { %v9865_v10 = vadd.f32 %v9838_v56, %v4443_v9  ;;  %v6665_v9 = vld [vmem:[%s9556_s13 + $0x148] sm:$0xf] }
  0xb8   : > { %v4453_v11 = vpop.f32.mrf.mxu3  ;;  %v9870_v15 = vpop.f32.mrf.mxu1 }
  0xb9   : > { %v9868_v14 = vadd.f32 %v9838_v56, %v4453_v11  ;;  %v8913_v11 = vld [vmem:[%s9556_s13 + $0x1d8] sm:$0xf0] }
  0xba   : > { %v9872_v18 = vpop.f32.mrf.mxu0  ;;  %v6666_v27 = vor.u32 %v8913_v11, %v6665_v9  ;;  %v4434_v11 = vadd.f32 %v9838_v56, %v9846_v61  ;;  %v6947_v61 = vld [vmem:[%s9556_s13 + $0x41c] sm:$0xf0] }
  0xbb   : > { %4504 = vmatmul.bf16.gmra.mxu1 %v7526_v12  ;;  %4553 = vmatmul.bf16.gmra.mxu2 %v7530_v13  ;;  %v4427_v13 = vadd.f32 %v9838_v56, %v9872_v18  ;;  %v9234_v18 = vld [vmem:[%s11541_s1 + $0x2a0] sm:$0xff] }
  0xbc   : > { %4905 = vmatpush.bf16.msrb.mxu2 %v9234_v18  ;;  %v8968_v18 = vld [vmem:[%s9556_s13 + $0x394] sm:$0xf] }
  0xbd   : > { %4602 = vmatmul.bf16.gmra.mxu3 %v7534_v16  ;;  %4651 = vmatmul.bf16.gmra.mxu0 %v7538_v17 }
  0xbe   : > { %v4446_v21 = vpop.f32.mrf.mxu2 }
  0xbf   : > { %v9881_v22 = vadd.f32 %v9838_v56, %v4446_v21 }
  0xc0   : > { %v4456_v23 = vpop.f32.mrf.mxu3  ;;  %v9886_v25 = vpop.f32.mrf.mxu1 }
  0xc1   : > { %v9884_v24 = vadd.f32 %v9838_v56, %v4456_v23  ;;  %v6662_v23 = vor.u32 %v8894_v7, %v6659_v8  ;;  %v9241_v8 = vld [vmem:[%s11541_s1 + $0x2d8] sm:$0xff] }
  0xc2   : > { %v9888_v26 = vpop.f32.mrf.mxu0  ;;  %4955 = vmatpush.bf16.msrb.mxu3 %v9241_v8  ;;  %v7109_v8 = vld [vmem:[%s9556_s13 + $0x4c0] sm:$0xf] }
  0xc3   : > { %v4429_v34 = vadd.f32 %v9838_v56, %v9888_v26  ;;  %v6799_v26 = vld [vmem:[%s9556_s13 + $0x2f4] sm:$0xf0] }
  0xc6   : > { %v4448_v37 = vpop.f32.mrf.mxu2  ;;  %4956 = vmatpush.bf16.msrb.mxu3 %v9240_v51 }
  0xc7   : > { %v9907_v39 = vadd.f32 %v9838_v56, %v4448_v37 }
  0xc8   : > { %v4458_v40 = vpop.f32.mrf.mxu3  ;;  %v4470_v44 = vpop.f32.mrf.mxu1 }
  0xc9   : > { %v9910_v43 = vadd.f32 %v9838_v56, %v4458_v40  ;;  %v4471_v47 = vadd.f32 %v4470_v44, %v4422_v38  ;;  %v9250_v44 = vld [vmem:[%s11541_s1 + $0x320] sm:$0xff] }
  0xca   : > { %v4617_v48 = vpop.f32.mrf.mxu0  ;;  %5003 = vmatpush.bf16.msrb.mxu0 %v9250_v44  ;;  %v6958_v44 = vor.u32 %v8968_v18, %v6955_v32  ;;  %v9239_v18 = vld [vmem:[%s11541_s1 + $0x2c8] sm:$0xff] }
  0xcb   : > { %4665 = vmatmul.bf16.vlgmr.msra.gmra.mxu1 %v6506_v41  ;;  %4714 = vmatmul.bf16.vlgmr.msra.gmra.mxu2 %v6510_v42  ;;  %v9226_v42 = vld [vmem:[%s11541_s1 + $0x260] sm:$0xff] }
  0xcc   : > { %4856 = vmatpush.bf16.msrb.mxu1 %v9226_v42  ;;  %4957 = vmatpush.bf16.msrb.mxu3 %v9239_v18 }
  0xcd   : > { %4763 = vmatmul.bf16.vlgmr.msra.gmra.mxu3 %v6514_v45  ;;  %4812 = vmatmul.bf16.vlgmr.msra.gmra.mxu0 %v6518_v46  ;;  %v8930_v45 = vld [vmem:[%s9556_s13 + $0x264] sm:$0xf] }
  0xce   : > { %v4519_v52 = vpop.f32.mrf.mxu2 }
  0xcf   : > { %v4520_v54 = vadd.f32 %v4519_v52, %v4471_v47  ;;  %v6805_v47 = vld [vmem:[%s9556_s13 + $0x268] sm:$0xf]  ;;  %v6813_v52 = vld [vmem:[%s9556_s13 + $0x270] sm:$0xf] }
  0xd0   : > { %v4568_v55 = vpop.f32.mrf.mxu3  ;;  %v4472_v57 = vpop.f32.mrf.mxu1 }
  0xd1   : > { %v4569_v59 = vadd.f32 %v4568_v55, %v4520_v54  ;;  %v4473_v63 = vadd.f32 %v4472_v57, %v4424_v53  ;;  %v8950_v53 = vld [vmem:[%s9556_s13 + $0x300] sm:$0xf0]  ;;  %v4432_v55 = vadd.f32 %v9838_v56, %v9825_v50  ;;  %v9233_v50 = vld [vmem:[%s11541_s1 + $0x298] sm:$0xff] }
  0xd2   : > { %v4619_v0 = vpop.f32.mrf.mxu0  ;;  %v6814_v3 = vor.u32 %v8950_v53, %v6813_v52  ;;  %4906 = vmatpush.bf16.msrb.mxu2 %v9233_v50  ;;  %v4439_v53 = vadd.f32 %v9838_v56, %v9886_v25  ;;  %v7103_v50 = vld [vmem:[%s9556_s13 + $0x54c] sm:$0xf0] }
  0xd3   : > { %v9928_v4 = vadd.f32 %v4617_v48, %v4569_v59  ;;  %v8949_v48 = vld [vmem:[%s9556_s13 + $0x2f8] sm:$0xf0] }
  0xd6   : > { %v4521_v12 = vpop.f32.mrf.mxu2 }
  0xd7   : > { %v4522_v16 = vadd.f32 %v4521_v12, %v4473_v63  ;;  %v6802_v63 = vor.u32 %v8930_v45, %v6799_v26 }
  0xd8   : > { %v4570_v17 = vpop.f32.mrf.mxu3  ;;  %v4475_v21 = vpop.f32.mrf.mxu1 }
  0xd9   : > { %v4571_v28 = vadd.f32 %v4570_v17, %v4522_v16  ;;  %v4476_v29 = vadd.f32 %v4475_v21, %v4427_v13  ;;  %v9225_v21 = vld [vmem:[%s11541_s1 + $0x258] sm:$0xff] }
  0xda   : > { %v4622_v30 = vpop.f32.mrf.mxu0  ;;  %4857 = vmatpush.bf16.msrb.mxu1 %v9225_v21 }
  0xdb   : > { %4670 = vmatmul.bf16.gmra.mxu1 %v6654_v19  ;;  %4719 = vmatmul.bf16.gmra.mxu2 %v6658_v20  ;;  %v9938_v31 = vadd.f32 %v4619_v0, %v4571_v28  ;;  %v6806_v0 = vor.u32 %v8949_v48, %v6805_v47 }
  0xdd   : > { %4768 = vmatmul.bf16.gmra.mxu3 %v6662_v23  ;;  %4817 = vmatmul.bf16.gmra.mxu0 %v6666_v27  ;;  %v9249_v23 = vld [vmem:[%s11541_s1 + $0x318] sm:$0xff]  ;;  %v8967_v27 = vld [vmem:[%s9556_s13 + $0x38c] sm:$0xf] }
  0xde   : > { %v4524_v33 = vpop.f32.mrf.mxu2  ;;  %5004 = vmatpush.bf16.msrb.mxu0 %v9249_v23 }
  0xdf   : > { %v4525_v35 = vadd.f32 %v4524_v33, %v4476_v29  ;;  %v6953_v29 = vld [vmem:[%s9556_s13 + $0x390] sm:$0xf]  ;;  %v6961_v33 = vld [vmem:[%s9556_s13 + $0x398] sm:$0xf] }
  0xe0   : > { %v4573_v36 = vpop.f32.mrf.mxu3  ;;  %v4477_v37 = vpop.f32.mrf.mxu1 }
  0xe1   : > { %v4574_v38 = vadd.f32 %v4573_v36, %v4525_v35  ;;  %v4478_v40 = vadd.f32 %v4477_v37, %v4429_v34  ;;  %v8987_v34 = vld [vmem:[%s9556_s13 + $0x428] sm:$0xf0]  ;;  %v4437_v36 = vadd.f32 %v9838_v56, %v9870_v15  ;;  %v9232_v15 = vld [vmem:[%s11541_s1 + $0x290] sm:$0xff]  ;;  %v7095_v56 = vld [vmem:[%s9556_s13 + $0x544] sm:$0xf0] }
  0xe2   : > { %v4624_v41 = vpop.f32.mrf.mxu0  ;;  %v6962_v45 = vor.u32 %v8987_v34, %v6961_v33  ;;  %4907 = vmatpush.bf16.msrb.mxu2 %v9232_v15  ;;  %v9061_v15 = vld [vmem:[%s9556_s13 + $0x678] sm:$0xf0] }
  0xe3   : > { %v9956_v46 = vadd.f32 %v4622_v30, %v4574_v38  ;;  %v8986_v30 = vld [vmem:[%s9556_s13 + $0x420] sm:$0xf0] }
  0xe6   : > { %v4526_v54 = vpop.f32.mrf.mxu2 }
  0xe7   : > { %v4527_v57 = vadd.f32 %v4526_v54, %v4478_v40  ;;  %v6950_v40 = vor.u32 %v8967_v27, %v6947_v61 }
  0xe8   : > { %v4575_v59 = vpop.f32.mrf.mxu3  ;;  %v4480_v1 = vpop.f32.mrf.mxu1 }
  0xe9   : > { %v4576_v62 = vadd.f32 %v4575_v59, %v4527_v57  ;;  %v4481_v5 = vadd.f32 %v4480_v1, %v4432_v55  ;;  %v9224_v1 = vld [vmem:[%s11541_s1 + $0x250] sm:$0xff] }
  0xea   : > { %v4627_v6 = vpop.f32.mrf.mxu0  ;;  %4858 = vmatpush.bf16.msrb.mxu1 %v9224_v1 }
  0xeb   : > { %4675 = vmatmul.bf16.gmra.mxu1 %v6802_v63  ;;  %4724 = vmatmul.bf16.gmra.mxu2 %v6806_v0  ;;  %v9966_v7 = vadd.f32 %v4624_v41, %v4576_v62  ;;  %v6954_v41 = vor.u32 %v8986_v30, %v6953_v29  ;;  %v7101_v62 = vld [vmem:[%s9556_s13 + $0x4b8] sm:$0xf]  ;;  %v9231_v30 = vld [vmem:[%s11541_s1 + $0x288] sm:$0xff] }
  0xec   : > { %4908 = vmatpush.bf16.msrb.mxu2 %v9231_v30 }
  0xed   : > { %4773 = vmatmul.bf16.gmra.mxu3 %v6810_v2  ;;  %4822 = vmatmul.bf16.gmra.mxu0 %v6814_v3  ;;  %v9248_v2 = vld [vmem:[%s11541_s1 + $0x310] sm:$0xff] }
  0xee   : > { %v4529_v9 = vpop.f32.mrf.mxu2  ;;  %v9004_v3 = vld [vmem:[%s9556_s13 + $0x4b4] sm:$0xf]  ;;  %5005 = vmatpush.bf16.msrb.mxu0 %v9248_v2 }
  0xef   : > { %v4530_v12 = vadd.f32 %v4529_v9, %v4481_v5  ;;  %v9023_v5 = vld [vmem:[%s9556_s13 + $0x548] sm:$0xf0]  ;;  %v9024_v9 = vld [vmem:[%s9556_s13 + $0x550] sm:$0xf0] }
  0xf0   : > { %v4578_v13 = vpop.f32.mrf.mxu3  ;;  %v4482_v16 = vpop.f32.mrf.mxu1  ;;  %v7110_v21 = vor.u32 %v9024_v9, %v7109_v8 }
  0xf1   : > { %v4579_v17 = vadd.f32 %v4578_v13, %v4530_v12  ;;  %v4483_v19 = vadd.f32 %v4482_v16, %v4434_v11  ;;  %v7098_v16 = vor.u32 %v9004_v3, %v7095_v56  ;;  %v9230_v56 = vld [vmem:[%s11541_s1 + $0x280] sm:$0xff] }
  0xf2   : > { %v4629_v20 = vpop.f32.mrf.mxu0  ;;  %4909 = vmatpush.bf16.msrb.mxu2 %v9230_v56 }
  0xf3   : > { %v9984_v28 = vadd.f32 %v4627_v6, %v4579_v17  ;;  %v9005_v6 = vld [vmem:[%s9556_s13 + $0x4bc] sm:$0xf]  ;;  %v7102_v17 = vor.u32 %v9023_v5, %v7101_v62  ;;  %v9238_v62 = vld [vmem:[%s11541_s1 + $0x2c0] sm:$0xff] }
  0xf4   : > { %4958 = vmatpush.bf16.msrb.mxu3 %v9238_v62 }
  0xf6   : > { %v4531_v35 = vpop.f32.mrf.mxu2 }
  0xf7   : > { %v4532_v37 = vadd.f32 %v4531_v35, %v4483_v19 }
  0xf8   : > { %v4580_v38 = vpop.f32.mrf.mxu3  ;;  %v4485_v42 = vpop.f32.mrf.mxu1 }
  0xf9   : > { %v4581_v26 = vadd.f32 %v4580_v38, %v4532_v37  ;;  %v4486_v47 = vadd.f32 %v4485_v42, %v4437_v36  ;;  %v9223_v38 = vld [vmem:[%s11541_s1 + $0x248] sm:$0xff]  ;;  %v7243_v42 = vld [vmem:[%s9556_s13 + $0x66c] sm:$0xf0] }
  0xfa   : > { %v4632_v48 = vpop.f32.mrf.mxu0  ;;  %4859 = vmatpush.bf16.msrb.mxu1 %v9223_v38 }
  0xfb   : > { %4680 = vmatmul.bf16.gmra.mxu1 %v6950_v40  ;;  %4729 = vmatmul.bf16.gmra.mxu2 %v6954_v41  ;;  %v9994_v49 = vadd.f32 %v4629_v20, %v4581_v26  ;;  %v7106_v20 = vor.u32 %v9005_v6, %v7103_v50  ;;  %v9247_v40 = vld [vmem:[%s11541_s1 + $0x308] sm:$0xff]  ;;  %v9041_v41 = vld [vmem:[%s9556_s13 + $0x5dc] sm:$0xf]  ;;  %v9060_v26 = vld [vmem:[%s9556_s13 + $0x670] sm:$0xf0] }
  0xfc   : > { %5006 = vmatpush.bf16.msrb.mxu0 %v9247_v40 }
  0xfd   : > { %4778 = vmatmul.bf16.gmra.mxu3 %v6958_v44  ;;  %4827 = vmatmul.bf16.gmra.mxu0 %v6962_v45  ;;  %v7249_v45 = vld [vmem:[%s9556_s13 + $0x5e0] sm:$0xf] }
  0xfe   : > { %v4534_v52 = vpop.f32.mrf.mxu2 }
  0xff   : > { %v4535_v54 = vadd.f32 %v4534_v52, %v4486_v47  ;;  %v9042_v47 = vld [vmem:[%s9556_s13 + $0x5e4] sm:$0xf] }
 0x100   : > { %v4583_v55 = vpop.f32.mrf.mxu3  ;;  %v4487_v57 = vpop.f32.mrf.mxu1 }
 0x101   : > { %v4584_v59 = vadd.f32 %v4583_v55, %v4535_v54  ;;  %v4488_v63 = vadd.f32 %v4487_v57, %v4439_v53  ;;  %v7246_v54 = vor.u32 %v9041_v41, %v7243_v42  ;;  %v7250_v55 = vor.u32 %v9060_v26, %v7249_v45  ;;  %v9269_v42 = vld [vmem:[%s11541_s1 + $0x3b8] sm:$0xff] }
 0x102   : > { %v4634_v0 = vpop.f32.mrf.mxu0  ;;  %v9277_v45 = vld [vmem:[%s11541_s1 + $0x3f8] sm:$0xff]  ;;  %5098 = vmatpush.bf16.msra.mxu2 %v9269_v42 }
 0x103   : > { %v10012_v25 = vadd.f32 %v4632_v48, %v4584_v59  ;;  %v7251_v48 = vld [vmem:[%s9556_s13 + $0x674] sm:$0xf0]  ;;  %5147 = vmatpush.bf16.msra.mxu3 %v9277_v45 }
 0x104   : > { %v7254_v59 = vor.u32 %v9042_v47, %v7251_v48 }
 0x106   : > { %v4536_v11 = vpop.f32.mrf.mxu2 }
 0x107   : > { %v4537_v12 = vadd.f32 %v4536_v11, %v4488_v63 }
 0x108   : > { %v4585_v13 = vpop.f32.mrf.mxu3  ;;  %v4490_v19 = vpop.f32.mrf.mxu1 }
 0x109   : > { %v4586_v23 = vadd.f32 %v4585_v13, %v4537_v12  ;;  %v4491_v27 = vadd.f32 %v4490_v19, %v9841_v58  ;;  %v9222_v12 = vld [vmem:[%s11541_s1 + $0x240] sm:$0xff] }
 0x10a   : > { %v4637_v61 = vpop.f32.mrf.mxu0  ;;  %v9246_v13 = vld [vmem:[%s11541_s1 + $0x300] sm:$0xff]  ;;  %4860 = vmatpush.bf16.msrb.mxu1 %v9222_v12 }
 0x10b   : > { %4685 = vmatmul.bf16.gmra.mxu1 %v7098_v16  ;;  %4734 = vmatmul.bf16.gmra.mxu2 %v7102_v17  ;;  %v10021_v29 = vadd.f32 %v4634_v0, %v4586_v23  ;;  %v9078_v16 = vld [vmem:[%s9556_s13 + $0x704] sm:$0xf]  ;;  %v7391_v17 = vld [vmem:[%s9556_s13 + $0x794] sm:$0xf0]  ;;  %v9079_v23 = vld [vmem:[%s9556_s13 + $0x70c] sm:$0xf] }
 0x10c   : > { %5007 = vmatpush.bf16.msrb.mxu0 %v9246_v13 }
 0x10d   : > { %4783 = vmatmul.bf16.gmra.mxu3 %v7106_v20  ;;  %4832 = vmatmul.bf16.gmra.mxu0 %v7110_v21  ;;  %v7397_v20 = vld [vmem:[%s9556_s13 + $0x708] sm:$0xf]  ;;  %v9097_v21 = vld [vmem:[%s9556_s13 + $0x798] sm:$0xf0] }
 0x10e   : > { %v4539_v32 = vpop.f32.mrf.mxu2 }
 0x10f   : > { %v4540_v58 = vadd.f32 %v4539_v32, %v4491_v27  ;;  %v7399_v27 = vld [vmem:[%s9556_s13 + $0x79c] sm:$0xf0] }
 0x110   : > { %v4588_v33 = vpop.f32.mrf.mxu3  ;;  %v4492_v34 = vpop.f32.mrf.mxu1 }
 0x111   : > { %v4589_v35 = vadd.f32 %v4588_v33, %v4540_v58  ;;  %v4493_v36 = vadd.f32 %v4492_v34, %v9865_v10  ;;  %v7257_v10 = vld [vmem:[%s9556_s13 + $0x5e8] sm:$0xf]  ;;  %v7394_v58 = vor.u32 %v9078_v16, %v7391_v17  ;;  %v7398_v33 = vor.u32 %v9097_v21, %v7397_v20  ;;  %v9268_v17 = vld [vmem:[%s11541_s1 + $0x3b0] sm:$0xff] }
 0x112   : > { %v4639_v37 = vpop.f32.mrf.mxu0  ;;  %v7258_v63 = vor.u32 %v9061_v15, %v7257_v10  ;;  %v9276_v20 = vld [vmem:[%s11541_s1 + $0x3f0] sm:$0xff]  ;;  %5099 = vmatpush.bf16.msra.mxu2 %v9268_v17 }
 0x113   : > { %v10038_v44 = vadd.f32 %v4637_v61, %v4589_v35  ;;  %v9098_v61 = vld [vmem:[%s9556_s13 + $0x7a0] sm:$0xf0]  ;;  %v7402_v35 = vor.u32 %v9079_v23, %v7399_v27  ;;  %5148 = vmatpush.bf16.msra.mxu3 %v9276_v20 }
 0x116   : > { %v4541_v51 = vpop.f32.mrf.mxu2 }
 0x117   : > { %v4542_v52 = vadd.f32 %v4541_v51, %v4493_v36 }
 0x118   : > { %v4590_v53 = vpop.f32.mrf.mxu3  ;;  %v4495_v57 = vpop.f32.mrf.mxu1 }
 0x119   : > { %v4591_v0 = vadd.f32 %v4590_v53, %v4542_v52  ;;  %v4496_v1 = vadd.f32 %v4495_v57, %v9881_v22  ;;  %v9261_v52 = vld [vmem:[%s11541_s1 + $0x378] sm:$0xff] }
 0x11a   : > { %v4642_v2 = vpop.f32.mrf.mxu0  ;;  %v9285_v53 = vld [vmem:[%s11541_s1 + $0x438] sm:$0xff]  ;;  %5049 = vmatpush.bf16.msra.mxu1 %v9261_v52 }
 0x11b   : > { %4690 = vmatmul.bf16.gmra.mxu1 %v7246_v54  ;;  %4739 = vmatmul.bf16.gmra.mxu2 %v7250_v55  ;;  %v10047_v3 = vadd.f32 %v4639_v37, %v4591_v0  ;;  %v9115_v54 = vld [vmem:[%s9556_s13 + $0x82c] sm:$0xf]  ;;  %v7539_v55 = vld [vmem:[%s9556_s13 + $0x8bc] sm:$0xf0]  ;;  %v9116_v0 = vld [vmem:[%s9556_s13 + $0x834] sm:$0xf] }
 0x11c   : > { %5196 = vmatpush.bf16.msra.mxu0 %v9285_v53 }
 0x11d   : > { %4788 = vmatmul.bf16.gmra.mxu3 %v7254_v59  ;;  %4837 = vmatmul.bf16.gmra.mxu0 %v7258_v63  ;;  %v7545_v59 = vld [vmem:[%s9556_s13 + $0x830] sm:$0xf]  ;;  %v9134_v63 = vld [vmem:[%s9556_s13 + $0x8c0] sm:$0xf0] }
 0x11e   : > { %v4544_v5 = vpop.f32.mrf.mxu2 }
 0x11f   : > { %v4545_v22 = vadd.f32 %v4544_v5, %v4496_v1  ;;  %v7547_v1 = vld [vmem:[%s9556_s13 + $0x8c4] sm:$0xf0] }
 0x120   : > { %v4593_v6 = vpop.f32.mrf.mxu3  ;;  %v4497_v50 = vpop.f32.mrf.mxu1 }
 0x121   : > { %v4594_v8 = vadd.f32 %v4593_v6, %v4545_v22  ;;  %v4498_v9 = vadd.f32 %v4497_v50, %v9907_v39  ;;  %v7405_v39 = vld [vmem:[%s9556_s13 + $0x710] sm:$0xf]  ;;  %v7542_v22 = vor.u32 %v9115_v54, %v7539_v55  ;;  %v7546_v6 = vor.u32 %v9134_v63, %v7545_v59  ;;  %v9267_v55 = vld [vmem:[%s11541_s1 + $0x3a8] sm:$0xff] }
 0x122   : > { %v4644_v11 = vpop.f32.mrf.mxu0  ;;  %v7406_v36 = vor.u32 %v9098_v61, %v7405_v39  ;;  %v9275_v59 = vld [vmem:[%s11541_s1 + $0x3e8] sm:$0xff]  ;;  %5100 = vmatpush.bf16.msra.mxu2 %v9267_v55 }
 0x123   : > { %v10064_v19 = vadd.f32 %v4642_v2, %v4594_v8  ;;  %v9135_v2 = vld [vmem:[%s9556_s13 + $0x8c8] sm:$0xf0]  ;;  %v7550_v8 = vor.u32 %v9116_v0, %v7547_v1  ;;  %5149 = vmatpush.bf16.msra.mxu3 %v9275_v59 }
 0x126   : > { %v4546_v30 = vpop.f32.mrf.mxu2 }
 0x127   : > { %v4547_v18 = vadd.f32 %v4546_v30, %v4498_v9 }
 0x128   : > { %v4595_v32 = vpop.f32.mrf.mxu3  ;;  %v4500_v34 = vpop.f32.mrf.mxu1 }
 0x129   : > { %v4596_v37 = vadd.f32 %v4595_v32, %v4547_v18  ;;  %v4501_v38 = vadd.f32 %v4500_v34, %v9844_v60  ;;  %v9260_v18 = vld [vmem:[%s11541_s1 + $0x370] sm:$0xff] }
 0x12a   : > { %v4647_v40 = vpop.f32.mrf.mxu0  ;;  %v9284_v32 = vld [vmem:[%s11541_s1 + $0x430] sm:$0xff]  ;;  %5050 = vmatpush.bf16.msra.mxu1 %v9260_v18 }
 0x12b   : > { %4695 = vmatmul.bf16.gmra.mxu1 %v7394_v58  ;;  %4744 = vmatmul.bf16.gmra.mxu2 %v7398_v33  ;;  %v10073_v41 = vadd.f32 %v4644_v11, %v4596_v37  ;;  %v8858_v58 = vld [vmem:[%s9556_s13 + $0x24] sm:$0xf]  ;;  %v6519_v33 = vld [vmem:[%s9556_s13 + $0xb4] sm:$0xf0]  ;;  %v8859_v37 = vld [vmem:[%s9556_s13 + $0x2c] sm:$0xf] }
 0x12c   : > { %5197 = vmatpush.bf16.msra.mxu0 %v9284_v32 }
 0x12d   : > { %4793 = vmatmul.bf16.gmra.mxu3 %v7402_v35  ;;  %4842 = vmatmul.bf16.gmra.mxu0 %v7406_v36  ;;  %v6525_v35 = vld [vmem:[%s9556_s13 + $0x28] sm:$0xf]  ;;  %v8877_v36 = vld [vmem:[%s9556_s13 + $0xb8] sm:$0xf0] }
 0x12e   : > { %v4549_v26 = vpop.f32.mrf.mxu2 }
 0x12f   : > { %v4550_v60 = vadd.f32 %v4549_v26, %v4501_v38  ;;  %v6527_v38 = vld [vmem:[%s9556_s13 + $0xbc] sm:$0xf0] }
 0x130   : > { %v4598_v47 = vpop.f32.mrf.mxu3  ;;  %v4502_v48 = vpop.f32.mrf.mxu1 }
 0x131   : > { %v4599_v10 = vadd.f32 %v4598_v47, %v4550_v60  ;;  %v4503_v15 = vadd.f32 %v4502_v48, %v9868_v14  ;;  %v7553_v14 = vld [vmem:[%s9556_s13 + $0x838] sm:$0xf]  ;;  %v6522_v60 = vor.u32 %v8858_v58, %v6519_v33  ;;  %v6526_v47 = vor.u32 %v8877_v36, %v6525_v35  ;;  %v9266_v33 = vld [vmem:[%s11541_s1 + $0x3a0] sm:$0xff] }
 0x132   : > { %v4649_v51 = vpop.f32.mrf.mxu0  ;;  %v7554_v9 = vor.u32 %v9135_v2, %v7553_v14  ;;  %v9274_v35 = vld [vmem:[%s11541_s1 + $0x3e0] sm:$0xff]  ;;  %5101 = vmatpush.bf16.msra.mxu2 %v9266_v33 }
 0x133   : > { %v10090_v57 = vadd.f32 %v4647_v40, %v4599_v10  ;;  %v8878_v40 = vld [vmem:[%s9556_s13 + $0xc0] sm:$0xf0]  ;;  %v6530_v10 = vor.u32 %v8859_v37, %v6527_v38  ;;  %5150 = vmatpush.bf16.msra.mxu3 %v9274_v35 }
 0x136   : > { %v4551_v56 = vpop.f32.mrf.mxu2 }
 0x137   : > { %v4552_v62 = vadd.f32 %v4551_v56, %v4503_v15 }
 0x138   : > { %v4600_v5 = vpop.f32.mrf.mxu3  ;;  %v4505_v50 = vpop.f32.mrf.mxu1 }
 0x139   : > { %v4601_v11 = vadd.f32 %v4600_v5, %v4552_v62  ;;  %v4506_v12 = vadd.f32 %v4505_v50, %v9884_v24  ;;  %v9259_v62 = vld [vmem:[%s11541_s1 + $0x368] sm:$0xff] }
 0x13a   : > { %v4652_v13 = vpop.f32.mrf.mxu0  ;;  %v9283_v5 = vld [vmem:[%s11541_s1 + $0x428] sm:$0xff]  ;;  %5051 = vmatpush.bf16.msra.mxu1 %v9259_v62 }
 0x13b   : > { %4700 = vmatmul.bf16.gmra.mxu1 %v7542_v22  ;;  %4749 = vmatmul.bf16.gmra.mxu2 %v7546_v6  ;;  %v10099_v16 = vadd.f32 %v4649_v51, %v4601_v11  ;;  %v8895_v22 = vld [vmem:[%s9556_s13 + $0x14c] sm:$0xf]  ;;  %v6667_v6 = vld [vmem:[%s9556_s13 + $0x1dc] sm:$0xf0]  ;;  %v8896_v11 = vld [vmem:[%s9556_s13 + $0x154] sm:$0xf] }
 0x13c   : > { %5198 = vmatpush.bf16.msra.mxu0 %v9283_v5 }
 0x13d   : > { %4798 = vmatmul.bf16.gmra.mxu3 %v7550_v8  ;;  %4847 = vmatmul.bf16.gmra.mxu0 %v7554_v9  ;;  %v6673_v8 = vld [vmem:[%s9556_s13 + $0x150] sm:$0xf]  ;;  %v8914_v9 = vld [vmem:[%s9556_s13 + $0x1e0] sm:$0xf0] }
 0x13e   : > { %v4554_v21 = vpop.f32.mrf.mxu2 }
 0x13f   : > { %v4555_v24 = vadd.f32 %v4554_v21, %v4506_v12  ;;  %v6675_v12 = vld [vmem:[%s9556_s13 + $0x1e4] sm:$0xf0] }
 0x140   : > { %v4603_v23 = vpop.f32.mrf.mxu3  ;;  %v4507_v27 = vpop.f32.mrf.mxu1 }
 0x141   : > { %v4604_v39 = vadd.f32 %v4603_v23, %v4555_v24  ;;  %v4508_v61 = vadd.f32 %v4507_v27, %v9910_v43  ;;  %v6533_v43 = vld [vmem:[%s9556_s13 + $0x30] sm:$0xf]  ;;  %v6670_v24 = vor.u32 %v8895_v22, %v6667_v6  ;;  %v6674_v23 = vor.u32 %v8914_v9, %v6673_v8  ;;  %v9265_v6 = vld [vmem:[%s11541_s1 + $0x398] sm:$0xff] }
 0x142   : > { %v4654_v30 = vpop.f32.mrf.mxu0  ;;  %v6534_v15 = vor.u32 %v8878_v40, %v6533_v43  ;;  %v9273_v8 = vld [vmem:[%s11541_s1 + $0x3d8] sm:$0xff]  ;;  %5102 = vmatpush.bf16.msra.mxu2 %v9265_v6 }
 0x143   : > { %v10116_v34 = vadd.f32 %v4652_v13, %v4604_v39  ;;  %v8915_v13 = vld [vmem:[%s9556_s13 + $0x1e8] sm:$0xf0]  ;;  %v6678_v39 = vor.u32 %v8896_v11, %v6675_v12  ;;  %5151 = vmatpush.bf16.msra.mxu3 %v9273_v8 }
 0x146   : > { %v4556_v42 = vpop.f32.mrf.mxu2 }
 0x147   : > { %v4557_v45 = vadd.f32 %v4556_v42, %v4508_v61 }
 0x148   : > { %v4605_v26 = vpop.f32.mrf.mxu3  ;;  %v4666_v48 = vpop.f32.mrf.mxu1 }
 0x149   : > { %v4606_v51 = vadd.f32 %v4605_v26, %v4557_v45  ;;  %v4667_v52 = vadd.f32 %v4666_v48, %v9928_v4  ;;  %v9258_v45 = vld [vmem:[%s11541_s1 + $0x360] sm:$0xff] }
 0x14a   : > { %v4813_v53 = vpop.f32.mrf.mxu0  ;;  %v9282_v26 = vld [vmem:[%s11541_s1 + $0x420] sm:$0xff]  ;;  %5052 = vmatpush.bf16.msra.mxu1 %v9258_v45 }
 0x14b   : > { %4861 = vmatmul.bf16.vlgmr.msrb.gmra.mxu1 %v6522_v60  ;;  %4910 = vmatmul.bf16.vlgmr.msrb.gmra.mxu2 %v6526_v47  ;;  %v10125_v54 = vadd.f32 %v4654_v30, %v4606_v51  ;;  %v8932_v60 = vld [vmem:[%s9556_s13 + $0x274] sm:$0xf]  ;;  %v6815_v47 = vld [vmem:[%s9556_s13 + $0x304] sm:$0xf0]  ;;  %v8933_v51 = vld [vmem:[%s9556_s13 + $0x27c] sm:$0xf] }
 0x14c   : > { %5199 = vmatpush.bf16.msra.mxu0 %v9282_v26 }
 0x14d   : > { %4959 = vmatmul.bf16.vlgmr.msrb.gmra.mxu3 %v6530_v10  ;;  %5008 = vmatmul.bf16.vlgmr.msrb.gmra.mxu0 %v6534_v15  ;;  %v6821_v10 = vld [vmem:[%s9556_s13 + $0x278] sm:$0xf]  ;;  %v8951_v15 = vld [vmem:[%s9556_s13 + $0x308] sm:$0xf0] }
 0x14e   : > { %v4715_v63 = vpop.f32.mrf.mxu2 }
 0x14f   : > { %v4716_v4 = vadd.f32 %v4715_v63, %v4667_v52  ;;  %v6823_v52 = vld [vmem:[%s9556_s13 + $0x30c] sm:$0xf0] }
 0x150   : > { %v4764_v0 = vpop.f32.mrf.mxu3  ;;  %v4668_v1 = vpop.f32.mrf.mxu1 }
 0x151   : > { %v4765_v14 = vadd.f32 %v4764_v0, %v4716_v4  ;;  %v4669_v2 = vadd.f32 %v4668_v1, %v9938_v31  ;;  %v6681_v31 = vld [vmem:[%s9556_s13 + $0x158] sm:$0xf]  ;;  %v6818_v4 = vor.u32 %v8932_v60, %v6815_v47  ;;  %v6822_v0 = vor.u32 %v8951_v15, %v6821_v10  ;;  %v9264_v47 = vld [vmem:[%s11541_s1 + $0x390] sm:$0xff] }
 0x152   : > { %v4815_v56 = vpop.f32.mrf.mxu0  ;;  %v6682_v61 = vor.u32 %v8915_v13, %v6681_v31  ;;  %v9272_v10 = vld [vmem:[%s11541_s1 + $0x3d0] sm:$0xff]  ;;  %5103 = vmatpush.bf16.msra.mxu2 %v9264_v47 }
 0x153   : > { %v10142_v50 = vadd.f32 %v4813_v53, %v4765_v14  ;;  %v8952_v53 = vld [vmem:[%s9556_s13 + $0x310] sm:$0xf0]  ;;  %v6826_v14 = vor.u32 %v8933_v51, %v6823_v52  ;;  %5152 = vmatpush.bf16.msra.mxu3 %v9272_v10 }
 0x156   : > { %v4717_v17 = vpop.f32.mrf.mxu2 }
 0x157   : > { %v4718_v20 = vadd.f32 %v4717_v17, %v4669_v2 }
 0x158   : > { %v4766_v21 = vpop.f32.mrf.mxu3  ;;  %v4671_v27 = vpop.f32.mrf.mxu1 }
 0x159   : > { %v4767_v30 = vadd.f32 %v4766_v21, %v4718_v20  ;;  %v4672_v18 = vadd.f32 %v4671_v27, %v9956_v46  ;;  %v9257_v20 = vld [vmem:[%s11541_s1 + $0x358] sm:$0xff] }
 0x15a   : > { %v4818_v32 = vpop.f32.mrf.mxu0  ;;  %v9281_v21 = vld [vmem:[%s11541_s1 + $0x418] sm:$0xff]  ;;  %5053 = vmatpush.bf16.msra.mxu1 %v9257_v20 }
 0x15b   : > { %4866 = vmatmul.bf16.gmra.mxu1 %v6670_v24  ;;  %4915 = vmatmul.bf16.gmra.mxu2 %v6674_v23  ;;  %v10151_v58 = vadd.f32 %v4815_v56, %v4767_v30  ;;  %v8969_v24 = vld [vmem:[%s9556_s13 + $0x39c] sm:$0xf]  ;;  %v6963_v23 = vld [vmem:[%s9556_s13 + $0x42c] sm:$0xf0]  ;;  %v8970_v30 = vld [vmem:[%s9556_s13 + $0x3a4] sm:$0xf] }
 0x15c   : > { %5200 = vmatpush.bf16.msra.mxu0 %v9281_v21 }
 0x15d   : > { %4964 = vmatmul.bf16.gmra.mxu3 %v6678_v39  ;;  %5013 = vmatmul.bf16.gmra.mxu0 %v6682_v61  ;;  %v6969_v39 = vld [vmem:[%s9556_s13 + $0x3a0] sm:$0xf]  ;;  %v8988_v61 = vld [vmem:[%s9556_s13 + $0x430] sm:$0xf0] }
 0x15e   : > { %v4720_v36 = vpop.f32.mrf.mxu2 }
 0x15f   : > { %v4721_v46 = vadd.f32 %v4720_v36, %v4672_v18  ;;  %v6971_v18 = vld [vmem:[%s9556_s13 + $0x434] sm:$0xf0] }
 0x160   : > { %v4769_v37 = vpop.f32.mrf.mxu3  ;;  %v4673_v38 = vpop.f32.mrf.mxu1 }
 0x161   : > { %v4770_v43 = vadd.f32 %v4769_v37, %v4721_v46  ;;  %v4674_v40 = vadd.f32 %v4673_v38, %v9966_v7  ;;  %v6829_v7 = vld [vmem:[%s9556_s13 + $0x280] sm:$0xf]  ;;  %v6966_v46 = vor.u32 %v8969_v24, %v6963_v23  ;;  %v6970_v37 = vor.u32 %v8988_v61, %v6969_v39  ;;  %v9263_v23 = vld [vmem:[%s11541_s1 + $0x388] sm:$0xff] }
 0x162   : > { %v4820_v42 = vpop.f32.mrf.mxu0  ;;  %v6830_v2 = vor.u32 %v8952_v53, %v6829_v7  ;;  %v9271_v39 = vld [vmem:[%s11541_s1 + $0x3c8] sm:$0xff]  ;;  %5104 = vmatpush.bf16.msra.mxu2 %v9263_v23 }
 0x163   : > { %v10168_v48 = vadd.f32 %v4818_v32, %v4770_v43  ;;  %v8989_v32 = vld [vmem:[%s9556_s13 + $0x438] sm:$0xf0]  ;;  %v6974_v43 = vor.u32 %v8970_v30, %v6971_v18  ;;  %5153 = vmatpush.bf16.msra.mxu3 %v9271_v39 }
 0x166   : > { %v4722_v55 = vpop.f32.mrf.mxu2 }
 0x167   : > { %v4723_v59 = vadd.f32 %v4722_v55, %v4674_v40 }
 0x168   : > { %v4771_v63 = vpop.f32.mrf.mxu3  ;;  %v4676_v1 = vpop.f32.mrf.mxu1 }
 0x169   : > { %v4772_v56 = vadd.f32 %v4771_v63, %v4723_v59  ;;  %v4677_v62 = vadd.f32 %v4676_v1, %v9984_v28  ;;  %v9256_v59 = vld [vmem:[%s11541_s1 + $0x350] sm:$0xff] }
 0x16a   : > { %v4823_v5 = vpop.f32.mrf.mxu0  ;;  %v9280_v63 = vld [vmem:[%s11541_s1 + $0x410] sm:$0xff]  ;;  %5054 = vmatpush.bf16.msra.mxu1 %v9256_v59 }
 0x16b   : > { %4871 = vmatmul.bf16.gmra.mxu1 %v6818_v4  ;;  %4920 = vmatmul.bf16.gmra.mxu2 %v6822_v0  ;;  %v10177_v22 = vadd.f32 %v4820_v42, %v4772_v56  ;;  %v9006_v4 = vld [vmem:[%s9556_s13 + $0x4c4] sm:$0xf]  ;;  %v7111_v0 = vld [vmem:[%s9556_s13 + $0x554] sm:$0xf0]  ;;  %v9007_v56 = vld [vmem:[%s9556_s13 + $0x4cc] sm:$0xf] }
 0x16c   : > { %5201 = vmatpush.bf16.msra.mxu0 %v9280_v63 }
 0x16d   : > { %4969 = vmatmul.bf16.gmra.mxu3 %v6826_v14  ;;  %5018 = vmatmul.bf16.gmra.mxu0 %v6830_v2  ;;  %v7117_v14 = vld [vmem:[%s9556_s13 + $0x4c8] sm:$0xf]  ;;  %v9025_v2 = vld [vmem:[%s9556_s13 + $0x558] sm:$0xf0] }
 0x16e   : > { %v4725_v9 = vpop.f32.mrf.mxu2 }
 0x16f   : > { %v4726_v28 = vadd.f32 %v4725_v9, %v4677_v62  ;;  %v7119_v62 = vld [vmem:[%s9556_s13 + $0x55c] sm:$0xf0] }
 0x170   : > { %v4774_v11 = vpop.f32.mrf.mxu3  ;;  %v4678_v12 = vpop.f32.mrf.mxu1 }
 0x171   : > { %v4775_v31 = vadd.f32 %v4774_v11, %v4726_v28  ;;  %v4679_v13 = vadd.f32 %v4678_v12, %v9994_v49  ;;  %v6977_v49 = vld [vmem:[%s9556_s13 + $0x3a8] sm:$0xf]  ;;  %v7114_v28 = vor.u32 %v9006_v4, %v7111_v0  ;;  %v7118_v11 = vor.u32 %v9025_v2, %v7117_v14  ;;  %v9262_v0 = vld [vmem:[%s11541_s1 + $0x380] sm:$0xff] }
 0x172   : > { %v4825_v17 = vpop.f32.mrf.mxu0  ;;  %v6978_v40 = vor.u32 %v8989_v32, %v6977_v49  ;;  %v9270_v14 = vld [vmem:[%s11541_s1 + $0x3c0] sm:$0xff]  ;;  %5105 = vmatpush.bf16.msra.mxu2 %v9262_v0 }
 0x173   : > { %v10194_v27 = vadd.f32 %v4823_v5, %v4775_v31  ;;  %v9026_v5 = vld [vmem:[%s9556_s13 + $0x560] sm:$0xf0]  ;;  %v7122_v31 = vor.u32 %v9007_v56, %v7119_v62  ;;  %5154 = vmatpush.bf16.msra.mxu3 %v9270_v14 }
 0x176   : > { %v4727_v33 = vpop.f32.mrf.mxu2 }
 0x177   : > { %v4728_v35 = vadd.f32 %v4727_v33, %v4679_v13 }
 0x178   : > { %v4776_v36 = vpop.f32.mrf.mxu3  ;;  %v4681_v38 = vpop.f32.mrf.mxu1 }
 0x179   : > { %v4777_v42 = vadd.f32 %v4776_v36, %v4728_v35  ;;  %v4682_v45 = vadd.f32 %v4681_v38, %v10012_v25  ;;  %v9255_v35 = vld [vmem:[%s11541_s1 + $0x348] sm:$0xff] }
 0x17a   : > { %v4828_v26 = vpop.f32.mrf.mxu0  ;;  %v9279_v36 = vld [vmem:[%s11541_s1 + $0x408] sm:$0xff]  ;;  %5055 = vmatpush.bf16.msra.mxu1 %v9255_v35 }
 0x17b   : > { %4876 = vmatmul.bf16.gmra.mxu1 %v6966_v46  ;;  %4925 = vmatmul.bf16.gmra.mxu2 %v6970_v37  ;;  %v10203_v60 = vadd.f32 %v4825_v17, %v4777_v42  ;;  %v9043_v46 = vld [vmem:[%s9556_s13 + $0x5ec] sm:$0xf]  ;;  %v7259_v37 = vld [vmem:[%s9556_s13 + $0x67c] sm:$0xf0]  ;;  %v9044_v42 = vld [vmem:[%s9556_s13 + $0x5f4] sm:$0xf] }
 0x17c   : > { %5202 = vmatpush.bf16.msra.mxu0 %v9279_v36 }
 0x17d   : > { %4974 = vmatmul.bf16.gmra.mxu3 %v6974_v43  ;;  %5023 = vmatmul.bf16.gmra.mxu0 %v6978_v40  ;;  %v7265_v43 = vld [vmem:[%s9556_s13 + $0x5f0] sm:$0xf]  ;;  %v9062_v40 = vld [vmem:[%s9556_s13 + $0x680] sm:$0xf0] }
 0x17e   : > { %v4730_v15 = vpop.f32.mrf.mxu2 }
 0x17f   : > { %v4731_v25 = vadd.f32 %v4730_v15, %v4682_v45  ;;  %v7267_v45 = vld [vmem:[%s9556_s13 + $0x684] sm:$0xf0] }
 0x180   : > { %v4779_v51 = vpop.f32.mrf.mxu3  ;;  %v4683_v52 = vpop.f32.mrf.mxu1 }
 0x181   : > { %v4780_v7 = vadd.f32 %v4779_v51, %v4731_v25  ;;  %v4684_v53 = vadd.f32 %v4683_v52, %v10021_v29  ;;  %v7125_v29 = vld [vmem:[%s9556_s13 + $0x4d0] sm:$0xf]  ;;  %v7262_v25 = vor.u32 %v9043_v46, %v7259_v37  ;;  %v7266_v51 = vor.u32 %v9062_v40, %v7265_v43  ;;  %v9301_v37 = vld [vmem:[%s11541_s1 + $0x4b8] sm:$0xff] }
 0x182   : > { %v4830_v55 = vpop.f32.mrf.mxu0  ;;  %v7126_v13 = vor.u32 %v9026_v5, %v7125_v29  ;;  %v9309_v43 = vld [vmem:[%s11541_s1 + $0x4f8] sm:$0xff]  ;;  %5294 = vmatpush.bf16.msrb.mxu2 %v9301_v37 }
 0x183   : > { %v10220_v1 = vadd.f32 %v4828_v26, %v4780_v7  ;;  %v9063_v26 = vld [vmem:[%s9556_s13 + $0x688] sm:$0xf0]  ;;  %v7270_v7 = vor.u32 %v9044_v42, %v7267_v45  ;;  %5343 = vmatpush.bf16.msrb.mxu3 %v9309_v43 }
 0x186   : > { %v4732_v6 = vpop.f32.mrf.mxu2 }
 0x187   : > { %v4733_v8 = vadd.f32 %v4732_v6, %v4684_v53 }
 0x188   : > { %v4781_v9 = vpop.f32.mrf.mxu3  ;;  %v4686_v12 = vpop.f32.mrf.mxu1 }
 0x189   : > { %v4782_v17 = vadd.f32 %v4781_v9, %v4733_v8  ;;  %v4687_v20 = vadd.f32 %v4686_v12, %v10038_v44  ;;  %v9254_v8 = vld [vmem:[%s11541_s1 + $0x340] sm:$0xff] }
 0x18a   : > { %v4833_v21 = vpop.f32.mrf.mxu0  ;;  %v9278_v9 = vld [vmem:[%s11541_s1 + $0x400] sm:$0xff]  ;;  %5056 = vmatpush.bf16.msra.mxu1 %v9254_v8 }
 0x18b   : > { %4881 = vmatmul.bf16.gmra.mxu1 %v7114_v28  ;;  %4930 = vmatmul.bf16.gmra.mxu2 %v7118_v11  ;;  %v10229_v24 = vadd.f32 %v4830_v55, %v4782_v17  ;;  %v9080_v28 = vld [vmem:[%s9556_s13 + $0x714] sm:$0xf]  ;;  %v7407_v11 = vld [vmem:[%s9556_s13 + $0x7a4] sm:$0xf0]  ;;  %v9081_v17 = vld [vmem:[%s9556_s13 + $0x71c] sm:$0xf] }
 0x18c   : > { %5203 = vmatpush.bf16.msra.mxu0 %v9278_v9 }
 0x18d   : > { %4979 = vmatmul.bf16.gmra.mxu3 %v7122_v31  ;;  %5028 = vmatmul.bf16.gmra.mxu0 %v7126_v13  ;;  %v7413_v31 = vld [vmem:[%s9556_s13 + $0x718] sm:$0xf]  ;;  %v9099_v13 = vld [vmem:[%s9556_s13 + $0x7a8] sm:$0xf0] }
 0x18e   : > { %v4735_v61 = vpop.f32.mrf.mxu2 }
 0x18f   : > { %v4736_v44 = vadd.f32 %v4735_v61, %v4687_v20  ;;  %v7415_v20 = vld [vmem:[%s9556_s13 + $0x7ac] sm:$0xf0] }
 0x190   : > { %v4784_v30 = vpop.f32.mrf.mxu3  ;;  %v4688_v18 = vpop.f32.mrf.mxu1 }
 0x191   : > { %v4785_v49 = vadd.f32 %v4784_v30, %v4736_v44  ;;  %v4689_v32 = vadd.f32 %v4688_v18, %v10047_v3  ;;  %v7273_v3 = vld [vmem:[%s9556_s13 + $0x5f8] sm:$0xf]  ;;  %v7410_v44 = vor.u32 %v9080_v28, %v7407_v11  ;;  %v7414_v30 = vor.u32 %v9099_v13, %v7413_v31  ;;  %v9300_v11 = vld [vmem:[%s11541_s1 + $0x4b0] sm:$0xff] }
 0x192   : > { %v4835_v33 = vpop.f32.mrf.mxu0  ;;  %v7274_v53 = vor.u32 %v9063_v26, %v7273_v3  ;;  %v9308_v31 = vld [vmem:[%s11541_s1 + $0x4f0] sm:$0xff]  ;;  %5295 = vmatpush.bf16.msrb.mxu2 %v9300_v11 }
 0x193   : > { %v10246_v38 = vadd.f32 %v4833_v21, %v4785_v49  ;;  %v9100_v21 = vld [vmem:[%s9556_s13 + $0x7b0] sm:$0xf0]  ;;  %v7418_v49 = vor.u32 %v9081_v17, %v7415_v20  ;;  %5344 = vmatpush.bf16.msrb.mxu3 %v9308_v31 }
 0x196   : > { %v4737_v47 = vpop.f32.mrf.mxu2 }
 0x197   : > { %v4738_v10 = vadd.f32 %v4737_v47, %v4689_v32 }
 0x198   : > { %v4786_v15 = vpop.f32.mrf.mxu3  ;;  %v4691_v52 = vpop.f32.mrf.mxu1 }
 0x199   : > { %v4787_v55 = vadd.f32 %v4786_v15, %v4738_v10  ;;  %v4692_v59 = vadd.f32 %v4691_v52, %v10064_v19  ;;  %v9293_v10 = vld [vmem:[%s11541_s1 + $0x478] sm:$0xff] }
 0x19a   : > { %v4838_v63 = vpop.f32.mrf.mxu0  ;;  %v9317_v15 = vld [vmem:[%s11541_s1 + $0x538] sm:$0xff]  ;;  %5245 = vmatpush.bf16.msrb.mxu1 %v9293_v10 }
 0x19b   : > { %4886 = vmatmul.bf16.gmra.mxu1 %v7262_v25  ;;  %4935 = vmatmul.bf16.gmra.mxu2 %v7266_v51  ;;  %v10255_v4 = vadd.f32 %v4835_v33, %v4787_v55  ;;  %v9117_v25 = vld [vmem:[%s9556_s13 + $0x83c] sm:$0xf]  ;;  %v7555_v51 = vld [vmem:[%s9556_s13 + $0x8cc] sm:$0xf0]  ;;  %v9118_v55 = vld [vmem:[%s9556_s13 + $0x844] sm:$0xf] }
 0x19c   : > { %5392 = vmatpush.bf16.msrb.mxu0 %v9317_v15 }
 0x19d   : > { %4984 = vmatmul.bf16.gmra.mxu3 %v7270_v7  ;;  %5033 = vmatmul.bf16.gmra.mxu0 %v7274_v53  ;;  %v7561_v7 = vld [vmem:[%s9556_s13 + $0x840] sm:$0xf]  ;;  %v9136_v53 = vld [vmem:[%s9556_s13 + $0x8d0] sm:$0xf0] }
 0x19e   : > { %v4740_v2 = vpop.f32.mrf.mxu2 }
 0x19f   : > { %v4741_v19 = vadd.f32 %v4740_v2, %v4692_v59  ;;  %v7563_v59 = vld [vmem:[%s9556_s13 + $0x8d4] sm:$0xf0] }
 0x1a0   : > { %v4789_v56 = vpop.f32.mrf.mxu3  ;;  %v4693_v62 = vpop.f32.mrf.mxu1 }
 0x1a1   : > { %v4790_v29 = vadd.f32 %v4789_v56, %v4741_v19  ;;  %v4694_v5 = vadd.f32 %v4693_v62, %v10073_v41  ;;  %v7421_v41 = vld [vmem:[%s9556_s13 + $0x720] sm:$0xf]  ;;  %v7558_v19 = vor.u32 %v9117_v25, %v7555_v51  ;;  %v7562_v56 = vor.u32 %v9136_v53, %v7561_v7  ;;  %v9299_v51 = vld [vmem:[%s11541_s1 + $0x4a8] sm:$0xff] }
 0x1a2   : > { %v4840_v6 = vpop.f32.mrf.mxu0  ;;  %v7422_v32 = vor.u32 %v9100_v21, %v7421_v41  ;;  %v9307_v7 = vld [vmem:[%s11541_s1 + $0x4e8] sm:$0xff]  ;;  %5296 = vmatpush.bf16.msrb.mxu2 %v9299_v51 }
 0x1a3   : > { %v10272_v12 = vadd.f32 %v4838_v63, %v4790_v29  ;;  %v9137_v63 = vld [vmem:[%s9556_s13 + $0x8d8] sm:$0xf0]  ;;  %v7566_v29 = vor.u32 %v9118_v55, %v7563_v59  ;;  %5345 = vmatpush.bf16.msrb.mxu3 %v9307_v7 }
 0x1a6   : > { %v4742_v23 = vpop.f32.mrf.mxu2 }
 0x1a7   : > { %v4743_v39 = vadd.f32 %v4742_v23, %v4694_v5 }
 0x1a8   : > { %v4791_v61 = vpop.f32.mrf.mxu3  ;;  %v4696_v18 = vpop.f32.mrf.mxu1 }
 0x1a9   : > { %v4792_v33 = vadd.f32 %v4791_v61, %v4743_v39  ;;  %v4697_v35 = vadd.f32 %v4696_v18, %v10090_v57  ;;  %v9292_v39 = vld [vmem:[%s11541_s1 + $0x470] sm:$0xff] }
 0x1aa   : > { %v4843_v36 = vpop.f32.mrf.mxu0  ;;  %v9316_v61 = vld [vmem:[%s11541_s1 + $0x530] sm:$0xff]  ;;  %5246 = vmatpush.bf16.msrb.mxu1 %v9292_v39 }
 0x1ab   : > { %4891 = vmatmul.bf16.gmra.mxu1 %v7410_v44  ;;  %4940 = vmatmul.bf16.gmra.mxu2 %v7414_v30  ;;  %v10281_v46 = vadd.f32 %v4840_v6, %v4792_v33  ;;  %v8860_v44 = vld [vmem:[%s9556_s13 + $0x34] sm:$0xf]  ;;  %v6535_v30 = vld [vmem:[%s9556_s13 + $0xc4] sm:$0xf0]  ;;  %v8861_v33 = vld [vmem:[%s9556_s13 + $0x3c] sm:$0xf] }
 0x1ac   : > { %5393 = vmatpush.bf16.msrb.mxu0 %v9316_v61 }
 0x1ad   : > { %4989 = vmatmul.bf16.gmra.mxu3 %v7418_v49  ;;  %5038 = vmatmul.bf16.gmra.mxu0 %v7422_v32  ;;  %v6541_v49 = vld [vmem:[%s9556_s13 + $0x38] sm:$0xf]  ;;  %v8879_v32 = vld [vmem:[%s9556_s13 + $0xc8] sm:$0xf0] }
 0x1ae   : > { %v4745_v40 = vpop.f32.mrf.mxu2 }
 0x1af   : > { %v4746_v57 = vadd.f32 %v4745_v40, %v4697_v35  ;;  %v6543_v35 = vld [vmem:[%s9556_s13 + $0xcc] sm:$0xf0] }
 0x1b0   : > { %v4794_v42 = vpop.f32.mrf.mxu3  ;;  %v4698_v45 = vpop.f32.mrf.mxu1 }
 0x1b1   : > { %v4795_v3 = vadd.f32 %v4794_v42, %v4746_v57  ;;  %v4699_v26 = vadd.f32 %v4698_v45, %v10099_v16  ;;  %v7569_v16 = vld [vmem:[%s9556_s13 + $0x848] sm:$0xf]  ;;  %v6538_v57 = vor.u32 %v8860_v44, %v6535_v30  ;;  %v6542_v42 = vor.u32 %v8879_v32, %v6541_v49  ;;  %v9298_v30 = vld [vmem:[%s11541_s1 + $0x4a0] sm:$0xff] }
 0x1b2   : > { %v4845_v47 = vpop.f32.mrf.mxu0  ;;  %v7570_v5 = vor.u32 %v9137_v63, %v7569_v16  ;;  %v9306_v49 = vld [vmem:[%s11541_s1 + $0x4e0] sm:$0xff]  ;;  %5297 = vmatpush.bf16.msrb.mxu2 %v9298_v30 }
 0x1b3   : > { %v10298_v52 = vadd.f32 %v4843_v36, %v4795_v3  ;;  %v8880_v36 = vld [vmem:[%s9556_s13 + $0xd0] sm:$0xf0]  ;;  %v6546_v3 = vor.u32 %v8861_v33, %v6543_v35  ;;  %5346 = vmatpush.bf16.msrb.mxu3 %v9306_v49 }
 0x1b6   : > { %v4747_v0 = vpop.f32.mrf.mxu2 }
 0x1b7   : > { %v4748_v14 = vadd.f32 %v4747_v0, %v4699_v26 }
 0x1b8   : > { %v4796_v2 = vpop.f32.mrf.mxu3  ;;  %v4701_v62 = vpop.f32.mrf.mxu1 }
 0x1b9   : > { %v4797_v6 = vadd.f32 %v4796_v2, %v4748_v14  ;;  %v4702_v8 = vadd.f32 %v4701_v62, %v10116_v34  ;;  %v9291_v14 = vld [vmem:[%s11541_s1 + $0x468] sm:$0xff] }
 0x1ba   : > { %v4848_v9 = vpop.f32.mrf.mxu0  ;;  %v9315_v2 = vld [vmem:[%s11541_s1 + $0x528] sm:$0xff]  ;;  %5247 = vmatpush.bf16.msrb.mxu1 %v9291_v14 }
 0x1bb   : > { %4896 = vmatmul.bf16.gmra.mxu1 %v7558_v19  ;;  %4945 = vmatmul.bf16.gmra.mxu2 %v7562_v56  ;;  %v10307_v28 = vadd.f32 %v4845_v47, %v4797_v6  ;;  %v8897_v19 = vld [vmem:[%s9556_s13 + $0x15c] sm:$0xf]  ;;  %v6683_v56 = vld [vmem:[%s9556_s13 + $0x1ec] sm:$0xf0]  ;;  %v8898_v6 = vld [vmem:[%s9556_s13 + $0x164] sm:$0xf] }
 0x1bc   : > { %5394 = vmatpush.bf16.msrb.mxu0 %v9315_v2 }
 0x1bd   : > { %4994 = vmatmul.bf16.gmra.mxu3 %v7566_v29  ;;  %5043 = vmatmul.bf16.gmra.mxu0 %v7570_v5  ;;  %v6689_v29 = vld [vmem:[%s9556_s13 + $0x160] sm:$0xf]  ;;  %v8916_v5 = vld [vmem:[%s9556_s13 + $0x1f0] sm:$0xf0] }
 0x1be   : > { %v4750_v13 = vpop.f32.mrf.mxu2 }
 0x1bf   : > { %v4751_v34 = vadd.f32 %v4750_v13, %v4702_v8  ;;  %v6691_v8 = vld [vmem:[%s9556_s13 + $0x1f4] sm:$0xf0] }
 0x1c0   : > { %v4799_v17 = vpop.f32.mrf.mxu3  ;;  %v4703_v20 = vpop.f32.mrf.mxu1 }
 0x1c1   : > { %v4800_v41 = vadd.f32 %v4799_v17, %v4751_v34  ;;  %v4704_v21 = vadd.f32 %v4703_v20, %v10125_v54  ;;  %v6549_v54 = vld [vmem:[%s9556_s13 + $0x40] sm:$0xf]  ;;  %v6686_v34 = vor.u32 %v8897_v19, %v6683_v56  ;;  %v6690_v17 = vor.u32 %v8916_v5, %v6689_v29  ;;  %v9297_v56 = vld [vmem:[%s11541_s1 + $0x498] sm:$0xff] }
 0x1c2   : > { %v4850_v23 = vpop.f32.mrf.mxu0  ;;  %v6550_v26 = vor.u32 %v8880_v36, %v6549_v54  ;;  %v9305_v29 = vld [vmem:[%s11541_s1 + $0x4d8] sm:$0xff]  ;;  %5298 = vmatpush.bf16.msrb.mxu2 %v9297_v56 }
 0x1c3   : > { %v10324_v18 = vadd.f32 %v4848_v9, %v4800_v41  ;;  %v8917_v9 = vld [vmem:[%s9556_s13 + $0x1f8] sm:$0xf0]  ;;  %v6694_v41 = vor.u32 %v8898_v6, %v6691_v8  ;;  %5347 = vmatpush.bf16.msrb.mxu3 %v9305_v29 }
 0x1c6   : > { %v4752_v37 = vpop.f32.mrf.mxu2 }
 0x1c7   : > { %v4753_v43 = vadd.f32 %v4752_v37, %v4704_v21 }
 0x1c8   : > { %v4801_v40 = vpop.f32.mrf.mxu3  ;;  %v4862_v45 = vpop.f32.mrf.mxu1 }
 0x1c9   : > { %v4802_v47 = vadd.f32 %v4801_v40, %v4753_v43  ;;  %v4863_v10 = vadd.f32 %v4862_v45, %v10142_v50  ;;  %v9290_v43 = vld [vmem:[%s11541_s1 + $0x460] sm:$0xff] }
 0x1ca   : > { %v5009_v15 = vpop.f32.mrf.mxu0  ;;  %v9314_v40 = vld [vmem:[%s11541_s1 + $0x520] sm:$0xff]  ;;  %5248 = vmatpush.bf16.msrb.mxu1 %v9290_v43 }
 0x1cb   : > { %5057 = vmatmul.bf16.vlgmr.msra.gmra.mxu1 %v6538_v57  ;;  %5106 = vmatmul.bf16.vlgmr.msra.gmra.mxu2 %v6542_v42  ;;  %v10333_v25 = vadd.f32 %v4850_v23, %v4802_v47  ;;  %v8934_v57 = vld [vmem:[%s9556_s13 + $0x284] sm:$0xf]  ;;  %v6831_v42 = vld [vmem:[%s9556_s13 + $0x314] sm:$0xf0]  ;;  %v8935_v47 = vld [vmem:[%s9556_s13 + $0x28c] sm:$0xf] }
 0x1cc   : > { %5395 = vmatpush.bf16.msrb.mxu0 %v9314_v40 }
 0x1cd   : > { %5155 = vmatmul.bf16.vlgmr.msra.gmra.mxu3 %v6546_v3  ;;  %5204 = vmatmul.bf16.vlgmr.msra.gmra.mxu0 %v6550_v26  ;;  %v6837_v3 = vld [vmem:[%s9556_s13 + $0x288] sm:$0xf]  ;;  %v8953_v26 = vld [vmem:[%s9556_s13 + $0x318] sm:$0xf0] }
 0x1ce   : > { %v4911_v53 = vpop.f32.mrf.mxu2 }
 0x1cf   : > { %v4912_v50 = vadd.f32 %v4911_v53, %v4863_v10  ;;  %v6839_v10 = vld [vmem:[%s9556_s13 + $0x31c] sm:$0xf0] }
 0x1d0   : > { %v4960_v55 = vpop.f32.mrf.mxu3  ;;  %v4864_v59 = vpop.f32.mrf.mxu1 }
 0x1d1   : > { %v4961_v16 = vadd.f32 %v4960_v55, %v4912_v50  ;;  %v4865_v63 = vadd.f32 %v4864_v59, %v10151_v58  ;;  %v6697_v58 = vld [vmem:[%s9556_s13 + $0x168] sm:$0xf]  ;;  %v6834_v50 = vor.u32 %v8934_v57, %v6831_v42  ;;  %v6838_v55 = vor.u32 %v8953_v26, %v6837_v3  ;;  %v9296_v42 = vld [vmem:[%s11541_s1 + $0x490] sm:$0xff] }
 0x1d2   : > { %v5011_v0 = vpop.f32.mrf.mxu0  ;;  %v6698_v21 = vor.u32 %v8917_v9, %v6697_v58  ;;  %v9304_v3 = vld [vmem:[%s11541_s1 + $0x4d0] sm:$0xff]  ;;  %5299 = vmatpush.bf16.msrb.mxu2 %v9296_v42 }
 0x1d3   : > { %v10350_v62 = vadd.f32 %v5009_v15, %v4961_v16  ;;  %v8954_v15 = vld [vmem:[%s9556_s13 + $0x320] sm:$0xf0]  ;;  %v6842_v16 = vor.u32 %v8935_v47, %v6839_v10  ;;  %5348 = vmatpush.bf16.msrb.mxu3 %v9304_v3 }
 0x1d6   : > { %v4913_v11 = vpop.f32.mrf.mxu2 }
 0x1d7   : > { %v4914_v31 = vadd.f32 %v4913_v11, %v4865_v63 }
 0x1d8   : > { %v4962_v13 = vpop.f32.mrf.mxu3  ;;  %v4867_v20 = vpop.f32.mrf.mxu1 }
 0x1d9   : > { %v4963_v23 = vadd.f32 %v4962_v13, %v4914_v31  ;;  %v4868_v39 = vadd.f32 %v4867_v20, %v10168_v48  ;;  %v9289_v31 = vld [vmem:[%s11541_s1 + $0x458] sm:$0xff] }
 0x1da   : > { %v5014_v61 = vpop.f32.mrf.mxu0  ;;  %v9313_v13 = vld [vmem:[%s11541_s1 + $0x518] sm:$0xff]  ;;  %5249 = vmatpush.bf16.msrb.mxu1 %v9289_v31 }
 0x1db   : > { %5062 = vmatmul.bf16.gmra.mxu1 %v6686_v34  ;;  %5111 = vmatmul.bf16.gmra.mxu2 %v6690_v17  ;;  %v10359_v44 = vadd.f32 %v5011_v0, %v4963_v23  ;;  %v8971_v34 = vld [vmem:[%s9556_s13 + $0x3ac] sm:$0xf]  ;;  %v6979_v17 = vld [vmem:[%s9556_s13 + $0x43c] sm:$0xf0]  ;;  %v8972_v23 = vld [vmem:[%s9556_s13 + $0x3b4] sm:$0xf] }
 0x1dc   : > { %5396 = vmatpush.bf16.msrb.mxu0 %v9313_v13 }
 0x1dd   : > { %5160 = vmatmul.bf16.gmra.mxu3 %v6694_v41  ;;  %5209 = vmatmul.bf16.gmra.mxu0 %v6698_v21  ;;  %v6985_v41 = vld [vmem:[%s9556_s13 + $0x3b0] sm:$0xf]  ;;  %v8990_v21 = vld [vmem:[%s9556_s13 + $0x440] sm:$0xf0] }
 0x1de   : > { %v4916_v32 = vpop.f32.mrf.mxu2 }
 0x1df   : > { %v4917_v48 = vadd.f32 %v4916_v32, %v4868_v39  ;;  %v6987_v39 = vld [vmem:[%s9556_s13 + $0x444] sm:$0xf0] }
 0x1e0   : > { %v4965_v33 = vpop.f32.mrf.mxu3  ;;  %v4869_v35 = vpop.f32.mrf.mxu1 }
 0x1e1   : > { %v4966_v54 = vadd.f32 %v4965_v33, %v4917_v48  ;;  %v4870_v36 = vadd.f32 %v4869_v35, %v10177_v22  ;;  %v6845_v22 = vld [vmem:[%s9556_s13 + $0x290] sm:$0xf]  ;;  %v6982_v48 = vor.u32 %v8971_v34, %v6979_v17  ;;  %v6986_v33 = vor.u32 %v8990_v21, %v6985_v41  ;;  %v9295_v17 = vld [vmem:[%s11541_s1 + $0x488] sm:$0xff] }
 0x1e2   : > { %v5016_v37 = vpop.f32.mrf.mxu0  ;;  %v6846_v63 = vor.u32 %v8954_v15, %v6845_v22  ;;  %v9303_v41 = vld [vmem:[%s11541_s1 + $0x4c8] sm:$0xff]  ;;  %5300 = vmatpush.bf16.msrb.mxu2 %v9295_v17 }
 0x1e3   : > { %v10376_v45 = vadd.f32 %v5014_v61, %v4966_v54  ;;  %v8991_v61 = vld [vmem:[%s9556_s13 + $0x448] sm:$0xf0]  ;;  %v6990_v54 = vor.u32 %v8972_v23, %v6987_v39  ;;  %5349 = vmatpush.bf16.msrb.mxu3 %v9303_v41 }
 0x1e6   : > { %v4918_v51 = vpop.f32.mrf.mxu2 }
 0x1e7   : > { %v4919_v7 = vadd.f32 %v4918_v51, %v4870_v36 }
 0x1e8   : > { %v4967_v53 = vpop.f32.mrf.mxu3  ;;  %v4872_v59 = vpop.f32.mrf.mxu1 }
 0x1e9   : > { %v4968_v0 = vadd.f32 %v4967_v53, %v4919_v7  ;;  %v4873_v14 = vadd.f32 %v4872_v59, %v10194_v27  ;;  %v9288_v7 = vld [vmem:[%s11541_s1 + $0x450] sm:$0xff] }
 0x1ea   : > { %v5019_v2 = vpop.f32.mrf.mxu0  ;;  %v9312_v53 = vld [vmem:[%s11541_s1 + $0x510] sm:$0xff]  ;;  %5250 = vmatpush.bf16.msrb.mxu1 %v9288_v7 }
 0x1eb   : > { %5067 = vmatmul.bf16.gmra.mxu1 %v6834_v50  ;;  %5116 = vmatmul.bf16.gmra.mxu2 %v6838_v55  ;;  %v10385_v19 = vadd.f32 %v5016_v37, %v4968_v0  ;;  %v9008_v50 = vld [vmem:[%s9556_s13 + $0x4d4] sm:$0xf]  ;;  %v7127_v55 = vld [vmem:[%s9556_s13 + $0x564] sm:$0xf0]  ;;  %v9009_v0 = vld [vmem:[%s9556_s13 + $0x4dc] sm:$0xf] }
 0x1ec   : > { %5397 = vmatpush.bf16.msrb.mxu0 %v9312_v53 }
 0x1ed   : > { %5165 = vmatmul.bf16.gmra.mxu3 %v6842_v16  ;;  %5214 = vmatmul.bf16.gmra.mxu0 %v6846_v63  ;;  %v7133_v16 = vld [vmem:[%s9556_s13 + $0x4d8] sm:$0xf]  ;;  %v9027_v63 = vld [vmem:[%s9556_s13 + $0x568] sm:$0xf0] }
 0x1ee   : > { %v4921_v5 = vpop.f32.mrf.mxu2 }
 0x1ef   : > { %v4922_v27 = vadd.f32 %v4921_v5, %v4873_v14  ;;  %v7135_v14 = vld [vmem:[%s9556_s13 + $0x56c] sm:$0xf0] }
 0x1f0   : > { %v4970_v6 = vpop.f32.mrf.mxu3  ;;  %v4874_v8 = vpop.f32.mrf.mxu1 }
 0x1f1   : > { %v4971_v58 = vadd.f32 %v4970_v6, %v4922_v27  ;;  %v4875_v9 = vadd.f32 %v4874_v8, %v10203_v60  ;;  %v6993_v60 = vld [vmem:[%s9556_s13 + $0x3b8] sm:$0xf]  ;;  %v7130_v27 = vor.u32 %v9008_v50, %v7127_v55  ;;  %v7134_v6 = vor.u32 %v9027_v63, %v7133_v16  ;;  %v9294_v55 = vld [vmem:[%s11541_s1 + $0x480] sm:$0xff] }
 0x1f2   : > { %v5021_v11 = vpop.f32.mrf.mxu0  ;;  %v6994_v36 = vor.u32 %v8991_v61, %v6993_v60  ;;  %v9302_v16 = vld [vmem:[%s11541_s1 + $0x4c0] sm:$0xff]  ;;  %5301 = vmatpush.bf16.msrb.mxu2 %v9294_v55 }
 0x1f3   : > { %v10402_v20 = vadd.f32 %v5019_v2, %v4971_v58  ;;  %v9028_v2 = vld [vmem:[%s9556_s13 + $0x570] sm:$0xf0]  ;;  %v7138_v58 = vor.u32 %v9009_v0, %v7135_v14  ;;  %5350 = vmatpush.bf16.msrb.mxu3 %v9302_v16 }
 0x1f6   : > { %v4923_v30 = vpop.f32.mrf.mxu2 }
 0x1f7   : > { %v4924_v49 = vadd.f32 %v4923_v30, %v4875_v9 }
 0x1f8   : > { %v4972_v32 = vpop.f32.mrf.mxu3  ;;  %v4877_v35 = vpop.f32.mrf.mxu1 }
 0x1f9   : > { %v4973_v37 = vadd.f32 %v4972_v32, %v4924_v49  ;;  %v4878_v43 = vadd.f32 %v4877_v35, %v10220_v1  ;;  %v9287_v49 = vld [vmem:[%s11541_s1 + $0x448] sm:$0xff] }
 0x1fa   : > { %v5024_v40 = vpop.f32.mrf.mxu0  ;;  %v9311_v32 = vld [vmem:[%s11541_s1 + $0x508] sm:$0xff]  ;;  %5251 = vmatpush.bf16.msrb.mxu1 %v9287_v49 }
 0x1fb   : > { %5072 = vmatmul.bf16.gmra.mxu1 %v6982_v48  ;;  %5121 = vmatmul.bf16.gmra.mxu2 %v6986_v33  ;;  %v10411_v57 = vadd.f32 %v5021_v11, %v4973_v37  ;;  %v9045_v48 = vld [vmem:[%s9556_s13 + $0x5fc] sm:$0xf]  ;;  %v7275_v33 = vld [vmem:[%s9556_s13 + $0x68c] sm:$0xf0]  ;;  %v9046_v37 = vld [vmem:[%s9556_s13 + $0x604] sm:$0xf] }
 0x1fc   : > { %5398 = vmatpush.bf16.msrb.mxu0 %v9311_v32 }
 0x1fd   : > { %5170 = vmatmul.bf16.gmra.mxu3 %v6990_v54  ;;  %5219 = vmatmul.bf16.gmra.mxu0 %v6994_v36  ;;  %v7281_v54 = vld [vmem:[%s9556_s13 + $0x600] sm:$0xf]  ;;  %v9064_v36 = vld [vmem:[%s9556_s13 + $0x690] sm:$0xf0] }
 0x1fe   : > { %v4926_v26 = vpop.f32.mrf.mxu2 }
 0x1ff   : > { %v4927_v1 = vadd.f32 %v4926_v26, %v4878_v43  ;;  %v7283_v43 = vld [vmem:[%s9556_s13 + $0x694] sm:$0xf0] }
 0x200   : > { %v4975_v47 = vpop.f32.mrf.mxu3  ;;  %v4879_v10 = vpop.f32.mrf.mxu1 }
 0x201   : > { %v4976_v22 = vadd.f32 %v4975_v47, %v4927_v1  ;;  %v4880_v15 = vadd.f32 %v4879_v10, %v10229_v24  ;;  %v7141_v24 = vld [vmem:[%s9556_s13 + $0x4e0] sm:$0xf]  ;;  %v7278_v1 = vor.u32 %v9045_v48, %v7275_v33  ;;  %v7282_v47 = vor.u32 %v9064_v36, %v7281_v54  ;;  %v9333_v33 = vld [vmem:[%s11541_s1 + $0x5b8] sm:$0xff] }
 0x202   : > { %v5026_v51 = vpop.f32.mrf.mxu0  ;;  %v7142_v9 = vor.u32 %v9028_v2, %v7141_v24  ;;  %v9341_v54 = vld [vmem:[%s11541_s1 + $0x5f8] sm:$0xff]  ;;  %5490 = vmatpush.bf16.msra.mxu2 %v9333_v33 }
 0x203   : > { %v10428_v59 = vadd.f32 %v5024_v40, %v4976_v22  ;;  %v9065_v40 = vld [vmem:[%s9556_s13 + $0x698] sm:$0xf0]  ;;  %v7286_v22 = vor.u32 %v9046_v37, %v7283_v43  ;;  %5539 = vmatpush.bf16.msra.mxu3 %v9341_v54 }
 0x206   : > { %v4928_v56 = vpop.f32.mrf.mxu2 }
 0x207   : > { %v4929_v29 = vadd.f32 %v4928_v56, %v4880_v15 }
 0x208   : > { %v4977_v5 = vpop.f32.mrf.mxu3  ;;  %v4882_v8 = vpop.f32.mrf.mxu1 }
 0x209   : > { %v4978_v11 = vadd.f32 %v4977_v5, %v4929_v29  ;;  %v4883_v31 = vadd.f32 %v4882_v8, %v10246_v38  ;;  %v9286_v29 = vld [vmem:[%s11541_s1 + $0x440] sm:$0xff] }
 0x20a   : > { %v5029_v13 = vpop.f32.mrf.mxu0  ;;  %v9310_v5 = vld [vmem:[%s11541_s1 + $0x500] sm:$0xff]  ;;  %5252 = vmatpush.bf16.msrb.mxu1 %v9286_v29 }
 0x20b   : > { %5077 = vmatmul.bf16.gmra.mxu1 %v7130_v27  ;;  %5126 = vmatmul.bf16.gmra.mxu2 %v7134_v6  ;;  %v10437_v34 = vadd.f32 %v5026_v51, %v4978_v11  ;;  %v9082_v27 = vld [vmem:[%s9556_s13 + $0x724] sm:$0xf]  ;;  %v7423_v6 = vld [vmem:[%s9556_s13 + $0x7b4] sm:$0xf0]  ;;  %v9083_v11 = vld [vmem:[%s9556_s13 + $0x72c] sm:$0xf] }
 0x20c   : > { %5399 = vmatpush.bf16.msrb.mxu0 %v9310_v5 }
 0x20d   : > { %5175 = vmatmul.bf16.gmra.mxu3 %v7138_v58  ;;  %5224 = vmatmul.bf16.gmra.mxu0 %v7142_v9  ;;  %v7429_v58 = vld [vmem:[%s9556_s13 + $0x728] sm:$0xf]  ;;  %v9101_v9 = vld [vmem:[%s9556_s13 + $0x7b8] sm:$0xf0] }
 0x20e   : > { %v4931_v21 = vpop.f32.mrf.mxu2 }
 0x20f   : > { %v4932_v38 = vadd.f32 %v4931_v21, %v4883_v31  ;;  %v7431_v31 = vld [vmem:[%s9556_s13 + $0x7bc] sm:$0xf0] }
 0x210   : > { %v4980_v23 = vpop.f32.mrf.mxu3  ;;  %v4884_v39 = vpop.f32.mrf.mxu1 }
 0x211   : > { %v4981_v60 = vadd.f32 %v4980_v23, %v4932_v38  ;;  %v4885_v61 = vadd.f32 %v4884_v39, %v10255_v4  ;;  %v7289_v4 = vld [vmem:[%s9556_s13 + $0x608] sm:$0xf]  ;;  %v7426_v38 = vor.u32 %v9082_v27, %v7423_v6  ;;  %v7430_v23 = vor.u32 %v9101_v9, %v7429_v58  ;;  %v9332_v6 = vld [vmem:[%s11541_s1 + $0x5b0] sm:$0xff] }
 0x212   : > { %v5031_v30 = vpop.f32.mrf.mxu0  ;;  %v7290_v15 = vor.u32 %v9065_v40, %v7289_v4  ;;  %v9340_v58 = vld [vmem:[%s11541_s1 + $0x5f0] sm:$0xff]  ;;  %5491 = vmatpush.bf16.msra.mxu2 %v9332_v6 }
 0x213   : > { %v10454_v35 = vadd.f32 %v5029_v13, %v4981_v60  ;;  %v9102_v13 = vld [vmem:[%s9556_s13 + $0x7c0] sm:$0xf0]  ;;  %v7434_v60 = vor.u32 %v9083_v11, %v7431_v31  ;;  %5540 = vmatpush.bf16.msra.mxu3 %v9340_v58 }
 0x216   : > { %v4933_v42 = vpop.f32.mrf.mxu2 }
 0x217   : > { %v4934_v3 = vadd.f32 %v4933_v42, %v4885_v61 }
 0x218   : > { %v4982_v26 = vpop.f32.mrf.mxu3  ;;  %v4887_v10 = vpop.f32.mrf.mxu1 }
 0x219   : > { %v4983_v51 = vadd.f32 %v4982_v26, %v4934_v3  ;;  %v4888_v7 = vadd.f32 %v4887_v10, %v10272_v12  ;;  %v9325_v3 = vld [vmem:[%s11541_s1 + $0x578] sm:$0xff] }
 0x21a   : > { %v5034_v53 = vpop.f32.mrf.mxu0  ;;  %v9349_v26 = vld [vmem:[%s11541_s1 + $0x638] sm:$0xff]  ;;  %5441 = vmatpush.bf16.msra.mxu1 %v9325_v3 }
 0x21b   : > { %5082 = vmatmul.bf16.gmra.mxu1 %v7278_v1  ;;  %5131 = vmatmul.bf16.gmra.mxu2 %v7282_v47  ;;  %v10463_v50 = vadd.f32 %v5031_v30, %v4983_v51  ;;  %v9119_v1 = vld [vmem:[%s9556_s13 + $0x84c] sm:$0xf]  ;;  %v7571_v47 = vld [vmem:[%s9556_s13 + $0x8dc] sm:$0xf0]  ;;  %v9120_v51 = vld [vmem:[%s9556_s13 + $0x854] sm:$0xf] }
 0x21c   : > { %5588 = vmatpush.bf16.msra.mxu0 %v9349_v26 }
 0x21d   : > { %5180 = vmatmul.bf16.gmra.mxu3 %v7286_v22  ;;  %5229 = vmatmul.bf16.gmra.mxu0 %v7290_v15  ;;  %v7577_v22 = vld [vmem:[%s9556_s13 + $0x850] sm:$0xf]  ;;  %v9138_v15 = vld [vmem:[%s9556_s13 + $0x8e0] sm:$0xf0] }
 0x21e   : > { %v4936_v63 = vpop.f32.mrf.mxu2 }
 0x21f   : > { %v4937_v12 = vadd.f32 %v4936_v63, %v4888_v7  ;;  %v7579_v7 = vld [vmem:[%s9556_s13 + $0x8e4] sm:$0xf0] }
 0x220   : > { %v4985_v0 = vpop.f32.mrf.mxu3  ;;  %v4889_v14 = vpop.f32.mrf.mxu1 }
 0x221   : > { %v4986_v24 = vadd.f32 %v4985_v0, %v4937_v12  ;;  %v4890_v2 = vadd.f32 %v4889_v14, %v10281_v46  ;;  %v7437_v46 = vld [vmem:[%s9556_s13 + $0x730] sm:$0xf]  ;;  %v7574_v12 = vor.u32 %v9119_v1, %v7571_v47  ;;  %v7578_v0 = vor.u32 %v9138_v15, %v7577_v22  ;;  %v9331_v47 = vld [vmem:[%s11541_s1 + $0x5a8] sm:$0xff] }
 0x222   : > { %v5036_v56 = vpop.f32.mrf.mxu0  ;;  %v7438_v61 = vor.u32 %v9102_v13, %v7437_v46  ;;  %v9339_v22 = vld [vmem:[%s11541_s1 + $0x5e8] sm:$0xff]  ;;  %5492 = vmatpush.bf16.msra.mxu2 %v9331_v47 }
 0x223   : > { %v10480_v8 = vadd.f32 %v5034_v53, %v4986_v24  ;;  %v9139_v53 = vld [vmem:[%s9556_s13 + $0x8e8] sm:$0xf0]  ;;  %v7582_v24 = vor.u32 %v9120_v51, %v7579_v7  ;;  %5541 = vmatpush.bf16.msra.mxu3 %v9339_v22 }
 0x226   : > { %v4938_v17 = vpop.f32.mrf.mxu2 }
 0x227   : > { %v4939_v41 = vadd.f32 %v4938_v17, %v4890_v2 }
 0x228   : > { %v4987_v21 = vpop.f32.mrf.mxu3  ;;  %v4892_v39 = vpop.f32.mrf.mxu1 }
 0x229   : > { %v4988_v30 = vadd.f32 %v4987_v21, %v4939_v41  ;;  %v4893_v49 = vadd.f32 %v4892_v39, %v10298_v52  ;;  %v9324_v41 = vld [vmem:[%s11541_s1 + $0x570] sm:$0xff] }
 0x22a   : > { %v5039_v32 = vpop.f32.mrf.mxu0  ;;  %v9348_v21 = vld [vmem:[%s11541_s1 + $0x630] sm:$0xff]  ;;  %5442 = vmatpush.bf16.msra.mxu1 %v9324_v41 }
 0x22b   : > { %5087 = vmatmul.bf16.gmra.mxu1 %v7426_v38  ;;  %5136 = vmatmul.bf16.gmra.mxu2 %v7430_v23  ;;  %v10489_v48 = vadd.f32 %v5036_v56, %v4988_v30  ;;  %v8862_v38 = vld [vmem:[%s9556_s13 + $0x44] sm:$0xf]  ;;  %v6551_v23 = vld [vmem:[%s9556_s13 + $0xd4] sm:$0xf0]  ;;  %v8863_v30 = vld [vmem:[%s9556_s13 + $0x4c] sm:$0xf] }
 0x22c   : > { %5589 = vmatpush.bf16.msra.mxu0 %v9348_v21 }
 0x22d   : > { %5185 = vmatmul.bf16.gmra.mxu3 %v7434_v60  ;;  %5234 = vmatmul.bf16.gmra.mxu0 %v7438_v61  ;;  %v6557_v60 = vld [vmem:[%s9556_s13 + $0x48] sm:$0xf]  ;;  %v8881_v61 = vld [vmem:[%s9556_s13 + $0xd8] sm:$0xf0] }
 0x22e   : > { %v4941_v36 = vpop.f32.mrf.mxu2 }
 0x22f   : > { %v4942_v52 = vadd.f32 %v4941_v36, %v4893_v49  ;;  %v6559_v49 = vld [vmem:[%s9556_s13 + $0xdc] sm:$0xf0] }
 0x230   : > { %v4990_v37 = vpop.f32.mrf.mxu3  ;;  %v4894_v43 = vpop.f32.mrf.mxu1 }
 0x231   : > { %v4991_v4 = vadd.f32 %v4990_v37, %v4942_v52  ;;  %v4895_v40 = vadd.f32 %v4894_v43, %v10307_v28  ;;  %v7585_v28 = vld [vmem:[%s9556_s13 + $0x858] sm:$0xf]  ;;  %v6554_v52 = vor.u32 %v8862_v38, %v6551_v23  ;;  %v6558_v37 = vor.u32 %v8881_v61, %v6557_v60  ;;  %v9330_v23 = vld [vmem:[%s11541_s1 + $0x5a0] sm:$0xff] }
 0x232   : > { %v5041_v42 = vpop.f32.mrf.mxu0  ;;  %v7586_v2 = vor.u32 %v9139_v53, %v7585_v28  ;;  %v9338_v60 = vld [vmem:[%s11541_s1 + $0x5e0] sm:$0xff]  ;;  %5493 = vmatpush.bf16.msra.mxu2 %v9330_v23 }
 0x233   : > { %v10506_v10 = vadd.f32 %v5039_v32, %v4991_v4  ;;  %v8882_v32 = vld [vmem:[%s9556_s13 + $0xe0] sm:$0xf0]  ;;  %v6562_v4 = vor.u32 %v8863_v30, %v6559_v49  ;;  %5542 = vmatpush.bf16.msra.mxu3 %v9338_v60 }
 0x236   : > { %v4943_v55 = vpop.f32.mrf.mxu2 }
 0x237   : > { %v4944_v16 = vadd.f32 %v4943_v55, %v4895_v40 }
 0x238   : > { %v4992_v63 = vpop.f32.mrf.mxu3  ;;  %v4897_v14 = vpop.f32.mrf.mxu1 }
 0x239   : > { %v4993_v56 = vadd.f32 %v4992_v63, %v4944_v16  ;;  %v4898_v29 = vadd.f32 %v4897_v14, %v10324_v18  ;;  %v9323_v16 = vld [vmem:[%s11541_s1 + $0x568] sm:$0xff] }
 0x23a   : > { %v5044_v5 = vpop.f32.mrf.mxu0  ;;  %v9347_v63 = vld [vmem:[%s11541_s1 + $0x628] sm:$0xff]  ;;  %5443 = vmatpush.bf16.msra.mxu1 %v9323_v16 }
 0x23b   : > { %5092 = vmatmul.bf16.gmra.mxu1 %v7574_v12  ;;  %5141 = vmatmul.bf16.gmra.mxu2 %v7578_v0  ;;  %v10515_v27 = vadd.f32 %v5041_v42, %v4993_v56  ;;  %v8899_v12 = vld [vmem:[%s9556_s13 + $0x16c] sm:$0xf]  ;;  %v6699_v0 = vld [vmem:[%s9556_s13 + $0x1fc] sm:$0xf0]  ;;  %v8900_v56 = vld [vmem:[%s9556_s13 + $0x174] sm:$0xf] }
 0x23c   : > { %5590 = vmatpush.bf16.msra.mxu0 %v9347_v63 }
 0x23d   : > { %5190 = vmatmul.bf16.gmra.mxu3 %v7582_v24  ;;  %5239 = vmatmul.bf16.gmra.mxu0 %v7586_v2  ;;  %v6705_v24 = vld [vmem:[%s9556_s13 + $0x170] sm:$0xf]  ;;  %v8918_v2 = vld [vmem:[%s9556_s13 + $0x200] sm:$0xf0] }
 0x23e   : > { %v4946_v9 = vpop.f32.mrf.mxu2 }
 0x23f   : > { %v4947_v18 = vadd.f32 %v4946_v9, %v4898_v29  ;;  %v6707_v29 = vld [vmem:[%s9556_s13 + $0x204] sm:$0xf0] }
 0x240   : > { %v4995_v11 = vpop.f32.mrf.mxu3  ;;  %v4899_v31 = vpop.f32.mrf.mxu1 }
 0x241   : > { %v4996_v46 = vadd.f32 %v4995_v11, %v4947_v18  ;;  %v4900_v13 = vadd.f32 %v4899_v31, %v10333_v25  ;;  %v6565_v25 = vld [vmem:[%s9556_s13 + $0x50] sm:$0xf]  ;;  %v6702_v18 = vor.u32 %v8899_v12, %v6699_v0  ;;  %v6706_v11 = vor.u32 %v8918_v2, %v6705_v24  ;;  %v9329_v0 = vld [vmem:[%s11541_s1 + $0x598] sm:$0xff] }
 0x242   : > { %v5046_v17 = vpop.f32.mrf.mxu0  ;;  %v6566_v40 = vor.u32 %v8882_v32, %v6565_v25  ;;  %v9337_v24 = vld [vmem:[%s11541_s1 + $0x5d8] sm:$0xff]  ;;  %5494 = vmatpush.bf16.msra.mxu2 %v9329_v0 }
 0x243   : > { %v10532_v39 = vadd.f32 %v5044_v5, %v4996_v46  ;;  %v8919_v5 = vld [vmem:[%s9556_s13 + $0x208] sm:$0xf0]  ;;  %v6710_v46 = vor.u32 %v8900_v56, %v6707_v29  ;;  %5543 = vmatpush.bf16.msra.mxu3 %v9337_v24 }
 0x246   : > { %v4948_v33 = vpop.f32.mrf.mxu2 }
 0x247   : > { %v4949_v54 = vadd.f32 %v4948_v33, %v4900_v13 }
 0x248   : > { %v4997_v36 = vpop.f32.mrf.mxu3  ;;  %v5058_v43 = vpop.f32.mrf.mxu1 }
 0x249   : > { %v4998_v42 = vadd.f32 %v4997_v36, %v4949_v54  ;;  %v5059_v3 = vadd.f32 %v5058_v43, %v10350_v62  ;;  %v9322_v54 = vld [vmem:[%s11541_s1 + $0x560] sm:$0xff] }
 0x24a   : > { %v5205_v26 = vpop.f32.mrf.mxu0  ;;  %v9346_v36 = vld [vmem:[%s11541_s1 + $0x620] sm:$0xff]  ;;  %5444 = vmatpush.bf16.msra.mxu1 %v9322_v54 }
 0x24b   : > { %5253 = vmatmul.bf16.vlgmr.msrb.gmra.mxu1 %v6554_v52  ;;  %5302 = vmatmul.bf16.vlgmr.msrb.gmra.mxu2 %v6558_v37  ;;  %v10541_v1 = vadd.f32 %v5046_v17, %v4998_v42  ;;  %v8936_v52 = vld [vmem:[%s9556_s13 + $0x294] sm:$0xf]  ;;  %v6847_v37 = vld [vmem:[%s9556_s13 + $0x324] sm:$0xf0]  ;;  %v8937_v42 = vld [vmem:[%s9556_s13 + $0x29c] sm:$0xf] }
 0x24c   : > { %5591 = vmatpush.bf16.msra.mxu0 %v9346_v36 }
 0x24d   : > { %5351 = vmatmul.bf16.vlgmr.msrb.gmra.mxu3 %v6562_v4  ;;  %5400 = vmatmul.bf16.vlgmr.msrb.gmra.mxu0 %v6566_v40  ;;  %v6853_v4 = vld [vmem:[%s9556_s13 + $0x298] sm:$0xf]  ;;  %v8955_v40 = vld [vmem:[%s9556_s13 + $0x328] sm:$0xf0] }
 0x24e   : > { %v5107_v15 = vpop.f32.mrf.mxu2 }
 0x24f   : > { %v5108_v62 = vadd.f32 %v5107_v15, %v5059_v3  ;;  %v6855_v3 = vld [vmem:[%s9556_s13 + $0x32c] sm:$0xf0] }
 0x250   : > { %v5156_v51 = vpop.f32.mrf.mxu3  ;;  %v5060_v7 = vpop.f32.mrf.mxu1 }
 0x251   : > { %v5157_v28 = vadd.f32 %v5156_v51, %v5108_v62  ;;  %v5061_v53 = vadd.f32 %v5060_v7, %v10359_v44  ;;  %v6713_v44 = vld [vmem:[%s9556_s13 + $0x178] sm:$0xf]  ;;  %v6850_v62 = vor.u32 %v8936_v52, %v6847_v37  ;;  %v6854_v51 = vor.u32 %v8955_v40, %v6853_v4  ;;  %v9328_v37 = vld [vmem:[%s11541_s1 + $0x590] sm:$0xff] }
 0x252   : > { %v5207_v55 = vpop.f32.mrf.mxu0  ;;  %v6714_v13 = vor.u32 %v8919_v5, %v6713_v44  ;;  %v9336_v4 = vld [vmem:[%s11541_s1 + $0x5d0] sm:$0xff]  ;;  %5495 = vmatpush.bf16.msra.mxu2 %v9328_v37 }
 0x253   : > { %v10558_v14 = vadd.f32 %v5205_v26, %v5157_v28  ;;  %v8956_v26 = vld [vmem:[%s9556_s13 + $0x330] sm:$0xf0]  ;;  %v6858_v28 = vor.u32 %v8937_v42, %v6855_v3  ;;  %5544 = vmatpush.bf16.msra.mxu3 %v9336_v4 }
 0x256   : > { %v5109_v6 = vpop.f32.mrf.mxu2 }
 0x257   : > { %v5110_v58 = vadd.f32 %v5109_v6, %v5061_v53 }
 0x258   : > { %v5158_v9 = vpop.f32.mrf.mxu3  ;;  %v5063_v31 = vpop.f32.mrf.mxu1 }
 0x259   : > { %v5159_v17 = vadd.f32 %v5158_v9, %v5110_v58  ;;  %v5064_v41 = vadd.f32 %v5063_v31, %v10376_v45  ;;  %v9321_v58 = vld [vmem:[%s11541_s1 + $0x558] sm:$0xff] }
 0x25a   : > { %v5210_v21 = vpop.f32.mrf.mxu0  ;;  %v9345_v9 = vld [vmem:[%s11541_s1 + $0x618] sm:$0xff]  ;;  %5445 = vmatpush.bf16.msra.mxu1 %v9321_v58 }
 0x25b   : > { %5258 = vmatmul.bf16.gmra.mxu1 %v6702_v18  ;;  %5307 = vmatmul.bf16.gmra.mxu2 %v6706_v11  ;;  %v10567_v38 = vadd.f32 %v5207_v55, %v5159_v17  ;;  %v8973_v18 = vld [vmem:[%s9556_s13 + $0x3bc] sm:$0xf]  ;;  %v6995_v11 = vld [vmem:[%s9556_s13 + $0x44c] sm:$0xf0]  ;;  %v8974_v17 = vld [vmem:[%s9556_s13 + $0x3c4] sm:$0xf] }
 0x25c   : > { %5592 = vmatpush.bf16.msra.mxu0 %v9345_v9 }
 0x25d   : > { %5356 = vmatmul.bf16.gmra.mxu3 %v6710_v46  ;;  %5405 = vmatmul.bf16.gmra.mxu0 %v6714_v13  ;;  %v7001_v46 = vld [vmem:[%s9556_s13 + $0x3c0] sm:$0xf]  ;;  %v8992_v13 = vld [vmem:[%s9556_s13 + $0x450] sm:$0xf0] }
 0x25e   : > { %v5112_v61 = vpop.f32.mrf.mxu2 }
 0x25f   : > { %v5113_v45 = vadd.f32 %v5112_v61, %v5064_v41  ;;  %v7003_v41 = vld [vmem:[%s9556_s13 + $0x454] sm:$0xf0] }
 0x260   : > { %v5161_v30 = vpop.f32.mrf.mxu3  ;;  %v5065_v49 = vpop.f32.mrf.mxu1 }
 0x261   : > { %v5162_v25 = vadd.f32 %v5161_v30, %v5113_v45  ;;  %v5066_v32 = vadd.f32 %v5065_v49, %v10385_v19  ;;  %v6861_v19 = vld [vmem:[%s9556_s13 + $0x2a0] sm:$0xf]  ;;  %v6998_v45 = vor.u32 %v8973_v18, %v6995_v11  ;;  %v7002_v30 = vor.u32 %v8992_v13, %v7001_v46  ;;  %v9327_v11 = vld [vmem:[%s11541_s1 + $0x588] sm:$0xff] }
 0x262   : > { %v5212_v33 = vpop.f32.mrf.mxu0  ;;  %v6862_v53 = vor.u32 %v8956_v26, %v6861_v19  ;;  %v9335_v46 = vld [vmem:[%s11541_s1 + $0x5c8] sm:$0xff]  ;;  %5496 = vmatpush.bf16.msra.mxu2 %v9327_v11 }
 0x263   : > { %v10584_v43 = vadd.f32 %v5210_v21, %v5162_v25  ;;  %v8993_v21 = vld [vmem:[%s9556_s13 + $0x458] sm:$0xf0]  ;;  %v7006_v25 = vor.u32 %v8974_v17, %v7003_v41  ;;  %5545 = vmatpush.bf16.msra.mxu3 %v9335_v46 }
 0x266   : > { %v5114_v47 = vpop.f32.mrf.mxu2 }
 0x267   : > { %v5115_v22 = vadd.f32 %v5114_v47, %v5066_v32 }
 0x268   : > { %v5163_v15 = vpop.f32.mrf.mxu3  ;;  %v5068_v7 = vpop.f32.mrf.mxu1 }
 0x269   : > { %v5164_v55 = vadd.f32 %v5163_v15, %v5115_v22  ;;  %v5069_v16 = vadd.f32 %v5068_v7, %v10402_v20  ;;  %v9320_v22 = vld [vmem:[%s11541_s1 + $0x550] sm:$0xff] }
 0x26a   : > { %v5215_v63 = vpop.f32.mrf.mxu0  ;;  %v9344_v15 = vld [vmem:[%s11541_s1 + $0x610] sm:$0xff]  ;;  %5446 = vmatpush.bf16.msra.mxu1 %v9320_v22 }
 0x26b   : > { %5263 = vmatmul.bf16.gmra.mxu1 %v6850_v62  ;;  %5312 = vmatmul.bf16.gmra.mxu2 %v6854_v51  ;;  %v10593_v12 = vadd.f32 %v5212_v33, %v5164_v55  ;;  %v9010_v62 = vld [vmem:[%s9556_s13 + $0x4e4] sm:$0xf]  ;;  %v7143_v51 = vld [vmem:[%s9556_s13 + $0x574] sm:$0xf0]  ;;  %v9011_v55 = vld [vmem:[%s9556_s13 + $0x4ec] sm:$0xf] }
 0x26c   : > { %5593 = vmatpush.bf16.msra.mxu0 %v9344_v15 }
 0x26d   : > { %5361 = vmatmul.bf16.gmra.mxu3 %v6858_v28  ;;  %5410 = vmatmul.bf16.gmra.mxu0 %v6862_v53  ;;  %v7149_v28 = vld [vmem:[%s9556_s13 + $0x4e8] sm:$0xf]  ;;  %v9029_v53 = vld [vmem:[%s9556_s13 + $0x578] sm:$0xf0] }
 0x26e   : > { %v5117_v2 = vpop.f32.mrf.mxu2 }
 0x26f   : > { %v5118_v20 = vadd.f32 %v5117_v2, %v5069_v16  ;;  %v7151_v16 = vld [vmem:[%s9556_s13 + $0x57c] sm:$0xf0] }
 0x270   : > { %v5166_v56 = vpop.f32.mrf.mxu3  ;;  %v5070_v29 = vpop.f32.mrf.mxu1 }
 0x271   : > { %v5167_v44 = vadd.f32 %v5166_v56, %v5118_v20  ;;  %v5071_v5 = vadd.f32 %v5070_v29, %v10411_v57  ;;  %v7009_v57 = vld [vmem:[%s9556_s13 + $0x3c8] sm:$0xf]  ;;  %v7146_v20 = vor.u32 %v9010_v62, %v7143_v51  ;;  %v7150_v56 = vor.u32 %v9029_v53, %v7149_v28  ;;  %v9326_v51 = vld [vmem:[%s11541_s1 + $0x580] sm:$0xff] }
 0x272   : > { %v5217_v6 = vpop.f32.mrf.mxu0  ;;  %v7010_v32 = vor.u32 %v8993_v21, %v7009_v57  ;;  %v9334_v28 = vld [vmem:[%s11541_s1 + $0x5c0] sm:$0xff]  ;;  %5497 = vmatpush.bf16.msra.mxu2 %v9326_v51 }
 0x273   : > { %v10610_v31 = vadd.f32 %v5215_v63, %v5167_v44  ;;  %v9030_v63 = vld [vmem:[%s9556_s13 + $0x580] sm:$0xf0]  ;;  %v7154_v44 = vor.u32 %v9011_v55, %v7151_v16  ;;  %5546 = vmatpush.bf16.msra.mxu3 %v9334_v28 }
 0x276   : > { %v5119_v23 = vpop.f32.mrf.mxu2 }
 0x277   : > { %v5120_v60 = vadd.f32 %v5119_v23, %v5071_v5 }
 0x278   : > { %v5168_v61 = vpop.f32.mrf.mxu3  ;;  %v5073_v49 = vpop.f32.mrf.mxu1 }
 0x279   : > { %v5169_v33 = vadd.f32 %v5168_v61, %v5120_v60  ;;  %v5074_v54 = vadd.f32 %v5073_v49, %v10428_v59  ;;  %v9319_v60 = vld [vmem:[%s11541_s1 + $0x548] sm:$0xff] }
 0x27a   : > { %v5220_v36 = vpop.f32.mrf.mxu0  ;;  %v9343_v61 = vld [vmem:[%s11541_s1 + $0x608] sm:$0xff]  ;;  %5447 = vmatpush.bf16.msra.mxu1 %v9319_v60 }
 0x27b   : > { %5268 = vmatmul.bf16.gmra.mxu1 %v6998_v45  ;;  %5317 = vmatmul.bf16.gmra.mxu2 %v7002_v30  ;;  %v10619_v52 = vadd.f32 %v5217_v6, %v5169_v33  ;;  %v9047_v45 = vld [vmem:[%s9556_s13 + $0x60c] sm:$0xf]  ;;  %v7291_v30 = vld [vmem:[%s9556_s13 + $0x69c] sm:$0xf0]  ;;  %v9048_v33 = vld [vmem:[%s9556_s13 + $0x614] sm:$0xf] }
 0x27c   : > { %5594 = vmatpush.bf16.msra.mxu0 %v9343_v61 }
 0x27d   : > { %5366 = vmatmul.bf16.gmra.mxu3 %v7006_v25  ;;  %5415 = vmatmul.bf16.gmra.mxu0 %v7010_v32  ;;  %v7297_v25 = vld [vmem:[%s9556_s13 + $0x610] sm:$0xf]  ;;  %v9066_v32 = vld [vmem:[%s9556_s13 + $0x6a0] sm:$0xf0] }
 0x27e   : > { %v5122_v40 = vpop.f32.mrf.mxu2 }
 0x27f   : > { %v5123_v59 = vadd.f32 %v5122_v40, %v5074_v54  ;;  %v7299_v54 = vld [vmem:[%s9556_s13 + $0x6a4] sm:$0xf0] }
 0x280   : > { %v5171_v42 = vpop.f32.mrf.mxu3  ;;  %v5075_v3 = vpop.f32.mrf.mxu1 }
 0x281   : > { %v5172_v19 = vadd.f32 %v5171_v42, %v5123_v59  ;;  %v5076_v26 = vadd.f32 %v5075_v3, %v10437_v34  ;;  %v7157_v34 = vld [vmem:[%s9556_s13 + $0x4f0] sm:$0xf]  ;;  %v7294_v59 = vor.u32 %v9047_v45, %v7291_v30  ;;  %v7298_v42 = vor.u32 %v9066_v32, %v7297_v25  ;;  %v9365_v30 = vld [vmem:[%s11541_s1 + $0x6b8] sm:$0xff] }
 0x282   : > { %v5222_v47 = vpop.f32.mrf.mxu0  ;;  %v7158_v5 = vor.u32 %v9030_v63, %v7157_v34  ;;  %v9373_v25 = vld [vmem:[%s11541_s1 + $0x6f8] sm:$0xff]  ;;  %5686 = vmatpush.bf16.msrb.mxu2 %v9365_v30 }
 0x283   : > { %v10636_v7 = vadd.f32 %v5220_v36, %v5172_v19  ;;  %v9067_v36 = vld [vmem:[%s9556_s13 + $0x6a8] sm:$0xf0]  ;;  %v7302_v19 = vor.u32 %v9048_v33, %v7299_v54  ;;  %5735 = vmatpush.bf16.msrb.mxu3 %v9373_v25 }
 0x286   : > { %v5124_v0 = vpop.f32.mrf.mxu2 }
 0x287   : > { %v5125_v24 = vadd.f32 %v5124_v0, %v5076_v26 }
 0x288   : > { %v5173_v2 = vpop.f32.mrf.mxu3  ;;  %v5078_v29 = vpop.f32.mrf.mxu1 }
 0x289   : > { %v5174_v6 = vadd.f32 %v5173_v2, %v5125_v24  ;;  %v5079_v58 = vadd.f32 %v5078_v29, %v10454_v35  ;;  %v9318_v24 = vld [vmem:[%s11541_s1 + $0x540] sm:$0xff] }
 0x28a   : > { %v5225_v9 = vpop.f32.mrf.mxu0  ;;  %v9342_v2 = vld [vmem:[%s11541_s1 + $0x600] sm:$0xff]  ;;  %5448 = vmatpush.bf16.msra.mxu1 %v9318_v24 }
 0x28b   : > { %5273 = vmatmul.bf16.gmra.mxu1 %v7146_v20  ;;  %5322 = vmatmul.bf16.gmra.mxu2 %v7150_v56  ;;  %v10645_v18 = vadd.f32 %v5222_v47, %v5174_v6  ;;  %v9084_v20 = vld [vmem:[%s9556_s13 + $0x734] sm:$0xf]  ;;  %v7439_v56 = vld [vmem:[%s9556_s13 + $0x7c4] sm:$0xf0]  ;;  %v9085_v6 = vld [vmem:[%s9556_s13 + $0x73c] sm:$0xf] }
 0x28c   : > { %5595 = vmatpush.bf16.msra.mxu0 %v9342_v2 }
 0x28d   : > { %5371 = vmatmul.bf16.gmra.mxu3 %v7154_v44  ;;  %5420 = vmatmul.bf16.gmra.mxu0 %v7158_v5  ;;  %v7445_v44 = vld [vmem:[%s9556_s13 + $0x738] sm:$0xf]  ;;  %v9103_v5 = vld [vmem:[%s9556_s13 + $0x7c8] sm:$0xf0] }
 0x28e   : > { %v5127_v13 = vpop.f32.mrf.mxu2 }
 0x28f   : > { %v5128_v35 = vadd.f32 %v5127_v13, %v5079_v58  ;;  %v7447_v58 = vld [vmem:[%s9556_s13 + $0x7cc] sm:$0xf0] }
 0x290   : > { %v5176_v17 = vpop.f32.mrf.mxu3  ;;  %v5080_v41 = vpop.f32.mrf.mxu1 }
 0x291   : > { %v5177_v57 = vadd.f32 %v5176_v17, %v5128_v35  ;;  %v5081_v21 = vadd.f32 %v5080_v41, %v10463_v50  ;;  %v7305_v50 = vld [vmem:[%s9556_s13 + $0x618] sm:$0xf]  ;;  %v7442_v35 = vor.u32 %v9084_v20, %v7439_v56  ;;  %v7446_v17 = vor.u32 %v9103_v5, %v7445_v44  ;;  %v9364_v56 = vld [vmem:[%s11541_s1 + $0x6b0] sm:$0xff] }
 0x292   : > { %v5227_v23 = vpop.f32.mrf.mxu0  ;;  %v7306_v26 = vor.u32 %v9067_v36, %v7305_v50  ;;  %v9372_v44 = vld [vmem:[%s11541_s1 + $0x6f0] sm:$0xff]  ;;  %5687 = vmatpush.bf16.msrb.mxu2 %v9364_v56 }
 0x293   : > { %v10662_v49 = vadd.f32 %v5225_v9, %v5177_v57  ;;  %v9104_v9 = vld [vmem:[%s9556_s13 + $0x7d0] sm:$0xf0]  ;;  %v7450_v57 = vor.u32 %v9085_v6, %v7447_v58  ;;  %5736 = vmatpush.bf16.msrb.mxu3 %v9372_v44 }
 0x296   : > { %v5129_v37 = vpop.f32.mrf.mxu2 }
 0x297   : > { %v5130_v4 = vadd.f32 %v5129_v37, %v5081_v21 }
 0x298   : > { %v5178_v40 = vpop.f32.mrf.mxu3  ;;  %v5083_v3 = vpop.f32.mrf.mxu1 }
 0x299   : > { %v5179_v47 = vadd.f32 %v5178_v40, %v5130_v4  ;;  %v5084_v22 = vadd.f32 %v5083_v3, %v10480_v8  ;;  %v9357_v4 = vld [vmem:[%s11541_s1 + $0x678] sm:$0xff] }
 0x29a   : > { %v5230_v15 = vpop.f32.mrf.mxu0  ;;  %v9381_v40 = vld [vmem:[%s11541_s1 + $0x738] sm:$0xff]  ;;  %5637 = vmatpush.bf16.msrb.mxu1 %v9357_v4 }
 0x29b   : > { %5278 = vmatmul.bf16.gmra.mxu1 %v7294_v59  ;;  %5327 = vmatmul.bf16.gmra.mxu2 %v7298_v42  ;;  %v10671_v62 = vadd.f32 %v5227_v23, %v5179_v47  ;;  %v9121_v59 = vld [vmem:[%s9556_s13 + $0x85c] sm:$0xf]  ;;  %v7587_v42 = vld [vmem:[%s9556_s13 + $0x8ec] sm:$0xf0]  ;;  %v9122_v47 = vld [vmem:[%s9556_s13 + $0x864] sm:$0xf] }
 0x29c   : > { %5784 = vmatpush.bf16.msrb.mxu0 %v9381_v40 }
 0x29d   : > { %5376 = vmatmul.bf16.gmra.mxu3 %v7302_v19  ;;  %5425 = vmatmul.bf16.gmra.mxu0 %v7306_v26  ;;  %v7593_v19 = vld [vmem:[%s9556_s13 + $0x860] sm:$0xf]  ;;  %v9140_v26 = vld [vmem:[%s9556_s13 + $0x8f0] sm:$0xf0] }
 0x29e   : > { %v5132_v53 = vpop.f32.mrf.mxu2 }
 0x29f   : > { %v5133_v8 = vadd.f32 %v5132_v53, %v5084_v22  ;;  %v7595_v22 = vld [vmem:[%s9556_s13 + $0x8f4] sm:$0xf0] }
 0x2a0   : > { %v5181_v55 = vpop.f32.mrf.mxu3  ;;  %v5085_v16 = vpop.f32.mrf.mxu1 }
 0x2a1   : > { %v5182_v34 = vadd.f32 %v5181_v55, %v5133_v8  ;;  %v5086_v63 = vadd.f32 %v5085_v16, %v10489_v48  ;;  %v7453_v48 = vld [vmem:[%s9556_s13 + $0x740] sm:$0xf]  ;;  %v7590_v8 = vor.u32 %v9121_v59, %v7587_v42  ;;  %v7594_v55 = vor.u32 %v9140_v26, %v7593_v19  ;;  %v9363_v42 = vld [vmem:[%s11541_s1 + $0x6a8] sm:$0xff] }
 0x2a2   : > { %v5232_v0 = vpop.f32.mrf.mxu0  ;;  %v7454_v21 = vor.u32 %v9104_v9, %v7453_v48  ;;  %v9371_v19 = vld [vmem:[%s11541_s1 + $0x6e8] sm:$0xff]  ;;  %5688 = vmatpush.bf16.msrb.mxu2 %v9363_v42 }
 0x2a3   : > { %v10688_v29 = vadd.f32 %v5230_v15, %v5182_v34  ;;  %v9141_v15 = vld [vmem:[%s9556_s13 + $0x8f8] sm:$0xf0]  ;;  %v7598_v34 = vor.u32 %v9122_v47, %v7595_v22  ;;  %5737 = vmatpush.bf16.msrb.mxu3 %v9371_v19 }
 0x2a6   : > { %v5134_v11 = vpop.f32.mrf.mxu2 }
 0x2a7   : > { %v5135_v46 = vadd.f32 %v5134_v11, %v5086_v63 }
 0x2a8   : > { %v5183_v13 = vpop.f32.mrf.mxu3  ;;  %v5088_v41 = vpop.f32.mrf.mxu1 }
 0x2a9   : > { %v5184_v23 = vadd.f32 %v5183_v13, %v5135_v46  ;;  %v5089_v60 = vadd.f32 %v5088_v41, %v10506_v10  ;;  %v9356_v46 = vld [vmem:[%s11541_s1 + $0x670] sm:$0xff] }
 0x2aa   : > { %v5235_v61 = vpop.f32.mrf.mxu0  ;;  %v9380_v13 = vld [vmem:[%s11541_s1 + $0x730] sm:$0xff]  ;;  %5638 = vmatpush.bf16.msrb.mxu1 %v9356_v46 }
 0x2ab   : > { %5283 = vmatmul.bf16.gmra.mxu1 %v7442_v35  ;;  %5332 = vmatmul.bf16.gmra.mxu2 %v7446_v17  ;;  %v10697_v45 = vadd.f32 %v5232_v0, %v5184_v23  ;;  %v8864_v35 = vld [vmem:[%s9556_s13 + $0x54] sm:$0xf]  ;;  %v6567_v17 = vld [vmem:[%s9556_s13 + $0xe4] sm:$0xf0]  ;;  %v8865_v23 = vld [vmem:[%s9556_s13 + $0x5c] sm:$0xf] }
 0x2ac   : > { %5785 = vmatpush.bf16.msrb.mxu0 %v9380_v13 }
 0x2ad   : > { %5381 = vmatmul.bf16.gmra.mxu3 %v7450_v57  ;;  %5430 = vmatmul.bf16.gmra.mxu0 %v7454_v21  ;;  %v6573_v57 = vld [vmem:[%s9556_s13 + $0x58] sm:$0xf]  ;;  %v8883_v21 = vld [vmem:[%s9556_s13 + $0xe8] sm:$0xf0] }
 0x2ae   : > { %v5137_v32 = vpop.f32.mrf.mxu2 }
 0x2af   : > { %v5138_v10 = vadd.f32 %v5137_v32, %v5089_v60  ;;  %v6575_v60 = vld [vmem:[%s9556_s13 + $0xec] sm:$0xf0] }
 0x2b0   : > { %v5186_v33 = vpop.f32.mrf.mxu3  ;;  %v5090_v54 = vpop.f32.mrf.mxu1 }
 0x2b1   : > { %v5187_v50 = vadd.f32 %v5186_v33, %v5138_v10  ;;  %v5091_v36 = vadd.f32 %v5090_v54, %v10515_v27  ;;  %v7601_v27 = vld [vmem:[%s9556_s13 + $0x868] sm:$0xf]  ;;  %v6570_v10 = vor.u32 %v8864_v35, %v6567_v17  ;;  %v6574_v33 = vor.u32 %v8883_v21, %v6573_v57  ;;  %v9362_v17 = vld [vmem:[%s11541_s1 + $0x6a0] sm:$0xff] }
 0x2b2   : > { %v5237_v37 = vpop.f32.mrf.mxu0  ;;  %v7602_v63 = vor.u32 %v9141_v15, %v7601_v27  ;;  %v9370_v57 = vld [vmem:[%s11541_s1 + $0x6e0] sm:$0xff]  ;;  %5689 = vmatpush.bf16.msrb.mxu2 %v9362_v17 }
 0x2b3   : > { %v10714_v3 = vadd.f32 %v5235_v61, %v5187_v50  ;;  %v8884_v61 = vld [vmem:[%s9556_s13 + $0xf0] sm:$0xf0]  ;;  %v6578_v50 = vor.u32 %v8865_v23, %v6575_v60  ;;  %5738 = vmatpush.bf16.msrb.mxu3 %v9370_v57 }
 0x2b6   : > { %v5139_v51 = vpop.f32.mrf.mxu2 }
 0x2b7   : > { %v5140_v28 = vadd.f32 %v5139_v51, %v5091_v36 }
 0x2b8   : > { %v5188_v53 = vpop.f32.mrf.mxu3  ;;  %v5093_v16 = vpop.f32.mrf.mxu1 }
 0x2b9   : > { %v5189_v0 = vadd.f32 %v5188_v53, %v5140_v28  ;;  %v5094_v24 = vadd.f32 %v5093_v16, %v10532_v39  ;;  %v9355_v28 = vld [vmem:[%s11541_s1 + $0x668] sm:$0xff] }
 0x2ba   : > { %v5240_v2 = vpop.f32.mrf.mxu0  ;;  %v9379_v53 = vld [vmem:[%s11541_s1 + $0x728] sm:$0xff]  ;;  %5639 = vmatpush.bf16.msrb.mxu1 %v9355_v28 }
 0x2bb   : > { %5288 = vmatmul.bf16.gmra.mxu1 %v7590_v8  ;;  %5337 = vmatmul.bf16.gmra.mxu2 %v7594_v55  ;;  %v10723_v20 = vadd.f32 %v5237_v37, %v5189_v0  ;;  %v8901_v8 = vld [vmem:[%s9556_s13 + $0x17c] sm:$0xf]  ;;  %v6715_v55 = vld [vmem:[%s9556_s13 + $0x20c] sm:$0xf0]  ;;  %v8902_v0 = vld [vmem:[%s9556_s13 + $0x184] sm:$0xf] }
 0x2bc   : > { %5786 = vmatpush.bf16.msrb.mxu0 %v9379_v53 }
 0x2bd   : > { %5386 = vmatmul.bf16.gmra.mxu3 %v7598_v34  ;;  %5435 = vmatmul.bf16.gmra.mxu0 %v7602_v63  ;;  %v6721_v34 = vld [vmem:[%s9556_s13 + $0x180] sm:$0xf]  ;;  %v8920_v63 = vld [vmem:[%s9556_s13 + $0x210] sm:$0xf0] }
 0x2be   : > { %v5142_v5 = vpop.f32.mrf.mxu2 }
 0x2bf   : > { %v5143_v39 = vadd.f32 %v5142_v5, %v5094_v24  ;;  %v6723_v24 = vld [vmem:[%s9556_s13 + $0x214] sm:$0xf0] }
 0x2c0   : > { %v5191_v6 = vpop.f32.mrf.mxu3  ;;  %v5095_v58 = vpop.f32.mrf.mxu1 }
 0x2c1   : > { %v5192_v48 = vadd.f32 %v5191_v6, %v5143_v39  ;;  %v5096_v9 = vadd.f32 %v5095_v58, %v10541_v1  ;;  %v6581_v1 = vld [vmem:[%s9556_s13 + $0x60] sm:$0xf]  ;;  %v6718_v39 = vor.u32 %v8901_v8, %v6715_v55  ;;  %v6722_v6 = vor.u32 %v8920_v63, %v6721_v34  ;;  %v9361_v55 = vld [vmem:[%s11541_s1 + $0x698] sm:$0xff] }
 0x2c2   : > { %v5242_v11 = vpop.f32.mrf.mxu0  ;;  %v6582_v36 = vor.u32 %v8884_v61, %v6581_v1  ;;  %v9369_v34 = vld [vmem:[%s11541_s1 + $0x6d8] sm:$0xff]  ;;  %5690 = vmatpush.bf16.msrb.mxu2 %v9361_v55 }
 0x2c3   : > { %v10740_v41 = vadd.f32 %v5240_v2, %v5192_v48  ;;  %v8921_v2 = vld [vmem:[%s9556_s13 + $0x218] sm:$0xf0]  ;;  %v6726_v48 = vor.u32 %v8902_v0, %v6723_v24  ;;  %5739 = vmatpush.bf16.msrb.mxu3 %v9369_v34 }
 0x2c6   : > { %v5144_v30 = vpop.f32.mrf.mxu2 }
 0x2c7   : > { %v5145_v25 = vadd.f32 %v5144_v30, %v5096_v9 }
 0x2c8   : > { %v5193_v32 = vpop.f32.mrf.mxu3  ;;  %v5254_v54 = vpop.f32.mrf.mxu1 }
 0x2c9   : > { %v5194_v37 = vadd.f32 %v5193_v32, %v5145_v25  ;;  %v5255_v4 = vadd.f32 %v5254_v54, %v10558_v14  ;;  %v9354_v25 = vld [vmem:[%s11541_s1 + $0x660] sm:$0xff] }
 0x2ca   : > { %v5401_v40 = vpop.f32.mrf.mxu0  ;;  %v9378_v32 = vld [vmem:[%s11541_s1 + $0x720] sm:$0xff]  ;;  %5640 = vmatpush.bf16.msrb.mxu1 %v9354_v25 }
 0x2cb   : > { %5449 = vmatmul.bf16.vlgmr.msra.gmra.mxu1 %v6570_v10  ;;  %5498 = vmatmul.bf16.vlgmr.msra.gmra.mxu2 %v6574_v33  ;;  %v10749_v59 = vadd.f32 %v5242_v11, %v5194_v37  ;;  %v8938_v10 = vld [vmem:[%s9556_s13 + $0x2a4] sm:$0xf]  ;;  %v6863_v33 = vld [vmem:[%s9556_s13 + $0x334] sm:$0xf0]  ;;  %v8939_v37 = vld [vmem:[%s9556_s13 + $0x2ac] sm:$0xf] }
 0x2cc   : > { %5787 = vmatpush.bf16.msrb.mxu0 %v9378_v32 }
 0x2cd   : > { %5547 = vmatmul.bf16.vlgmr.msra.gmra.mxu3 %v6578_v50  ;;  %5596 = vmatmul.bf16.vlgmr.msra.gmra.mxu0 %v6582_v36  ;;  %v6869_v50 = vld [vmem:[%s9556_s13 + $0x2a8] sm:$0xf]  ;;  %v8957_v36 = vld [vmem:[%s9556_s13 + $0x338] sm:$0xf0] }
 0x2ce   : > { %v5303_v26 = vpop.f32.mrf.mxu2 }
 0x2cf   : > { %v5304_v14 = vadd.f32 %v5303_v26, %v5255_v4  ;;  %v6871_v4 = vld [vmem:[%s9556_s13 + $0x33c] sm:$0xf0] }
 0x2d0   : > { %v5352_v47 = vpop.f32.mrf.mxu3  ;;  %v5256_v22 = vpop.f32.mrf.mxu1 }
 0x2d1   : > { %v5353_v27 = vadd.f32 %v5352_v47, %v5304_v14  ;;  %v5257_v15 = vadd.f32 %v5256_v22, %v10567_v38  ;;  %v6729_v38 = vld [vmem:[%s9556_s13 + $0x188] sm:$0xf]  ;;  %v6866_v14 = vor.u32 %v8938_v10, %v6863_v33  ;;  %v6870_v47 = vor.u32 %v8957_v36, %v6869_v50  ;;  %v9360_v33 = vld [vmem:[%s11541_s1 + $0x690] sm:$0xff] }
 0x2d2   : > { %v5403_v51 = vpop.f32.mrf.mxu0  ;;  %v6730_v9 = vor.u32 %v8921_v2, %v6729_v38  ;;  %v9368_v50 = vld [vmem:[%s11541_s1 + $0x6d0] sm:$0xff]  ;;  %5691 = vmatpush.bf16.msrb.mxu2 %v9360_v33 }
 0x2d3   : > { %v10766_v16 = vadd.f32 %v5401_v40, %v5353_v27  ;;  %v8958_v40 = vld [vmem:[%s9556_s13 + $0x340] sm:$0xf0]  ;;  %v6874_v27 = vor.u32 %v8939_v37, %v6871_v4  ;;  %5740 = vmatpush.bf16.msrb.mxu3 %v9368_v50 }
 0x2d6   : > { %v5305_v56 = vpop.f32.mrf.mxu2 }
 0x2d7   : > { %v5306_v44 = vadd.f32 %v5305_v56, %v5257_v15 }
 0x2d8   : > { %v5354_v5 = vpop.f32.mrf.mxu3  ;;  %v5259_v58 = vpop.f32.mrf.mxu1 }
 0x2d9   : > { %v5355_v11 = vadd.f32 %v5354_v5, %v5306_v44  ;;  %v5260_v46 = vadd.f32 %v5259_v58, %v10584_v43  ;;  %v9353_v44 = vld [vmem:[%s11541_s1 + $0x658] sm:$0xff] }
 0x2da   : > { %v5406_v13 = vpop.f32.mrf.mxu0  ;;  %v9377_v5 = vld [vmem:[%s11541_s1 + $0x718] sm:$0xff]  ;;  %5641 = vmatpush.bf16.msrb.mxu1 %v9353_v44 }
 0x2db   : > { %5454 = vmatmul.bf16.gmra.mxu1 %v6718_v39  ;;  %5503 = vmatmul.bf16.gmra.mxu2 %v6722_v6  ;;  %v10775_v35 = vadd.f32 %v5403_v51, %v5355_v11  ;;  %v8975_v39 = vld [vmem:[%s9556_s13 + $0x3cc] sm:$0xf]  ;;  %v7011_v6 = vld [vmem:[%s9556_s13 + $0x45c] sm:$0xf0]  ;;  %v8976_v11 = vld [vmem:[%s9556_s13 + $0x3d4] sm:$0xf] }
 0x2dc   : > { %5788 = vmatpush.bf16.msrb.mxu0 %v9377_v5 }
 0x2dd   : > { %5552 = vmatmul.bf16.gmra.mxu3 %v6726_v48  ;;  %5601 = vmatmul.bf16.gmra.mxu0 %v6730_v9  ;;  %v7017_v48 = vld [vmem:[%s9556_s13 + $0x3d0] sm:$0xf]  ;;  %v8994_v9 = vld [vmem:[%s9556_s13 + $0x460] sm:$0xf0] }
 0x2de   : > { %v5308_v21 = vpop.f32.mrf.mxu2 }
 0x2df   : > { %v5309_v43 = vadd.f32 %v5308_v21, %v5260_v46  ;;  %v7019_v46 = vld [vmem:[%s9556_s13 + $0x464] sm:$0xf0] }
 0x2e0   : > { %v5357_v23 = vpop.f32.mrf.mxu3  ;;  %v5261_v60 = vpop.f32.mrf.mxu1 }
 0x2e1   : > { %v5358_v1 = vadd.f32 %v5357_v23, %v5309_v43  ;;  %v5262_v61 = vadd.f32 %v5261_v60, %v10593_v12  ;;  %v6877_v12 = vld [vmem:[%s9556_s13 + $0x2b0] sm:$0xf]  ;;  %v7014_v43 = vor.u32 %v8975_v39, %v7011_v6  ;;  %v7018_v23 = vor.u32 %v8994_v9, %v7017_v48  ;;  %v9359_v6 = vld [vmem:[%s11541_s1 + $0x688] sm:$0xff] }
 0x2e2   : > { %v5408_v30 = vpop.f32.mrf.mxu0  ;;  %v6878_v15 = vor.u32 %v8958_v40, %v6877_v12  ;;  %v9367_v48 = vld [vmem:[%s11541_s1 + $0x6c8] sm:$0xff]  ;;  %5692 = vmatpush.bf16.msrb.mxu2 %v9359_v6 }
 0x2e3   : > { %v10792_v54 = vadd.f32 %v5406_v13, %v5358_v1  ;;  %v8995_v13 = vld [vmem:[%s9556_s13 + $0x468] sm:$0xf0]  ;;  %v7022_v1 = vor.u32 %v8976_v11, %v7019_v46  ;;  %5741 = vmatpush.bf16.msrb.mxu3 %v9367_v48 }
 0x2e6   : > { %v5310_v42 = vpop.f32.mrf.mxu2 }
 0x2e7   : > { %v5311_v19 = vadd.f32 %v5310_v42, %v5262_v61 }
 0x2e8   : > { %v5359_v26 = vpop.f32.mrf.mxu3  ;;  %v5264_v22 = vpop.f32.mrf.mxu1 }
 0x2e9   : > { %v5360_v51 = vadd.f32 %v5359_v26, %v5311_v19  ;;  %v5265_v28 = vadd.f32 %v5264_v22, %v10610_v31  ;;  %v9352_v19 = vld [vmem:[%s11541_s1 + $0x650] sm:$0xff] }
 0x2ea   : > { %v5411_v53 = vpop.f32.mrf.mxu0  ;;  %v9376_v26 = vld [vmem:[%s11541_s1 + $0x710] sm:$0xff]  ;;  %5642 = vmatpush.bf16.msrb.mxu1 %v9352_v19 }
 0x2eb   : > { %5459 = vmatmul.bf16.gmra.mxu1 %v6866_v14  ;;  %5508 = vmatmul.bf16.gmra.mxu2 %v6870_v47  ;;  %v10801_v8 = vadd.f32 %v5408_v30, %v5360_v51  ;;  %v9012_v14 = vld [vmem:[%s9556_s13 + $0x4f4] sm:$0xf]  ;;  %v7159_v47 = vld [vmem:[%s9556_s13 + $0x584] sm:$0xf0]  ;;  %v9013_v51 = vld [vmem:[%s9556_s13 + $0x4fc] sm:$0xf] }
 0x2ec   : > { %5789 = vmatpush.bf16.msrb.mxu0 %v9376_v26 }
 0x2ed   : > { %5557 = vmatmul.bf16.gmra.mxu3 %v6874_v27  ;;  %5606 = vmatmul.bf16.gmra.mxu0 %v6878_v15  ;;  %v7165_v27 = vld [vmem:[%s9556_s13 + $0x4f8] sm:$0xf]  ;;  %v9031_v15 = vld [vmem:[%s9556_s13 + $0x588] sm:$0xf0] }
 0x2ee   : > { %v5313_v63 = vpop.f32.mrf.mxu2 }
 0x2ef   : > { %v5314_v31 = vadd.f32 %v5313_v63, %v5265_v28  ;;  %v7167_v28 = vld [vmem:[%s9556_s13 + $0x58c] sm:$0xf0] }
 0x2f0   : > { %v5362_v0 = vpop.f32.mrf.mxu3  ;;  %v5266_v24 = vpop.f32.mrf.mxu1 }
 0x2f1   : > { %v5363_v38 = vadd.f32 %v5362_v0, %v5314_v31  ;;  %v5267_v2 = vadd.f32 %v5266_v24, %v10619_v52  ;;  %v7025_v52 = vld [vmem:[%s9556_s13 + $0x3d8] sm:$0xf]  ;;  %v7162_v31 = vor.u32 %v9012_v14, %v7159_v47  ;;  %v7166_v0 = vor.u32 %v9031_v15, %v7165_v27  ;;  %v9358_v47 = vld [vmem:[%s11541_s1 + $0x680] sm:$0xff] }
 0x2f2   : > { %v5413_v56 = vpop.f32.mrf.mxu0  ;;  %v7026_v61 = vor.u32 %v8995_v13, %v7025_v52  ;;  %v9366_v27 = vld [vmem:[%s11541_s1 + $0x6c0] sm:$0xff]  ;;  %5693 = vmatpush.bf16.msrb.mxu2 %v9358_v47 }
 0x2f3   : > { %v10818_v58 = vadd.f32 %v5411_v53, %v5363_v38  ;;  %v9032_v53 = vld [vmem:[%s9556_s13 + $0x590] sm:$0xf0]  ;;  %v7170_v38 = vor.u32 %v9013_v51, %v7167_v28  ;;  %5742 = vmatpush.bf16.msrb.mxu3 %v9366_v27 }
 0x2f6   : > { %v5315_v17 = vpop.f32.mrf.mxu2 }
 0x2f7   : > { %v5316_v57 = vadd.f32 %v5315_v17, %v5267_v2 }
 0x2f8   : > { %v5364_v21 = vpop.f32.mrf.mxu3  ;;  %v5269_v60 = vpop.f32.mrf.mxu1 }
 0x2f9   : > { %v5365_v30 = vadd.f32 %v5364_v21, %v5316_v57  ;;  %v5270_v25 = vadd.f32 %v5269_v60, %v10636_v7  ;;  %v9351_v57 = vld [vmem:[%s11541_s1 + $0x648] sm:$0xff] }
 0x2fa   : > { %v5416_v32 = vpop.f32.mrf.mxu0  ;;  %v9375_v21 = vld [vmem:[%s11541_s1 + $0x708] sm:$0xff]  ;;  %5643 = vmatpush.bf16.msrb.mxu1 %v9351_v57 }
 0x2fb   : > { %5464 = vmatmul.bf16.gmra.mxu1 %v7014_v43  ;;  %5513 = vmatmul.bf16.gmra.mxu2 %v7018_v23  ;;  %v10827_v10 = vadd.f32 %v5413_v56, %v5365_v30  ;;  %v9049_v43 = vld [vmem:[%s9556_s13 + $0x61c] sm:$0xf]  ;;  %v7307_v23 = vld [vmem:[%s9556_s13 + $0x6ac] sm:$0xf0]  ;;  %v9050_v30 = vld [vmem:[%s9556_s13 + $0x624] sm:$0xf] }
 0x2fc   : > { %5790 = vmatpush.bf16.msrb.mxu0 %v9375_v21 }
 0x2fd   : > { %5562 = vmatmul.bf16.gmra.mxu3 %v7022_v1  ;;  %5611 = vmatmul.bf16.gmra.mxu0 %v7026_v61  ;;  %v7313_v1 = vld [vmem:[%s9556_s13 + $0x620] sm:$0xf]  ;;  %v9068_v61 = vld [vmem:[%s9556_s13 + $0x6b0] sm:$0xf0] }
 0x2fe   : > { %v5318_v36 = vpop.f32.mrf.mxu2 }
 0x2ff   : > { %v5319_v7 = vadd.f32 %v5318_v36, %v5270_v25  ;;  %v7315_v25 = vld [vmem:[%s9556_s13 + $0x6b4] sm:$0xf0] }
 0x300   : > { %v5367_v37 = vpop.f32.mrf.mxu3  ;;  %v5271_v4 = vpop.f32.mrf.mxu1 }
 0x301   : > { %v5368_v12 = vadd.f32 %v5367_v37, %v5319_v7  ;;  %v5272_v40 = vadd.f32 %v5271_v4, %v10645_v18  ;;  %v7173_v18 = vld [vmem:[%s9556_s13 + $0x500] sm:$0xf]  ;;  %v7310_v7 = vor.u32 %v9049_v43, %v7307_v23  ;;  %v7314_v37 = vor.u32 %v9068_v61, %v7313_v1  ;;  %v9397_v23 = vld [vmem:[%s11541_s1 + $0x7b8] sm:$0xff] }
 0x302   : > { %v5418_v42 = vpop.f32.mrf.mxu0  ;;  %v7174_v2 = vor.u32 %v9032_v53, %v7173_v18  ;;  %v9405_v1 = vld [vmem:[%s11541_s1 + $0x7f8] sm:$0xff]  ;;  %5882 = vmatpush.bf16.msra.mxu2 %v9397_v23 }
 0x303   : > { %v10844_v22 = vadd.f32 %v5416_v32, %v5368_v12  ;;  %v9069_v32 = vld [vmem:[%s9556_s13 + $0x6b8] sm:$0xf0]  ;;  %v7318_v12 = vor.u32 %v9050_v30, %v7315_v25  ;;  %5931 = vmatpush.bf16.msra.mxu3 %v9405_v1 }
 0x306   : > { %v5320_v55 = vpop.f32.mrf.mxu2 }
 0x307   : > { %v5321_v34 = vadd.f32 %v5320_v55, %v5272_v40 }
 0x308   : > { %v5369_v63 = vpop.f32.mrf.mxu3  ;;  %v5274_v24 = vpop.f32.mrf.mxu1 }
 0x309   : > { %v5370_v56 = vadd.f32 %v5369_v63, %v5321_v34  ;;  %v5275_v44 = vadd.f32 %v5274_v24, %v10662_v49  ;;  %v9350_v34 = vld [vmem:[%s11541_s1 + $0x640] sm:$0xff] }
 0x30a   : > { %v5421_v5 = vpop.f32.mrf.mxu0  ;;  %v9374_v63 = vld [vmem:[%s11541_s1 + $0x700] sm:$0xff]  ;;  %5644 = vmatpush.bf16.msrb.mxu1 %v9350_v34 }
 0x30b   : > { %5469 = vmatmul.bf16.gmra.mxu1 %v7162_v31  ;;  %5518 = vmatmul.bf16.gmra.mxu2 %v7166_v0  ;;  %v10853_v39 = vadd.f32 %v5418_v42, %v5370_v56  ;;  %v9086_v31 = vld [vmem:[%s9556_s13 + $0x744] sm:$0xf]  ;;  %v7455_v0 = vld [vmem:[%s9556_s13 + $0x7d4] sm:$0xf0]  ;;  %v9087_v56 = vld [vmem:[%s9556_s13 + $0x74c] sm:$0xf] }
 0x30c   : > { %5791 = vmatpush.bf16.msrb.mxu0 %v9374_v63 }
 0x30d   : > { %5567 = vmatmul.bf16.gmra.mxu3 %v7170_v38  ;;  %5616 = vmatmul.bf16.gmra.mxu0 %v7174_v2  ;;  %v7461_v38 = vld [vmem:[%s9556_s13 + $0x748] sm:$0xf]  ;;  %v9105_v2 = vld [vmem:[%s9556_s13 + $0x7d8] sm:$0xf0] }
 0x30e   : > { %v5323_v9 = vpop.f32.mrf.mxu2 }
 0x30f   : > { %v5324_v49 = vadd.f32 %v5323_v9, %v5275_v44  ;;  %v7463_v44 = vld [vmem:[%s9556_s13 + $0x7dc] sm:$0xf0] }
 0x310   : > { %v5372_v11 = vpop.f32.mrf.mxu3  ;;  %v5276_v46 = vpop.f32.mrf.mxu1 }
 0x311   : > { %v5373_v52 = vadd.f32 %v5372_v11, %v5324_v49  ;;  %v5277_v13 = vadd.f32 %v5276_v46, %v10671_v62  ;;  %v7321_v62 = vld [vmem:[%s9556_s13 + $0x628] sm:$0xf]  ;;  %v7458_v49 = vor.u32 %v9086_v31, %v7455_v0  ;;  %v7462_v11 = vor.u32 %v9105_v2, %v7461_v38  ;;  %v9396_v0 = vld [vmem:[%s11541_s1 + $0x7b0] sm:$0xff] }
 0x312   : > { %v5423_v17 = vpop.f32.mrf.mxu0  ;;  %v7322_v40 = vor.u32 %v9069_v32, %v7321_v62  ;;  %v9404_v38 = vld [vmem:[%s11541_s1 + $0x7f0] sm:$0xff]  ;;  %5883 = vmatpush.bf16.msra.mxu2 %v9396_v0 }
 0x313   : > { %v10870_v60 = vadd.f32 %v5421_v5, %v5373_v52  ;;  %v9106_v5 = vld [vmem:[%s9556_s13 + $0x7e0] sm:$0xf0]  ;;  %v7466_v52 = vor.u32 %v9087_v56, %v7463_v44  ;;  %5932 = vmatpush.bf16.msra.mxu3 %v9404_v38 }
 0x316   : > { %v5325_v33 = vpop.f32.mrf.mxu2 }
 0x317   : > { %v5326_v50 = vadd.f32 %v5325_v33, %v5277_v13 }
 0x318   : > { %v5374_v36 = vpop.f32.mrf.mxu3  ;;  %v5279_v4 = vpop.f32.mrf.mxu1 }
 0x319   : > { %v5375_v42 = vadd.f32 %v5374_v36, %v5326_v50  ;;  %v5280_v19 = vadd.f32 %v5279_v4, %v10688_v29  ;;  %v9389_v50 = vld [vmem:[%s11541_s1 + $0x778] sm:$0xff] }
 0x31a   : > { %v5426_v26 = vpop.f32.mrf.mxu0  ;;  %v9413_v36 = vld [vmem:[%s11541_s1 + $0x838] sm:$0xff]  ;;  %5833 = vmatpush.bf16.msra.mxu1 %v9389_v50 }
 0x31b   : > { %5474 = vmatmul.bf16.gmra.mxu1 %v7310_v7  ;;  %5523 = vmatmul.bf16.gmra.mxu2 %v7314_v37  ;;  %v10879_v14 = vadd.f32 %v5423_v17, %v5375_v42  ;;  %v9123_v7 = vld [vmem:[%s9556_s13 + $0x86c] sm:$0xf]  ;;  %v7603_v37 = vld [vmem:[%s9556_s13 + $0x8fc] sm:$0xf0]  ;;  %v9124_v42 = vld [vmem:[%s9556_s13 + $0x874] sm:$0xf] }
 0x31c   : > { %5980 = vmatpush.bf16.msra.mxu0 %v9413_v36 }
 0x31d   : > { %5572 = vmatmul.bf16.gmra.mxu3 %v7318_v12  ;;  %5621 = vmatmul.bf16.gmra.mxu0 %v7322_v40  ;;  %v7609_v12 = vld [vmem:[%s9556_s13 + $0x870] sm:$0xf]  ;;  %v9142_v40 = vld [vmem:[%s9556_s13 + $0x900] sm:$0xf0] }
 0x31e   : > { %v5328_v15 = vpop.f32.mrf.mxu2 }
 0x31f   : > { %v5329_v29 = vadd.f32 %v5328_v15, %v5280_v19  ;;  %v7611_v19 = vld [vmem:[%s9556_s13 + $0x904] sm:$0xf0] }
 0x320   : > { %v5377_v51 = vpop.f32.mrf.mxu3  ;;  %v5281_v28 = vpop.f32.mrf.mxu1 }
 0x321   : > { %v5378_v18 = vadd.f32 %v5377_v51, %v5329_v29  ;;  %v5282_v53 = vadd.f32 %v5281_v28, %v10697_v45  ;;  %v7469_v45 = vld [vmem:[%s9556_s13 + $0x750] sm:$0xf]  ;;  %v7606_v29 = vor.u32 %v9123_v7, %v7603_v37  ;;  %v7610_v51 = vor.u32 %v9142_v40, %v7609_v12  ;;  %v9395_v37 = vld [vmem:[%s11541_s1 + $0x7a8] sm:$0xff] }
 0x322   : > { %v5428_v55 = vpop.f32.mrf.mxu0  ;;  %v7470_v13 = vor.u32 %v9106_v5, %v7469_v45  ;;  %v9403_v12 = vld [vmem:[%s11541_s1 + $0x7e8] sm:$0xff]  ;;  %5884 = vmatpush.bf16.msra.mxu2 %v9395_v37 }
 0x323   : > { %v10896_v24 = vadd.f32 %v5426_v26, %v5378_v18  ;;  %v9143_v26 = vld [vmem:[%s9556_s13 + $0x908] sm:$0xf0]  ;;  %v7614_v18 = vor.u32 %v9124_v42, %v7611_v19  ;;  %5933 = vmatpush.bf16.msra.mxu3 %v9403_v12 }
 0x326   : > { %v5330_v6 = vpop.f32.mrf.mxu2 }
 0x327   : > { %v5331_v48 = vadd.f32 %v5330_v6, %v5282_v53 }
 0x328   : > { %v5379_v9 = vpop.f32.mrf.mxu3  ;;  %v5284_v46 = vpop.f32.mrf.mxu1 }
 0x329   : > { %v5380_v17 = vadd.f32 %v5379_v9, %v5331_v48  ;;  %v5285_v57 = vadd.f32 %v5284_v46, %v10714_v3  ;;  %v9388_v48 = vld [vmem:[%s11541_s1 + $0x770] sm:$0xff] }
 0x32a   : > { %v5431_v21 = vpop.f32.mrf.mxu0  ;;  %v9412_v9 = vld [vmem:[%s11541_s1 + $0x830] sm:$0xff]  ;;  %5834 = vmatpush.bf16.msra.mxu1 %v9388_v48 }
 0x32b   : > { %5479 = vmatmul.bf16.gmra.mxu1 %v7458_v49  ;;  %5528 = vmatmul.bf16.gmra.mxu2 %v7462_v11  ;;  %v10905_v43 = vadd.f32 %v5428_v55, %v5380_v17  ;;  %v8866_v49 = vld [vmem:[%s9556_s13 + $0x64] sm:$0xf]  ;;  %v6583_v11 = vld [vmem:[%s9556_s13 + $0xf4] sm:$0xf0]  ;;  %v8867_v17 = vld [vmem:[%s9556_s13 + $0x6c] sm:$0xf] }
 0x32c   : > { %5981 = vmatpush.bf16.msra.mxu0 %v9412_v9 }
 0x32d   : > { %5577 = vmatmul.bf16.gmra.mxu3 %v7466_v52  ;;  %5626 = vmatmul.bf16.gmra.mxu0 %v7470_v13  ;;  %v6589_v52 = vld [vmem:[%s9556_s13 + $0x68] sm:$0xf]  ;;  %v8885_v13 = vld [vmem:[%s9556_s13 + $0xf8] sm:$0xf0] }
 0x32e   : > { %v5333_v61 = vpop.f32.mrf.mxu2 }
 0x32f   : > { %v5334_v3 = vadd.f32 %v5333_v61, %v5285_v57  ;;  %v6591_v57 = vld [vmem:[%s9556_s13 + $0xfc] sm:$0xf0] }
 0x330   : > { %v5382_v30 = vpop.f32.mrf.mxu3  ;;  %v5286_v25 = vpop.f32.mrf.mxu1 }
 0x331   : > { %v5383_v62 = vadd.f32 %v5382_v30, %v5334_v3  ;;  %v5287_v32 = vadd.f32 %v5286_v25, %v10723_v20  ;;  %v7617_v20 = vld [vmem:[%s9556_s13 + $0x878] sm:$0xf]  ;;  %v6586_v3 = vor.u32 %v8866_v49, %v6583_v11  ;;  %v6590_v30 = vor.u32 %v8885_v13, %v6589_v52  ;;  %v9394_v11 = vld [vmem:[%s11541_s1 + $0x7a0] sm:$0xff] }
 0x332   : > { %v5433_v33 = vpop.f32.mrf.mxu0  ;;  %v7618_v53 = vor.u32 %v9143_v26, %v7617_v20  ;;  %v9402_v52 = vld [vmem:[%s11541_s1 + $0x7e0] sm:$0xff]  ;;  %5885 = vmatpush.bf16.msra.mxu2 %v9394_v11 }
 0x333   : > { %v10922_v4 = vadd.f32 %v5431_v21, %v5383_v62  ;;  %v8886_v21 = vld [vmem:[%s9556_s13 + $0x100] sm:$0xf0]  ;;  %v6594_v62 = vor.u32 %v8867_v17, %v6591_v57  ;;  %5934 = vmatpush.bf16.msra.mxu3 %v9402_v52 }
 0x336   : > { %v5335_v47 = vpop.f32.mrf.mxu2 }
 0x337   : > { %v5336_v27 = vadd.f32 %v5335_v47, %v5287_v32 }
 0x338   : > { %v5384_v15 = vpop.f32.mrf.mxu3  ;;  %v5289_v28 = vpop.f32.mrf.mxu1 }
 0x339   : > { %v5385_v55 = vadd.f32 %v5384_v15, %v5336_v27  ;;  %v5290_v34 = vadd.f32 %v5289_v28, %v10740_v41  ;;  %v9387_v27 = vld [vmem:[%s11541_s1 + $0x768] sm:$0xff] }
 0x33a   : > { %v5436_v63 = vpop.f32.mrf.mxu0  ;;  %v9411_v15 = vld [vmem:[%s11541_s1 + $0x828] sm:$0xff]  ;;  %5835 = vmatpush.bf16.msra.mxu1 %v9387_v27 }
 0x33b   : > { %5484 = vmatmul.bf16.gmra.mxu1 %v7606_v29  ;;  %5533 = vmatmul.bf16.gmra.mxu2 %v7610_v51  ;;  %v10931_v31 = vadd.f32 %v5433_v33, %v5385_v55  ;;  %v8903_v29 = vld [vmem:[%s9556_s13 + $0x18c] sm:$0xf]  ;;  %v6731_v51 = vld [vmem:[%s9556_s13 + $0x21c] sm:$0xf0]  ;;  %v8904_v55 = vld [vmem:[%s9556_s13 + $0x194] sm:$0xf] }
 0x33c   : > { %5982 = vmatpush.bf16.msra.mxu0 %v9411_v15 }
 0x33d   : > { %5582 = vmatmul.bf16.gmra.mxu3 %v7614_v18  ;;  %5631 = vmatmul.bf16.gmra.mxu0 %v7618_v53  ;;  %v6737_v18 = vld [vmem:[%s9556_s13 + $0x190] sm:$0xf]  ;;  %v8922_v53 = vld [vmem:[%s9556_s13 + $0x220] sm:$0xf0] }
 0x33e   : > { %v5338_v2 = vpop.f32.mrf.mxu2 }
 0x33f   : > { %v5339_v41 = vadd.f32 %v5338_v2, %v5290_v34  ;;  %v6739_v34 = vld [vmem:[%s9556_s13 + $0x224] sm:$0xf0] }
 0x340   : > { %v5387_v56 = vpop.f32.mrf.mxu3  ;;  %v5291_v44 = vpop.f32.mrf.mxu1 }
 0x341   : > { %v5388_v45 = vadd.f32 %v5387_v56, %v5339_v41  ;;  %v5292_v5 = vadd.f32 %v5291_v44, %v10749_v59  ;;  %v6597_v59 = vld [vmem:[%s9556_s13 + $0x70] sm:$0xf]  ;;  %v6734_v41 = vor.u32 %v8903_v29, %v6731_v51  ;;  %v6738_v56 = vor.u32 %v8922_v53, %v6737_v18  ;;  %v9393_v51 = vld [vmem:[%s11541_s1 + $0x798] sm:$0xff] }
 0x342   : > { %v5438_v6 = vpop.f32.mrf.mxu0  ;;  %v6598_v32 = vor.u32 %v8886_v21, %v6597_v59  ;;  %v9401_v18 = vld [vmem:[%s11541_s1 + $0x7d8] sm:$0xff]  ;;  %5886 = vmatpush.bf16.msra.mxu2 %v9393_v51 }
 0x343   : > { %v10948_v46 = vadd.f32 %v5436_v63, %v5388_v45  ;;  %v8923_v63 = vld [vmem:[%s9556_s13 + $0x228] sm:$0xf0]  ;;  %v6742_v45 = vor.u32 %v8904_v55, %v6739_v34  ;;  %5935 = vmatpush.bf16.msra.mxu3 %v9401_v18 }
 0x346   : > { %v5340_v23 = vpop.f32.mrf.mxu2 }
 0x347   : > { %v5341_v1 = vadd.f32 %v5340_v23, %v5292_v5 }
 0x348   : > { %v5389_v61 = vpop.f32.mrf.mxu3  ;;  %v5450_v25 = vpop.f32.mrf.mxu1 }
 0x349   : > { %v5390_v33 = vadd.f32 %v5389_v61, %v5341_v1  ;;  %v5451_v50 = vadd.f32 %v5450_v25, %v10766_v16  ;;  %v9386_v1 = vld [vmem:[%s11541_s1 + $0x760] sm:$0xff] }
 0x34a   : > { %v5597_v36 = vpop.f32.mrf.mxu0  ;;  %v9410_v61 = vld [vmem:[%s11541_s1 + $0x820] sm:$0xff]  ;;  %5836 = vmatpush.bf16.msra.mxu1 %v9386_v1 }
 0x34b   : > { %5645 = vmatmul.bf16.vlgmr.msrb.gmra.mxu1 %v6586_v3  ;;  %5694 = vmatmul.bf16.vlgmr.msrb.gmra.mxu2 %v6590_v30  ;;  %v10957_v7 = vadd.f32 %v5438_v6, %v5390_v33  ;;  %v8940_v3 = vld [vmem:[%s9556_s13 + $0x2b4] sm:$0xf]  ;;  %v6879_v30 = vld [vmem:[%s9556_s13 + $0x344] sm:$0xf0]  ;;  %v8941_v33 = vld [vmem:[%s9556_s13 + $0x2bc] sm:$0xf] }
 0x34c   : > { %5983 = vmatpush.bf16.msra.mxu0 %v9410_v61 }
 0x34d   : > { %5743 = vmatmul.bf16.vlgmr.msrb.gmra.mxu3 %v6594_v62  ;;  %5792 = vmatmul.bf16.vlgmr.msrb.gmra.mxu0 %v6598_v32  ;;  %v6885_v62 = vld [vmem:[%s9556_s13 + $0x2b8] sm:$0xf]  ;;  %v8959_v32 = vld [vmem:[%s9556_s13 + $0x348] sm:$0xf0] }
 0x34e   : > { %v5499_v40 = vpop.f32.mrf.mxu2 }
 0x34f   : > { %v5500_v16 = vadd.f32 %v5499_v40, %v5451_v50  ;;  %v6887_v50 = vld [vmem:[%s9556_s13 + $0x34c] sm:$0xf0] }
 0x350   : > { %v5548_v42 = vpop.f32.mrf.mxu3  ;;  %v5452_v19 = vpop.f32.mrf.mxu1 }
 0x351   : > { %v5549_v20 = vadd.f32 %v5548_v42, %v5500_v16  ;;  %v5453_v26 = vadd.f32 %v5452_v19, %v10775_v35  ;;  %v6745_v35 = vld [vmem:[%s9556_s13 + $0x198] sm:$0xf]  ;;  %v6882_v16 = vor.u32 %v8940_v3, %v6879_v30  ;;  %v6886_v42 = vor.u32 %v8959_v32, %v6885_v62  ;;  %v9392_v30 = vld [vmem:[%s11541_s1 + $0x790] sm:$0xff] }
 0x352   : > { %v5599_v47 = vpop.f32.mrf.mxu0  ;;  %v6746_v5 = vor.u32 %v8923_v63, %v6745_v35  ;;  %v9400_v62 = vld [vmem:[%s11541_s1 + $0x7d0] sm:$0xff]  ;;  %5887 = vmatpush.bf16.msra.mxu2 %v9392_v30 }
 0x353   : > { %v10974_v28 = vadd.f32 %v5597_v36, %v5549_v20  ;;  %v8960_v36 = vld [vmem:[%s9556_s13 + $0x350] sm:$0xf0]  ;;  %v6890_v20 = vor.u32 %v8941_v33, %v6887_v50  ;;  %5936 = vmatpush.bf16.msra.mxu3 %v9400_v62 }
 0x356   : > { %v5501_v0 = vpop.f32.mrf.mxu2 }
 0x357   : > { %v5502_v38 = vadd.f32 %v5501_v0, %v5453_v26 }
 0x358   : > { %v5550_v2 = vpop.f32.mrf.mxu3  ;;  %v5455_v44 = vpop.f32.mrf.mxu1 }
 0x359   : > { %v5551_v6 = vadd.f32 %v5550_v2, %v5502_v38  ;;  %v5456_v48 = vadd.f32 %v5455_v44, %v10792_v54  ;;  %v9385_v38 = vld [vmem:[%s11541_s1 + $0x758] sm:$0xff] }
 0x35a   : > { %v5602_v9 = vpop.f32.mrf.mxu0  ;;  %v9409_v2 = vld [vmem:[%s11541_s1 + $0x818] sm:$0xff]  ;;  %5837 = vmatpush.bf16.msra.mxu1 %v9385_v38 }
 0x35b   : > { %5650 = vmatmul.bf16.gmra.mxu1 %v6734_v41  ;;  %5699 = vmatmul.bf16.gmra.mxu2 %v6738_v56  ;;  %v10983_v49 = vadd.f32 %v5599_v47, %v5551_v6  ;;  %v8977_v41 = vld [vmem:[%s9556_s13 + $0x3dc] sm:$0xf]  ;;  %v7027_v56 = vld [vmem:[%s9556_s13 + $0x46c] sm:$0xf0]  ;;  %v8978_v6 = vld [vmem:[%s9556_s13 + $0x3e4] sm:$0xf] }
 0x35c   : > { %5984 = vmatpush.bf16.msra.mxu0 %v9409_v2 }
 0x35d   : > { %5748 = vmatmul.bf16.gmra.mxu3 %v6742_v45  ;;  %5797 = vmatmul.bf16.gmra.mxu0 %v6746_v5  ;;  %v7033_v45 = vld [vmem:[%s9556_s13 + $0x3e0] sm:$0xf]  ;;  %v8996_v5 = vld [vmem:[%s9556_s13 + $0x470] sm:$0xf0] }
 0x35e   : > { %v5504_v13 = vpop.f32.mrf.mxu2 }
 0x35f   : > { %v5505_v54 = vadd.f32 %v5504_v13, %v5456_v48  ;;  %v7035_v48 = vld [vmem:[%s9556_s13 + $0x474] sm:$0xf0] }
 0x360   : > { %v5553_v17 = vpop.f32.mrf.mxu3  ;;  %v5457_v57 = vpop.f32.mrf.mxu1 }
 0x361   : > { %v5554_v59 = vadd.f32 %v5553_v17, %v5505_v54  ;;  %v5458_v21 = vadd.f32 %v5457_v57, %v10801_v8  ;;  %v6893_v8 = vld [vmem:[%s9556_s13 + $0x2c0] sm:$0xf]  ;;  %v7030_v54 = vor.u32 %v8977_v41, %v7027_v56  ;;  %v7034_v17 = vor.u32 %v8996_v5, %v7033_v45  ;;  %v9391_v56 = vld [vmem:[%s11541_s1 + $0x788] sm:$0xff] }
 0x362   : > { %v5604_v23 = vpop.f32.mrf.mxu0  ;;  %v6894_v26 = vor.u32 %v8960_v36, %v6893_v8  ;;  %v9399_v45 = vld [vmem:[%s11541_s1 + $0x7c8] sm:$0xff]  ;;  %5888 = vmatpush.bf16.msra.mxu2 %v9391_v56 }
 0x363   : > { %v11000_v25 = vadd.f32 %v5602_v9, %v5554_v59  ;;  %v8997_v9 = vld [vmem:[%s9556_s13 + $0x478] sm:$0xf0]  ;;  %v7038_v59 = vor.u32 %v8978_v6, %v7035_v48  ;;  %5937 = vmatpush.bf16.msra.mxu3 %v9399_v45 }
 0x366   : > { %v5506_v37 = vpop.f32.mrf.mxu2 }
 0x367   : > { %v5507_v12 = vadd.f32 %v5506_v37, %v5458_v21 }
 0x368   : > { %v5555_v40 = vpop.f32.mrf.mxu3  ;;  %v5460_v19 = vpop.f32.mrf.mxu1 }
 0x369   : > { %v5556_v47 = vadd.f32 %v5555_v40, %v5507_v12  ;;  %v5461_v27 = vadd.f32 %v5460_v19, %v10818_v58  ;;  %v9384_v12 = vld [vmem:[%s11541_s1 + $0x750] sm:$0xff] }
 0x36a   : > { %v5607_v15 = vpop.f32.mrf.mxu0  ;;  %v9408_v40 = vld [vmem:[%s11541_s1 + $0x810] sm:$0xff]  ;;  %5838 = vmatpush.bf16.msra.mxu1 %v9384_v12 }
 0x36b   : > { %5655 = vmatmul.bf16.gmra.mxu1 %v6882_v16  ;;  %5704 = vmatmul.bf16.gmra.mxu2 %v6886_v42  ;;  %v11009_v29 = vadd.f32 %v5604_v23, %v5556_v47  ;;  %v9014_v16 = vld [vmem:[%s9556_s13 + $0x504] sm:$0xf]  ;;  %v7175_v42 = vld [vmem:[%s9556_s13 + $0x594] sm:$0xf0]  ;;  %v9015_v47 = vld [vmem:[%s9556_s13 + $0x50c] sm:$0xf] }
 0x36c   : > { %5985 = vmatpush.bf16.msra.mxu0 %v9408_v40 }
 0x36d   : > { %5753 = vmatmul.bf16.gmra.mxu3 %v6890_v20  ;;  %5802 = vmatmul.bf16.gmra.mxu0 %v6894_v26  ;;  %v7181_v20 = vld [vmem:[%s9556_s13 + $0x508] sm:$0xf]  ;;  %v9033_v26 = vld [vmem:[%s9556_s13 + $0x598] sm:$0xf0] }
 0x36e   : > { %v5509_v53 = vpop.f32.mrf.mxu2 }
 0x36f   : > { %v5510_v58 = vadd.f32 %v5509_v53, %v5461_v27  ;;  %v7183_v27 = vld [vmem:[%s9556_s13 + $0x59c] sm:$0xf0] }
 0x370   : > { %v5558_v55 = vpop.f32.mrf.mxu3  ;;  %v5462_v34 = vpop.f32.mrf.mxu1 }
 0x371   : > { %v5559_v35 = vadd.f32 %v5558_v55, %v5510_v58  ;;  %v5463_v63 = vadd.f32 %v5462_v34, %v10827_v10  ;;  %v7041_v10 = vld [vmem:[%s9556_s13 + $0x3e8] sm:$0xf]  ;;  %v7178_v58 = vor.u32 %v9014_v16, %v7175_v42  ;;  %v7182_v55 = vor.u32 %v9033_v26, %v7181_v20  ;;  %v9390_v42 = vld [vmem:[%s11541_s1 + $0x780] sm:$0xff] }
 0x372   : > { %v5609_v0 = vpop.f32.mrf.mxu0  ;;  %v7042_v21 = vor.u32 %v8997_v9, %v7041_v10  ;;  %v9398_v20 = vld [vmem:[%s11541_s1 + $0x7c0] sm:$0xff]  ;;  %5889 = vmatpush.bf16.msra.mxu2 %v9390_v42 }
 0x373   : > { %v11026_v44 = vadd.f32 %v5607_v15, %v5559_v35  ;;  %v9034_v15 = vld [vmem:[%s9556_s13 + $0x5a0] sm:$0xf0]  ;;  %v7186_v35 = vor.u32 %v9015_v47, %v7183_v27  ;;  %5938 = vmatpush.bf16.msra.mxu3 %v9398_v20 }
 0x376   : > { %v5511_v11 = vpop.f32.mrf.mxu2 }
 0x377   : > { %v5512_v52 = vadd.f32 %v5511_v11, %v5463_v63 }
 0x378   : > { %v5560_v13 = vpop.f32.mrf.mxu3  ;;  %v5465_v57 = vpop.f32.mrf.mxu1 }
 0x379   : > { %v5561_v23 = vadd.f32 %v5560_v13, %v5512_v52  ;;  %v5466_v1 = vadd.f32 %v5465_v57, %v10844_v22  ;;  %v9383_v52 = vld [vmem:[%s11541_s1 + $0x748] sm:$0xff] }
 0x37a   : > { %v5612_v61 = vpop.f32.mrf.mxu0  ;;  %v9407_v13 = vld [vmem:[%s11541_s1 + $0x808] sm:$0xff]  ;;  %5839 = vmatpush.bf16.msra.mxu1 %v9383_v52 }
 0x37b   : > { %5660 = vmatmul.bf16.gmra.mxu1 %v7030_v54  ;;  %5709 = vmatmul.bf16.gmra.mxu2 %v7034_v17  ;;  %v11035_v3 = vadd.f32 %v5609_v0, %v5561_v23  ;;  %v9051_v54 = vld [vmem:[%s9556_s13 + $0x62c] sm:$0xf]  ;;  %v7323_v17 = vld [vmem:[%s9556_s13 + $0x6bc] sm:$0xf0]  ;;  %v9052_v23 = vld [vmem:[%s9556_s13 + $0x634] sm:$0xf] }
 0x37c   : > { %5986 = vmatpush.bf16.msra.mxu0 %v9407_v13 }
 0x37d   : > { %5758 = vmatmul.bf16.gmra.mxu3 %v7038_v59  ;;  %5807 = vmatmul.bf16.gmra.mxu0 %v7042_v21  ;;  %v7329_v59 = vld [vmem:[%s9556_s13 + $0x630] sm:$0xf]  ;;  %v9070_v21 = vld [vmem:[%s9556_s13 + $0x6c0] sm:$0xf0] }
 0x37e   : > { %v5514_v32 = vpop.f32.mrf.mxu2 }
 0x37f   : > { %v5515_v22 = vadd.f32 %v5514_v32, %v5466_v1  ;;  %v7331_v1 = vld [vmem:[%s9556_s13 + $0x6c4] sm:$0xf0] }
 0x380   : > { %v5563_v33 = vpop.f32.mrf.mxu3  ;;  %v5467_v50 = vpop.f32.mrf.mxu1 }
 0x381   : > { %v5564_v8 = vadd.f32 %v5563_v33, %v5515_v22  ;;  %v5468_v36 = vadd.f32 %v5467_v50, %v10853_v39  ;;  %v7189_v39 = vld [vmem:[%s9556_s13 + $0x510] sm:$0xf]  ;;  %v7326_v22 = vor.u32 %v9051_v54, %v7323_v17  ;;  %v7330_v33 = vor.u32 %v9070_v21, %v7329_v59  ;;  %v9429_v17 = vld [vmem:[%s11541_s1 + $0x8b8] sm:$0xff] }
 0x382   : > { %v5614_v37 = vpop.f32.mrf.mxu0  ;;  %v7190_v63 = vor.u32 %v9034_v15, %v7189_v39  ;;  %v9437_v59 = vld [vmem:[%s11541_s1 + $0x8f8] sm:$0xff]  ;;  %6078 = vmatpush.bf16.msrb.mxu2 %v9429_v17 }
 0x383   : > { %v11052_v19 = vadd.f32 %v5612_v61, %v5564_v8  ;;  %v9071_v61 = vld [vmem:[%s9556_s13 + $0x6c8] sm:$0xf0]  ;;  %v7334_v8 = vor.u32 %v9052_v23, %v7331_v1  ;;  %6127 = vmatpush.bf16.msrb.mxu3 %v9437_v59 }
 0x386   : > { %v5516_v51 = vpop.f32.mrf.mxu2 }
 0x387   : > { %v5517_v18 = vadd.f32 %v5516_v51, %v5468_v36 }
 0x388   : > { %v5565_v53 = vpop.f32.mrf.mxu3  ;;  %v5470_v34 = vpop.f32.mrf.mxu1 }
 0x389   : > { %v5566_v0 = vadd.f32 %v5565_v53, %v5517_v18  ;;  %v5471_v38 = vadd.f32 %v5470_v34, %v10870_v60  ;;  %v9382_v18 = vld [vmem:[%s11541_s1 + $0x740] sm:$0xff] }
 0x38a   : > { %v5617_v2 = vpop.f32.mrf.mxu0  ;;  %v9406_v53 = vld [vmem:[%s11541_s1 + $0x800] sm:$0xff]  ;;  %5840 = vmatpush.bf16.msra.mxu1 %v9382_v18 }
 0x38b   : > { %5665 = vmatmul.bf16.gmra.mxu1 %v7178_v58  ;;  %5714 = vmatmul.bf16.gmra.mxu2 %v7182_v55  ;;  %v11061_v41 = vadd.f32 %v5614_v37, %v5566_v0  ;;  %v9088_v58 = vld [vmem:[%s9556_s13 + $0x754] sm:$0xf]  ;;  %v7471_v55 = vld [vmem:[%s9556_s13 + $0x7e4] sm:$0xf0]  ;;  %v9089_v0 = vld [vmem:[%s9556_s13 + $0x75c] sm:$0xf] }
 0x38c   : > { %5987 = vmatpush.bf16.msra.mxu0 %v9406_v53 }
 0x38d   : > { %5763 = vmatmul.bf16.gmra.mxu3 %v7186_v35  ;;  %5812 = vmatmul.bf16.gmra.mxu0 %v7190_v63  ;;  %v7477_v35 = vld [vmem:[%s9556_s13 + $0x758] sm:$0xf]  ;;  %v9107_v63 = vld [vmem:[%s9556_s13 + $0x7e8] sm:$0xf0] }
 0x38e   : > { %v5519_v5 = vpop.f32.mrf.mxu2 }
 0x38f   : > { %v5520_v60 = vadd.f32 %v5519_v5, %v5471_v38  ;;  %v7479_v38 = vld [vmem:[%s9556_s13 + $0x7ec] sm:$0xf0] }
 0x390   : > { %v5568_v6 = vpop.f32.mrf.mxu3  ;;  %v5472_v48 = vpop.f32.mrf.mxu1 }
 0x391   : > { %v5569_v10 = vadd.f32 %v5568_v6, %v5520_v60  ;;  %v5473_v9 = vadd.f32 %v5472_v48, %v10879_v14  ;;  %v7337_v14 = vld [vmem:[%s9556_s13 + $0x638] sm:$0xf]  ;;  %v7474_v60 = vor.u32 %v9088_v58, %v7471_v55  ;;  %v7478_v6 = vor.u32 %v9107_v63, %v7477_v35  ;;  %v9428_v55 = vld [vmem:[%s11541_s1 + $0x8b0] sm:$0xff] }
 0x392   : > { %v5619_v11 = vpop.f32.mrf.mxu0  ;;  %v7338_v36 = vor.u32 %v9071_v61, %v7337_v14  ;;  %v9436_v35 = vld [vmem:[%s11541_s1 + $0x8f0] sm:$0xff]  ;;  %6079 = vmatpush.bf16.msrb.mxu2 %v9428_v55 }
 0x393   : > { %v11078_v57 = vadd.f32 %v5617_v2, %v5569_v10  ;;  %v9108_v2 = vld [vmem:[%s9556_s13 + $0x7f0] sm:$0xf0]  ;;  %v7482_v10 = vor.u32 %v9089_v0, %v7479_v38  ;;  %6128 = vmatpush.bf16.msrb.mxu3 %v9436_v35 }
 0x396   : > { %v5521_v30 = vpop.f32.mrf.mxu2 }
 0x397   : > { %v5522_v62 = vadd.f32 %v5521_v30, %v5473_v9 }
 0x398   : > { %v5570_v32 = vpop.f32.mrf.mxu3  ;;  %v5475_v50 = vpop.f32.mrf.mxu1 }
 0x399   : > { %v5571_v37 = vadd.f32 %v5570_v32, %v5522_v62  ;;  %v5476_v12 = vadd.f32 %v5475_v50, %v10896_v24  ;;  %v9421_v62 = vld [vmem:[%s11541_s1 + $0x878] sm:$0xff] }
 0x39a   : > { %v5622_v40 = vpop.f32.mrf.mxu0  ;;  %v9445_v32 = vld [vmem:[%s11541_s1 + $0x938] sm:$0xff]  ;;  %6029 = vmatpush.bf16.msrb.mxu1 %v9421_v62 }
 0x39b   : > { %5670 = vmatmul.bf16.gmra.mxu1 %v7326_v22  ;;  %5719 = vmatmul.bf16.gmra.mxu2 %v7330_v33  ;;  %v11087_v16 = vadd.f32 %v5619_v11, %v5571_v37  ;;  %v9125_v22 = vld [vmem:[%s9556_s13 + $0x87c] sm:$0xf]  ;;  %v7619_v33 = vld [vmem:[%s9556_s13 + $0x90c] sm:$0xf0]  ;;  %v9126_v37 = vld [vmem:[%s9556_s13 + $0x884] sm:$0xf] }
 0x39c   : > { %6176 = vmatpush.bf16.msrb.mxu0 %v9445_v32 }
 0x39d   : > { %5768 = vmatmul.bf16.gmra.mxu3 %v7334_v8  ;;  %5817 = vmatmul.bf16.gmra.mxu0 %v7338_v36  ;;  %v7625_v8 = vld [vmem:[%s9556_s13 + $0x880] sm:$0xf]  ;;  %v9144_v36 = vld [vmem:[%s9556_s13 + $0x910] sm:$0xf0] }
 0x39e   : > { %v5524_v26 = vpop.f32.mrf.mxu2 }
 0x39f   : > { %v5525_v24 = vadd.f32 %v5524_v26, %v5476_v12  ;;  %v7627_v12 = vld [vmem:[%s9556_s13 + $0x914] sm:$0xf0] }
 0x3a0   : > { %v5573_v47 = vpop.f32.mrf.mxu3  ;;  %v5477_v27 = vpop.f32.mrf.mxu1 }
 0x3a1   : > { %v5574_v39 = vadd.f32 %v5573_v47, %v5525_v24  ;;  %v5478_v15 = vadd.f32 %v5477_v27, %v10905_v43  ;;  %v7485_v43 = vld [vmem:[%s9556_s13 + $0x760] sm:$0xf]  ;;  %v7622_v24 = vor.u32 %v9125_v22, %v7619_v33  ;;  %v7626_v47 = vor.u32 %v9144_v36, %v7625_v8  ;;  %v9427_v33 = vld [vmem:[%s11541_s1 + $0x8a8] sm:$0xff] }
 0x3a2   : > { %v5624_v51 = vpop.f32.mrf.mxu0  ;;  %v7486_v9 = vor.u32 %v9108_v2, %v7485_v43  ;;  %v9435_v8 = vld [vmem:[%s11541_s1 + $0x8e8] sm:$0xff]  ;;  %6080 = vmatpush.bf16.msrb.mxu2 %v9427_v33 }
 0x3a3   : > { %v11104_v34 = vadd.f32 %v5622_v40, %v5574_v39  ;;  %v9145_v40 = vld [vmem:[%s9556_s13 + $0x918] sm:$0xf0]  ;;  %v7630_v39 = vor.u32 %v9126_v37, %v7627_v12  ;;  %6129 = vmatpush.bf16.msrb.mxu3 %v9435_v8 }
 0x3a6   : > { %v5526_v56 = vpop.f32.mrf.mxu2 }
 0x3a7   : > { %v5527_v45 = vadd.f32 %v5526_v56, %v5478_v15 }
 0x3a8   : > { %v5575_v5 = vpop.f32.mrf.mxu3  ;;  %v5480_v48 = vpop.f32.mrf.mxu1 }
 0x3a9   : > { %v5576_v11 = vadd.f32 %v5575_v5, %v5527_v45  ;;  %v5481_v52 = vadd.f32 %v5480_v48, %v10922_v4  ;;  %v9420_v45 = vld [vmem:[%s11541_s1 + $0x870] sm:$0xff] }
 0x3aa   : > { %v5627_v13 = vpop.f32.mrf.mxu0  ;;  %v9444_v5 = vld [vmem:[%s11541_s1 + $0x930] sm:$0xff]  ;;  %6030 = vmatpush.bf16.msrb.mxu1 %v9420_v45 }
 0x3ab   : > { %5675 = vmatmul.bf16.gmra.mxu1 %v7474_v60  ;;  %5724 = vmatmul.bf16.gmra.mxu2 %v7478_v6  ;;  %v11113_v54 = vadd.f32 %v5624_v51, %v5576_v11  ;;  %v8868_v60 = vld [vmem:[%s9556_s13 + $0x74] sm:$0xf]  ;;  %v6599_v6 = vld [vmem:[%s9556_s13 + $0x104] sm:$0xf0]  ;;  %v8869_v11 = vld [vmem:[%s9556_s13 + $0x7c] sm:$0xf] }
 0x3ac   : > { %6177 = vmatpush.bf16.msrb.mxu0 %v9444_v5 }
 0x3ad   : > { %5773 = vmatmul.bf16.gmra.mxu3 %v7482_v10  ;;  %5822 = vmatmul.bf16.gmra.mxu0 %v7486_v9  ;;  %v6605_v10 = vld [vmem:[%s9556_s13 + $0x78] sm:$0xf]  ;;  %v8887_v9 = vld [vmem:[%s9556_s13 + $0x108] sm:$0xf0] }
 0x3ae   : > { %v5529_v21 = vpop.f32.mrf.mxu2 }
 0x3af   : > { %v5530_v4 = vadd.f32 %v5529_v21, %v5481_v52  ;;  %v6607_v52 = vld [vmem:[%s9556_s13 + $0x10c] sm:$0xf0] }
 0x3b0   : > { %v5578_v23 = vpop.f32.mrf.mxu3  ;;  %v5482_v1 = vpop.f32.mrf.mxu1 }
 0x3b1   : > { %v5579_v14 = vadd.f32 %v5578_v23, %v5530_v4  ;;  %v5483_v61 = vadd.f32 %v5482_v1, %v10931_v31  ;;  %v7633_v31 = vld [vmem:[%s9556_s13 + $0x888] sm:$0xf]  ;;  %v6602_v4 = vor.u32 %v8868_v60, %v6599_v6  ;;  %v6606_v23 = vor.u32 %v8887_v9, %v6605_v10  ;;  %v9426_v6 = vld [vmem:[%s11541_s1 + $0x8a0] sm:$0xff] }
 0x3b2   : > { %v5629_v30 = vpop.f32.mrf.mxu0  ;;  %v7634_v15 = vor.u32 %v9145_v40, %v7633_v31  ;;  %v9434_v10 = vld [vmem:[%s11541_s1 + $0x8e0] sm:$0xff]  ;;  %6081 = vmatpush.bf16.msrb.mxu2 %v9426_v6 }
 0x3b3   : > { %v11130_v50 = vadd.f32 %v5627_v13, %v5579_v14  ;;  %v8888_v13 = vld [vmem:[%s9556_s13 + $0x110] sm:$0xf0]  ;;  %v6610_v14 = vor.u32 %v8869_v11, %v6607_v52  ;;  %6130 = vmatpush.bf16.msrb.mxu3 %v9434_v10 }
 0x3b6   : > { %v5531_v42 = vpop.f32.mrf.mxu2 }
 0x3b7   : > { %v5532_v20 = vadd.f32 %v5531_v42, %v5483_v61 }
 0x3b8   : > { %v5580_v26 = vpop.f32.mrf.mxu3  ;;  %v5485_v27 = vpop.f32.mrf.mxu1 }
 0x3b9   : > { %v5581_v51 = vadd.f32 %v5580_v26, %v5532_v20  ;;  %v5486_v18 = vadd.f32 %v5485_v27, %v10948_v46  ;;  %v9419_v20 = vld [vmem:[%s11541_s1 + $0x868] sm:$0xff] }
 0x3ba   : > { %v5632_v53 = vpop.f32.mrf.mxu0  ;;  %v9443_v26 = vld [vmem:[%s11541_s1 + $0x928] sm:$0xff]  ;;  %6031 = vmatpush.bf16.msrb.mxu1 %v9419_v20 }
 0x3bb   : > { %5680 = vmatmul.bf16.gmra.mxu1 %v7622_v24  ;;  %5729 = vmatmul.bf16.gmra.mxu2 %v7626_v47  ;;  %v11139_v58 = vadd.f32 %v5629_v30, %v5581_v51  ;;  %v8905_v24 = vld [vmem:[%s9556_s13 + $0x19c] sm:$0xf]  ;;  %v6747_v47 = vld [vmem:[%s9556_s13 + $0x22c] sm:$0xf0]  ;;  %v8906_v51 = vld [vmem:[%s9556_s13 + $0x1a4] sm:$0xf] }
 0x3bc   : > { %6178 = vmatpush.bf16.msrb.mxu0 %v9443_v26 }
 0x3bd   : > { %5778 = vmatmul.bf16.gmra.mxu3 %v7630_v39  ;;  %5827 = vmatmul.bf16.gmra.mxu0 %v7634_v15  ;;  %v6753_v39 = vld [vmem:[%s9556_s13 + $0x1a0] sm:$0xf]  ;;  %v8924_v15 = vld [vmem:[%s9556_s13 + $0x230] sm:$0xf0] }
 0x3be   : > { %v5534_v63 = vpop.f32.mrf.mxu2 }
 0x3bf   : > { %v5535_v46 = vadd.f32 %v5534_v63, %v5486_v18  ;;  %v6755_v18 = vld [vmem:[%s9556_s13 + $0x234] sm:$0xf0] }
 0x3c0   : > { %v5583_v0 = vpop.f32.mrf.mxu3  ;;  %v5487_v38 = vpop.f32.mrf.mxu1 }
 0x3c1   : > { %v5584_v43 = vadd.f32 %v5583_v0, %v5535_v46  ;;  %v5488_v2 = vadd.f32 %v5487_v38, %v10957_v7  ;;  %v6613_v7 = vld [vmem:[%s9556_s13 + $0x80] sm:$0xf]  ;;  %v6750_v46 = vor.u32 %v8905_v24, %v6747_v47  ;;  %v6754_v0 = vor.u32 %v8924_v15, %v6753_v39  ;;  %v9425_v47 = vld [vmem:[%s11541_s1 + $0x898] sm:$0xff] }
 0x3c2   : > { %v5634_v56 = vpop.f32.mrf.mxu0  ;;  %v6614_v61 = vor.u32 %v8888_v13, %v6613_v7  ;;  %v9433_v39 = vld [vmem:[%s11541_s1 + $0x8d8] sm:$0xff]  ;;  %6082 = vmatpush.bf16.msrb.mxu2 %v9425_v47 }
 0x3c3   : > { %v11156_v48 = vadd.f32 %v5632_v53, %v5584_v43  ;;  %v8925_v53 = vld [vmem:[%s9556_s13 + $0x238] sm:$0xf0]  ;;  %v6758_v43 = vor.u32 %v8906_v51, %v6755_v18  ;;  %6131 = vmatpush.bf16.msrb.mxu3 %v9433_v39 }
 0x3c6   : > { %v5536_v17 = vpop.f32.mrf.mxu2 }
 0x3c7   : > { %v5537_v59 = vadd.f32 %v5536_v17, %v5488_v2 }
 0x3c8   : > { %v5585_v21 = vpop.f32.mrf.mxu3  ;;  %v5646_v1 = vpop.f32.mrf.mxu1 }
 0x3c9   : > { %v5586_v30 = vadd.f32 %v5585_v21, %v5537_v59  ;;  %v5647_v62 = vadd.f32 %v5646_v1, %v10974_v28  ;;  %v9418_v59 = vld [vmem:[%s11541_s1 + $0x860] sm:$0xff] }
 0x3ca   : > { %v5793_v32 = vpop.f32.mrf.mxu0  ;;  %v9442_v21 = vld [vmem:[%s11541_s1 + $0x920] sm:$0xff]  ;;  %6032 = vmatpush.bf16.msrb.mxu1 %v9418_v59 }
 0x3cb   : > { %5841 = vmatmul.bf16.vlgmr.msra.gmra.mxu1 %v6602_v4  ;;  %5890 = vmatmul.bf16.vlgmr.msra.gmra.mxu2 %v6606_v23  ;;  %v11165_v22 = vadd.f32 %v5634_v56, %v5586_v30  ;;  %v8942_v4 = vld [vmem:[%s9556_s13 + $0x2c4] sm:$0xf]  ;;  %v6895_v23 = vld [vmem:[%s9556_s13 + $0x354] sm:$0xf0]  ;;  %v8943_v30 = vld [vmem:[%s9556_s13 + $0x2cc] sm:$0xf] }
 0x3cc   : > { %6179 = vmatpush.bf16.msrb.mxu0 %v9442_v21 }
 0x3cd   : > { %5939 = vmatmul.bf16.vlgmr.msra.gmra.mxu3 %v6610_v14  ;;  %5988 = vmatmul.bf16.vlgmr.msra.gmra.mxu0 %v6614_v61  ;;  %v6901_v14 = vld [vmem:[%s9556_s13 + $0x2c8] sm:$0xf]  ;;  %v8961_v61 = vld [vmem:[%s9556_s13 + $0x358] sm:$0xf0] }
 0x3ce   : > { %v5695_v36 = vpop.f32.mrf.mxu2 }
 0x3cf   : > { %v5696_v28 = vadd.f32 %v5695_v36, %v5647_v62  ;;  %v6903_v62 = vld [vmem:[%s9556_s13 + $0x35c] sm:$0xf0] }
 0x3d0   : > { %v5744_v37 = vpop.f32.mrf.mxu3  ;;  %v5648_v12 = vpop.f32.mrf.mxu1 }
 0x3d1   : > { %v5745_v31 = vadd.f32 %v5744_v37, %v5696_v28  ;;  %v5649_v40 = vadd.f32 %v5648_v12, %v10983_v49  ;;  %v6761_v49 = vld [vmem:[%s9556_s13 + $0x1a8] sm:$0xf]  ;;  %v6898_v28 = vor.u32 %v8942_v4, %v6895_v23  ;;  %v6902_v37 = vor.u32 %v8961_v61, %v6901_v14  ;;  %v9424_v23 = vld [vmem:[%s11541_s1 + $0x890] sm:$0xff] }
 0x3d2   : > { %v5795_v42 = vpop.f32.mrf.mxu0  ;;  %v6762_v2 = vor.u32 %v8925_v53, %v6761_v49  ;;  %v9432_v14 = vld [vmem:[%s11541_s1 + $0x8d0] sm:$0xff]  ;;  %6083 = vmatpush.bf16.msrb.mxu2 %v9424_v23 }
 0x3d3   : > { %v11182_v27 = vadd.f32 %v5793_v32, %v5745_v31  ;;  %v8962_v32 = vld [vmem:[%s9556_s13 + $0x360] sm:$0xf0]  ;;  %v6906_v31 = vor.u32 %v8943_v30, %v6903_v62  ;;  %6132 = vmatpush.bf16.msrb.mxu3 %v9432_v14 }
 0x3d6   : > { %v5697_v55 = vpop.f32.mrf.mxu2 }
 0x3d7   : > { %v5698_v35 = vadd.f32 %v5697_v55, %v5649_v40 }
 0x3d8   : > { %v5746_v63 = vpop.f32.mrf.mxu3  ;;  %v5651_v38 = vpop.f32.mrf.mxu1 }
 0x3d9   : > { %v5747_v56 = vadd.f32 %v5746_v63, %v5698_v35  ;;  %v5652_v45 = vadd.f32 %v5651_v38, %v11000_v25  ;;  %v9417_v35 = vld [vmem:[%s11541_s1 + $0x858] sm:$0xff] }
 0x3da   : > { %v5798_v5 = vpop.f32.mrf.mxu0  ;;  %v9441_v63 = vld [vmem:[%s11541_s1 + $0x918] sm:$0xff]  ;;  %6033 = vmatpush.bf16.msrb.mxu1 %v9417_v35 }
 0x3db   : > { %5846 = vmatmul.bf16.gmra.mxu1 %v6750_v46  ;;  %5895 = vmatmul.bf16.gmra.mxu2 %v6754_v0  ;;  %v11191_v60 = vadd.f32 %v5795_v42, %v5747_v56  ;;  %v8979_v46 = vld [vmem:[%s9556_s13 + $0x3ec] sm:$0xf]  ;;  %v7043_v0 = vld [vmem:[%s9556_s13 + $0x47c] sm:$0xf0]  ;;  %v8980_v56 = vld [vmem:[%s9556_s13 + $0x3f4] sm:$0xf] }
 0x3dc   : > { %6180 = vmatpush.bf16.msrb.mxu0 %v9441_v63 }
 0x3dd   : > { %5944 = vmatmul.bf16.gmra.mxu3 %v6758_v43  ;;  %5993 = vmatmul.bf16.gmra.mxu0 %v6762_v2  ;;  %v7049_v43 = vld [vmem:[%s9556_s13 + $0x3f0] sm:$0xf]  ;;  %v8998_v2 = vld [vmem:[%s9556_s13 + $0x480] sm:$0xf0] }
 0x3de   : > { %v5700_v9 = vpop.f32.mrf.mxu2 }
 0x3df   : > { %v5701_v25 = vadd.f32 %v5700_v9, %v5652_v45  ;;  %v7051_v45 = vld [vmem:[%s9556_s13 + $0x484] sm:$0xf0] }
 0x3e0   : > { %v5749_v11 = vpop.f32.mrf.mxu3  ;;  %v5653_v52 = vpop.f32.mrf.mxu1 }
 0x3e1   : > { %v5750_v7 = vadd.f32 %v5749_v11, %v5701_v25  ;;  %v5654_v13 = vadd.f32 %v5653_v52, %v11009_v29  ;;  %v6909_v29 = vld [vmem:[%s9556_s13 + $0x2d0] sm:$0xf]  ;;  %v7046_v25 = vor.u32 %v8979_v46, %v7043_v0  ;;  %v7050_v11 = vor.u32 %v8998_v2, %v7049_v43  ;;  %v9423_v0 = vld [vmem:[%s11541_s1 + $0x888] sm:$0xff] }
 0x3e2   : > { %v5800_v17 = vpop.f32.mrf.mxu0  ;;  %v6910_v40 = vor.u32 %v8962_v32, %v6909_v29  ;;  %v9431_v43 = vld [vmem:[%s11541_s1 + $0x8c8] sm:$0xff]  ;;  %6084 = vmatpush.bf16.msrb.mxu2 %v9423_v0 }
 0x3e3   : > { %v11208_v1 = vadd.f32 %v5798_v5, %v5750_v7  ;;  %v8999_v5 = vld [vmem:[%s9556_s13 + $0x488] sm:$0xf0]  ;;  %v7054_v7 = vor.u32 %v8980_v56, %v7051_v45  ;;  %6133 = vmatpush.bf16.msrb.mxu3 %v9431_v43 }
 0x3e6   : > { %v5702_v33 = vpop.f32.mrf.mxu2 }
 0x3e7   : > { %v5703_v8 = vadd.f32 %v5702_v33, %v5654_v13 }
 0x3e8   : > { %v5751_v36 = vpop.f32.mrf.mxu3  ;;  %v5656_v12 = vpop.f32.mrf.mxu1 }
 0x3e9   : > { %v5752_v42 = vadd.f32 %v5751_v36, %v5703_v8  ;;  %v5657_v20 = vadd.f32 %v5656_v12, %v11026_v44  ;;  %v9416_v8 = vld [vmem:[%s11541_s1 + $0x850] sm:$0xff] }
 0x3ea   : > { %v5803_v26 = vpop.f32.mrf.mxu0  ;;  %v9440_v36 = vld [vmem:[%s11541_s1 + $0x910] sm:$0xff]  ;;  %6034 = vmatpush.bf16.msrb.mxu1 %v9416_v8 }
 0x3eb   : > { %5851 = vmatmul.bf16.gmra.mxu1 %v6898_v28  ;;  %5900 = vmatmul.bf16.gmra.mxu2 %v6902_v37  ;;  %v11217_v24 = vadd.f32 %v5800_v17, %v5752_v42  ;;  %v9016_v28 = vld [vmem:[%s9556_s13 + $0x514] sm:$0xf]  ;;  %v7191_v37 = vld [vmem:[%s9556_s13 + $0x5a4] sm:$0xf0]  ;;  %v9017_v42 = vld [vmem:[%s9556_s13 + $0x51c] sm:$0xf] }
 0x3ec   : > { %6181 = vmatpush.bf16.msrb.mxu0 %v9440_v36 }
 0x3ed   : > { %5949 = vmatmul.bf16.gmra.mxu3 %v6906_v31  ;;  %5998 = vmatmul.bf16.gmra.mxu0 %v6910_v40  ;;  %v7197_v31 = vld [vmem:[%s9556_s13 + $0x518] sm:$0xf]  ;;  %v9035_v40 = vld [vmem:[%s9556_s13 + $0x5a8] sm:$0xf0] }
 0x3ee   : > { %v5705_v15 = vpop.f32.mrf.mxu2 }
 0x3ef   : > { %v5706_v44 = vadd.f32 %v5705_v15, %v5657_v20  ;;  %v7199_v20 = vld [vmem:[%s9556_s13 + $0x5ac] sm:$0xf0] }
 0x3f0   : > { %v5754_v51 = vpop.f32.mrf.mxu3  ;;  %v5658_v18 = vpop.f32.mrf.mxu1 }
 0x3f1   : > { %v5755_v49 = vadd.f32 %v5754_v51, %v5706_v44  ;;  %v5659_v53 = vadd.f32 %v5658_v18, %v11035_v3  ;;  %v7057_v3 = vld [vmem:[%s9556_s13 + $0x3f8] sm:$0xf]  ;;  %v7194_v44 = vor.u32 %v9016_v28, %v7191_v37  ;;  %v7198_v51 = vor.u32 %v9035_v40, %v7197_v31  ;;  %v9422_v37 = vld [vmem:[%s11541_s1 + $0x880] sm:$0xff] }
 0x3f2   : > { %v5805_v55 = vpop.f32.mrf.mxu0  ;;  %v7058_v13 = vor.u32 %v8999_v5, %v7057_v3  ;;  %v9430_v31 = vld [vmem:[%s11541_s1 + $0x8c0] sm:$0xff]  ;;  %6085 = vmatpush.bf16.msrb.mxu2 %v9422_v37 }
 0x3f3   : > { %v11234_v38 = vadd.f32 %v5803_v26, %v5755_v49  ;;  %v9036_v26 = vld [vmem:[%s9556_s13 + $0x5b0] sm:$0xf0]  ;;  %v7202_v49 = vor.u32 %v9017_v42, %v7199_v20  ;;  %6134 = vmatpush.bf16.msrb.mxu3 %v9430_v31 }
 0x3f6   : > { %v5707_v6 = vpop.f32.mrf.mxu2 }
 0x3f7   : > { %v5708_v10 = vadd.f32 %v5707_v6, %v5659_v53 }
 0x3f8   : > { %v5756_v9 = vpop.f32.mrf.mxu3  ;;  %v5661_v52 = vpop.f32.mrf.mxu1 }
 0x3f9   : > { %v5757_v17 = vadd.f32 %v5756_v9, %v5708_v10  ;;  %v5662_v59 = vadd.f32 %v5661_v52, %v11052_v19  ;;  %v9415_v10 = vld [vmem:[%s11541_s1 + $0x848] sm:$0xff] }
 0x3fa   : > { %v5808_v21 = vpop.f32.mrf.mxu0  ;;  %v9439_v9 = vld [vmem:[%s11541_s1 + $0x908] sm:$0xff]  ;;  %6035 = vmatpush.bf16.msrb.mxu1 %v9415_v10 }
 0x3fb   : > { %5856 = vmatmul.bf16.gmra.mxu1 %v7046_v25  ;;  %5905 = vmatmul.bf16.gmra.mxu2 %v7050_v11  ;;  %v11243_v4 = vadd.f32 %v5805_v55, %v5757_v17  ;;  %v9053_v25 = vld [vmem:[%s9556_s13 + $0x63c] sm:$0xf]  ;;  %v7339_v11 = vld [vmem:[%s9556_s13 + $0x6cc] sm:$0xf0]  ;;  %v9054_v17 = vld [vmem:[%s9556_s13 + $0x644] sm:$0xf] }
 0x3fc   : > { %6182 = vmatpush.bf16.msrb.mxu0 %v9439_v9 }
 0x3fd   : > { %5954 = vmatmul.bf16.gmra.mxu3 %v7054_v7  ;;  %6003 = vmatmul.bf16.gmra.mxu0 %v7058_v13  ;;  %v7345_v7 = vld [vmem:[%s9556_s13 + $0x640] sm:$0xf]  ;;  %v9072_v13 = vld [vmem:[%s9556_s13 + $0x6d0] sm:$0xf0] }
 0x3fe   : > { %v5710_v61 = vpop.f32.mrf.mxu2 }
 0x3ff   : > { %v5711_v19 = vadd.f32 %v5710_v61, %v5662_v59  ;;  %v7347_v59 = vld [vmem:[%s9556_s13 + $0x6d4] sm:$0xf0] }
 0x400   : > { %v5759_v30 = vpop.f32.mrf.mxu3  ;;  %v5663_v62 = vpop.f32.mrf.mxu1 }
 0x401   : > { %v5760_v29 = vadd.f32 %v5759_v30, %v5711_v19  ;;  %v5664_v32 = vadd.f32 %v5663_v62, %v11061_v41  ;;  %v7205_v41 = vld [vmem:[%s9556_s13 + $0x520] sm:$0xf]  ;;  %v7342_v19 = vor.u32 %v9053_v25, %v7339_v11  ;;  %v7346_v30 = vor.u32 %v9072_v13, %v7345_v7 }
 0x402   : > { %v5810_v33 = vpop.f32.mrf.mxu0  ;;  %v7206_v53 = vor.u32 %v9036_v26, %v7205_v41 }
 0x403   : > { %v11260_v12 = vadd.f32 %v5808_v21, %v5760_v29  ;;  %v9073_v21 = vld [vmem:[%s9556_s13 + $0x6d8] sm:$0xf0]  ;;  %v7350_v29 = vor.u32 %v9054_v17, %v7347_v59 }
 0x406   : > { %v5712_v47 = vpop.f32.mrf.mxu2 }
 0x407   : > { %v5713_v39 = vadd.f32 %v5712_v47, %v5664_v32 }
 0x408   : > { %v5761_v15 = vpop.f32.mrf.mxu3  ;;  %v5666_v18 = vpop.f32.mrf.mxu1 }
 0x409   : > { %v5762_v55 = vadd.f32 %v5761_v15, %v5713_v39  ;;  %v5667_v35 = vadd.f32 %v5666_v18, %v11078_v57  ;;  %v9414_v39 = vld [vmem:[%s11541_s1 + $0x840] sm:$0xff] }
 0x40a   : > { %v5813_v63 = vpop.f32.mrf.mxu0  ;;  %v9438_v15 = vld [vmem:[%s11541_s1 + $0x900] sm:$0xff]  ;;  %6036 = vmatpush.bf16.msrb.mxu1 %v9414_v39 }
 0x40b   : > { %5861 = vmatmul.bf16.gmra.mxu1 %v7194_v44  ;;  %5910 = vmatmul.bf16.gmra.mxu2 %v7198_v51  ;;  %v11269_v46 = vadd.f32 %v5810_v33, %v5762_v55  ;;  %v9090_v44 = vld [vmem:[%s9556_s13 + $0x764] sm:$0xf]  ;;  %v7487_v51 = vld [vmem:[%s9556_s13 + $0x7f4] sm:$0xf0]  ;;  %v9091_v55 = vld [vmem:[%s9556_s13 + $0x76c] sm:$0xf] }
 0x40c   : > { %6183 = vmatpush.bf16.msrb.mxu0 %v9438_v15 }
 0x40d   : > { %5959 = vmatmul.bf16.gmra.mxu3 %v7202_v49  ;;  %6008 = vmatmul.bf16.gmra.mxu0 %v7206_v53  ;;  %v7493_v49 = vld [vmem:[%s9556_s13 + $0x768] sm:$0xf]  ;;  %v9109_v53 = vld [vmem:[%s9556_s13 + $0x7f8] sm:$0xf0] }
 0x40e   : > { %v5715_v2 = vpop.f32.mrf.mxu2 }
 0x40f   : > { %v5716_v57 = vadd.f32 %v5715_v2, %v5667_v35  ;;  %v7495_v35 = vld [vmem:[%s9556_s13 + $0x7fc] sm:$0xf0] }
 0x410   : > { %v5764_v56 = vpop.f32.mrf.mxu3  ;;  %v5668_v45 = vpop.f32.mrf.mxu1 }
 0x411   : > { %v5765_v3 = vadd.f32 %v5764_v56, %v5716_v57  ;;  %v5669_v5 = vadd.f32 %v5668_v45, %v11087_v16  ;;  %v7353_v16 = vld [vmem:[%s9556_s13 + $0x648] sm:$0xf]  ;;  %v7490_v57 = vor.u32 %v9090_v44, %v7487_v51  ;;  %v7494_v56 = vor.u32 %v9109_v53, %v7493_v49  ;;  %v8870_v53 = vld [vmem:[%s9556_s13 + $0x84] sm:$0xf] }
 0x412   : > { %v5815_v6 = vpop.f32.mrf.mxu0  ;;  %v7354_v32 = vor.u32 %v9073_v21, %v7353_v16  ;;  %v9127_v21 = vld [vmem:[%s9556_s13 + $0x88c] sm:$0xf] }
 0x413   : > { %v11286_v52 = vadd.f32 %v5813_v63, %v5765_v3  ;;  %v9110_v63 = vld [vmem:[%s9556_s13 + $0x800] sm:$0xf0]  ;;  %v7498_v3 = vor.u32 %v9091_v55, %v7495_v35  ;;  %v6615_v55 = vld [vmem:[%s9556_s13 + $0x114] sm:$0xf0] }
 0x416   : > { %v5717_v23 = vpop.f32.mrf.mxu2 }
 0x417   : > { %v5718_v14 = vadd.f32 %v5717_v23, %v5669_v5  ;;  %v7635_v23 = vld [vmem:[%s9556_s13 + $0x91c] sm:$0xf0] }
 0x418   : > { %v5766_v61 = vpop.f32.mrf.mxu3  ;;  %v5671_v62 = vpop.f32.mrf.mxu1  ;;  %v7638_v37 = vor.u32 %v9127_v21, %v7635_v23 }
 0x419   : > { %v5767_v33 = vadd.f32 %v5766_v61, %v5718_v14  ;;  %v5672_v8 = vadd.f32 %v5671_v62, %v11104_v34  ;;  %v7641_v61 = vld [vmem:[%s9556_s13 + $0x890] sm:$0xf]  ;;  %v7643_v62 = vld [vmem:[%s9556_s13 + $0x924] sm:$0xf0] }
 0x41a   : > { %v5818_v36 = vpop.f32.mrf.mxu0 }
 0x41b   : > { %5866 = vmatmul.bf16.gmra.mxu1 %v7342_v19  ;;  %5915 = vmatmul.bf16.gmra.mxu2 %v7346_v30  ;;  %v11295_v28 = vadd.f32 %v5815_v6, %v5767_v33  ;;  %v9146_v19 = vld [vmem:[%s9556_s13 + $0x920] sm:$0xf0]  ;;  %v9128_v30 = vld [vmem:[%s9556_s13 + $0x894] sm:$0xf] }
 0x41c   : > { %v7642_v31 = vor.u32 %v9146_v19, %v7641_v61  ;;  %v8907_v19 = vld [vmem:[%s9556_s13 + $0x1ac] sm:$0xf] }
 0x41d   : > { %5964 = vmatmul.bf16.gmra.mxu3 %v7350_v29  ;;  %6013 = vmatmul.bf16.gmra.mxu0 %v7354_v32  ;;  %v7649_v29 = vld [vmem:[%s9556_s13 + $0x898] sm:$0xf]  ;;  %v9147_v32 = vld [vmem:[%s9556_s13 + $0x928] sm:$0xf0] }
 0x41e   : > { %v5720_v40 = vpop.f32.mrf.mxu2 }
 0x41f   : > { %v5721_v34 = vadd.f32 %v5720_v40, %v5672_v8 }
 0x420   : > { %v5769_v42 = vpop.f32.mrf.mxu3  ;;  %v5673_v20 = vpop.f32.mrf.mxu1 }
 0x421   : > { %v5770_v41 = vadd.f32 %v5769_v42, %v5721_v34  ;;  %v5674_v26 = vadd.f32 %v5673_v20, %v11113_v54  ;;  %v7501_v54 = vld [vmem:[%s9556_s13 + $0x770] sm:$0xf]  ;;  %v7646_v34 = vor.u32 %v9128_v30, %v7643_v62  ;;  %v7650_v42 = vor.u32 %v9147_v32, %v7649_v29  ;;  %v6763_v30 = vld [vmem:[%s9556_s13 + $0x23c] sm:$0xf0]  ;;  %v8926_v32 = vld [vmem:[%s9556_s13 + $0x240] sm:$0xf0] }
 0x422   : > { %v5820_v47 = vpop.f32.mrf.mxu0  ;;  %v7502_v5 = vor.u32 %v9110_v63, %v7501_v54  ;;  %v6621_v54 = vld [vmem:[%s9556_s13 + $0x88] sm:$0xf]  ;;  %v8889_v63 = vld [vmem:[%s9556_s13 + $0x118] sm:$0xf0]  ;;  %v6769_v29 = vld [vmem:[%s9556_s13 + $0x1b0] sm:$0xf] }
 0x423   : > { %v11312_v18 = vadd.f32 %v5818_v36, %v5770_v41 }
 0x426   : > { %v5722_v0 = vpop.f32.mrf.mxu2 }
 0x427   : > { %v5723_v43 = vadd.f32 %v5722_v0, %v5674_v26  ;;  %v8871_v0 = vld [vmem:[%s9556_s13 + $0x8c] sm:$0xf] }
 0x428   : > { %v5771_v2 = vpop.f32.mrf.mxu3  ;;  %v5676_v45 = vpop.f32.mrf.mxu1 }
 0x429   : > { %v5772_v6 = vadd.f32 %v5771_v2, %v5723_v43  ;;  %v5677_v10 = vadd.f32 %v5676_v45, %v11130_v50  ;;  %v6623_v43 = vld [vmem:[%s9556_s13 + $0x11c] sm:$0xf0]  ;;  %v6629_v2 = vld [vmem:[%s9556_s13 + $0x90] sm:$0xf] }
 0x42a   : > { %v5823_v9 = vpop.f32.mrf.mxu0 }
 0x42b   : > { %5871 = vmatmul.bf16.gmra.mxu1 %v7490_v57  ;;  %5920 = vmatmul.bf16.gmra.mxu2 %v7494_v56  ;;  %v11321_v25 = vadd.f32 %v5820_v47, %v5772_v6  ;;  %v8890_v57 = vld [vmem:[%s9556_s13 + $0x120] sm:$0xf0]  ;;  %v6622_v6 = vor.u32 %v8889_v63, %v6621_v54  ;;  %v8944_v63 = vld [vmem:[%s9556_s13 + $0x2d4] sm:$0xf] }
 0x42d   : > { %5969 = vmatmul.bf16.gmra.mxu3 %v7498_v3  ;;  %6018 = vmatmul.bf16.gmra.mxu0 %v7502_v5  ;;  %v6618_v5 = vor.u32 %v8870_v53, %v6615_v55 }
 0x42e   : > { %v5725_v11 = vpop.f32.mrf.mxu2 }
 0x42f   : > { %v5726_v7 = vadd.f32 %v5725_v11, %v5677_v10  ;;  %v6630_v11 = vor.u32 %v8890_v57, %v6629_v2  ;;  %v6917_v2 = vld [vmem:[%s9556_s13 + $0x2d8] sm:$0xf]  ;;  %v8963_v57 = vld [vmem:[%s9556_s13 + $0x368] sm:$0xf0] }
 0x430   : > { %v5774_v13 = vpop.f32.mrf.mxu3  ;;  %v5678_v17 = vpop.f32.mrf.mxu1 }
 0x431   : > { %v5775_v59 = vadd.f32 %v5774_v13, %v5726_v7  ;;  %v5679_v50 = vadd.f32 %v5678_v17, %v11139_v58 }
 0x432   : > { %v5825_v16 = vpop.f32.mrf.mxu0 }
 0x433   : > { %v11326_v14 = vadd.f32 %v5823_v9, %v5775_v59  ;;  %v6626_v9 = vor.u32 %v8871_v0, %v6623_v43  ;;  %v6911_v0 = vld [vmem:[%s9556_s13 + $0x364] sm:$0xf0] }
 0x436   : > { %v5727_v33 = vpop.f32.mrf.mxu2 }
 0x437   : > { %v5728_v8 = vadd.f32 %v5727_v33, %v5679_v50  ;;  %v8908_v33 = vld [vmem:[%s9556_s13 + $0x1b4] sm:$0xf] }
 0x438   : > { %v5776_v36 = vpop.f32.mrf.mxu3  ;;  %v5681_v40 = vpop.f32.mrf.mxu1 }
 0x439   : > { %v5777_v58 = vadd.f32 %v5776_v36, %v5728_v8  ;;  %v5682_v20 = vadd.f32 %v5681_v40, %v11156_v48  ;;  %v6771_v8 = vld [vmem:[%s9556_s13 + $0x244] sm:$0xf0]  ;;  %v6777_v36 = vld [vmem:[%s9556_s13 + $0x1b8] sm:$0xf] }
 0x43a   : > { %v5828_v41 = vpop.f32.mrf.mxu0 }
 0x43b   : > { %5876 = vmatmul.bf16.gmra.mxu1 %v7638_v37  ;;  %5925 = vmatmul.bf16.gmra.mxu2 %v7642_v31  ;;  %v11335_v26 = vadd.f32 %v5825_v16, %v5777_v58  ;;  %v8927_v37 = vld [vmem:[%s9556_s13 + $0x248] sm:$0xf0]  ;;  %v6770_v58 = vor.u32 %v8926_v32, %v6769_v29  ;;  %v8981_v32 = vld [vmem:[%s9556_s13 + $0x3fc] sm:$0xf] }
 0x43d   : > { %5974 = vmatmul.bf16.gmra.mxu3 %v7646_v34  ;;  %6023 = vmatmul.bf16.gmra.mxu0 %v7650_v42  ;;  %v6766_v42 = vor.u32 %v8907_v19, %v6763_v30 }
 0x43e   : > { %v5730_v47 = vpop.f32.mrf.mxu2 }
 0x43f   : > { %v5731_v39 = vadd.f32 %v5730_v47, %v5682_v20  ;;  %v6778_v47 = vor.u32 %v8927_v37, %v6777_v36  ;;  %v7065_v36 = vld [vmem:[%s9556_s13 + $0x400] sm:$0xf]  ;;  %v9000_v37 = vld [vmem:[%s9556_s13 + $0x490] sm:$0xf0] }
 0x440   : > { %v5779_v15 = vpop.f32.mrf.mxu3  ;;  %v5683_v44 = vpop.f32.mrf.mxu1 }
 0x441   : > { %v5780_v51 = vadd.f32 %v5779_v15, %v5731_v39  ;;  %v5684_v48 = vadd.f32 %v5683_v44, %v11165_v22 }
 0x442   : > { %v5830_v49 = vpop.f32.mrf.mxu0 }
 0x443   : > { %v11340_v35 = vadd.f32 %v5828_v41, %v5780_v51  ;;  %v6774_v41 = vor.u32 %v8908_v33, %v6771_v8  ;;  %v7059_v33 = vld [vmem:[%s9556_s13 + $0x48c] sm:$0xf0] }
 0x446   : > { %v5732_v56 = vpop.f32.mrf.mxu2 }
 0x447   : > { %v5733_v45 = vadd.f32 %v5732_v56, %v5684_v48  ;;  %v8945_v56 = vld [vmem:[%s9556_s13 + $0x2dc] sm:$0xf] }
 0x448   : > { %v5781_v3 = vpop.f32.mrf.mxu3  ;;  %v5842_v10 = vpop.f32.mrf.mxu1 }
 0x449   : > { %v5782_v22 = vadd.f32 %v5781_v3, %v5733_v45  ;;  %v5843_v7 = vadd.f32 %v5842_v10, %v11182_v27  ;;  %v6919_v45 = vld [vmem:[%s9556_s13 + $0x36c] sm:$0xf0]  ;;  %v6925_v3 = vld [vmem:[%s9556_s13 + $0x2e0] sm:$0xf] }
 0x44a   : > { %v5989_v13 = vpop.f32.mrf.mxu0 }
 0x44b   : > { %6037 = vmatmul.bf16.vlgmr.msrb.gmra.mxu1 %v6618_v5  ;;  %6086 = vmatmul.bf16.vlgmr.msrb.gmra.mxu2 %v6622_v6  ;;  %v11349_v17 = vadd.f32 %v5830_v49, %v5782_v22  ;;  %v8964_v5 = vld [vmem:[%s9556_s13 + $0x370] sm:$0xf0]  ;;  %v6918_v22 = vor.u32 %v8963_v57, %v6917_v2  ;;  %v9018_v57 = vld [vmem:[%s9556_s13 + $0x524] sm:$0xf] }
 0x44d   : > { %6135 = vmatmul.bf16.vlgmr.msrb.gmra.mxu3 %v6626_v9  ;;  %6184 = vmatmul.bf16.vlgmr.msrb.gmra.mxu0 %v6630_v11  ;;  %v6914_v11 = vor.u32 %v8944_v63, %v6911_v0 }
 0x44e   : > { %v5891_v59 = vpop.f32.mrf.mxu2 }
 0x44f   : > { %v5892_v50 = vadd.f32 %v5891_v59, %v5843_v7  ;;  %v6926_v59 = vor.u32 %v8964_v5, %v6925_v3  ;;  %v7213_v3 = vld [vmem:[%s9556_s13 + $0x528] sm:$0xf]  ;;  %v9037_v5 = vld [vmem:[%s9556_s13 + $0x5b8] sm:$0xf0] }
 0x450   : > { %v5940_v16 = vpop.f32.mrf.mxu3  ;;  %v5844_v21 = vpop.f32.mrf.mxu1 }
 0x451   : > { %v5941_v23 = vadd.f32 %v5940_v16, %v5892_v50  ;;  %v5845_v27 = vadd.f32 %v5844_v21, %v11191_v60 }
 0x452   : > { %v5991_v61 = vpop.f32.mrf.mxu0 }
 0x453   : > { %v11354_v62 = vadd.f32 %v5989_v13, %v5941_v23  ;;  %v6922_v13 = vor.u32 %v8945_v56, %v6919_v45  ;;  %v7207_v56 = vld [vmem:[%s9556_s13 + $0x5b4] sm:$0xf0] }
 0x456   : > { %v5893_v31 = vpop.f32.mrf.mxu2 }
 0x457   : > { %v5894_v40 = vadd.f32 %v5893_v31, %v5845_v27  ;;  %v8982_v31 = vld [vmem:[%s9556_s13 + $0x404] sm:$0xf] }
 0x458   : > { %v5942_v34 = vpop.f32.mrf.mxu3  ;;  %v5847_v20 = vpop.f32.mrf.mxu1 }
 0x459   : > { %v5943_v60 = vadd.f32 %v5942_v34, %v5894_v40  ;;  %v5848_v39 = vadd.f32 %v5847_v20, %v11208_v1  ;;  %v7067_v40 = vld [vmem:[%s9556_s13 + $0x494] sm:$0xf0]  ;;  %v7073_v34 = vld [vmem:[%s9556_s13 + $0x408] sm:$0xf] }
 0x45a   : > { %v5994_v15 = vpop.f32.mrf.mxu0 }
 0x45b   : > { %6042 = vmatmul.bf16.gmra.mxu1 %v6766_v42  ;;  %6091 = vmatmul.bf16.gmra.mxu2 %v6770_v58  ;;  %v11363_v44 = vadd.f32 %v5991_v61, %v5943_v60  ;;  %v9001_v42 = vld [vmem:[%s9556_s13 + $0x498] sm:$0xf0]  ;;  %v7066_v60 = vor.u32 %v9000_v37, %v7065_v36  ;;  %v9055_v37 = vld [vmem:[%s9556_s13 + $0x64c] sm:$0xf] }
 0x45d   : > { %6140 = vmatmul.bf16.gmra.mxu3 %v6774_v41  ;;  %6189 = vmatmul.bf16.gmra.mxu0 %v6778_v47  ;;  %v7062_v47 = vor.u32 %v8981_v32, %v7059_v33 }
 0x45e   : > { %v5896_v51 = vpop.f32.mrf.mxu2 }
 0x45f   : > { %v5897_v48 = vadd.f32 %v5896_v51, %v5848_v39  ;;  %v7074_v51 = vor.u32 %v9001_v42, %v7073_v34  ;;  %v7361_v34 = vld [vmem:[%s9556_s13 + $0x650] sm:$0xf]  ;;  %v9074_v42 = vld [vmem:[%s9556_s13 + $0x6e0] sm:$0xf0] }
 0x460   : > { %v5945_v49 = vpop.f32.mrf.mxu3  ;;  %v5849_v53 = vpop.f32.mrf.mxu1 }
 0x461   : > { %v5946_v55 = vadd.f32 %v5945_v49, %v5897_v48  ;;  %v5850_v1 = vadd.f32 %v5849_v53, %v11217_v24 }
 0x462   : > { %v5996_v54 = vpop.f32.mrf.mxu0 }
 0x463   : > { %v11368_v43 = vadd.f32 %v5994_v15, %v5946_v55  ;;  %v7070_v15 = vor.u32 %v8982_v31, %v7067_v40  ;;  %v7355_v31 = vld [vmem:[%s9556_s13 + $0x6dc] sm:$0xf0] }
 0x466   : > { %v5898_v6 = vpop.f32.mrf.mxu2 }
 0x467   : > { %v5899_v10 = vadd.f32 %v5898_v6, %v5850_v1  ;;  %v9019_v6 = vld [vmem:[%s9556_s13 + $0x52c] sm:$0xf] }
 0x468   : > { %v5947_v9 = vpop.f32.mrf.mxu3  ;;  %v5852_v7 = vpop.f32.mrf.mxu1 }
 0x469   : > { %v5948_v24 = vadd.f32 %v5947_v9, %v5899_v10  ;;  %v5853_v50 = vadd.f32 %v5852_v7, %v11234_v38  ;;  %v7215_v10 = vld [vmem:[%s9556_s13 + $0x5bc] sm:$0xf0]  ;;  %v7221_v9 = vld [vmem:[%s9556_s13 + $0x530] sm:$0xf] }
 0x46a   : > { %v5999_v16 = vpop.f32.mrf.mxu0 }
 0x46b   : > { %6047 = vmatmul.bf16.gmra.mxu1 %v6914_v11  ;;  %6096 = vmatmul.bf16.gmra.mxu2 %v6918_v22  ;;  %v11377_v21 = vadd.f32 %v5996_v54, %v5948_v24  ;;  %v9038_v11 = vld [vmem:[%s9556_s13 + $0x5c0] sm:$0xf0]  ;;  %v7214_v24 = vor.u32 %v9037_v5, %v7213_v3  ;;  %v9092_v5 = vld [vmem:[%s9556_s13 + $0x774] sm:$0xf] }
 0x46d   : > { %6145 = vmatmul.bf16.gmra.mxu3 %v6922_v13  ;;  %6194 = vmatmul.bf16.gmra.mxu0 %v6926_v59  ;;  %v7210_v59 = vor.u32 %v9018_v57, %v7207_v56 }
 0x46e   : > { %v5901_v23 = vpop.f32.mrf.mxu2 }
 0x46f   : > { %v5902_v27 = vadd.f32 %v5901_v23, %v5853_v50  ;;  %v7222_v23 = vor.u32 %v9038_v11, %v7221_v9  ;;  %v7509_v9 = vld [vmem:[%s9556_s13 + $0x778] sm:$0xf]  ;;  %v9111_v11 = vld [vmem:[%s9556_s13 + $0x808] sm:$0xf0] }
 0x470   : > { %v5950_v61 = vpop.f32.mrf.mxu3  ;;  %v5854_v19 = vpop.f32.mrf.mxu1 }
 0x471   : > { %v5951_v30 = vadd.f32 %v5950_v61, %v5902_v27  ;;  %v5855_v38 = vadd.f32 %v5854_v19, %v11243_v4 }
 0x472   : > { %v6001_v29 = vpop.f32.mrf.mxu0 }
 0x473   : > { %v11382_v8 = vadd.f32 %v5999_v16, %v5951_v30  ;;  %v7218_v16 = vor.u32 %v9019_v6, %v7215_v10  ;;  %v7503_v6 = vld [vmem:[%s9556_s13 + $0x804] sm:$0xf0] }
 0x476   : > { %v5903_v58 = vpop.f32.mrf.mxu2 }
 0x477   : > { %v5904_v20 = vadd.f32 %v5903_v58, %v5855_v38  ;;  %v9056_v58 = vld [vmem:[%s9556_s13 + $0x654] sm:$0xf] }
 0x478   : > { %v5952_v41 = vpop.f32.mrf.mxu3  ;;  %v5857_v39 = vpop.f32.mrf.mxu1 }
 0x479   : > { %v5953_v4 = vadd.f32 %v5952_v41, %v5904_v20  ;;  %v5858_v48 = vadd.f32 %v5857_v39, %v11260_v12  ;;  %v7363_v20 = vld [vmem:[%s9556_s13 + $0x6e4] sm:$0xf0]  ;;  %v7369_v41 = vld [vmem:[%s9556_s13 + $0x658] sm:$0xf] }
 0x47a   : > { %v6004_v49 = vpop.f32.mrf.mxu0 }
 0x47b   : > { %6052 = vmatmul.bf16.gmra.mxu1 %v7062_v47  ;;  %6101 = vmatmul.bf16.gmra.mxu2 %v7066_v60  ;;  %v11391_v53 = vadd.f32 %v6001_v29, %v5953_v4  ;;  %v9075_v47 = vld [vmem:[%s9556_s13 + $0x6e8] sm:$0xf0]  ;;  %v7362_v4 = vor.u32 %v9074_v42, %v7361_v34  ;;  %v9129_v42 = vld [vmem:[%s9556_s13 + $0x89c] sm:$0xf] }
 0x47d   : > { %6150 = vmatmul.bf16.gmra.mxu3 %v7070_v15  ;;  %6199 = vmatmul.bf16.gmra.mxu0 %v7074_v51  ;;  %v7358_v51 = vor.u32 %v9055_v37, %v7355_v31 }
 0x47e   : > { %v5906_v55 = vpop.f32.mrf.mxu2 }
 0x47f   : > { %v5907_v1 = vadd.f32 %v5906_v55, %v5858_v48  ;;  %v7370_v55 = vor.u32 %v9075_v47, %v7369_v41  ;;  %v7657_v41 = vld [vmem:[%s9556_s13 + $0x8a0] sm:$0xf]  ;;  %v9148_v47 = vld [vmem:[%s9556_s13 + $0x930] sm:$0xf0] }
 0x480   : > { %v5955_v54 = vpop.f32.mrf.mxu3  ;;  %v5859_v63 = vpop.f32.mrf.mxu1 }
 0x481   : > { %v5956_v0 = vadd.f32 %v5955_v54, %v5907_v1  ;;  %v5860_v12 = vadd.f32 %v5859_v63, %v11269_v46 }
 0x482   : > { %v6006_v2 = vpop.f32.mrf.mxu0 }
 0x483   : > { %v11396_v45 = vadd.f32 %v6004_v49, %v5956_v0  ;;  %v7366_v49 = vor.u32 %v9056_v58, %v7363_v20  ;;  %v7651_v58 = vld [vmem:[%s9556_s13 + $0x92c] sm:$0xf0] }
 0x486   : > { %v5908_v22 = vpop.f32.mrf.mxu2 }
 0x487   : > { %v5909_v7 = vadd.f32 %v5908_v22, %v5860_v12  ;;  %v9093_v22 = vld [vmem:[%s9556_s13 + $0x77c] sm:$0xf] }
 0x488   : > { %v5957_v13 = vpop.f32.mrf.mxu3  ;;  %v5862_v50 = vpop.f32.mrf.mxu1 }
 0x489   : > { %v5958_v46 = vadd.f32 %v5957_v13, %v5909_v7  ;;  %v5863_v27 = vadd.f32 %v5862_v50, %v11286_v52  ;;  %v7511_v7 = vld [vmem:[%s9556_s13 + $0x80c] sm:$0xf0]  ;;  %v7517_v13 = vld [vmem:[%s9556_s13 + $0x780] sm:$0xf] }
 0x48a   : > { %v6009_v61 = vpop.f32.mrf.mxu0 }
 0x48b   : > { %6057 = vmatmul.bf16.gmra.mxu1 %v7210_v59  ;;  %6106 = vmatmul.bf16.gmra.mxu2 %v7214_v24  ;;  %v11405_v19 = vadd.f32 %v6006_v2, %v5958_v46  ;;  %v9112_v59 = vld [vmem:[%s9556_s13 + $0x810] sm:$0xf0]  ;;  %v7510_v46 = vor.u32 %v9111_v11, %v7509_v9 }
 0x48d   : > { %6155 = vmatmul.bf16.gmra.mxu3 %v7218_v16  ;;  %6204 = vmatmul.bf16.gmra.mxu0 %v7222_v23  ;;  %v7506_v23 = vor.u32 %v9092_v5, %v7503_v6 }
 0x48e   : > { %v5911_v30 = vpop.f32.mrf.mxu2 }
 0x48f   : > { %v5912_v38 = vadd.f32 %v5911_v30, %v5863_v27  ;;  %v7518_v30 = vor.u32 %v9112_v59, %v7517_v13 }
 0x490   : > { %v5960_v29 = vpop.f32.mrf.mxu3  ;;  %v5864_v32 = vpop.f32.mrf.mxu1 }
 0x491   : > { %v5961_v33 = vadd.f32 %v5960_v29, %v5912_v38  ;;  %v5865_v52 = vadd.f32 %v5864_v32, %v11295_v28 }
 0x492   : > { %v6011_v36 = vpop.f32.mrf.mxu0 }
 0x493   : > { %v11410_v40 = vadd.f32 %v6009_v61, %v5961_v33  ;;  %v7514_v61 = vor.u32 %v9093_v22, %v7511_v7 }
 0x496   : > { %v5913_v60 = vpop.f32.mrf.mxu2 }
 0x497   : > { %v5914_v39 = vadd.f32 %v5913_v60, %v5865_v52  ;;  %v9130_v60 = vld [vmem:[%s9556_s13 + $0x8a4] sm:$0xf] }
 0x498   : > { %v5962_v15 = vpop.f32.mrf.mxu3  ;;  %v5867_v48 = vpop.f32.mrf.mxu1 }
 0x499   : > { %v5963_v28 = vadd.f32 %v5962_v15, %v5914_v39  ;;  %v5868_v1 = vadd.f32 %v5867_v48, %v11312_v18  ;;  %v7659_v39 = vld [vmem:[%s9556_s13 + $0x934] sm:$0xf0]  ;;  %v7665_v15 = vld [vmem:[%s9556_s13 + $0x8a8] sm:$0xf] }
 0x49a   : > { %v6014_v54 = vpop.f32.mrf.mxu0 }
 0x49b   : > { %6062 = vmatmul.bf16.gmra.mxu1 %v7358_v51  ;;  %6111 = vmatmul.bf16.gmra.mxu2 %v7362_v4  ;;  %v11419_v63 = vadd.f32 %v6011_v36, %v5963_v28  ;;  %v9149_v51 = vld [vmem:[%s9556_s13 + $0x938] sm:$0xf0]  ;;  %v7658_v28 = vor.u32 %v9148_v47, %v7657_v41  ;;  %s8851_s13 = sshll.u32 %s9524_s19, 7  ;;  %s11549_s19 = smov (!%p242_p4, %s9524_s19), 2 }
 0x49c   : > { %s244_s10 = scalar_lea.vmem %s11544_s4, %s11549_s19  ;;  %s247_s14 = scalar_lea.vmem %s11545_s5, %s11549_s19 }
 0x49d   : > { %6160 = vmatmul.bf16.gmra.mxu3 %v7366_v49  ;;  %6209 = vmatmul.bf16.gmra.mxu0 %v7370_v55  ;;  %v7654_v55 = vor.u32 %v9129_v42, %v7651_v58 }
 0x49e   : > { %v5916_v0 = vpop.f32.mrf.mxu2 }
 0x49f   : > { %v5917_v12 = vadd.f32 %v5916_v0, %v5868_v1  ;;  %v7666_v0 = vor.u32 %v9149_v51, %v7665_v15 }
 0x4a0   : > { %v5965_v2 = vpop.f32.mrf.mxu3  ;;  %v5869_v57 = vpop.f32.mrf.mxu1 }
 0x4a1   : > { %v5966_v56 = vadd.f32 %v5965_v2, %v5917_v12  ;;  %v5870_v18 = vadd.f32 %v5869_v57, %v11321_v25 }
 0x4a2   : > { %v6016_v3 = vpop.f32.mrf.mxu0 }
 0x4a3   : > { %v11424_v10 = vadd.f32 %v6014_v54, %v5966_v56  ;;  %v7662_v54 = vor.u32 %v9130_v60, %v7659_v39 }
 0x4a6   : > { %v5918_v24 = vpop.f32.mrf.mxu2 }
 0x4a7   : > { %v5919_v50 = vadd.f32 %v5918_v24, %v5870_v18 }
 0x4a8   : > { %v5967_v16 = vpop.f32.mrf.mxu3  ;;  %v5872_v27 = vpop.f32.mrf.mxu1 }
 0x4a9   : > { %v5968_v25 = vadd.f32 %v5967_v16, %v5919_v50  ;;  %v5873_v38 = vadd.f32 %v5872_v27, %v11326_v14 }
 0x4aa   : > { %v6019_v29 = vpop.f32.mrf.mxu0 }
 0x4ab   : > { %6067 = vmatmul.bf16.gmra.mxu1 %v7506_v23  ;;  %6116 = vmatmul.bf16.gmra.mxu2 %v7510_v46  ;;  %v11433_v32 = vadd.f32 %v6016_v3, %v5968_v25  ;;  %v6241_v23 = vlaneseq }
 0x4ad   : > { %6165 = vmatmul.bf16.gmra.mxu3 %v7514_v61  ;;  %6214 = vmatmul.bf16.gmra.mxu0 %v7518_v30 }
 0x4ae   : > { %v5921_v33 = vpop.f32.mrf.mxu2 }
 0x4af   : > { %v5922_v52 = vadd.f32 %v5921_v33, %v5873_v38 }
 0x4b0   : > { %v5970_v36 = vpop.f32.mrf.mxu3  ;;  %v5874_v37 = vpop.f32.mrf.mxu1 }
 0x4b1   : > { %v5971_v31 = vadd.f32 %v5970_v36, %v5922_v52  ;;  %v5875_v14 = vadd.f32 %v5874_v37, %v11335_v26 }
 0x4b2   : > { %v6021_v34 = vpop.f32.mrf.mxu0 }
 0x4b3   : > { %v11438_v20 = vadd.f32 %v6019_v29, %v5971_v31  ;;  %v11459_v29 = vstv %s8851_s13 }
 0x4b6   : > { %v5923_v4 = vpop.f32.mrf.mxu2 }
 0x4b7   : > { %v5924_v48 = vadd.f32 %v5923_v4, %v5875_v14 }
 0x4b8   : > { %v5972_v49 = vpop.f32.mrf.mxu3  ;;  %v5877_v1 = vpop.f32.mrf.mxu1 }
 0x4b9   : > { %v5973_v26 = vadd.f32 %v5972_v49, %v5924_v48  ;;  %v5878_v12 = vadd.f32 %v5877_v1, %v11340_v35 }
 0x4ba   : > { %v6024_v2 = vpop.f32.mrf.mxu0 }
 0x4bb   : > { %6072 = vmatmul.bf16.gmra.mxu1 %v7654_v55  ;;  %6121 = vmatmul.bf16.gmra.mxu2 %v7658_v28  ;;  %v11447_v57 = vadd.f32 %v6021_v34, %v5973_v26 }
 0x4bd   : > { %6170 = vmatmul.bf16.gmra.mxu3 %v7662_v54  ;;  %6219 = vmatmul.bf16.gmra.mxu0 %v7666_v0 }
 0x4be   : > { %v5926_v56 = vpop.f32.mrf.mxu2 }
 0x4bf   : > { %v5927_v18 = vadd.f32 %v5926_v56, %v5878_v12 }
 0x4c0   : > { %v5975_v3 = vpop.f32.mrf.mxu3  ;;  %v5879_v5 = vpop.f32.mrf.mxu1 }
 0x4c1   : > { %v5976_v6 = vadd.f32 %v5975_v3, %v5927_v18  ;;  %v5880_v9 = vadd.f32 %v5879_v5, %v11349_v17  ;;  %v11457_v17 = vshrl.u32 %v6241_v23, 7 }
 0x4c2   : > { %v6026_v11 = vpop.f32.mrf.mxu0 }
 0x4c3   : > { %v11450_v22 = vadd.f32 %v6024_v2, %v5976_v6  ;;  %v6260_v36 = vadd.s32 %v11459_v29, %v11457_v17  ;;  %v6244_v60 = vadd.s32 16, %v11457_v17  ;;  %v6245_v56 = vadd.s32 24, %v11457_v17 }
 0x4c4   : > { %v6246_v23 = vadd.s32 32, %v11457_v17 }
 0x4c5   : > { %vm6276_vm0 = vcmp.lt.s32.totalorder %v6260_v36, 384  ;;  %v6262_v28 = vadd.s32 %v11459_v29, %v6244_v60 }
 0x4c6   : > { %v5928_v35 = vpop.f32.mrf.mxu2 }
 0x4c7   : > { %v5929_v7 = vadd.f32 %v5928_v35, %v5880_v9  ;;  %vm6278_vm2 = vcmp.lt.s32.totalorder %v6262_v28, 384 }
 0x4c8   : > { %v5977_v13 = vpop.f32.mrf.mxu3  ;;  %v6038_v59 = vpop.f32.mrf.mxu1 }
 0x4c9   : > { %v5978_v24 = vadd.f32 %v5977_v13, %v5929_v7  ;;  %v6039_v46 = vadd.f32 %v6038_v59, %v11354_v62  ;;  %v6243_v62 = vadd.s32 8, %v11457_v17 }
 0x4ca   : > { %v6185_v50 = vpop.f32.mrf.mxu0 }
 0x4cb   : > { %v11452_v16 = vadd.f32 %v6026_v11, %v5978_v24  ;;  %v6261_v14 = vadd.s32 %v11459_v29, %v6243_v62  ;;  %v6263_v11 = vadd.s32 %v11459_v29, %v6245_v56 }
 0x4cd   : > { %vm6277_vm1 = vcmp.lt.s32.totalorder %v6261_v14, 384  ;;  %vm6279_vm3 = vcmp.lt.s32.totalorder %v6263_v11, 384  ;;  %v6247_v14 = vadd.s32 40, %v11457_v17 }
 0x4ce   : > { %v6087_v27 = vpop.f32.mrf.mxu2 }
 0x4cf   : > { %v6088_v61 = vadd.f32 %v6087_v27, %v6039_v46  ;;  %v6265_v60 = vadd.s32 %v11459_v29, %v6247_v14 }
 0x4d0   : > { %v6136_v30 = vpop.f32.mrf.mxu3  ;;  %v6040_v25 = vpop.f32.mrf.mxu1 }
 0x4d1   : > { %v6137_v38 = vadd.f32 %v6136_v30, %v6088_v61  ;;  %v6041_v37 = vadd.f32 %v6040_v25, %v11363_v44  ;;  %vm6281_vm5 = vcmp.lt.s32.totalorder %v6265_v60, 384 }
 0x4d2   : > { %v6187_v33 = vpop.f32.mrf.mxu0 }
 0x4d3   : > { %v6186_v52 = vadd.f32 %v6185_v50, %v6137_v38  ;;  %v6264_v38 = vadd.s32 %v11459_v29, %v6246_v23 }
 0x4d5   : > { %6225 = vst [vmem:[%s11464_s8] sm:$0xff] %v6186_v52  ;;  %v6292_v39 = vsel %vm6276_vm0, %v6186_v52, 0.0  ;;  %vm6280_vm4 = vcmp.lt.s32.totalorder %v6264_v38, 384 }
 0x4d6   : > { %v6089_v31 = vpop.f32.mrf.mxu2  ;;  %v6330_v44 = vmul.f32 %v6292_v39, %v6292_v39 }
 0x4d7   : > { %v6090_v34 = vadd.f32 %v6089_v31, %v6041_v37 }
 0x4d8   : > { %v6138_v42 = vpop.f32.mrf.mxu3  ;;  %v6043_v58 = vpop.f32.mrf.mxu1 }
 0x4d9   : > { %v6139_v41 = vadd.f32 %v6138_v42, %v6090_v34  ;;  %v6044_v4 = vadd.f32 %v6043_v58, %v11368_v43 }
 0x4da   : > { %v6190_v47 = vpop.f32.mrf.mxu0 }
 0x4db   : > { %v6188_v15 = vadd.f32 %v6187_v33, %v6139_v41 }
 0x4dd   : > { %6226 = vst [vmem:[%s11464_s8 + $0x8] sm:$0xff] %v6188_v15  ;;  %v6293_v51 = vsel %vm6277_vm1, %v6188_v15, 0.0 }
 0x4de   : > { %v6308_v48 = vadd.f32 %v6293_v51, %v6292_v39  ;;  %v6331_v49 = vmul.f32 %v6293_v51, %v6293_v51  ;;  %v6092_v55 = vpop.f32.mrf.mxu2 }
 0x4df   : > { %v6093_v1 = vadd.f32 %v6092_v55, %v6044_v4 }
 0x4e0   : > { %v6141_v54 = vpop.f32.mrf.mxu3  ;;  %v6346_v0 = vadd.f32 %v6331_v49, %v6330_v44  ;;  %v6045_v26 = vpop.f32.mrf.mxu1  ;;  %v6248_v49 = vadd.s32 48, %v11457_v17 }
 0x4e1   : > { %v6142_v12 = vadd.f32 %v6141_v54, %v6093_v1  ;;  %v6046_v43 = vadd.f32 %v6045_v26, %v11377_v21 }
 0x4e2   : > { %v6192_v2 = vpop.f32.mrf.mxu0  ;;  %v6266_v26 = vadd.s32 %v11459_v29, %v6248_v49 }
 0x4e3   : > { %v6191_v18 = vadd.f32 %v6190_v47, %v6142_v12 }
 0x4e4   : > { %vm6282_vm6 = vcmp.lt.s32.totalorder %v6266_v26, 384 }
 0x4e5   : > { %6227 = vst [vmem:[%s11464_s8 + $0x10] sm:$0xff] %v6191_v18  ;;  %v6294_v3 = vsel %vm6278_vm2, %v6191_v18, 0.0 }
 0x4e6   : > { %v6309_v5 = vadd.f32 %v6308_v48, %v6294_v3  ;;  %v6332_v6 = vmul.f32 %v6294_v3, %v6294_v3  ;;  %v6094_v9 = vpop.f32.mrf.mxu2 }
 0x4e7   : > { %v6095_v35 = vadd.f32 %v6094_v9, %v6046_v43 }
 0x4e8   : > { %v6143_v7 = vpop.f32.mrf.mxu3  ;;  %v6347_v13 = vadd.f32 %v6346_v0, %v6332_v6  ;;  %v6048_v59 = vpop.f32.mrf.mxu1 }
 0x4e9   : > { %v6144_v24 = vadd.f32 %v6143_v7, %v6095_v35  ;;  %v6049_v21 = vadd.f32 %v6048_v59, %v11382_v8 }
 0x4ea   : > { %v6195_v50 = vpop.f32.mrf.mxu0 }
 0x4eb   : > { %v6193_v46 = vadd.f32 %v6192_v2, %v6144_v24 }
 0x4ed   : > { %6228 = vst [vmem:[%s11464_s8 + $0x18] sm:$0xff] %v6193_v46  ;;  %v6295_v27 = vsel %vm6279_vm3, %v6193_v46, 0.0 }
 0x4ee   : > { %v6310_v61 = vadd.f32 %v6309_v5, %v6295_v27  ;;  %v6333_v30 = vmul.f32 %v6295_v27, %v6295_v27  ;;  %v6097_v25 = vpop.f32.mrf.mxu2  ;;  %v6249_v5 = vadd.s32 56, %v11457_v17 }
 0x4ef   : > { %v6098_v33 = vadd.f32 %v6097_v25, %v6049_v21  ;;  %v6250_v21 = vadd.s32 64, %v11457_v17 }
 0x4f0   : > { %v6146_v62 = vpop.f32.mrf.mxu3  ;;  %v6348_v52 = vadd.f32 %v6347_v13, %v6333_v30  ;;  %v6050_v36 = vpop.f32.mrf.mxu1  ;;  %v6267_v13 = vadd.s32 %v11459_v29, %v6249_v5  ;;  %v6253_v5 = vadd.s32 88, %v11457_v17 }
 0x4f1   : > { %v6147_v37 = vadd.f32 %v6146_v62, %v6098_v33  ;;  %v6051_v8 = vadd.f32 %v6050_v36, %v11391_v53  ;;  %v6268_v62 = vadd.s32 %v11459_v29, %v6250_v21 }
 0x4f2   : > { %v6197_v31 = vpop.f32.mrf.mxu0  ;;  %vm6283_vm7 = vcmp.lt.s32.totalorder %v6267_v13, 384 }
 0x4f3   : > { %v6196_v34 = vadd.f32 %v6195_v50, %v6147_v37  ;;  %vm6284_vm8 = vcmp.lt.s32.totalorder %v6268_v62, 384 }
 0x4f5   : > { %6229 = vst [vmem:[%s11464_s8 + $0x20] sm:$0xff] %v6196_v34  ;;  %v6296_v42 = vsel %vm6280_vm4, %v6196_v34, 0.0 }
 0x4f6   : > { %v6311_v58 = vadd.f32 %v6310_v61, %v6296_v42  ;;  %v6334_v41 = vmul.f32 %v6296_v42, %v6296_v42  ;;  %v6099_v47 = vpop.f32.mrf.mxu2  ;;  %v6251_v42 = vadd.s32 72, %v11457_v17 }
 0x4f7   : > { %v6100_v39 = vadd.f32 %v6099_v47, %v6051_v8 }
 0x4f8   : > { %v6148_v15 = vpop.f32.mrf.mxu3  ;;  %v6349_v51 = vadd.f32 %v6348_v52, %v6334_v41  ;;  %v6053_v4 = vpop.f32.mrf.mxu1 }
 0x4f9   : > { %v6149_v44 = vadd.f32 %v6148_v15, %v6100_v39  ;;  %v6054_v53 = vadd.f32 %v6053_v4, %v11396_v45  ;;  %v6269_v39 = vadd.s32 %v11459_v29, %v6251_v42 }
 0x4fa   : > { %v6200_v48 = vpop.f32.mrf.mxu0 }
 0x4fb   : > { %v6198_v55 = vadd.f32 %v6197_v31, %v6149_v44  ;;  %vm6285_vm9 = vcmp.lt.s32.totalorder %v6269_v39, 384 }
 0x4fd   : > { %6230 = vst [vmem:[%s11464_s8 + $0x28] sm:$0xff] %v6198_v55  ;;  %v6297_v28 = vsel %vm6281_vm5, %v6198_v55, 0.0  ;;  %v6252_v55 = vadd.s32 80, %v11457_v17 }
 0x4fe   : > { %v6312_v1 = vadd.f32 %v6311_v58, %v6297_v28  ;;  %v6335_v54 = vmul.f32 %v6297_v28, %v6297_v28  ;;  %v6102_v0 = vpop.f32.mrf.mxu2 }
 0x4ff   : > { %v6103_v12 = vadd.f32 %v6102_v0, %v6054_v53  ;;  %v6270_v26 = vadd.s32 %v11459_v29, %v6252_v55 }
 0x500   : > { %v6151_v2 = vpop.f32.mrf.mxu3  ;;  %v6350_v56 = vadd.f32 %v6349_v51, %v6335_v54  ;;  %v6055_v18 = vpop.f32.mrf.mxu1 }
 0x501   : > { %v6152_v3 = vadd.f32 %v6151_v2, %v6103_v12  ;;  %v6056_v45 = vadd.f32 %v6055_v18, %v11405_v19  ;;  %vm6286_vm10 = vcmp.lt.s32.totalorder %v6270_v26, 384 }
 0x502   : > { %v6202_v43 = vpop.f32.mrf.mxu0 }
 0x503   : > { %v6201_v6 = vadd.f32 %v6200_v48, %v6152_v3 }
 0x505   : > { %6231 = vst [vmem:[%s11464_s8 + $0x30] sm:$0xff] %v6201_v6  ;;  %v6298_v9 = vsel %vm6282_vm6, %v6201_v6, 0.0 }
 0x506   : > { %v6313_v11 = vadd.f32 %v6312_v1, %v6298_v9  ;;  %v6336_v35 = vmul.f32 %v6298_v9, %v6298_v9  ;;  %v6104_v7 = vpop.f32.mrf.mxu2 }
 0x507   : > { %v6105_v59 = vadd.f32 %v6104_v7, %v6056_v45  ;;  %v6271_v7 = vadd.s32 %v11459_v29, %v6253_v5 }
 0x508   : > { %v6153_v24 = vpop.f32.mrf.mxu3  ;;  %v6351_v50 = vadd.f32 %v6350_v56, %v6336_v35  ;;  %v6058_v23 = vpop.f32.mrf.mxu1 }
 0x509   : > { %v6154_v46 = vadd.f32 %v6153_v24, %v6105_v59  ;;  %v6059_v19 = vadd.f32 %v6058_v23, %v11410_v40  ;;  %vm6287_vm11 = vcmp.lt.s32.totalorder %v6271_v7, 384 }
 0x50a   : > { %v6205_v27 = vpop.f32.mrf.mxu0 }
 0x50b   : > { %v6203_v61 = vadd.f32 %v6202_v43, %v6154_v46  ;;  %v6254_v46 = vadd.s32 96, %v11457_v17 }
 0x50d   : > { %6232 = vst [vmem:[%s11464_s8 + $0x38] sm:$0xff] %v6203_v61  ;;  %v6299_v30 = vsel %vm6283_vm7, %v6203_v61, 0.0 }
 0x50e   : > { %v6314_v25 = vadd.f32 %v6313_v11, %v6299_v30  ;;  %v6337_v38 = vmul.f32 %v6299_v30, %v6299_v30  ;;  %v6107_v33 = vpop.f32.mrf.mxu2 }
 0x50f   : > { %v6108_v52 = vadd.f32 %v6107_v33, %v6059_v19 }
 0x510   : > { %v6156_v36 = vpop.f32.mrf.mxu3  ;;  %v6352_v37 = vadd.f32 %v6351_v50, %v6337_v38  ;;  %v6060_v31 = vpop.f32.mrf.mxu1  ;;  %v6272_v38 = vadd.s32 %v11459_v29, %v6254_v46 }
 0x511   : > { %v6157_v14 = vadd.f32 %v6156_v36, %v6108_v52  ;;  %v6061_v40 = vadd.f32 %v6060_v31, %v11419_v63  ;;  %v6255_v31 = vadd.s32 104, %v11457_v17 }
 0x512   : > { %v6207_v34 = vpop.f32.mrf.mxu0  ;;  %vm6288_vm12 = vcmp.lt.s32.totalorder %v6272_v38, 384 }
 0x513   : > { %v6206_v8 = vadd.f32 %v6205_v27, %v6157_v14 }
 0x515   : > { %6233 = vst [vmem:[%s11464_s8 + $0x40] sm:$0xff] %v6206_v8  ;;  %v6300_v58 = vsel %vm6284_vm8, %v6206_v8, 0.0 }
 0x516   : > { %v6315_v41 = vadd.f32 %v6314_v25, %v6300_v58  ;;  %v6338_v47 = vmul.f32 %v6300_v58, %v6300_v58  ;;  %v6109_v60 = vpop.f32.mrf.mxu2 }
 0x517   : > { %v6110_v15 = vadd.f32 %v6109_v60, %v6061_v40 }
 0x518   : > { %v6158_v51 = vpop.f32.mrf.mxu3  ;;  %v6353_v4 = vadd.f32 %v6352_v37, %v6338_v47  ;;  %v6063_v44 = vpop.f32.mrf.mxu1 }
 0x519   : > { %v6159_v48 = vadd.f32 %v6158_v51, %v6110_v15  ;;  %v6064_v63 = vadd.f32 %v6063_v44, %v11424_v10 }
 0x51a   : > { %v6210_v49 = vpop.f32.mrf.mxu0 }
 0x51b   : > { %v6208_v28 = vadd.f32 %v6207_v34, %v6159_v48 }
 0x51d   : > { %6234 = vst [vmem:[%s11464_s8 + $0x48] sm:$0xff] %v6208_v28  ;;  %v6301_v53 = vsel %vm6285_vm9, %v6208_v28, 0.0 }
 0x51e   : > { %v6316_v1 = vadd.f32 %v6315_v41, %v6301_v53  ;;  %v6339_v54 = vmul.f32 %v6301_v53, %v6301_v53  ;;  %v6112_v0 = vpop.f32.mrf.mxu2  ;;  %v6273_v41 = vadd.s32 %v11459_v29, %v6255_v31 }
 0x51f   : > { %v6113_v12 = vadd.f32 %v6112_v0, %v6064_v63 }
 0x520   : > { %v6161_v2 = vpop.f32.mrf.mxu3  ;;  %v6354_v56 = vadd.f32 %v6353_v4, %v6339_v54  ;;  %v6065_v18 = vpop.f32.mrf.mxu1  ;;  %vm6289_vm13 = vcmp.lt.s32.totalorder %v6273_v41, 384  ;;  %v6256_v4 = vadd.s32 112, %v11457_v17 }
 0x521   : > { %v6162_v3 = vadd.f32 %v6161_v2, %v6113_v12  ;;  %v6066_v10 = vadd.f32 %v6065_v18, %v11433_v32  ;;  %v6257_v2 = vadd.s32 120, %v11457_v17 }
 0x522   : > { %v6212_v43 = vpop.f32.mrf.mxu0  ;;  %v6274_v53 = vadd.s32 %v11459_v29, %v6256_v4 }
 0x523   : > { %v6211_v6 = vadd.f32 %v6210_v49, %v6162_v3 }
 0x524   : > { %vm6290_vm14 = vcmp.lt.s32.totalorder %v6274_v53, 384 }
 0x525   : > { %6235 = vst [vmem:[%s11464_s8 + $0x50] sm:$0xff] %v6211_v6  ;;  %v6302_v9 = vsel %vm6286_vm10, %v6211_v6, 0.0  ;;  %v6275_v6 = vadd.s32 %v11459_v29, %v6257_v2 }
 0x526   : > { %v6317_v45 = vadd.f32 %v6316_v1, %v6302_v9  ;;  %v6340_v11 = vmul.f32 %v6302_v9, %v6302_v9  ;;  %v6114_v35 = vpop.f32.mrf.mxu2 }
 0x527   : > { %v6115_v13 = vadd.f32 %v6114_v35, %v6066_v10  ;;  %vm6291_vm15 = vcmp.lt.s32.totalorder %v6275_v6, 384 }
 0x528   : > { %v6163_v59 = vpop.f32.mrf.mxu3  ;;  %v6355_v24 = vadd.f32 %v6354_v56, %v6340_v11  ;;  %v6068_v50 = vpop.f32.mrf.mxu1 }
 0x529   : > { %v6164_v23 = vadd.f32 %v6163_v59, %v6115_v13  ;;  %v6069_v32 = vadd.f32 %v6068_v50, %v11438_v20 }
 0x52a   : > { %v6215_v21 = vpop.f32.mrf.mxu0 }
 0x52b   : > { %v6213_v27 = vadd.f32 %v6212_v43, %v6164_v23 }
 0x52d   : > { %6236 = vst [vmem:[%s11464_s8 + $0x58] sm:$0xff] %v6213_v27  ;;  %v6303_v61 = vsel %vm6287_vm11, %v6213_v27, 0.0 }
 0x52e   : > { %v6318_v30 = vadd.f32 %v6317_v45, %v6303_v61  ;;  %v6341_v19 = vmul.f32 %v6303_v61, %v6303_v61  ;;  %v6117_v25 = vpop.f32.mrf.mxu2 }
 0x52f   : > { %v6118_v33 = vadd.f32 %v6117_v25, %v6069_v32 }
 0x530   : > { %v6166_v62 = vpop.f32.mrf.mxu3  ;;  %v6356_v52 = vadd.f32 %v6355_v24, %v6341_v19  ;;  %v6070_v36 = vpop.f32.mrf.mxu1 }
 0x531   : > { %v6167_v37 = vadd.f32 %v6166_v62, %v6118_v33  ;;  %v6071_v42 = vadd.f32 %v6070_v36, %v11447_v57 }
 0x532   : > { %v6217_v58 = vpop.f32.mrf.mxu0 }
 0x533   : > { %v6216_v14 = vadd.f32 %v6215_v21, %v6167_v37 }
 0x535   : > { %6237 = vst [vmem:[%s11464_s8 + $0x60] sm:$0xff] %v6216_v14  ;;  %v6304_v34 = vsel %vm6288_vm12, %v6216_v14, 0.0 }
 0x536   : > { %v6319_v20 = vadd.f32 %v6318_v30, %v6304_v34  ;;  %v6342_v8 = vmul.f32 %v6304_v34, %v6304_v34  ;;  %v6119_v40 = vpop.f32.mrf.mxu2 }
 0x537   : > { %v6120_v47 = vadd.f32 %v6119_v40, %v6071_v42 }
 0x538   : > { %v6168_v60 = vpop.f32.mrf.mxu3  ;;  %v6357_v39 = vadd.f32 %v6356_v52, %v6342_v8  ;;  %v6073_v15 = vpop.f32.mrf.mxu1 }
 0x539   : > { %v6169_v51 = vadd.f32 %v6168_v60, %v6120_v47  ;;  %v6074_v57 = vadd.f32 %v6073_v15, %v11450_v22 }
 0x53a   : > { %v6220_v0 = vpop.f32.mrf.mxu0 }
 0x53b   : > { %v6218_v44 = vadd.f32 %v6217_v58, %v6169_v51 }
 0x53d   : > { %6238 = vst [vmem:[%s11464_s8 + $0x68] sm:$0xff] %v6218_v44  ;;  %v6305_v48 = vsel %vm6289_vm13, %v6218_v44, 0.0 }
 0x53e   : > { %v6320_v49 = vadd.f32 %v6319_v20, %v6305_v48  ;;  %v6343_v55 = vmul.f32 %v6305_v48, %v6305_v48  ;;  %v6122_v28 = vpop.f32.mrf.mxu2 }
 0x53f   : > { %v6123_v63 = vadd.f32 %v6122_v28, %v6074_v57 }
 0x540   : > { %v6171_v1 = vpop.f32.mrf.mxu3  ;;  %v6358_v54 = vadd.f32 %v6357_v39, %v6343_v55  ;;  %v6075_v12 = vpop.f32.mrf.mxu1 }
 0x541   : > { %v6172_v26 = vadd.f32 %v6171_v1, %v6123_v63  ;;  %v6076_v22 = vadd.f32 %v6075_v12, %v11452_v16 }
 0x542   : > { %v6222_v35 = vpop.f32.mrf.mxu0 }
 0x543   : > { %v6221_v56 = vadd.f32 %v6220_v0, %v6172_v26 }
 0x545   : > { %6239 = vst [vmem:[%s11464_s8 + $0x70] sm:$0xff] %v6221_v56  ;;  %v6306_v18 = vsel %vm6290_vm14, %v6221_v56, 0.0 }
 0x546   : > { %v6321_v3 = vadd.f32 %v6320_v49, %v6306_v18  ;;  %v6344_v43 = vmul.f32 %v6306_v18, %v6306_v18  ;;  %v6124_v5 = vpop.f32.mrf.mxu2 }
 0x547   : > { %v6125_v9 = vadd.f32 %v6124_v5, %v6076_v22 }
 0x548   : > { %v6359_v10 = vadd.f32 %v6358_v54, %v6344_v43  ;;  %v6173_v45 = vpop.f32.mrf.mxu3 }
 0x549   : > { %v6174_v11 = vadd.f32 %v6173_v45, %v6125_v9 }
 0x54b   : > { %v6223_v17 = vadd.f32 %v6222_v35, %v6174_v11 }
 0x54d   : > { %6240 = vst [vmem:[%s11464_s8 + $0x78] sm:$0xff] %v6223_v17  ;;  %v6307_v7 = vsel %vm6291_vm15, %v6223_v17, 0.0 }
 0x54e   : > { %v6322_v13 = vadd.f32 %v6321_v3, %v6307_v7  ;;  %v6345_v59 = vmul.f32 %v6307_v7, %v6307_v7 }
 0x550   : > { %v6323_v24 = vrot.slane %v6322_v13, 4  ;;  %v6360_v16 = vadd.f32 %v6359_v10, %v6345_v59 }
 0x552   : > { %v6324_v50 = vadd.f32 %v6323_v24, %v6322_v13  ;;  %v6361_v23 = vrot.slane %v6360_v16, 4 }
 0x554   : > { %v6325_v46 = vrot.slane %v6324_v50, 2  ;;  %v6362_v27 = vadd.f32 %v6361_v23, %v6360_v16 }
 0x556   : > { %v6326_v29 = vadd.f32 %v6325_v46, %v6324_v50  ;;  %v6363_v21 = vrot.slane %v6362_v27, 2 }
 0x558   : > { %v6327_v61 = vrot.slane %v6326_v29, 1  ;;  %v6364_v32 = vadd.f32 %v6363_v21, %v6362_v27 }
 0x55a   : > { %v6328_v30 = vadd.f32 %v6327_v61, %v6326_v29  ;;  %v6365_v19 = vrot.slane %v6364_v32, 1 }
 0x55c   : > { %6329 = vst [vmem:[%s244_s10] sm:$0x1] %v6328_v30  ;;  %v6366_v25 = vadd.f32 %v6365_v19, %v6364_v32 }
 0x55e   : > { %6367 = vst [vmem:[%s247_s14] sm:$0x1] %v6366_v25 }
 0x55f PF: > { %s16_s18 = sadd.s32 1, %s9486_s18  }
 0x560   : > { %p13_p5 = scmp.ge.s32.totalorder %s16_s18, 5  }
 0x562   :  { %15 = sbr.rel (!%p13_p5) target bundleno = 1 (0x1), region = 86 }

// kernel: cnn3d_forward.12
= control target key start
LH: loop header
LB: loop body
LE: loop exit
PB: predicated region body
PF: predicated region fallthrough
CT: control target
= control target key end

     0   :  { %vm27_vm0 = vcmask 388096   ;;  %s67_s0 = inlined_call_operand.vmem [shape: f32[8,128], index: 0, kind: input, shape index: {}]   ;;  %s68_s1 = inlined_call_operand.vmem [shape: f32[1,128], index: 1, kind: input, shape index: {}]   ;;  %s69_s2 = inlined_call_operand.vmem [shape: f32[1,128], index: 2, kind: input, shape index: {}]   ;;  %s70_s3 = inlined_call_operand.vmem [shape: bf16[8,48], index: 3, kind: output, shape index: {}]  }
   0x1   :  { %v14_v0 = vld [vmem:[%s67_s0] sm:$0xff] }
   0x2   :  { %v33_v1 = vld [vmem:[%s68_s1] ss:$0 sm:$0xff] }
   0x3   :  { %v34_v2 = vld [vmem:[%s69_s2] ss:$0 sm:$0xff]  ;;  %v19_v3 = vmul.f32 %v33_v1, %v14_v0 }
   0x5   :  { %v24_v4 = vadd.f32 %v34_v2, %v19_v3 }
   0x7   :  { %v25_v5 = vmax.f32 %v24_v4, 0.0 }
   0x9   :  { %v26_v6 = vpack.c.bf16 %v25_v5, %v25_v5 }
   0xb   :  { %28 = vst.msk [vmem:[%s70_s3] sm:$0xf] %vm27_vm0, %v26_v6 }

// kernel: cnn3d_forward.13
= control target key start
LH: loop header
LB: loop body
LE: loop exit
PB: predicated region body
PF: predicated region fallthrough
CT: control target
= control target key end

     0   :  { %s677_s1 = inlined_call_operand.vmem [shape: bf16[256,128], index: 1, kind: input, shape index: {}]   ;;  %s678_s3 = inlined_call_operand.vmem [shape: bf16[128,128], index: 3, kind: input, shape index: {}]   ;;  %s679_s2 = inlined_call_operand.vmem [shape: f32[1,128], index: 2, kind: input, shape index: {}]   ;;  %s680_s0 = inlined_call_operand.vmem [shape: bf16[8,256], index: 0, kind: input, shape index: {}]   ;;  %s681_s4 = inlined_call_operand.vmem [shape: f32[1,128], index: 4, kind: input, shape index: {}]   ;;  %s682_s5 = inlined_call_operand.vmem [shape: bf16[128,128], index: 5, kind: input, shape index: {}]   ;;  %s683_s6 = inlined_call_operand.vmem [shape: f32[1,128], index: 6, kind: input, shape index: {}]   ;;  %s684_s7 = inlined_call_operand.vmem [shape: f32[8,128], index: 7, kind: output, shape index: {}]  }
   0x1   :  { %v498_v0 = vld [vmem:[%s677_s1 + $0x38] sm:$0xff]  ;;  %v497_v2 = vld [vmem:[%s677_s1 + $0x30] sm:$0xff]  ;;  %v496_v5 = vld [vmem:[%s677_s1 + $0x28] sm:$0xff] }
   0x2   :  { %v506_v1 = vld [vmem:[%s677_s1 + $0x78] sm:$0xff]  ;;  %166 = vmatpush.bf16.msra.mxu0 %v498_v0  ;;  %v505_v3 = vld [vmem:[%s677_s1 + $0x70] sm:$0xff]  ;;  %v504_v6 = vld [vmem:[%s677_s1 + $0x68] sm:$0xff] }
   0x3   :  { %179 = vmatpush.bf16.msra.mxu1 %v506_v1  ;;  %v514_v4 = vld [vmem:[%s678_s3 + $0x38] sm:$0xff]  ;;  %v513_v7 = vld [vmem:[%s678_s3 + $0x30] sm:$0xff]  ;;  %v495_v8 = vld [vmem:[%s677_s1 + $0x20] sm:$0xff] }
   0x4   :  { %262 = vmatpush.bf16.msra.mxu2 %v514_v4  ;;  %v503_v9 = vld [vmem:[%s677_s1 + $0x60] sm:$0xff]  ;;  %v512_v10 = vld [vmem:[%s678_s3 + $0x28] sm:$0xff]  ;;  %v494_v11 = vld [vmem:[%s677_s1 + $0x18] sm:$0xff] }
   0x5   :  { %v502_v12 = vld [vmem:[%s677_s1 + $0x58] sm:$0xff]  ;;  %v511_v13 = vld [vmem:[%s678_s3 + $0x20] sm:$0xff]  ;;  %v493_v14 = vld [vmem:[%s677_s1 + $0x10] sm:$0xff] }
   0x6   :  { %167 = vmatpush.bf16.msra.mxu0 %v497_v2  ;;  %v501_v15 = vld [vmem:[%s677_s1 + $0x50] sm:$0xff]  ;;  %v510_v16 = vld [vmem:[%s678_s3 + $0x18] sm:$0xff]  ;;  %v492_v17 = vld [vmem:[%s677_s1 + $0x8] sm:$0xff] }
   0x7   :  { %180 = vmatpush.bf16.msra.mxu1 %v505_v3  ;;  %v500_v18 = vld [vmem:[%s677_s1 + $0x48] sm:$0xff]  ;;  %v26_v19 = vld [vmem:[%s680_s0] sm:$0xff]  ;;  %v509_v20 = vld [vmem:[%s678_s3 + $0x10] sm:$0xff] }
   0x8   :  { %263 = vmatpush.bf16.msra.mxu2 %v513_v7  ;;  %v64_v21 = vunpack.c.l.b16 %v26_v19  ;;  %v65_v22 = vunpack.c.h.b16 %v26_v19  ;;  %v491_v23 = vld [vmem:[%s677_s1] sm:$0xff]  ;;  %v508_v27 = vld [vmem:[%s678_s3 + $0x8] sm:$0xff]  ;;  %v522_v29 = vld [vmem:[%s682_s5 + $0x38] sm:$0xff] }
   0x9   :  { %v499_v24 = vld [vmem:[%s677_s1 + $0x40] sm:$0xff]  ;;  %345 = vmatpush.bf16.msra.mxu3 %v522_v29  ;;  %v521_v30 = vld [vmem:[%s682_s5 + $0x30] sm:$0xff]  ;;  %v520_v31 = vld [vmem:[%s682_s5 + $0x28] sm:$0xff] }
   0xa   :  { %168 = vmatpush.bf16.msra.mxu0 %v496_v5  ;;  %v66_v25 = vpack.c.b16 %v64_v21, %v64_v21  ;;  %v67_v26 = vpack.c.b16 %v65_v22, %v65_v22  ;;  %v507_v28 = vld [vmem:[%s678_s3] sm:$0xff]  ;;  %v518_v33 = vld [vmem:[%s682_s5 + $0x18] sm:$0xff]  ;;  %v517_v34 = vld [vmem:[%s682_s5 + $0x10] sm:$0xff] }
   0xb   :  { %181 = vmatpush.bf16.msra.mxu1 %v504_v6  ;;  %v519_v32 = vld [vmem:[%s682_s5 + $0x20] sm:$0xff]  ;;  %v516_v44 = vld [vmem:[%s682_s5 + $0x8] sm:$0xff] }
   0xc   :  { %264 = vmatpush.bf16.msra.mxu2 %v512_v10  ;;  %v523_v35 = vld [vmem:[%s679_s2] ss:$0 sm:$0xff] }
   0xd   :  { %346 = vmatpush.bf16.msra.mxu3 %v521_v30  ;;  %v515_v45 = vld [vmem:[%s682_s5] sm:$0xff] }
   0xe   :  { %169 = vmatpush.bf16.msra.mxu0 %v495_v8  ;;  %v524_v46 = vld [vmem:[%s681_s4] ss:$0 sm:$0xff] }
   0xf   :  { %182 = vmatpush.bf16.msra.mxu1 %v503_v9  ;;  %v525_v52 = vld [vmem:[%s683_s6] ss:$0 sm:$0xff] }
  0x10   :  { %265 = vmatpush.bf16.msra.mxu2 %v511_v13 }
  0x11   :  { %347 = vmatpush.bf16.msra.mxu3 %v520_v31 }
  0x12   :  { %170 = vmatpush.bf16.msra.mxu0 %v494_v11 }
  0x13   :  { %183 = vmatpush.bf16.msra.mxu1 %v502_v12 }
  0x14   :  { %266 = vmatpush.bf16.msra.mxu2 %v510_v16 }
  0x15   :  { %348 = vmatpush.bf16.msra.mxu3 %v519_v32 }
  0x16   :  { %171 = vmatpush.bf16.msra.mxu0 %v493_v14 }
  0x17   :  { %184 = vmatpush.bf16.msra.mxu1 %v501_v15 }
  0x18   :  { %267 = vmatpush.bf16.msra.mxu2 %v509_v20 }
  0x19   :  { %349 = vmatpush.bf16.msra.mxu3 %v518_v33 }
  0x1a   :  { %172 = vmatpush.bf16.msra.mxu0 %v492_v17 }
  0x1b   :  { %185 = vmatpush.bf16.msra.mxu1 %v500_v18 }
  0x1c   :  { %268 = vmatpush.bf16.msra.mxu2 %v508_v27 }
  0x1d   :  { %350 = vmatpush.bf16.msra.mxu3 %v517_v34 }
  0x1e   :  { %173 = vmatpush.bf16.msra.mxu0 %v491_v23 }
  0x1f   :  { %186 = vmatpush.bf16.msra.mxu1 %v499_v24 }
  0x20   :  { %269 = vmatpush.bf16.msra.mxu2 %v507_v28 }
  0x21   :  { %174 = vmatmul.bf16.vlgmr.msra.gmra.mxu0 %v66_v25  ;;  %351 = vmatpush.bf16.msra.mxu3 %v516_v44 }
  0x22   :  { %187 = vmatmul.bf16.vlgmr.msra.gmra.mxu1 %v67_v26 }
  0x25   :  { %352 = vmatpush.bf16.msra.mxu3 %v515_v45 }
  0x9e   :  { %v175_v36 = vpop.f32.mrf.mxu0 }
  0x9f   :  { %v188_v37 = vpop.f32.mrf.mxu1  ;;  %v176_v38 = vadd.f32 %v523_v35, %v175_v36 }
  0xa1   :  { %v189_v39 = vadd.f32 %v188_v37, %v176_v38 }
  0xa3   :  { %v192_v40 = vmax.f32 %v189_v39, 0.0 }
  0xa5   :  { %v193_v41 = vpack.c.bf16 %v192_v40, %v192_v40 }
  0xa6   :  { %v177_v42 = vpop.f32.mrf.mxu0 }
  0xa7   :  { %v190_v43 = vpop.f32.mrf.mxu1  ;;  %270 = vmatmul.bf16.vlgmr.msra.gmra.mxu2 %v193_v41 }
 0x12a   :  { %v271_v47 = vpop.f32.mrf.mxu2 }
 0x12b   :  { %v272_v48 = vadd.f32 %v524_v46, %v271_v47 }
 0x12d   :  { %v275_v49 = vmax.f32 %v272_v48, 0.0 }
 0x12f   :  { %v276_v50 = vpack.c.bf16 %v275_v49, %v275_v49 }
 0x131   :  { %353 = vmatmul.bf16.vlgmr.msra.gmra.mxu3 %v276_v50 }
 0x132   :  { %v273_v51 = vpop.f32.mrf.mxu2 }
 0x1b4   :  { %v354_v53 = vpop.f32.mrf.mxu3 }
 0x1b5   :  { %v355_v54 = vadd.f32 %v525_v52, %v354_v53 }
 0x1b7   :  { %358 = vst [vmem:[%s684_s7] sm:$0xff] %v355_v54 }
 0x1bc   :  { %v356_v55 = vpop.f32.mrf.mxu3 }

// kernel: cnn3d_forward.11
= control target key start
LH: loop header
LB: loop body
LE: loop exit
PB: predicated region body
PF: predicated region fallthrough
CT: control target
= control target key end

     0   :  { %s4353_s1 = inlined_call_operand.vmem [shape: bf16[3712,128], index: 1, kind: input, shape index: {}]   ;;  %s4354_s0 = inlined_call_operand.vmem [shape: bf16[8,3712], index: 0, kind: input, shape index: {}]   ;;  %s4355_s2 = inlined_call_operand.vmem [shape: f32[1,128], index: 2, kind: input, shape index: {}]   ;;  %s4356_s3 = inlined_call_operand.vmem [shape: f32[8,128], index: 3, kind: output, shape index: {0}]   ;;  %s4357_s4 = inlined_call_operand.vmem [shape: f32[1,1,128], index: 4, kind: output, shape index: {1}]   ;;  %s4358_s5 = inlined_call_operand.vmem [shape: f32[1,1,128], index: 5, kind: output, shape index: {2}]  }
   0x1   :  { %v3341_v0 = vld [vmem:[%s4353_s1 + $0x38] sm:$0xff]  ;;  %v3340_v4 = vld [vmem:[%s4353_s1 + $0x30] sm:$0xff]  ;;  %v3339_v8 = vld [vmem:[%s4353_s1 + $0x28] sm:$0xff] }
   0x2   :  { %v3357_v1 = vld [vmem:[%s4353_s1 + $0xb8] sm:$0xff]  ;;  %1994 = vmatpush.bf16.msra.mxu0 %v3341_v0  ;;  %v3356_v5 = vld [vmem:[%s4353_s1 + $0xb0] sm:$0xff]  ;;  %v3355_v9 = vld [vmem:[%s4353_s1 + $0xa8] sm:$0xff] }
   0x3   :  { %v3349_v2 = vld [vmem:[%s4353_s1 + $0x78] sm:$0xff]  ;;  %2020 = vmatpush.bf16.msra.mxu2 %v3357_v1  ;;  %v3348_v6 = vld [vmem:[%s4353_s1 + $0x70] sm:$0xff]  ;;  %v3347_v10 = vld [vmem:[%s4353_s1 + $0x68] sm:$0xff] }
   0x4   :  { %v3365_v3 = vld [vmem:[%s4353_s1 + $0xf8] sm:$0xff]  ;;  %2007 = vmatpush.bf16.msra.mxu1 %v3349_v2  ;;  %v3364_v7 = vld [vmem:[%s4353_s1 + $0xf0] sm:$0xff]  ;;  %v3363_v11 = vld [vmem:[%s4353_s1 + $0xe8] sm:$0xff] }
   0x5   :  { %2033 = vmatpush.bf16.msra.mxu3 %v3365_v3  ;;  %v3338_v12 = vld [vmem:[%s4353_s1 + $0x20] sm:$0xff]  ;;  %v3337_v16 = vld [vmem:[%s4353_s1 + $0x18] sm:$0xff]  ;;  %v3336_v20 = vld [vmem:[%s4353_s1 + $0x10] sm:$0xff] }
   0x6   :  { %1995 = vmatpush.bf16.msra.mxu0 %v3340_v4  ;;  %v3354_v13 = vld [vmem:[%s4353_s1 + $0xa0] sm:$0xff]  ;;  %v3353_v17 = vld [vmem:[%s4353_s1 + $0x98] sm:$0xff]  ;;  %v3352_v21 = vld [vmem:[%s4353_s1 + $0x90] sm:$0xff] }
   0x7   :  { %2021 = vmatpush.bf16.msra.mxu2 %v3356_v5  ;;  %v3346_v14 = vld [vmem:[%s4353_s1 + $0x60] sm:$0xff]  ;;  %v3345_v18 = vld [vmem:[%s4353_s1 + $0x58] sm:$0xff]  ;;  %v3344_v22 = vld [vmem:[%s4353_s1 + $0x50] sm:$0xff] }
   0x8   :  { %2008 = vmatpush.bf16.msra.mxu1 %v3348_v6  ;;  %v3362_v15 = vld [vmem:[%s4353_s1 + $0xe0] sm:$0xff]  ;;  %v3361_v19 = vld [vmem:[%s4353_s1 + $0xd8] sm:$0xff]  ;;  %v3360_v23 = vld [vmem:[%s4353_s1 + $0xd0] sm:$0xff] }
   0x9   :  { %2034 = vmatpush.bf16.msra.mxu3 %v3364_v7  ;;  %v3335_v24 = vld [vmem:[%s4353_s1 + $0x8] sm:$0xff]  ;;  %v17_v29 = vld [vmem:[%s4354_s0] sm:$0xff]  ;;  %v3373_v34 = vld [vmem:[%s4353_s1 + $0x138] sm:$0xff] }
   0xa   :  { %1996 = vmatpush.bf16.msra.mxu0 %v3339_v8  ;;  %v3351_v25 = vld [vmem:[%s4353_s1 + $0x88] sm:$0xff]  ;;  %v3334_v30 = vld [vmem:[%s4353_s1] sm:$0xff]  ;;  %v515_v33 = vunpack.c.l.b16 %v17_v29  ;;  %v3389_v35 = vld [vmem:[%s4353_s1 + $0x1b8] sm:$0xff]  ;;  %v516_v39 = vunpack.c.h.b16 %v17_v29 }
   0xb   :  { %2022 = vmatpush.bf16.msra.mxu2 %v3355_v9  ;;  %v3343_v26 = vld [vmem:[%s4353_s1 + $0x48] sm:$0xff]  ;;  %v3350_v31 = vld [vmem:[%s4353_s1 + $0x80] sm:$0xff]  ;;  %v3381_v40 = vld [vmem:[%s4353_s1 + $0x178] sm:$0xff] }
   0xc   :  { %2009 = vmatpush.bf16.msra.mxu1 %v3347_v10  ;;  %v3359_v27 = vld [vmem:[%s4353_s1 + $0xc8] sm:$0xff]  ;;  %v3342_v36 = vld [vmem:[%s4353_s1 + $0x40] sm:$0xff]  ;;  %v3397_v41 = vld [vmem:[%s4353_s1 + $0x1f8] sm:$0xff]  ;;  %v544_v43 = vpack.c.b16 %v515_v33, %v515_v33  ;;  %v545_v47 = vpack.c.b16 %v516_v39, %v516_v39 }
   0xd   :  { %2035 = vmatpush.bf16.msra.mxu3 %v3363_v11  ;;  %v18_v28 = vld [vmem:[%s4354_s0 + $0x8] sm:$0xff]  ;;  %v3358_v37 = vld [vmem:[%s4353_s1 + $0xc0] sm:$0xff]  ;;  %v3372_v44 = vld [vmem:[%s4353_s1 + $0x130] sm:$0xff] }
   0xe   :  { %1997 = vmatpush.bf16.msra.mxu0 %v3338_v12  ;;  %v517_v32 = vunpack.c.l.b16 %v18_v28  ;;  %v518_v38 = vunpack.c.h.b16 %v18_v28  ;;  %v3388_v45 = vld [vmem:[%s4353_s1 + $0x1b0] sm:$0xff]  ;;  %v3371_v50 = vld [vmem:[%s4353_s1 + $0x128] sm:$0xff]  ;;  %v3370_v54 = vld [vmem:[%s4353_s1 + $0x120] sm:$0xff] }
   0xf   :  { %2023 = vmatpush.bf16.msra.mxu2 %v3354_v13  ;;  %v3380_v48 = vld [vmem:[%s4353_s1 + $0x170] sm:$0xff]  ;;  %v3387_v51 = vld [vmem:[%s4353_s1 + $0x1a8] sm:$0xff]  ;;  %v3386_v55 = vld [vmem:[%s4353_s1 + $0x1a0] sm:$0xff] }
  0x10   :  { %2010 = vmatpush.bf16.msra.mxu1 %v3346_v14  ;;  %v546_v42 = vpack.c.b16 %v517_v32, %v517_v32  ;;  %v547_v46 = vpack.c.b16 %v518_v38, %v518_v38  ;;  %v3396_v49 = vld [vmem:[%s4353_s1 + $0x1f0] sm:$0xff]  ;;  %v3379_v52 = vld [vmem:[%s4353_s1 + $0x168] sm:$0xff]  ;;  %v3378_v56 = vld [vmem:[%s4353_s1 + $0x160] sm:$0xff] }
  0x11   :  { %2036 = vmatpush.bf16.msra.mxu3 %v3362_v15  ;;  %v3395_v53 = vld [vmem:[%s4353_s1 + $0x1e8] sm:$0xff]  ;;  %v3394_v57 = vld [vmem:[%s4353_s1 + $0x1e0] sm:$0xff]  ;;  %v3369_v58 = vld [vmem:[%s4353_s1 + $0x118] sm:$0xff] }
  0x12   :  { %1998 = vmatpush.bf16.msra.mxu0 %v3337_v16  ;;  %v3385_v59 = vld [vmem:[%s4353_s1 + $0x198] sm:$0xff]  ;;  %v3368_v62 = vld [vmem:[%s4353_s1 + $0x110] sm:$0xff]  ;;  %v3367_v2 = vld [vmem:[%s4353_s1 + $0x108] sm:$0xff] }
  0x13   :  { %2024 = vmatpush.bf16.msra.mxu2 %v3353_v17  ;;  %v3377_v60 = vld [vmem:[%s4353_s1 + $0x158] sm:$0xff]  ;;  %v3384_v63 = vld [vmem:[%s4353_s1 + $0x190] sm:$0xff]  ;;  %v3383_v3 = vld [vmem:[%s4353_s1 + $0x188] sm:$0xff] }
  0x14   :  { %2011 = vmatpush.bf16.msra.mxu1 %v3345_v18  ;;  %v3393_v61 = vld [vmem:[%s4353_s1 + $0x1d8] sm:$0xff]  ;;  %v3376_v0 = vld [vmem:[%s4353_s1 + $0x150] sm:$0xff]  ;;  %v3375_v6 = vld [vmem:[%s4353_s1 + $0x148] sm:$0xff] }
  0x15   :  { %2037 = vmatpush.bf16.msra.mxu3 %v3361_v19  ;;  %v3392_v1 = vld [vmem:[%s4353_s1 + $0x1d0] sm:$0xff]  ;;  %v20_v4 = vld [vmem:[%s4354_s0 + $0x18] sm:$0xff]  ;;  %v3391_v7 = vld [vmem:[%s4353_s1 + $0x1c8] sm:$0xff] }
  0x16   :  { %1999 = vmatpush.bf16.msra.mxu0 %v3336_v20  ;;  %v19_v5 = vld [vmem:[%s4354_s0 + $0x10] sm:$0xff]  ;;  %v3366_v8 = vld [vmem:[%s4353_s1 + $0x100] sm:$0xff]  ;;  %v521_v10 = vunpack.c.l.b16 %v20_v4  ;;  %v3405_v12 = vld [vmem:[%s4353_s1 + $0x238] sm:$0xff]  ;;  %v522_v16 = vunpack.c.h.b16 %v20_v4 }
  0x17   :  { %2025 = vmatpush.bf16.msra.mxu2 %v3352_v21  ;;  %v3382_v9 = vld [vmem:[%s4353_s1 + $0x180] sm:$0xff]  ;;  %v519_v11 = vunpack.c.l.b16 %v19_v5  ;;  %v3421_v13 = vld [vmem:[%s4353_s1 + $0x2b8] sm:$0xff]  ;;  %v520_v17 = vunpack.c.h.b16 %v19_v5  ;;  %v3403_v28 = vld [vmem:[%s4353_s1 + $0x228] sm:$0xff] }
  0x18   :  { %2012 = vmatpush.bf16.msra.mxu1 %v3344_v22  ;;  %v3374_v14 = vld [vmem:[%s4353_s1 + $0x140] sm:$0xff]  ;;  %v3413_v18 = vld [vmem:[%s4353_s1 + $0x278] sm:$0xff]  ;;  %v550_v20 = vpack.c.b16 %v521_v10, %v521_v10  ;;  %v3404_v22 = vld [vmem:[%s4353_s1 + $0x230] sm:$0xff] }
  0x19   :  { %2038 = vmatpush.bf16.msra.mxu3 %v3360_v23  ;;  %v3390_v15 = vld [vmem:[%s4353_s1 + $0x1c0] sm:$0xff]  ;;  %v3429_v19 = vld [vmem:[%s4353_s1 + $0x2f8] sm:$0xff]  ;;  %v548_v21 = vpack.c.b16 %v519_v11, %v519_v11  ;;  %v3420_v23 = vld [vmem:[%s4353_s1 + $0x2b0] sm:$0xff] }
  0x1a   :  { %2000 = vmatpush.bf16.msra.mxu0 %v3335_v24  ;;  %v551_v24 = vpack.c.b16 %v522_v16, %v522_v16  ;;  %v3419_v29 = vld [vmem:[%s4353_s1 + $0x2a8] sm:$0xff]  ;;  %v3402_v32 = vld [vmem:[%s4353_s1 + $0x220] sm:$0xff]  ;;  %v3409_v38 = vld [vmem:[%s4353_s1 + $0x258] sm:$0xff] }
  0x1b   :  { %2026 = vmatpush.bf16.msra.mxu2 %v3351_v25  ;;  %v549_v25 = vpack.c.b16 %v520_v17, %v520_v17  ;;  %v3418_v33 = vld [vmem:[%s4353_s1 + $0x2a0] sm:$0xff]  ;;  %v3425_v39 = vld [vmem:[%s4353_s1 + $0x2d8] sm:$0xff]  ;;  %v3444_v4 = vld [vmem:[%s4353_s1 + $0x370] sm:$0xff] }
  0x1c   :  { %2013 = vmatpush.bf16.msra.mxu1 %v3343_v26  ;;  %v3412_v26 = vld [vmem:[%s4353_s1 + $0x270] sm:$0xff]  ;;  %v3434_v10 = vld [vmem:[%s4353_s1 + $0x320] sm:$0xff]  ;;  %v3441_v16 = vld [vmem:[%s4353_s1 + $0x358] sm:$0xff] }
  0x1d   :  { %2039 = vmatpush.bf16.msra.mxu3 %v3359_v27  ;;  %v3428_v27 = vld [vmem:[%s4353_s1 + $0x2f0] sm:$0xff]  ;;  %v3450_v11 = vld [vmem:[%s4353_s1 + $0x3a0] sm:$0xff]  ;;  %v3457_v17 = vld [vmem:[%s4353_s1 + $0x3d8] sm:$0xff] }
  0x1e   :  { %2001 = vmatpush.bf16.msra.mxu0 %v3334_v30  ;;  %v3411_v30 = vld [vmem:[%s4353_s1 + $0x268] sm:$0xff]  ;;  %v3460_v5 = vld [vmem:[%s4353_s1 + $0x3f0] sm:$0xff] }
  0x1f   :  { %2027 = vmatpush.bf16.msra.mxu2 %v3350_v31  ;;  %v3427_v31 = vld [vmem:[%s4353_s1 + $0x2e8] sm:$0xff] }
  0x20   :  { %2014 = vmatpush.bf16.msra.mxu1 %v3342_v36  ;;  %v3401_v36 = vld [vmem:[%s4353_s1 + $0x218] sm:$0xff] }
  0x21   :  { %2040 = vmatpush.bf16.msra.mxu3 %v3358_v37  ;;  %2002 = vmatmul.bf16.vlgmr.msra.gmra.mxu0 %v544_v43  ;;  %v3417_v37 = vld [vmem:[%s4353_s1 + $0x298] sm:$0xff]  ;;  %v3424_v43 = vld [vmem:[%s4353_s1 + $0x2d0] sm:$0xff] }
  0x22   :  { %2046 = vmatpush.bf16.msrb.mxu0 %v3373_v34  ;;  %2028 = vmatmul.bf16.vlgmr.msra.gmra.mxu2 %v546_v42  ;;  %v3410_v34 = vld [vmem:[%s4353_s1 + $0x260] sm:$0xff]  ;;  %v3408_v42 = vld [vmem:[%s4353_s1 + $0x250] sm:$0xff] }
  0x23   :  { %2072 = vmatpush.bf16.msrb.mxu2 %v3389_v35  ;;  %2015 = vmatmul.bf16.vlgmr.msra.gmra.mxu1 %v545_v47  ;;  %v3426_v35 = vld [vmem:[%s4353_s1 + $0x2e0] sm:$0xff]  ;;  %v22_v47 = vld [vmem:[%s4354_s0 + $0x28] sm:$0xff] }
  0x24   :  { %2059 = vmatpush.bf16.msrb.mxu1 %v3381_v40  ;;  %2041 = vmatmul.bf16.vlgmr.msra.gmra.mxu3 %v547_v46  ;;  %v3400_v40 = vld [vmem:[%s4353_s1 + $0x210] sm:$0xff]  ;;  %v21_v46 = vld [vmem:[%s4354_s0 + $0x20] sm:$0xff] }
  0x25   :  { %2085 = vmatpush.bf16.msrb.mxu3 %v3397_v41  ;;  %v3416_v41 = vld [vmem:[%s4353_s1 + $0x290] sm:$0xff] }
  0x26   :  { %2047 = vmatpush.bf16.msrb.mxu0 %v3372_v44  ;;  %v3399_v44 = vld [vmem:[%s4353_s1 + $0x208] sm:$0xff] }
  0x27   :  { %2073 = vmatpush.bf16.msrb.mxu2 %v3388_v45  ;;  %v3415_v45 = vld [vmem:[%s4353_s1 + $0x288] sm:$0xff] }
  0x28   :  { %2060 = vmatpush.bf16.msrb.mxu1 %v3380_v48  ;;  %v3407_v48 = vld [vmem:[%s4353_s1 + $0x248] sm:$0xff] }
  0x29   :  { %2086 = vmatpush.bf16.msrb.mxu3 %v3396_v49  ;;  %v3423_v49 = vld [vmem:[%s4353_s1 + $0x2c8] sm:$0xff] }
  0x2a   :  { %2048 = vmatpush.bf16.msrb.mxu0 %v3371_v50  ;;  %v523_v50 = vunpack.c.l.b16 %v21_v46 }
  0x2b   :  { %2074 = vmatpush.bf16.msrb.mxu2 %v3387_v51  ;;  %v525_v51 = vunpack.c.l.b16 %v22_v47 }
  0x2c   :  { %2061 = vmatpush.bf16.msrb.mxu1 %v3379_v52  ;;  %v3398_v52 = vld [vmem:[%s4353_s1 + $0x200] sm:$0xff] }
  0x2d   :  { %2087 = vmatpush.bf16.msrb.mxu3 %v3395_v53  ;;  %v3414_v53 = vld [vmem:[%s4353_s1 + $0x280] sm:$0xff] }
  0x2e   :  { %2049 = vmatpush.bf16.msrb.mxu0 %v3370_v54  ;;  %v3437_v54 = vld [vmem:[%s4353_s1 + $0x338] sm:$0xff] }
  0x2f   :  { %2075 = vmatpush.bf16.msrb.mxu2 %v3386_v55  ;;  %v3453_v55 = vld [vmem:[%s4353_s1 + $0x3b8] sm:$0xff] }
  0x30   :  { %2062 = vmatpush.bf16.msrb.mxu1 %v3378_v56  ;;  %v524_v56 = vunpack.c.h.b16 %v21_v46  ;;  %v3476_v46 = vld [vmem:[%s4353_s1 + $0x470] sm:$0xff] }
  0x31   :  { %2088 = vmatpush.bf16.msrb.mxu3 %v3394_v57  ;;  %v526_v57 = vunpack.c.h.b16 %v22_v47  ;;  %v3492_v47 = vld [vmem:[%s4353_s1 + $0x4f0] sm:$0xff] }
  0x32   :  { %2050 = vmatpush.bf16.msrb.mxu0 %v3369_v58  ;;  %v3406_v58 = vld [vmem:[%s4353_s1 + $0x240] sm:$0xff] }
  0x33   :  { %2076 = vmatpush.bf16.msrb.mxu2 %v3385_v59  ;;  %v3422_v59 = vld [vmem:[%s4353_s1 + $0x2c0] sm:$0xff] }
  0x34   :  { %2063 = vmatpush.bf16.msrb.mxu1 %v3377_v60  ;;  %v552_v60 = vpack.c.b16 %v523_v50, %v523_v50  ;;  %v3475_v50 = vld [vmem:[%s4353_s1 + $0x468] sm:$0xff] }
  0x35   :  { %2089 = vmatpush.bf16.msrb.mxu3 %v3393_v61  ;;  %v554_v61 = vpack.c.b16 %v525_v51, %v525_v51  ;;  %v3491_v51 = vld [vmem:[%s4353_s1 + $0x4e8] sm:$0xff] }
  0x36   :  { %2051 = vmatpush.bf16.msrb.mxu0 %v3368_v62  ;;  %v3445_v62 = vld [vmem:[%s4353_s1 + $0x378] sm:$0xff] }
  0x37   :  { %2077 = vmatpush.bf16.msrb.mxu2 %v3384_v63  ;;  %v3461_v63 = vld [vmem:[%s4353_s1 + $0x3f8] sm:$0xff] }
  0x38   :  { %2064 = vmatpush.bf16.msrb.mxu1 %v3376_v0  ;;  %v553_v0 = vpack.c.b16 %v524_v56, %v524_v56  ;;  %v3465_v56 = vld [vmem:[%s4353_s1 + $0x418] sm:$0xff] }
  0x39   :  { %2090 = vmatpush.bf16.msrb.mxu3 %v3392_v1  ;;  %v555_v1 = vpack.c.b16 %v526_v57, %v526_v57  ;;  %v3481_v57 = vld [vmem:[%s4353_s1 + $0x498] sm:$0xff] }
  0x3a   :  { %2052 = vmatpush.bf16.msrb.mxu0 %v3367_v2  ;;  %v3436_v2 = vld [vmem:[%s4353_s1 + $0x330] sm:$0xff] }
  0x3b   :  { %2078 = vmatpush.bf16.msrb.mxu2 %v3383_v3  ;;  %v3452_v3 = vld [vmem:[%s4353_s1 + $0x3b0] sm:$0xff] }
  0x3c   :  { %2065 = vmatpush.bf16.msrb.mxu1 %v3375_v6  ;;  %v3435_v6 = vld [vmem:[%s4353_s1 + $0x328] sm:$0xff] }
  0x3d   :  { %2091 = vmatpush.bf16.msrb.mxu3 %v3391_v7  ;;  %v3451_v7 = vld [vmem:[%s4353_s1 + $0x3a8] sm:$0xff] }
  0x3e   :  { %2053 = vmatpush.bf16.msrb.mxu0 %v3366_v8  ;;  %v3443_v8 = vld [vmem:[%s4353_s1 + $0x368] sm:$0xff] }
  0x3f   :  { %2079 = vmatpush.bf16.msrb.mxu2 %v3382_v9  ;;  %v3459_v9 = vld [vmem:[%s4353_s1 + $0x3e8] sm:$0xff] }
  0x40   :  { %2066 = vmatpush.bf16.msrb.mxu1 %v3374_v14  ;;  %v3433_v14 = vld [vmem:[%s4353_s1 + $0x318] sm:$0xff] }
  0x41   :  { %2092 = vmatpush.bf16.msrb.mxu3 %v3390_v15  ;;  %2054 = vmatmul.bf16.vlgmr.msrb.gmra.mxu0 %v548_v21  ;;  %v3449_v15 = vld [vmem:[%s4353_s1 + $0x398] sm:$0xff]  ;;  %v3456_v21 = vld [vmem:[%s4353_s1 + $0x3d0] sm:$0xff] }
  0x42   :  { %2098 = vmatpush.bf16.msra.mxu0 %v3405_v12  ;;  %2080 = vmatmul.bf16.vlgmr.msrb.gmra.mxu2 %v550_v20  ;;  %v3442_v12 = vld [vmem:[%s4353_s1 + $0x360] sm:$0xff]  ;;  %v3440_v20 = vld [vmem:[%s4353_s1 + $0x350] sm:$0xff] }
  0x43   :  { %2124 = vmatpush.bf16.msra.mxu2 %v3421_v13  ;;  %2067 = vmatmul.bf16.vlgmr.msrb.gmra.mxu1 %v549_v25  ;;  %v3458_v13 = vld [vmem:[%s4353_s1 + $0x3e0] sm:$0xff]  ;;  %v24_v25 = vld [vmem:[%s4354_s0 + $0x38] sm:$0xff] }
  0x44   :  { %2111 = vmatpush.bf16.msra.mxu1 %v3413_v18  ;;  %2093 = vmatmul.bf16.vlgmr.msrb.gmra.mxu3 %v551_v24  ;;  %v3432_v18 = vld [vmem:[%s4353_s1 + $0x310] sm:$0xff] }
  0x45   :  { %2137 = vmatpush.bf16.msra.mxu3 %v3429_v19  ;;  %v3448_v19 = vld [vmem:[%s4353_s1 + $0x390] sm:$0xff] }
  0x46   :  { %2099 = vmatpush.bf16.msra.mxu0 %v3404_v22  ;;  %v3431_v22 = vld [vmem:[%s4353_s1 + $0x308] sm:$0xff]  ;;  %v23_v24 = vld [vmem:[%s4354_s0 + $0x30] sm:$0xff] }
  0x47   :  { %2125 = vmatpush.bf16.msra.mxu2 %v3420_v23  ;;  %v3447_v23 = vld [vmem:[%s4353_s1 + $0x388] sm:$0xff] }
  0x48   :  { %2112 = vmatpush.bf16.msra.mxu1 %v3412_v26  ;;  %v3439_v26 = vld [vmem:[%s4353_s1 + $0x348] sm:$0xff] }
  0x49   :  { %2138 = vmatpush.bf16.msra.mxu3 %v3428_v27  ;;  %v3455_v27 = vld [vmem:[%s4353_s1 + $0x3c8] sm:$0xff] }
  0x4a   :  { %2100 = vmatpush.bf16.msra.mxu0 %v3403_v28  ;;  %v527_v28 = vunpack.c.l.b16 %v23_v24 }
  0x4b   :  { %2126 = vmatpush.bf16.msra.mxu2 %v3419_v29  ;;  %v529_v29 = vunpack.c.l.b16 %v24_v25 }
  0x4c   :  { %2113 = vmatpush.bf16.msra.mxu1 %v3411_v30  ;;  %v3430_v30 = vld [vmem:[%s4353_s1 + $0x300] sm:$0xff] }
  0x4d   :  { %2139 = vmatpush.bf16.msra.mxu3 %v3427_v31  ;;  %v3446_v31 = vld [vmem:[%s4353_s1 + $0x380] sm:$0xff] }
  0x4e   :  { %2101 = vmatpush.bf16.msra.mxu0 %v3402_v32  ;;  %v3469_v32 = vld [vmem:[%s4353_s1 + $0x438] sm:$0xff] }
  0x4f   :  { %2127 = vmatpush.bf16.msra.mxu2 %v3418_v33  ;;  %v3485_v33 = vld [vmem:[%s4353_s1 + $0x4b8] sm:$0xff] }
  0x50   :  { %2114 = vmatpush.bf16.msra.mxu1 %v3410_v34  ;;  %v528_v34 = vunpack.c.h.b16 %v23_v24  ;;  %v3508_v24 = vld [vmem:[%s4353_s1 + $0x570] sm:$0xff] }
  0x51   :  { %2140 = vmatpush.bf16.msra.mxu3 %v3426_v35  ;;  %v530_v35 = vunpack.c.h.b16 %v24_v25  ;;  %v3524_v25 = vld [vmem:[%s4353_s1 + $0x5f0] sm:$0xff] }
  0x52   :  { %2102 = vmatpush.bf16.msra.mxu0 %v3401_v36  ;;  %v3438_v36 = vld [vmem:[%s4353_s1 + $0x340] sm:$0xff] }
  0x53   :  { %2128 = vmatpush.bf16.msra.mxu2 %v3417_v37  ;;  %v3454_v37 = vld [vmem:[%s4353_s1 + $0x3c0] sm:$0xff] }
  0x54   :  { %2115 = vmatpush.bf16.msra.mxu1 %v3409_v38  ;;  %v556_v38 = vpack.c.b16 %v527_v28, %v527_v28  ;;  %v3507_v28 = vld [vmem:[%s4353_s1 + $0x568] sm:$0xff] }
  0x55   :  { %2141 = vmatpush.bf16.msra.mxu3 %v3425_v39  ;;  %v558_v39 = vpack.c.b16 %v529_v29, %v529_v29  ;;  %v3523_v29 = vld [vmem:[%s4353_s1 + $0x5e8] sm:$0xff] }
  0x56   :  { %2103 = vmatpush.bf16.msra.mxu0 %v3400_v40  ;;  %v3477_v40 = vld [vmem:[%s4353_s1 + $0x478] sm:$0xff] }
  0x57   :  { %2129 = vmatpush.bf16.msra.mxu2 %v3416_v41  ;;  %v3493_v41 = vld [vmem:[%s4353_s1 + $0x4f8] sm:$0xff] }
  0x58   :  { %2116 = vmatpush.bf16.msra.mxu1 %v3408_v42  ;;  %v557_v42 = vpack.c.b16 %v528_v34, %v528_v34  ;;  %v3506_v34 = vld [vmem:[%s4353_s1 + $0x560] sm:$0xff] }
  0x59   :  { %2142 = vmatpush.bf16.msra.mxu3 %v3424_v43  ;;  %v559_v43 = vpack.c.b16 %v530_v35, %v530_v35  ;;  %v3522_v35 = vld [vmem:[%s4353_s1 + $0x5e0] sm:$0xff] }
  0x5a   :  { %2104 = vmatpush.bf16.msra.mxu0 %v3399_v44  ;;  %v3468_v44 = vld [vmem:[%s4353_s1 + $0x430] sm:$0xff] }
  0x5b   :  { %2130 = vmatpush.bf16.msra.mxu2 %v3415_v45  ;;  %v3484_v45 = vld [vmem:[%s4353_s1 + $0x4b0] sm:$0xff] }
  0x5c   :  { %2117 = vmatpush.bf16.msra.mxu1 %v3407_v48  ;;  %v3467_v48 = vld [vmem:[%s4353_s1 + $0x428] sm:$0xff] }
  0x5d   :  { %2143 = vmatpush.bf16.msra.mxu3 %v3423_v49  ;;  %v3483_v49 = vld [vmem:[%s4353_s1 + $0x4a8] sm:$0xff] }
  0x5e   :  { %2105 = vmatpush.bf16.msra.mxu0 %v3398_v52  ;;  %v3466_v52 = vld [vmem:[%s4353_s1 + $0x420] sm:$0xff] }
  0x5f   :  { %2131 = vmatpush.bf16.msra.mxu2 %v3414_v53  ;;  %v3482_v53 = vld [vmem:[%s4353_s1 + $0x4a0] sm:$0xff] }
  0x60   :  { %2118 = vmatpush.bf16.msra.mxu1 %v3406_v58  ;;  %v3473_v58 = vld [vmem:[%s4353_s1 + $0x458] sm:$0xff] }
  0x61   :  { %2144 = vmatpush.bf16.msra.mxu3 %v3422_v59  ;;  %2106 = vmatmul.bf16.vlgmr.msra.gmra.mxu0 %v552_v60  ;;  %v3489_v59 = vld [vmem:[%s4353_s1 + $0x4d8] sm:$0xff]  ;;  %v3464_v60 = vld [vmem:[%s4353_s1 + $0x410] sm:$0xff] }
  0x62   :  { %2150 = vmatpush.bf16.msrb.mxu0 %v3437_v54  ;;  %2132 = vmatmul.bf16.vlgmr.msra.gmra.mxu2 %v554_v61  ;;  %v3474_v54 = vld [vmem:[%s4353_s1 + $0x460] sm:$0xff]  ;;  %v3480_v61 = vld [vmem:[%s4353_s1 + $0x490] sm:$0xff] }
  0x63   :  { %2176 = vmatpush.bf16.msrb.mxu2 %v3453_v55  ;;  %2119 = vmatmul.bf16.vlgmr.msra.gmra.mxu1 %v553_v0  ;;  %v3490_v55 = vld [vmem:[%s4353_s1 + $0x4e0] sm:$0xff]  ;;  %v3463_v0 = vld [vmem:[%s4353_s1 + $0x408] sm:$0xff] }
  0x64   :  { %2163 = vmatpush.bf16.msrb.mxu1 %v3445_v62  ;;  %2145 = vmatmul.bf16.vlgmr.msra.gmra.mxu3 %v555_v1  ;;  %v3472_v62 = vld [vmem:[%s4353_s1 + $0x450] sm:$0xff]  ;;  %v3479_v1 = vld [vmem:[%s4353_s1 + $0x488] sm:$0xff] }
  0x65   :  { %2189 = vmatpush.bf16.msrb.mxu3 %v3461_v63  ;;  %v3488_v63 = vld [vmem:[%s4353_s1 + $0x4d0] sm:$0xff] }
  0x66   :  { %2151 = vmatpush.bf16.msrb.mxu0 %v3436_v2  ;;  %v25_v2 = vld [vmem:[%s4354_s0 + $0x40] sm:$0xff] }
  0x67   :  { %2177 = vmatpush.bf16.msrb.mxu2 %v3452_v3  ;;  %v26_v3 = vld [vmem:[%s4354_s0 + $0x48] sm:$0xff] }
  0x68   :  { %2164 = vmatpush.bf16.msrb.mxu1 %v3444_v4  ;;  %v3471_v4 = vld [vmem:[%s4353_s1 + $0x448] sm:$0xff] }
  0x69   :  { %2190 = vmatpush.bf16.msrb.mxu3 %v3460_v5  ;;  %v3487_v5 = vld [vmem:[%s4353_s1 + $0x4c8] sm:$0xff] }
  0x6a   :  { %2152 = vmatpush.bf16.msrb.mxu0 %v3435_v6  ;;  %v531_v6 = vunpack.c.l.b16 %v25_v2 }
  0x6b   :  { %2178 = vmatpush.bf16.msrb.mxu2 %v3451_v7  ;;  %v533_v7 = vunpack.c.l.b16 %v26_v3 }
  0x6c   :  { %2165 = vmatpush.bf16.msrb.mxu1 %v3443_v8  ;;  %v3462_v8 = vld [vmem:[%s4353_s1 + $0x400] sm:$0xff] }
  0x6d   :  { %2191 = vmatpush.bf16.msrb.mxu3 %v3459_v9  ;;  %v3478_v9 = vld [vmem:[%s4353_s1 + $0x480] sm:$0xff] }
  0x6e   :  { %2153 = vmatpush.bf16.msrb.mxu0 %v3434_v10  ;;  %v3501_v10 = vld [vmem:[%s4353_s1 + $0x538] sm:$0xff] }
  0x6f   :  { %2179 = vmatpush.bf16.msrb.mxu2 %v3450_v11  ;;  %v3517_v11 = vld [vmem:[%s4353_s1 + $0x5b8] sm:$0xff] }
  0x70   :  { %2166 = vmatpush.bf16.msrb.mxu1 %v3442_v12  ;;  %v532_v12 = vunpack.c.h.b16 %v25_v2 }
  0x71   :  { %2192 = vmatpush.bf16.msrb.mxu3 %v3458_v13  ;;  %v534_v13 = vunpack.c.h.b16 %v26_v3 }
  0x72   :  { %2154 = vmatpush.bf16.msrb.mxu0 %v3433_v14  ;;  %v3470_v14 = vld [vmem:[%s4353_s1 + $0x440] sm:$0xff] }
  0x73   :  { %2180 = vmatpush.bf16.msrb.mxu2 %v3449_v15  ;;  %v3486_v15 = vld [vmem:[%s4353_s1 + $0x4c0] sm:$0xff] }
  0x74   :  { %2167 = vmatpush.bf16.msrb.mxu1 %v3441_v16  ;;  %v560_v16 = vpack.c.b16 %v531_v6, %v531_v6  ;;  %v3518_v6 = vld [vmem:[%s4353_s1 + $0x5c0] sm:$0xff] }
  0x75   :  { %2193 = vmatpush.bf16.msrb.mxu3 %v3457_v17  ;;  %v562_v17 = vpack.c.b16 %v533_v7, %v533_v7 }
  0x76   :  { %2155 = vmatpush.bf16.msrb.mxu0 %v3432_v18  ;;  %v3509_v18 = vld [vmem:[%s4353_s1 + $0x578] sm:$0xff] }
  0x77   :  { %2181 = vmatpush.bf16.msrb.mxu2 %v3448_v19  ;;  %v3525_v19 = vld [vmem:[%s4353_s1 + $0x5f8] sm:$0xff] }
  0x78   :  { %2168 = vmatpush.bf16.msrb.mxu1 %v3440_v20  ;;  %v561_v20 = vpack.c.b16 %v532_v12, %v532_v12 }
  0x79   :  { %2194 = vmatpush.bf16.msrb.mxu3 %v3456_v21  ;;  %v563_v21 = vpack.c.b16 %v534_v13, %v534_v13  ;;  %v3532_v13 = vld [vmem:[%s4353_s1 + $0x630] sm:$0xff] }
  0x7a   :  { %2156 = vmatpush.bf16.msrb.mxu0 %v3431_v22  ;;  %v3500_v22 = vld [vmem:[%s4353_s1 + $0x530] sm:$0xff] }
  0x7b   :  { %2182 = vmatpush.bf16.msrb.mxu2 %v3447_v23  ;;  %v3516_v23 = vld [vmem:[%s4353_s1 + $0x5b0] sm:$0xff] }
  0x7c   :  { %2169 = vmatpush.bf16.msrb.mxu1 %v3439_v26  ;;  %v3499_v26 = vld [vmem:[%s4353_s1 + $0x528] sm:$0xff] }
  0x7d   :  { %2195 = vmatpush.bf16.msrb.mxu3 %v3455_v27  ;;  %v3515_v27 = vld [vmem:[%s4353_s1 + $0x5a8] sm:$0xff] }
  0x7e   :  { %2157 = vmatpush.bf16.msrb.mxu0 %v3430_v30  ;;  %v3566_v30 = vld [vmem:[%s4355_s2] ss:$0 sm:$0xff] }
  0x7f   :  { %2183 = vmatpush.bf16.msrb.mxu2 %v3446_v31  ;;  %v3498_v31 = vld [vmem:[%s4353_s1 + $0x520] sm:$0xff] }
  0x80   :  { %2170 = vmatpush.bf16.msrb.mxu1 %v3438_v36 }
  0x81   :  { %2196 = vmatpush.bf16.msrb.mxu3 %v3454_v37  ;;  %2158 = vmatmul.bf16.vlgmr.msrb.gmra.mxu0 %v556_v38  ;;  %v3497_v38 = vld [vmem:[%s4353_s1 + $0x518] sm:$0xff] }
  0x82   :  { %2202 = vmatpush.bf16.msra.mxu0 %v3469_v32  ;;  %2184 = vmatmul.bf16.vlgmr.msrb.gmra.mxu2 %v558_v39  ;;  %v3514_v32 = vld [vmem:[%s4353_s1 + $0x5a0] sm:$0xff]  ;;  %v3513_v39 = vld [vmem:[%s4353_s1 + $0x598] sm:$0xff] }
  0x83   :  { %2228 = vmatpush.bf16.msra.mxu2 %v3485_v33  ;;  %2171 = vmatmul.bf16.vlgmr.msrb.gmra.mxu1 %v557_v42  ;;  %v3521_v42 = vld [vmem:[%s4353_s1 + $0x5d8] sm:$0xff] }
  0x84   :  { %2215 = vmatpush.bf16.msra.mxu1 %v3477_v40  ;;  %2197 = vmatmul.bf16.vlgmr.msrb.gmra.mxu3 %v559_v43 }
  0x85   :  { %2241 = vmatpush.bf16.msra.mxu3 %v3493_v41  ;;  %v3505_v41 = vld [vmem:[%s4353_s1 + $0x558] sm:$0xff] }
  0x86   :  { %2203 = vmatpush.bf16.msra.mxu0 %v3468_v44  ;;  %v3496_v44 = vld [vmem:[%s4353_s1 + $0x510] sm:$0xff] }
  0x87   :  { %2229 = vmatpush.bf16.msra.mxu2 %v3484_v45  ;;  %v3512_v45 = vld [vmem:[%s4353_s1 + $0x590] sm:$0xff] }
  0x88   :  { %2216 = vmatpush.bf16.msra.mxu1 %v3476_v46 }
  0x89   :  { %2242 = vmatpush.bf16.msra.mxu3 %v3492_v47 }
  0x8a   :  { %2204 = vmatpush.bf16.msra.mxu0 %v3467_v48 }
  0x8b   :  { %2230 = vmatpush.bf16.msra.mxu2 %v3483_v49  ;;  %v3504_v49 = vld [vmem:[%s4353_s1 + $0x550] sm:$0xff] }
  0x8c   :  { %2217 = vmatpush.bf16.msra.mxu1 %v3475_v50  ;;  %v3520_v50 = vld [vmem:[%s4353_s1 + $0x5d0] sm:$0xff] }
  0x8d   :  { %2243 = vmatpush.bf16.msra.mxu3 %v3491_v51 }
  0x8e   :  { %2205 = vmatpush.bf16.msra.mxu0 %v3466_v52  ;;  %v3495_v52 = vld [vmem:[%s4353_s1 + $0x508] sm:$0xff] }
  0x8f   :  { %2231 = vmatpush.bf16.msra.mxu2 %v3482_v53 }
  0x90   :  { %2218 = vmatpush.bf16.msra.mxu1 %v3474_v54  ;;  %v3511_v54 = vld [vmem:[%s4353_s1 + $0x588] sm:$0xff] }
  0x91   :  { %2244 = vmatpush.bf16.msra.mxu3 %v3490_v55  ;;  %v27_v55 = vld [vmem:[%s4354_s0 + $0x50] sm:$0xff] }
  0x92   :  { %2206 = vmatpush.bf16.msra.mxu0 %v3465_v56  ;;  %v28_v56 = vld [vmem:[%s4354_s0 + $0x58] sm:$0xff]  ;;  %v536_v2 = vunpack.c.h.b16 %v27_v55 }
  0x93   :  { %2232 = vmatpush.bf16.msra.mxu2 %v3481_v57  ;;  %v3503_v57 = vld [vmem:[%s4353_s1 + $0x548] sm:$0xff]  ;;  %v538_v3 = vunpack.c.h.b16 %v28_v56 }
  0x94   :  { %2219 = vmatpush.bf16.msra.mxu1 %v3473_v58  ;;  %v3519_v58 = vld [vmem:[%s4353_s1 + $0x5c8] sm:$0xff] }
  0x95   :  { %2245 = vmatpush.bf16.msra.mxu3 %v3489_v59  ;;  %v535_v59 = vunpack.c.l.b16 %v27_v55  ;;  %v567_v12 = vpack.c.b16 %v538_v3, %v538_v3  ;;  %v3565_v55 = vld [vmem:[%s4353_s1 + $0x738] sm:$0xff] }
  0x96   :  { %2207 = vmatpush.bf16.msra.mxu0 %v3464_v60  ;;  %v537_v60 = vunpack.c.l.b16 %v28_v56 }
  0x97   :  { %2233 = vmatpush.bf16.msra.mxu2 %v3480_v61  ;;  %v564_v7 = vpack.c.b16 %v535_v59, %v535_v59  ;;  %v3550_v59 = vld [vmem:[%s4353_s1 + $0x6c0] sm:$0xff] }
  0x98   :  { %2220 = vmatpush.bf16.msra.mxu1 %v3472_v62  ;;  %v3494_v62 = vld [vmem:[%s4353_s1 + $0x500] sm:$0xff] }
  0x99   :  { %2246 = vmatpush.bf16.msra.mxu3 %v3488_v63  ;;  %v3510_v63 = vld [vmem:[%s4353_s1 + $0x580] sm:$0xff] }
  0x9a   :  { %2208 = vmatpush.bf16.msra.mxu0 %v3463_v0  ;;  %v3533_v0 = vld [vmem:[%s4353_s1 + $0x638] sm:$0xff] }
  0x9b   :  { %2234 = vmatpush.bf16.msra.mxu2 %v3479_v1  ;;  %v3549_v1 = vld [vmem:[%s4353_s1 + $0x6b8] sm:$0xff] }
  0x9c   :  { %2221 = vmatpush.bf16.msra.mxu1 %v3471_v4 }
  0x9d   :  { %2247 = vmatpush.bf16.msra.mxu3 %v3487_v5  ;;  %v3502_v5 = vld [vmem:[%s4353_s1 + $0x540] sm:$0xff] }
  0x9e   :  { %2209 = vmatpush.bf16.msra.mxu0 %v3462_v8  ;;  %v2003_v33 = vpop.f32.mrf.mxu0  ;;  %v566_v8 = vpack.c.b16 %v537_v60, %v537_v60 }
  0x9f   :  { %2235 = vmatpush.bf16.msra.mxu2 %v3478_v9  ;;  %v2004_v36 = vadd.f32 %v3566_v30, %v2003_v33  ;;  %v3541_v9 = vld [vmem:[%s4353_s1 + $0x678] sm:$0xff] }
  0xa0   :  { %2222 = vmatpush.bf16.msra.mxu1 %v3470_v14  ;;  %v2016_v37 = vpop.f32.mrf.mxu1  ;;  %v3548_v14 = vld [vmem:[%s4353_s1 + $0x6b0] sm:$0xff]  ;;  %v3545_v30 = vld [vmem:[%s4353_s1 + $0x698] sm:$0xff] }
  0xa1   :  { %2248 = vmatpush.bf16.msra.mxu3 %v3486_v15  ;;  %2210 = vmatmul.bf16.vlgmr.msra.gmra.mxu0 %v560_v16  ;;  %v2017_v40 = vadd.f32 %v2016_v37, %v2004_v36  ;;  %v3540_v15 = vld [vmem:[%s4353_s1 + $0x670] sm:$0xff] }
  0xa2   :  { %2254 = vmatpush.bf16.msrb.mxu0 %v3501_v10  ;;  %2236 = vmatmul.bf16.vlgmr.msra.gmra.mxu2 %v562_v17  ;;  %v3557_v10 = vld [vmem:[%s4353_s1 + $0x6f8] sm:$0xff]  ;;  %v3556_v16 = vld [vmem:[%s4353_s1 + $0x6f0] sm:$0xff]  ;;  %v3531_v17 = vld [vmem:[%s4353_s1 + $0x628] sm:$0xff] }
  0xa3   :  { %2280 = vmatpush.bf16.msrb.mxu2 %v3517_v11  ;;  %2223 = vmatmul.bf16.vlgmr.msra.gmra.mxu1 %v561_v20  ;;  %v565_v11 = vpack.c.b16 %v536_v2, %v536_v2  ;;  %v3555_v20 = vld [vmem:[%s4353_s1 + $0x6e8] sm:$0xff]  ;;  %v3544_v36 = vld [vmem:[%s4353_s1 + $0x690] sm:$0xff] }
  0xa4   :  { %2267 = vmatpush.bf16.msrb.mxu1 %v3509_v18  ;;  %2249 = vmatmul.bf16.vlgmr.msra.gmra.mxu3 %v563_v21  ;;  %v3547_v18 = vld [vmem:[%s4353_s1 + $0x6a8] sm:$0xff]  ;;  %v3530_v21 = vld [vmem:[%s4353_s1 + $0x620] sm:$0xff] }
  0xa5   :  { %2293 = vmatpush.bf16.msrb.mxu3 %v3525_v19  ;;  %v2029_v43 = vpop.f32.mrf.mxu2  ;;  %v3539_v19 = vld [vmem:[%s4353_s1 + $0x668] sm:$0xff] }
  0xa6   :  { %2255 = vmatpush.bf16.msrb.mxu0 %v3500_v22  ;;  %v2030_v46 = vadd.f32 %v2029_v43, %v2017_v40  ;;  %v2005_v48 = vpop.f32.mrf.mxu0  ;;  %v3546_v22 = vld [vmem:[%s4353_s1 + $0x6a0] sm:$0xff]  ;;  %v3536_v40 = vld [vmem:[%s4353_s1 + $0x650] sm:$0xff]  ;;  %v3527_v43 = vld [vmem:[%s4353_s1 + $0x608] sm:$0xff] }
  0xa7   :  { %2281 = vmatpush.bf16.msrb.mxu2 %v3516_v23  ;;  %v2042_v47 = vpop.f32.mrf.mxu3  ;;  %v3551_v48 = vld [vmem:[%s4353_s1 + $0x6c8] sm:$0xff] }
  0xa8   :  { %2268 = vmatpush.bf16.msrb.mxu1 %v3508_v24  ;;  %v4182_v51 = vadd.f32 %v2042_v47, %v2030_v46  ;;  %v2018_v53 = vpop.f32.mrf.mxu1  ;;  %v30_v46 = vld [vmem:[%s4354_s0 + $0x68] sm:$0xff] }
  0xa9   :  { %2294 = vmatpush.bf16.msrb.mxu3 %v3524_v25  ;;  %v3538_v25 = vld [vmem:[%s4353_s1 + $0x660] sm:$0xff]  ;;  %v3535_v47 = vld [vmem:[%s4353_s1 + $0x648] sm:$0xff] }
  0xaa   :  { %2256 = vmatpush.bf16.msrb.mxu0 %v3499_v26  ;;  %v3554_v26 = vld [vmem:[%s4353_s1 + $0x6e0] sm:$0xff] }
  0xab   :  { %2282 = vmatpush.bf16.msrb.mxu2 %v3515_v27  ;;  %v3542_v53 = vld [vmem:[%s4353_s1 + $0x680] sm:$0xff] }
  0xac   :  { %2269 = vmatpush.bf16.msrb.mxu1 %v3507_v28 }
  0xad   :  { %2295 = vmatpush.bf16.msrb.mxu3 %v3523_v29  ;;  %v2031_v61 = vpop.f32.mrf.mxu2  ;;  %v3529_v29 = vld [vmem:[%s4353_s1 + $0x618] sm:$0xff] }
  0xae   :  { %2257 = vmatpush.bf16.msrb.mxu0 %v3498_v31  ;;  %v3537_v31 = vld [vmem:[%s4353_s1 + $0x658] sm:$0xff] }
  0xaf   :  { %2283 = vmatpush.bf16.msrb.mxu2 %v3514_v32  ;;  %v2044_v4 = vpop.f32.mrf.mxu3  ;;  %v3553_v32 = vld [vmem:[%s4353_s1 + $0x6d8] sm:$0xff] }
  0xb0   :  { %2270 = vmatpush.bf16.msrb.mxu1 %v3506_v34  ;;  %v3562_v4 = vld [vmem:[%s4353_s1 + $0x720] sm:$0xff] }
  0xb1   :  { %2296 = vmatpush.bf16.msrb.mxu3 %v3522_v35  ;;  %v3528_v35 = vld [vmem:[%s4353_s1 + $0x610] sm:$0xff] }
  0xb2   :  { %2258 = vmatpush.bf16.msrb.mxu0 %v3497_v38 }
  0xb3   :  { %2284 = vmatpush.bf16.msrb.mxu2 %v3513_v39 }
  0xb4   :  { %2271 = vmatpush.bf16.msrb.mxu1 %v3505_v41  ;;  %v3552_v41 = vld [vmem:[%s4353_s1 + $0x6d0] sm:$0xff] }
  0xb5   :  { %2297 = vmatpush.bf16.msrb.mxu3 %v3521_v42 }
  0xb6   :  { %2259 = vmatpush.bf16.msrb.mxu0 %v3496_v44  ;;  %v3543_v44 = vld [vmem:[%s4353_s1 + $0x688] sm:$0xff] }
  0xb7   :  { %2285 = vmatpush.bf16.msrb.mxu2 %v3512_v45  ;;  %v29_v45 = vld [vmem:[%s4354_s0 + $0x60] sm:$0xff] }
  0xb8   :  { %2272 = vmatpush.bf16.msrb.mxu1 %v3504_v49  ;;  %v540_v56 = vunpack.c.h.b16 %v29_v45 }
  0xb9   :  { %2298 = vmatpush.bf16.msrb.mxu3 %v3520_v50  ;;  %v539_v50 = vunpack.c.l.b16 %v29_v45 }
  0xba   :  { %2260 = vmatpush.bf16.msrb.mxu0 %v3495_v52  ;;  %v3526_v52 = vld [vmem:[%s4353_s1 + $0x600] sm:$0xff] }
  0xbb   :  { %2286 = vmatpush.bf16.msrb.mxu2 %v3511_v54  ;;  %v568_v60 = vpack.c.b16 %v539_v50, %v539_v50 }
  0xbc   :  { %2273 = vmatpush.bf16.msrb.mxu1 %v3503_v57  ;;  %v542_v57 = vunpack.c.h.b16 %v30_v46 }
  0xbd   :  { %2299 = vmatpush.bf16.msrb.mxu3 %v3519_v58  ;;  %v3534_v58 = vld [vmem:[%s4353_s1 + $0x640] sm:$0xff] }
  0xbe   :  { %2261 = vmatpush.bf16.msrb.mxu0 %v3494_v62  ;;  %v2055_v23 = vpop.f32.mrf.mxu0  ;;  %v569_v62 = vpack.c.b16 %v540_v56, %v540_v56 }
  0xbf   :  { %2287 = vmatpush.bf16.msrb.mxu2 %v3510_v63  ;;  %v2056_v24 = vadd.f32 %v2055_v23, %v4182_v51  ;;  %v541_v51 = vunpack.c.l.b16 %v30_v46  ;;  %v571_v63 = vpack.c.b16 %v542_v57, %v542_v57 }
  0xc0   :  { %2274 = vmatpush.bf16.msrb.mxu1 %v3502_v5  ;;  %v2068_v27 = vpop.f32.mrf.mxu1 }
  0xc1   :  { %2300 = vmatpush.bf16.msrb.mxu3 %v3518_v6  ;;  %2262 = vmatmul.bf16.vlgmr.msrb.gmra.mxu0 %v564_v7  ;;  %v2069_v28 = vadd.f32 %v2068_v27, %v2056_v24  ;;  %v570_v61 = vpack.c.b16 %v541_v51, %v541_v51  ;;  %v3561_v7 = vld [vmem:[%s4353_s1 + $0x718] sm:$0xff] }
  0xc2   :  { %2306 = vmatpush.bf16.msra.mxu0 %v3533_v0  ;;  %2288 = vmatmul.bf16.vlgmr.msrb.gmra.mxu2 %v566_v8  ;;  %v3564_v0 = vld [vmem:[%s4353_s1 + $0x730] sm:$0xff] }
  0xc3   :  { %2332 = vmatpush.bf16.msra.mxu2 %v3549_v1  ;;  %2275 = vmatmul.bf16.vlgmr.msrb.gmra.mxu1 %v565_v11  ;;  %v3563_v1 = vld [vmem:[%s4353_s1 + $0x728] sm:$0xff] }
  0xc4   :  { %2319 = vmatpush.bf16.msra.mxu1 %v3541_v9  ;;  %2301 = vmatmul.bf16.vlgmr.msrb.gmra.mxu3 %v567_v12 }
  0xc5   :  { %2345 = vmatpush.bf16.msra.mxu3 %v3557_v10  ;;  %v2081_v33 = vpop.f32.mrf.mxu2 }
  0xc6   :  { %2307 = vmatpush.bf16.msra.mxu0 %v3532_v13  ;;  %v2082_v34 = vadd.f32 %v2081_v33, %v2069_v28  ;;  %v2057_v38 = vpop.f32.mrf.mxu0  ;;  %v3560_v13 = vld [vmem:[%s4353_s1 + $0x710] sm:$0xff] }
  0xc7   :  { %2333 = vmatpush.bf16.msra.mxu2 %v3548_v14  ;;  %v2094_v37 = vpop.f32.mrf.mxu3 }
  0xc8   :  { %2320 = vmatpush.bf16.msra.mxu1 %v3540_v15  ;;  %v2095_v39 = vadd.f32 %v2094_v37, %v2082_v34  ;;  %v2070_v42 = vpop.f32.mrf.mxu1  ;;  %v3559_v15 = vld [vmem:[%s4353_s1 + $0x708] sm:$0xff] }
  0xc9   :  { %2346 = vmatpush.bf16.msra.mxu3 %v3556_v16  ;;  %v31_v16 = vld [vmem:[%s4354_s0 + $0x70] sm:$0xf] }
  0xca   :  { %2308 = vmatpush.bf16.msra.mxu0 %v3531_v17 }
  0xcb   :  { %2334 = vmatpush.bf16.msra.mxu2 %v3547_v18 }
  0xcc   :  { %2321 = vmatpush.bf16.msra.mxu1 %v3539_v19  ;;  %v543_v19 = vunpack.c.l.b16 %v31_v16 }
  0xcd   :  { %2347 = vmatpush.bf16.msra.mxu3 %v3555_v20  ;;  %v2083_v49 = vpop.f32.mrf.mxu2  ;;  %v3558_v20 = vld [vmem:[%s4353_s1 + $0x700] sm:$0xff] }
  0xce   :  { %2309 = vmatpush.bf16.msra.mxu0 %v3530_v21  ;;  %v572_v21 = vpack.c.b16 %v543_v19, %v543_v19 }
  0xcf   :  { %2335 = vmatpush.bf16.msra.mxu2 %v3546_v22  ;;  %v2096_v54 = vpop.f32.mrf.mxu3 }
  0xd0   :  { %2322 = vmatpush.bf16.msra.mxu1 %v3538_v25 }
  0xd1   :  { %2348 = vmatpush.bf16.msra.mxu3 %v3554_v26 }
  0xd2   :  { %2310 = vmatpush.bf16.msra.mxu0 %v3529_v29 }
  0xd3   :  { %2336 = vmatpush.bf16.msra.mxu2 %v3545_v30 }
  0xd4   :  { %2323 = vmatpush.bf16.msra.mxu1 %v3537_v31 }
  0xd5   :  { %2349 = vmatpush.bf16.msra.mxu3 %v3553_v32 }
  0xd6   :  { %2311 = vmatpush.bf16.msra.mxu0 %v3528_v35 }
  0xd7   :  { %2337 = vmatpush.bf16.msra.mxu2 %v3544_v36 }
  0xd8   :  { %2324 = vmatpush.bf16.msra.mxu1 %v3536_v40 }
  0xd9   :  { %2350 = vmatpush.bf16.msra.mxu3 %v3552_v41 }
  0xda   :  { %2312 = vmatpush.bf16.msra.mxu0 %v3527_v43 }
  0xdb   :  { %2338 = vmatpush.bf16.msra.mxu2 %v3543_v44 }
  0xdc   :  { %2325 = vmatpush.bf16.msra.mxu1 %v3535_v47 }
  0xdd   :  { %2351 = vmatpush.bf16.msra.mxu3 %v3551_v48 }
  0xde   :  { %2313 = vmatpush.bf16.msra.mxu0 %v3526_v52  ;;  %v2107_v2 = vpop.f32.mrf.mxu0 }
  0xdf   :  { %2339 = vmatpush.bf16.msra.mxu2 %v3542_v53  ;;  %v2108_v3 = vadd.f32 %v2107_v2, %v2095_v39 }
  0xe0   :  { %2326 = vmatpush.bf16.msra.mxu1 %v3534_v58  ;;  %v2120_v5 = vpop.f32.mrf.mxu1 }
  0xe1   :  { %2352 = vmatpush.bf16.msra.mxu3 %v3550_v59  ;;  %2314 = vmatmul.bf16.vlgmr.msra.gmra.mxu0 %v568_v60  ;;  %v2121_v6 = vadd.f32 %v2120_v5, %v2108_v3 }
  0xe2   :  { %2358 = vmatpush.bf16.msrb.mxu0 %v3565_v55  ;;  %2340 = vmatmul.bf16.vlgmr.msra.gmra.mxu2 %v570_v61 }
  0xe3   :  { %2327 = vmatmul.bf16.vlgmr.msra.gmra.mxu1 %v569_v62 }
  0xe4   :  { %2353 = vmatmul.bf16.vlgmr.msra.gmra.mxu3 %v571_v63 }
  0xe5   :  { %v2133_v8 = vpop.f32.mrf.mxu2 }
  0xe6   :  { %2359 = vmatpush.bf16.msrb.mxu0 %v3564_v0  ;;  %v2134_v9 = vadd.f32 %v2133_v8, %v2121_v6  ;;  %v2109_v11 = vpop.f32.mrf.mxu0 }
  0xe7   :  { %v2146_v10 = vpop.f32.mrf.mxu3 }
  0xe8   :  { %v2147_v12 = vadd.f32 %v2146_v10, %v2134_v9  ;;  %v2122_v14 = vpop.f32.mrf.mxu1 }
  0xea   :  { %2360 = vmatpush.bf16.msrb.mxu0 %v3563_v1 }
  0xed   :  { %v2135_v17 = vpop.f32.mrf.mxu2 }
  0xee   :  { %2361 = vmatpush.bf16.msrb.mxu0 %v3562_v4 }
  0xef   :  { %v2148_v18 = vpop.f32.mrf.mxu3 }
  0xf2   :  { %2362 = vmatpush.bf16.msrb.mxu0 %v3561_v7 }
  0xf6   :  { %2363 = vmatpush.bf16.msrb.mxu0 %v3560_v13 }
  0xfa   :  { %2364 = vmatpush.bf16.msrb.mxu0 %v3559_v15 }
  0xfe   :  { %2365 = vmatpush.bf16.msrb.mxu0 %v3558_v20  ;;  %v2159_v22 = vpop.f32.mrf.mxu0 }
  0xff   :  { %v2160_v23 = vadd.f32 %v2159_v22, %v2147_v12 }
 0x100   :  { %v2172_v24 = vpop.f32.mrf.mxu1 }
 0x101   :  { %2366 = vmatmul.bf16.vlgmr.msrb.gmra.mxu0 %v572_v21  ;;  %v2173_v25 = vadd.f32 %v2172_v24, %v2160_v23 }
 0x105   :  { %v2185_v26 = vpop.f32.mrf.mxu2 }
 0x106   :  { %v2186_v27 = vadd.f32 %v2185_v26, %v2173_v25  ;;  %v2161_v29 = vpop.f32.mrf.mxu0 }
 0x107   :  { %v2198_v28 = vpop.f32.mrf.mxu3 }
 0x108   :  { %v2199_v30 = vadd.f32 %v2198_v28, %v2186_v27  ;;  %v2174_v31 = vpop.f32.mrf.mxu1 }
 0x10d   :  { %v2187_v32 = vpop.f32.mrf.mxu2 }
 0x10f   :  { %v2200_v33 = vpop.f32.mrf.mxu3 }
 0x11e   :  { %v2211_v34 = vpop.f32.mrf.mxu0 }
 0x11f   :  { %v2212_v35 = vadd.f32 %v2211_v34, %v2199_v30 }
 0x120   :  { %v2224_v36 = vpop.f32.mrf.mxu1 }
 0x121   :  { %v2225_v37 = vadd.f32 %v2224_v36, %v2212_v35 }
 0x125   :  { %v2237_v38 = vpop.f32.mrf.mxu2 }
 0x126   :  { %v2238_v39 = vadd.f32 %v2237_v38, %v2225_v37  ;;  %v2213_v41 = vpop.f32.mrf.mxu0 }
 0x127   :  { %v2250_v40 = vpop.f32.mrf.mxu3 }
 0x128   :  { %v2251_v42 = vadd.f32 %v2250_v40, %v2238_v39  ;;  %v2226_v43 = vpop.f32.mrf.mxu1 }
 0x12d   :  { %v2239_v44 = vpop.f32.mrf.mxu2 }
 0x12f   :  { %v2252_v45 = vpop.f32.mrf.mxu3 }
 0x13e   :  { %v2263_v46 = vpop.f32.mrf.mxu0 }
 0x13f   :  { %v2264_v57 = vadd.f32 %v2263_v46, %v2251_v42 }
 0x140   :  { %v2276_v47 = vpop.f32.mrf.mxu1 }
 0x141   :  { %v2277_v61 = vadd.f32 %v2276_v47, %v2264_v57 }
 0x145   :  { %v2289_v48 = vpop.f32.mrf.mxu2 }
 0x146   :  { %v2265_v50 = vpop.f32.mrf.mxu0  ;;  %v2290_v62 = vadd.f32 %v2289_v48, %v2277_v61 }
 0x147   :  { %v2302_v49 = vpop.f32.mrf.mxu3 }
 0x148   :  { %v2278_v51 = vpop.f32.mrf.mxu1  ;;  %v2303_v1 = vadd.f32 %v2302_v49, %v2290_v62 }
 0x14d   :  { %v2291_v52 = vpop.f32.mrf.mxu2 }
 0x14f   :  { %v2304_v53 = vpop.f32.mrf.mxu3 }
 0x15e   :  { %v2315_v54 = vpop.f32.mrf.mxu0 }
 0x15f   :  { %v2316_v2 = vadd.f32 %v2315_v54, %v2303_v1 }
 0x160   :  { %v2328_v55 = vpop.f32.mrf.mxu1 }
 0x161   :  { %v2329_v3 = vadd.f32 %v2328_v55, %v2316_v2 }
 0x165   :  { %v2341_v56 = vpop.f32.mrf.mxu2 }
 0x166   :  { %v2317_v59 = vpop.f32.mrf.mxu0  ;;  %v2342_v4 = vadd.f32 %v2341_v56, %v2329_v3 }
 0x167   :  { %v2354_v58 = vpop.f32.mrf.mxu3 }
 0x168   :  { %v2330_v60 = vpop.f32.mrf.mxu1  ;;  %v2355_v5 = vadd.f32 %v2354_v58, %v2342_v4 }
 0x16d   :  { %v2343_v63 = vpop.f32.mrf.mxu2 }
 0x16f   :  { %v2356_v0 = vpop.f32.mrf.mxu3 }
 0x17e   :  { %v2367_v6 = vpop.f32.mrf.mxu0 }
 0x17f   :  { %v2368_v7 = vadd.f32 %v2367_v6, %v2355_v5 }
 0x181   :  { %2371 = vst [vmem:[%s4356_s3] sm:$0xff] %v2368_v7  ;;  %v2379_v8 = vrot.slane %v2368_v7, 4  ;;  %v2386_v9 = vmul.f32 %v2368_v7, %v2368_v7 }
 0x183   :  { %v2380_v10 = vadd.f32 %v2379_v8, %v2368_v7  ;;  %v2387_v11 = vrot.slane %v2386_v9, 4 }
 0x185   :  { %v2381_v12 = vrot.slane %v2380_v10, 2  ;;  %v2388_v13 = vadd.f32 %v2387_v11, %v2386_v9 }
 0x186   :  { %v2369_v14 = vpop.f32.mrf.mxu0 }
 0x187   :  { %v2382_v15 = vadd.f32 %v2381_v12, %v2380_v10  ;;  %v2389_v16 = vrot.slane %v2388_v13, 2 }
 0x189   :  { %v2383_v17 = vrot.slane %v2382_v15, 1  ;;  %v2390_v18 = vadd.f32 %v2389_v16, %v2388_v13 }
 0x18b   :  { %v2384_v19 = vadd.f32 %v2383_v17, %v2382_v15  ;;  %v2391_v20 = vrot.slane %v2390_v18, 1 }
 0x18d   :  { %2385 = vst [vmem:[%s4357_s4] sm:$0x1] %v2384_v19  ;;  %v2392_v21 = vadd.f32 %v2391_v20, %v2390_v18 }
 0x18f   :  { %2393 = vst [vmem:[%s4358_s5] sm:$0x1] %v2392_v21 }

</bundles_post_ra>
